<compile_context>
chip_gen: v6e
topology: v6e:2x2x1
jax: 0.10.0
libtpu: 0.0.40
codegen_flags: <defaults>
</compile_context>

<pallas_src>
import jax
import jax.numpy as jnp
from jax.experimental import pallas as pl
from jax.experimental.pallas import tpu as pltpu

NUM_FILTERS = 100      # fixed by the module: Conv2d(1, 100, ...)
NF_PAD = 128           # lane-dense padded filter count
NC_PAD = 128           # lane-dense padded class count
KMAX = 5               # largest conv kernel height


def _round_up(x, m):
    return (x + m - 1) // m * m


# --------------------------------------------------------------------------
# Kernel body
# --------------------------------------------------------------------------
def _cnn_text_kernel(embeds_ref, wcomb_ref, bconv_ref, wfc_ref, bfc_ref,
                     mask_ref, out_ref):
    TB, Lp, E = embeds_ref.shape
    Lw = Lp - (KMAX - 1)                  # number of conv windows (multiple of 8)

    emb = embeds_ref[...]                 # (TB, Lp, E) bf16

    # KMAX-step unrolled shift-accumulate conv: avoids materializing the
    # (TB*Lw, 5E) im2col slab and its lane concat.  Each step is one
    # (TB*Lw, E) @ (E, 384) MXU matmul, accumulated in f32.
    # (Per-bank matmuls would shave the k->5 / 100->128 padding MACs; only
    #  worth it if profiling shows vmatmul is the saturated slot.)
    conv = None
    for i in range(KMAX):
        x_i = emb[:, i:i + Lw, :].reshape(TB * Lw, E)
        d = jnp.dot(x_i, wcomb_ref[i], preferred_element_type=jnp.float32)
        conv = d if conv is None else conv + d
    conv = conv.reshape(TB, Lw, 3 * NF_PAD)

    # Grid-invariant additive time-validity mask (0 / -1e30), precomputed on
    # the host: bank b (kernel k = b+3) only has valid outputs at t < L-k+1.
    # Mask and pre-max values stay f32 so the sentinel cannot overflow.
    conv = conv + mask_ref[...][None, :, :]

    # Max over time first; bias (+ReLU) after is valid ONLY because the bias
    # is time-invariant and ReLU is monotone.  Do not reorder if that changes.
    pooled = jnp.max(conv, axis=1)                        # (TB, 384) f32
    pooled = jnp.maximum(pooled + bconv_ref[...], 0.0)

    # TODO(synk): nn.Dropout(0.5) is identity in eval mode; training-mode
    # dropout (pltpu.prng_seed / prng_random_bits) intentionally omitted.
    logits = jnp.dot(pooled.astype(wfc_ref.dtype), wfc_ref[...],
                     preferred_element_type=jnp.float32) + bfc_ref[...]
    out_ref[...] = logits.astype(out_ref.dtype)


# --------------------------------------------------------------------------
# One-time parameter preparation (hoisted out of the per-call path)
# --------------------------------------------------------------------------
def prepare_cnn_text_params(word_embedding, w3, b3, w4, b4, w5, b5, wfc, bfc):
    """Pad/concat/cast all weights once.  Conv banks (stored (k, E, 100)) are
    zero-padded to (KMAX, E, 128) and concatenated to (KMAX, E, 384); padded
    filters / kernel rows / classes contribute exactly zero."""
    E = word_embedding.shape[1]
    num_classes = bfc.shape[-1]

    def pad_bank(w, k):                    # (k, E, 100) -> (KMAX, E, 128)
        return jnp.pad(w, ((0, KMAX - k), (0, 0), (0, NF_PAD - w.shape[-1])))

    wcomb = jnp.concatenate([pad_bank(w3, 3), pad_bank(w4, 4), pad_bank(w5, 5)],
                            axis=-1)                       # (KMAX, E, 384)
    bconv = jnp.concatenate(
        [jnp.pad(b, ((0, 0), (0, NF_PAD - b.shape[-1]))) for b in (b3, b4, b5)],
        axis=1)                                            # (1, 384)

    wfc_pad = jnp.zeros((3 * NF_PAD, NC_PAD), jnp.float32)
    for bank in range(3):
        wfc_pad = wfc_pad.at[bank * NF_PAD:bank * NF_PAD + NUM_FILTERS,
                             :num_classes].set(
            wfc[bank * NUM_FILTERS:(bank + 1) * NUM_FILTERS])
    bfc_pad = jnp.pad(bfc, ((0, 0), (0, NC_PAD - num_classes)))   # (1, 128)

    return dict(
        embedding=word_embedding.astype(jnp.bfloat16),   # bf16 table -> bf16 gather
        wcomb=wcomb.astype(jnp.bfloat16),
        bconv=bconv.astype(jnp.float32),
        wfc=wfc_pad.astype(jnp.bfloat16),
        bfc=bfc_pad.astype(jnp.float32),
        num_classes=int(num_classes),
        embed_dim=int(E),
    )


# --------------------------------------------------------------------------
# Tiling / VMEM derivation (per TPU generation)
# --------------------------------------------------------------------------
def _vmem_limit_bytes():
    # ~75% of physical VMEM: ~96-100 MiB on 128 MiB parts (v5e/v6e),
    # ~48 MiB on v7x's 64 MiB.  Fall back conservatively if the query fails.
    try:
        cap = int(pltpu.get_tpu_info().vmem_capacity_bytes)
    except Exception:
        cap = 64 * 1024 * 1024
    return int(min(cap * 3 // 4, 100 * 1024 * 1024))


def _pick_block_b(B, Lp, Lw, E, vmem_limit):
    # Resident weights (worst case: double-buffered consts if the
    # single-buffer request is rejected).
    weights = 2 * (KMAX * E * 3 * NF_PAD * 2 + 3 * NF_PAD * NC_PAD * 2
                   + Lw * 3 * NF_PAD * 4 + 3 * NF_PAD * 4 + NC_PAD * 4)
    per_row = (2 * Lp * E * 2              # double-buffered bf16 embeds block
               + 2 * Lw * 3 * NF_PAD * 4   # f32 conv accumulator + temporaries
               + Lw * E * 2                # shifted-slice scratch
               + 2 * NC_PAD * 4)           # double-buffered output block
    budget = max(vmem_limit - weights, per_row * 8)
    tb_cap = _round_up(B, 8)
    # Keep >= ~4 grid steps (>= 2 per TensorCore on v7x) once that still
    # leaves TB >= 128 rows (full MXU occupancy for the FC matmul, and
    # TB*Lw aligned to the 128/256-row MXU for the conv matmuls).
    if tb_cap >= 4 * 128:
        tb_cap = _round_up(tb_cap // 4, 8)
    return int(max(8, min(256, tb_cap, (budget // per_row) // 8 * 8)))


def _time_mask(L, Lw):
    t = jnp.arange(Lw, dtype=jnp.int32)[:, None]
    bank = jnp.arange(3 * NF_PAD, dtype=jnp.int32)[None, :] // NF_PAD
    limit = (L - 2) - bank                 # bank 0/1/2 <-> k = 3/4/5
    return jnp.where(t < limit, 0.0, -1e30).astype(jnp.float32)   # (Lw, 384)


# --------------------------------------------------------------------------
# pallas_call wrapper
# --------------------------------------------------------------------------
def _call_kernel(embeds, wcomb, bconv, wfc, bfc, mask, *, TB, B_pad, Lp, Lw, E,
                 vmem_limit, single_buffer_consts):
    if single_buffer_consts:
        # Grid-invariant blocks don't need double buffering; freeing it buys
        # TB headroom on v7x's 64 MiB VMEM.
        const_kw = dict(pipeline_mode=pl.Buffered(1))
    else:
        const_kw = {}

    def const(shape):
        return pl.BlockSpec(shape, lambda i: (0,) * len(shape), **const_kw)

    return pl.pallas_call(
        _cnn_text_kernel,
        out_shape=jax.ShapeDtypeStruct((B_pad, NC_PAD), jnp.float32),
        grid=(B_pad // TB,),
        in_specs=[
            pl.BlockSpec((TB, Lp, E), lambda i: (i, 0, 0)),
            const((KMAX, E, 3 * NF_PAD)),
            const((1, 3 * NF_PAD)),
            const((3 * NF_PAD, NC_PAD)),
            const((1, NC_PAD)),
            const((Lw, 3 * NF_PAD)),
        ],
        out_specs=pl.BlockSpec((TB, NC_PAD), lambda i: (i, 0)),
        compiler_params=pltpu.CompilerParams(
            dimension_semantics=("parallel",),
            vmem_limit_bytes=vmem_limit),
    )(embeds, wcomb, bconv, wfc, bfc, mask)


def cnn_text_forward(sentences, params, *, block_b=None):
    """sentences: (B, L) int32 token ids, L >= 5.  params from
    prepare_cnn_text_params().  Returns (B, num_classes) f32 logits."""
    B, L = sentences.shape
    E = params["embed_dim"]
    num_classes = params["num_classes"]
    assert L >= KMAX, "k=5 conv requires max_len >= 5"

    Lw = _round_up(L, 8)                  # sublane-aligned window count
    Lp = Lw + (KMAX - 1)

    vmem_limit = _vmem_limit_bytes()
    TB = block_b if block_b is not None else _pick_block_b(B, Lp, Lw, E, vmem_limit)
    B_pad = _round_up(B, TB)

    # Pad the TOKEN IDS (not the big embeds tensor) and gather straight from
    # the bf16 table -> the (B_pad, Lp, E) activation is written once, in bf16.
    # Padded positions only feed masked conv outputs / sliced-off batch rows.
    # TODO(synk): at production sizes, fuse the gather into the kernel via
    # PrefetchScalarGridSpec scalar-prefetched token ids + per-row DMA.
    sent = jnp.pad(sentences, ((0, B_pad - B), (0, Lp - L)))
    embeds = jnp.take(params["embedding"], sent, axis=0)   # (B_pad, Lp, E) bf16

    mask = _time_mask(L, Lw)

    args = (embeds, params["wcomb"], params["bconv"], params["wfc"],
            params["bfc"], mask)
    kw = dict(TB=TB, B_pad=B_pad, Lp=Lp, Lw=Lw, E=E, vmem_limit=vmem_limit)
    try:
        out = _call_kernel(*args, single_buffer_consts=True, **kw)
    except Exception:
        # TODO(synk): this JAX build rejected pl.Buffered(1); fall back to the
        # default double-buffered constant blocks (costs a little VMEM only).
        out = _call_kernel(*args, single_buffer_consts=False, **kw)

    return out[:B, :num_classes]


# --------------------------------------------------------------------------
# Init + pure-JAX reference + test
# --------------------------------------------------------------------------
def _init_params(key, vocab, embed_dim, num_classes):
    ks = jax.random.split(key, 9)
    scale = 0.1
    word_embedding = jax.random.normal(ks[0], (vocab, embed_dim), jnp.float32) * scale
    # PyTorch conv weights are (100, 1, k, E); stored transposed as (k, E, 100)
    # so each shift-i slice is directly an (E, 100) MXU operand.
    w3 = jax.random.normal(ks[1], (3, embed_dim, NUM_FILTERS), jnp.float32) * scale
    b3 = jax.random.normal(ks[2], (1, NUM_FILTERS), jnp.float32) * scale
    w4 = jax.random.normal(ks[3], (4, embed_dim, NUM_FILTERS), jnp.float32) * scale
    b4 = jax.random.normal(ks[4], (1, NUM_FILTERS), jnp.float32) * scale
    w5 = jax.random.normal(ks[5], (5, embed_dim, NUM_FILTERS), jnp.float32) * scale
    b5 = jax.random.normal(ks[6], (1, NUM_FILTERS), jnp.float32) * scale
    # PyTorch Linear weight is (num_classes, 300); stored transposed (300, NC).
    wfc = jax.random.normal(ks[7], (3 * NUM_FILTERS, num_classes), jnp.float32) * scale
    bfc = jax.random.normal(ks[8], (1, num_classes), jnp.float32) * scale
    return word_embedding, w3, b3, w4, b4, w5, b5, wfc, bfc


def _reference(sentences, word_embedding, w3, b3, w4, b4, w5, b5, wfc, bfc):
    """Pure-JAX f32 reference of the PyTorch forward (eval mode)."""
    embeds = jnp.take(word_embedding, sentences, axis=0)  # (B, L, E)
    B, L, E = embeds.shape

    def conv_pool(w, b, k):
        lout = L - k + 1
        acc = jnp.zeros((B, lout, NUM_FILTERS), jnp.float32)
        for i in range(k):
            acc = acc + jnp.einsum('ble,ec->blc', embeds[:, i:i + lout, :], w[i])
        acc = jnp.maximum(acc + b[None, :, :], 0.0)
        return jnp.max(acc, axis=1)

    feat = jnp.concatenate([conv_pool(w3, b3, 3),
                            conv_pool(w4, b4, 4),
                            conv_pool(w5, b5, 5)], axis=1)
    return feat @ wfc + bfc


if __name__ == "__main__":
    key = jax.random.PRNGKey(0)
    k_tok, k_par = jax.random.split(key)

    batch, max_len, embed_dim, vocab, num_classes = 16, 16, 32, 50, 4
    sentences = jax.random.randint(k_tok, (batch, max_len), 0, vocab, jnp.int32)
    raw_params = _init_params(k_par, vocab, embed_dim, num_classes)

    prepared = prepare_cnn_text_params(*raw_params)   # one-time weight prep
    logits = cnn_text_forward(sentences, prepared)
    logits = jax.block_until_ready(logits)

    ref = _reference(sentences, *raw_params)
    assert logits.shape == (batch, num_classes)
    # bf16 MXU operands vs. f32 reference -> loose-ish tolerance.
    assert jnp.allclose(logits, ref, atol=2e-2, rtol=2e-2), "mismatch vs reference"
    print("KERNEL_OK")
</pallas_src>

<mosaic_0001>
module attributes {stable_mosaic.version = 11 : i64} {
  func.func @_cnn_text_kernel(%arg0: i32, %arg1: memref<16x20x32xbf16, #tpu.memory_space<vmem>>, %arg2: memref<5x32x384xbf16, #tpu.memory_space<vmem>>, %arg3: memref<1x384xf32, #tpu.memory_space<vmem>>, %arg4: memref<384x128xbf16, #tpu.memory_space<vmem>>, %arg5: memref<1x128xf32, #tpu.memory_space<vmem>>, %arg6: memref<16x384xf32, #tpu.memory_space<vmem>>, %arg7: memref<16x128xf32, #tpu.memory_space<vmem>>) attributes {dimension_semantics = [#tpu.dimension_semantics<parallel>], iteration_bounds = array<i64: 1>, scalar_prefetch = 0 : i64, scratch_operands = 0 : i64, tpu.core_type = #tpu.core_type<tc>, window_params = [{transform_indices = @transform_0, window_bounds = array<i64: 16, 20, 32>}, {pipeline_mode = #tpu.pipeline_mode<synchronous>, transform_indices = @transform_1, window_bounds = array<i64: 5, 32, 384>}, {pipeline_mode = #tpu.pipeline_mode<synchronous>, transform_indices = @transform_2, window_bounds = array<i64: 1, 384>}, {pipeline_mode = #tpu.pipeline_mode<synchronous>, transform_indices = @transform_3, window_bounds = array<i64: 384, 128>}, {pipeline_mode = #tpu.pipeline_mode<synchronous>, transform_indices = @transform_4, window_bounds = array<i64: 1, 128>}, {pipeline_mode = #tpu.pipeline_mode<synchronous>, transform_indices = @transform_5, window_bounds = array<i64: 16, 384>}, {transform_indices = @transform_6, window_bounds = array<i64: 16, 128>}]} {
    %c0 = arith.constant 0 : index
    %c0_0 = arith.constant 0 : index
    %c0_1 = arith.constant 0 : index
    %0 = vector.load %arg1[%c0, %c0_0, %c0_1] : memref<16x20x32xbf16, #tpu.memory_space<vmem>>, vector<16x20x32xbf16>
    %1 = vector.extract_strided_slice %0 {offsets = [0, 0, 0], sizes = [16, 16, 32], strides = [1, 1, 1]} : vector<16x20x32xbf16> to vector<16x16x32xbf16>
    %2 = vector.shape_cast %1 : vector<16x16x32xbf16> to vector<256x32xbf16>
    %c0_2 = arith.constant 0 : index
    %c0_3 = arith.constant 0 : index
    %c0_4 = arith.constant 0 : index
    %3 = vector.load %arg2[%c0_2, %c0_3, %c0_4] : memref<5x32x384xbf16, #tpu.memory_space<vmem>>, vector<1x32x384xbf16>
    %4 = vector.shape_cast %3 : vector<1x32x384xbf16> to vector<32x384xbf16>
    %cst = arith.constant dense<0.000000e+00> : vector<256x384xf32>
    %5 = tpu.matmul %2, %4, %cst {dimension_numbers = #tpu.dot_dimension_numbers<[1], [0], [0], [1], [0, 0, 1, 1], [], []>} : vector<256x32xbf16>, vector<32x384xbf16>, vector<256x384xf32> -> vector<256x384xf32>
    %6 = vector.extract_strided_slice %0 {offsets = [0, 1, 0], sizes = [16, 16, 32], strides = [1, 1, 1]} : vector<16x20x32xbf16> to vector<16x16x32xbf16>
    %7 = vector.shape_cast %6 : vector<16x16x32xbf16> to vector<256x32xbf16>
    %c1 = arith.constant 1 : index
    %c0_5 = arith.constant 0 : index
    %c0_6 = arith.constant 0 : index
    %8 = vector.load %arg2[%c1, %c0_5, %c0_6] : memref<5x32x384xbf16, #tpu.memory_space<vmem>>, vector<1x32x384xbf16>
    %9 = vector.shape_cast %8 : vector<1x32x384xbf16> to vector<32x384xbf16>
    %cst_7 = arith.constant dense<0.000000e+00> : vector<256x384xf32>
    %10 = tpu.matmul %7, %9, %cst_7 {dimension_numbers = #tpu.dot_dimension_numbers<[1], [0], [0], [1], [0, 0, 1, 1], [], []>} : vector<256x32xbf16>, vector<32x384xbf16>, vector<256x384xf32> -> vector<256x384xf32>
    %11 = arith.addf %5, %10 : vector<256x384xf32>
    %12 = vector.extract_strided_slice %0 {offsets = [0, 2, 0], sizes = [16, 16, 32], strides = [1, 1, 1]} : vector<16x20x32xbf16> to vector<16x16x32xbf16>
    %13 = vector.shape_cast %12 : vector<16x16x32xbf16> to vector<256x32xbf16>
    %c2 = arith.constant 2 : index
    %c0_8 = arith.constant 0 : index
    %c0_9 = arith.constant 0 : index
    %14 = vector.load %arg2[%c2, %c0_8, %c0_9] : memref<5x32x384xbf16, #tpu.memory_space<vmem>>, vector<1x32x384xbf16>
    %15 = vector.shape_cast %14 : vector<1x32x384xbf16> to vector<32x384xbf16>
    %cst_10 = arith.constant dense<0.000000e+00> : vector<256x384xf32>
    %16 = tpu.matmul %13, %15, %cst_10 {dimension_numbers = #tpu.dot_dimension_numbers<[1], [0], [0], [1], [0, 0, 1, 1], [], []>} : vector<256x32xbf16>, vector<32x384xbf16>, vector<256x384xf32> -> vector<256x384xf32>
    %17 = arith.addf %11, %16 : vector<256x384xf32>
    %18 = vector.extract_strided_slice %0 {offsets = [0, 3, 0], sizes = [16, 16, 32], strides = [1, 1, 1]} : vector<16x20x32xbf16> to vector<16x16x32xbf16>
    %19 = vector.shape_cast %18 : vector<16x16x32xbf16> to vector<256x32xbf16>
    %c3 = arith.constant 3 : index
    %c0_11 = arith.constant 0 : index
    %c0_12 = arith.constant 0 : index
    %20 = vector.load %arg2[%c3, %c0_11, %c0_12] : memref<5x32x384xbf16, #tpu.memory_space<vmem>>, vector<1x32x384xbf16>
    %21 = vector.shape_cast %20 : vector<1x32x384xbf16> to vector<32x384xbf16>
    %cst_13 = arith.constant dense<0.000000e+00> : vector<256x384xf32>
    %22 = tpu.matmul %19, %21, %cst_13 {dimension_numbers = #tpu.dot_dimension_numbers<[1], [0], [0], [1], [0, 0, 1, 1], [], []>} : vector<256x32xbf16>, vector<32x384xbf16>, vector<256x384xf32> -> vector<256x384xf32>
    %23 = arith.addf %17, %22 : vector<256x384xf32>
    %24 = vector.extract_strided_slice %0 {offsets = [0, 4, 0], sizes = [16, 16, 32], strides = [1, 1, 1]} : vector<16x20x32xbf16> to vector<16x16x32xbf16>
    %25 = vector.shape_cast %24 : vector<16x16x32xbf16> to vector<256x32xbf16>
    %c4 = arith.constant 4 : index
    %c0_14 = arith.constant 0 : index
    %c0_15 = arith.constant 0 : index
    %26 = vector.load %arg2[%c4, %c0_14, %c0_15] : memref<5x32x384xbf16, #tpu.memory_space<vmem>>, vector<1x32x384xbf16>
    %27 = vector.shape_cast %26 : vector<1x32x384xbf16> to vector<32x384xbf16>
    %cst_16 = arith.constant dense<0.000000e+00> : vector<256x384xf32>
    %28 = tpu.matmul %25, %27, %cst_16 {dimension_numbers = #tpu.dot_dimension_numbers<[1], [0], [0], [1], [0, 0, 1, 1], [], []>} : vector<256x32xbf16>, vector<32x384xbf16>, vector<256x384xf32> -> vector<256x384xf32>
    %29 = arith.addf %23, %28 : vector<256x384xf32>
    %30 = vector.shape_cast %29 : vector<256x384xf32> to vector<16x16x384xf32>
    %c0_17 = arith.constant 0 : index
    %c0_18 = arith.constant 0 : index
    %31 = vector.load %arg6[%c0_17, %c0_18] : memref<16x384xf32, #tpu.memory_space<vmem>>, vector<16x384xf32>
    %32 = vector.shape_cast %31 : vector<16x384xf32> to vector<1x16x384xf32>
    %33 = vector.broadcast %32 : vector<1x16x384xf32> to vector<16x16x384xf32>
    %34 = arith.addf %30, %33 : vector<16x16x384xf32>
    %cst_19 = arith.constant dense<0xFF800000> : vector<16x384xf32>
    %35 = vector.multi_reduction <maximumf>, %34, %cst_19 [1] : vector<16x16x384xf32> to vector<16x384xf32>
    %c0_20 = arith.constant 0 : index
    %c0_21 = arith.constant 0 : index
    %36 = vector.load %arg3[%c0_20, %c0_21] : memref<1x384xf32, #tpu.memory_space<vmem>>, vector<1x384xf32>
    %37 = vector.broadcast %36 : vector<1x384xf32> to vector<16x384xf32>
    %38 = arith.addf %35, %37 : vector<16x384xf32>
    %cst_22 = arith.constant 0.000000e+00 : f32
    %39 = vector.broadcast %cst_22 : f32 to vector<16x384xf32>
    %40 = arith.maximumf %38, %39 : vector<16x384xf32>
    %41 = arith.truncf %40 : vector<16x384xf32> to vector<16x384xbf16>
    %c0_23 = arith.constant 0 : index
    %c0_24 = arith.constant 0 : index
    %42 = vector.load %arg4[%c0_23, %c0_24] : memref<384x128xbf16, #tpu.memory_space<vmem>>, vector<384x128xbf16>
    %cst_25 = arith.constant dense<0.000000e+00> : vector<16x128xf32>
    %43 = tpu.matmul %41, %42, %cst_25 {dimension_numbers = #tpu.dot_dimension_numbers<[1], [0], [0], [1], [0, 0, 1, 1], [], []>} : vector<16x384xbf16>, vector<384x128xbf16>, vector<16x128xf32> -> vector<16x128xf32>
    %c0_26 = arith.constant 0 : index
    %c0_27 = arith.constant 0 : index
    %44 = vector.load %arg5[%c0_26, %c0_27] : memref<1x128xf32, #tpu.memory_space<vmem>>, vector<1x128xf32>
    %45 = vector.broadcast %44 : vector<1x128xf32> to vector<16x128xf32>
    %46 = arith.addf %43, %45 : vector<16x128xf32>
    %c0_28 = arith.constant 0 : index
    %c0_29 = arith.constant 0 : index
    %47 = vector.load %arg7[%c0_28, %c0_29] : memref<16x128xf32, #tpu.memory_space<vmem>>, vector<16x128xf32>
    tpu.vector_store %arg7[%c0_28, %c0_29], %46 {strides = array<i32>} : memref<16x128xf32, #tpu.memory_space<vmem>>, vector<16x128xf32>,
    return
  }
  func.func @transform_0(%arg0: i32) -> (i32, i32, i32) {
    %c0_i32 = arith.constant 0 : i32
    %c0_i32_0 = arith.constant 0 : i32
    %c0_i32_1 = arith.constant 0 : i32
    return %arg0, %c0_i32, %c0_i32_0 : i32, i32, i32
  }
  func.func @transform_1(%arg0: i32) -> (i32, i32, i32) {
    %c0_i32 = arith.constant 0 : i32
    %c0_i32_0 = arith.constant 0 : i32
    %c0_i32_1 = arith.constant 0 : i32
    %c0_i32_2 = arith.constant 0 : i32
    return %c0_i32, %c0_i32_0, %c0_i32_1 : i32, i32, i32
  }
  func.func @transform_2(%arg0: i32) -> (i32, i32) {
    %c0_i32 = arith.constant 0 : i32
    %c0_i32_0 = arith.constant 0 : i32
    %c0_i32_1 = arith.constant 0 : i32
    return %c0_i32, %c0_i32_0 : i32, i32
  }
  func.func @transform_3(%arg0: i32) -> (i32, i32) {
    %c0_i32 = arith.constant 0 : i32
    %c0_i32_0 = arith.constant 0 : i32
    %c0_i32_1 = arith.constant 0 : i32
    return %c0_i32, %c0_i32_0 : i32, i32
  }
  func.func @transform_4(%arg0: i32) -> (i32, i32) {
    %c0_i32 = arith.constant 0 : i32
    %c0_i32_0 = arith.constant 0 : i32
    %c0_i32_1 = arith.constant 0 : i32
    return %c0_i32, %c0_i32_0 : i32, i32
  }
  func.func @transform_5(%arg0: i32) -> (i32, i32) {
    %c0_i32 = arith.constant 0 : i32
    %c0_i32_0 = arith.constant 0 : i32
    %c0_i32_1 = arith.constant 0 : i32
    return %c0_i32, %c0_i32_0 : i32, i32
  }
  func.func @transform_6(%arg0: i32) -> (i32, i32) {
    %c0_i32 = arith.constant 0 : i32
    %c0_i32_0 = arith.constant 0 : i32
    return %arg0, %c0_i32 : i32, i32
  }
}

module attributes {stable_mosaic.version = 11 : i64} {
  func.func @_cnn_text_kernel(%arg0: i32, %arg1: memref<16x20x32xbf16, #tpu.memory_space<vmem>>, %arg2: memref<5x32x384xbf16, #tpu.memory_space<vmem>>, %arg3: memref<1x384xf32, #tpu.memory_space<vmem>>, %arg4: memref<384x128xbf16, #tpu.memory_space<vmem>>, %arg5: memref<1x128xf32, #tpu.memory_space<vmem>>, %arg6: memref<16x384xf32, #tpu.memory_space<vmem>>, %arg7: memref<16x128xf32, #tpu.memory_space<vmem>>) attributes {dimension_semantics = [#tpu.dimension_semantics<parallel>], iteration_bounds = array<i64: 1>, scalar_prefetch = 0 : i64, scratch_operands = 0 : i64, tpu.core_type = #tpu.core_type<tc>, window_params = [{transform_indices = @transform_0, window_bounds = array<i64: 16, 20, 32>}, {pipeline_mode = #tpu.pipeline_mode<synchronous>, transform_indices = @transform_1, window_bounds = array<i64: 5, 32, 384>}, {pipeline_mode = #tpu.pipeline_mode<synchronous>, transform_indices = @transform_2, window_bounds = array<i64: 1, 384>}, {pipeline_mode = #tpu.pipeline_mode<synchronous>, transform_indices = @transform_3, window_bounds = array<i64: 384, 128>}, {pipeline_mode = #tpu.pipeline_mode<synchronous>, transform_indices = @transform_4, window_bounds = array<i64: 1, 128>}, {pipeline_mode = #tpu.pipeline_mode<synchronous>, transform_indices = @transform_5, window_bounds = array<i64: 16, 384>}, {transform_indices = @transform_6, window_bounds = array<i64: 16, 128>}]} {
    %c0 = arith.constant 0 : index
    %c0_0 = arith.constant 0 : index
    %c0_1 = arith.constant 0 : index
    %0 = vector.load %arg1[%c0, %c0_0, %c0_1] : memref<16x20x32xbf16, #tpu.memory_space<vmem>>, vector<16x20x32xbf16>
    %1 = vector.extract_strided_slice %0 {offsets = [0, 0, 0], sizes = [16, 16, 32], strides = [1, 1, 1]} : vector<16x20x32xbf16> to vector<16x16x32xbf16>
    %2 = vector.shape_cast %1 : vector<16x16x32xbf16> to vector<256x32xbf16>
    %c0_2 = arith.constant 0 : index
    %c0_3 = arith.constant 0 : index
    %c0_4 = arith.constant 0 : index
    %3 = vector.load %arg2[%c0_2, %c0_3, %c0_4] : memref<5x32x384xbf16, #tpu.memory_space<vmem>>, vector<1x32x384xbf16>
    %4 = vector.shape_cast %3 : vector<1x32x384xbf16> to vector<32x384xbf16>
    %cst = arith.constant dense<0.000000e+00> : vector<256x384xf32>
    %5 = tpu.matmul %2, %4, %cst {dimension_numbers = #tpu.dot_dimension_numbers<[1], [0], [0], [1], [0, 0, 1, 1], [], []>} : vector<256x32xbf16>, vector<32x384xbf16>, vector<256x384xf32> -> vector<256x384xf32>
    %6 = vector.extract_strided_slice %0 {offsets = [0, 1, 0], sizes = [16, 16, 32], strides = [1, 1, 1]} : vector<16x20x32xbf16> to vector<16x16x32xbf16>
    %7 = vector.shape_cast %6 : vector<16x16x32xbf16> to vector<256x32xbf16>
    %c1 = arith.constant 1 : index
    %c0_5 = arith.constant 0 : index
    %c0_6 = arith.constant 0 : index
    %8 = vector.load %arg2[%c1, %c0_5, %c0_6] : memref<5x32x384xbf16, #tpu.memory_space<vmem>>, vector<1x32x384xbf16>
    %9 = vector.shape_cast %8 : vector<1x32x384xbf16> to vector<32x384xbf16>
    %cst_7 = arith.constant dense<0.000000e+00> : vector<256x384xf32>
    %10 = tpu.matmul %7, %9, %cst_7 {dimension_numbers = #tpu.dot_dimension_numbers<[1], [0], [0], [1], [0, 0, 1, 1], [], []>} : vector<256x32xbf16>, vector<32x384xbf16>, vector<256x384xf32> -> vector<256x384xf32>
    %11 = arith.addf %5, %10 : vector<256x384xf32>
    %12 = vector.extract_strided_slice %0 {offsets = [0, 2, 0], sizes = [16, 16, 32], strides = [1, 1, 1]} : vector<16x20x32xbf16> to vector<16x16x32xbf16>
    %13 = vector.shape_cast %12 : vector<16x16x32xbf16> to vector<256x32xbf16>
    %c2 = arith.constant 2 : index
    %c0_8 = arith.constant 0 : index
    %c0_9 = arith.constant 0 : index
    %14 = vector.load %arg2[%c2, %c0_8, %c0_9] : memref<5x32x384xbf16, #tpu.memory_space<vmem>>, vector<1x32x384xbf16>
    %15 = vector.shape_cast %14 : vector<1x32x384xbf16> to vector<32x384xbf16>
    %cst_10 = arith.constant dense<0.000000e+00> : vector<256x384xf32>
    %16 = tpu.matmul %13, %15, %cst_10 {dimension_numbers = #tpu.dot_dimension_numbers<[1], [0], [0], [1], [0, 0, 1, 1], [], []>} : vector<256x32xbf16>, vector<32x384xbf16>, vector<256x384xf32> -> vector<256x384xf32>
    %17 = arith.addf %11, %16 : vector<256x384xf32>
    %18 = vector.extract_strided_slice %0 {offsets = [0, 3, 0], sizes = [16, 16, 32], strides = [1, 1, 1]} : vector<16x20x32xbf16> to vector<16x16x32xbf16>
    %19 = vector.shape_cast %18 : vector<16x16x32xbf16> to vector<256x32xbf16>
    %c3 = arith.constant 3 : index
    %c0_11 = arith.constant 0 : index
    %c0_12 = arith.constant 0 : index
    %20 = vector.load %arg2[%c3, %c0_11, %c0_12] : memref<5x32x384xbf16, #tpu.memory_space<vmem>>, vector<1x32x384xbf16>
    %21 = vector.shape_cast %20 : vector<1x32x384xbf16> to vector<32x384xbf16>
    %cst_13 = arith.constant dense<0.000000e+00> : vector<256x384xf32>
    %22 = tpu.matmul %19, %21, %cst_13 {dimension_numbers = #tpu.dot_dimension_numbers<[1], [0], [0], [1], [0, 0, 1, 1], [], []>} : vector<256x32xbf16>, vector<32x384xbf16>, vector<256x384xf32> -> vector<256x384xf32>
    %23 = arith.addf %17, %22 : vector<256x384xf32>
    %24 = vector.extract_strided_slice %0 {offsets = [0, 4, 0], sizes = [16, 16, 32], strides = [1, 1, 1]} : vector<16x20x32xbf16> to vector<16x16x32xbf16>
    %25 = vector.shape_cast %24 : vector<16x16x32xbf16> to vector<256x32xbf16>
    %c4 = arith.constant 4 : index
    %c0_14 = arith.constant 0 : index
    %c0_15 = arith.constant 0 : index
    %26 = vector.load %arg2[%c4, %c0_14, %c0_15] : memref<5x32x384xbf16, #tpu.memory_space<vmem>>, vector<1x32x384xbf16>
    %27 = vector.shape_cast %26 : vector<1x32x384xbf16> to vector<32x384xbf16>
    %cst_16 = arith.constant dense<0.000000e+00> : vector<256x384xf32>
    %28 = tpu.matmul %25, %27, %cst_16 {dimension_numbers = #tpu.dot_dimension_numbers<[1], [0], [0], [1], [0, 0, 1, 1], [], []>} : vector<256x32xbf16>, vector<32x384xbf16>, vector<256x384xf32> -> vector<256x384xf32>
    %29 = arith.addf %23, %28 : vector<256x384xf32>
    %30 = vector.shape_cast %29 : vector<256x384xf32> to vector<16x16x384xf32>
    %c0_17 = arith.constant 0 : index
    %c0_18 = arith.constant 0 : index
    %31 = vector.load %arg6[%c0_17, %c0_18] : memref<16x384xf32, #tpu.memory_space<vmem>>, vector<16x384xf32>
    %32 = vector.shape_cast %31 : vector<16x384xf32> to vector<1x16x384xf32>
    %33 = vector.broadcast %32 : vector<1x16x384xf32> to vector<16x16x384xf32>
    %34 = arith.addf %30, %33 : vector<16x16x384xf32>
    %cst_19 = arith.constant dense<0xFF800000> : vector<16x384xf32>
    %35 = vector.multi_reduction <maximumf>, %34, %cst_19 [1] : vector<16x16x384xf32> to vector<16x384xf32>
    %c0_20 = arith.constant 0 : index
    %c0_21 = arith.constant 0 : index
    %36 = vector.load %arg3[%c0_20, %c0_21] : memref<1x384xf32, #tpu.memory_space<vmem>>, vector<1x384xf32>
    %37 = vector.broadcast %36 : vector<1x384xf32> to vector<16x384xf32>
    %38 = arith.addf %35, %37 : vector<16x384xf32>
    %cst_22 = arith.constant 0.000000e+00 : f32
    %39 = vector.broadcast %cst_22 : f32 to vector<16x384xf32>
    %40 = arith.maximumf %38, %39 : vector<16x384xf32>
    %41 = arith.truncf %40 : vector<16x384xf32> to vector<16x384xbf16>
    %c0_23 = arith.constant 0 : index
    %c0_24 = arith.constant 0 : index
    %42 = vector.load %arg4[%c0_23, %c0_24] : memref<384x128xbf16, #tpu.memory_space<vmem>>, vector<384x128xbf16>
    %cst_25 = arith.constant dense<0.000000e+00> : vector<16x128xf32>
    %43 = tpu.matmul %41, %42, %cst_25 {dimension_numbers = #tpu.dot_dimension_numbers<[1], [0], [0], [1], [0, 0, 1, 1], [], []>} : vector<16x384xbf16>, vector<384x128xbf16>, vector<16x128xf32> -> vector<16x128xf32>
    %c0_26 = arith.constant 0 : index
    %c0_27 = arith.constant 0 : index
    %44 = vector.load %arg5[%c0_26, %c0_27] : memref<1x128xf32, #tpu.memory_space<vmem>>, vector<1x128xf32>
    %45 = vector.broadcast %44 : vector<1x128xf32> to vector<16x128xf32>
    %46 = arith.addf %43, %45 : vector<16x128xf32>
    %c0_28 = arith.constant 0 : index
    %c0_29 = arith.constant 0 : index
    %47 = vector.load %arg7[%c0_28, %c0_29] : memref<16x128xf32, #tpu.memory_space<vmem>>, vector<16x128xf32>
    tpu.vector_store %arg7[%c0_28, %c0_29], %46 {strides = array<i32>} : memref<16x128xf32, #tpu.memory_space<vmem>>, vector<16x128xf32>,
    return
  }
  func.func @transform_0(%arg0: i32) -> (i32, i32, i32) {
    %c0_i32 = arith.constant 0 : i32
    %c0_i32_0 = arith.constant 0 : i32
    %c0_i32_1 = arith.constant 0 : i32
    return %arg0, %c0_i32, %c0_i32_0 : i32, i32, i32
  }
  func.func @transform_1(%arg0: i32) -> (i32, i32, i32) {
    %c0_i32 = arith.constant 0 : i32
    %c0_i32_0 = arith.constant 0 : i32
    %c0_i32_1 = arith.constant 0 : i32
    %c0_i32_2 = arith.constant 0 : i32
    return %c0_i32, %c0_i32_0, %c0_i32_1 : i32, i32, i32
  }
  func.func @transform_2(%arg0: i32) -> (i32, i32) {
    %c0_i32 = arith.constant 0 : i32
    %c0_i32_0 = arith.constant 0 : i32
    %c0_i32_1 = arith.constant 0 : i32
    return %c0_i32, %c0_i32_0 : i32, i32
  }
  func.func @transform_3(%arg0: i32) -> (i32, i32) {
    %c0_i32 = arith.constant 0 : i32
    %c0_i32_0 = arith.constant 0 : i32
    %c0_i32_1 = arith.constant 0 : i32
    return %c0_i32, %c0_i32_0 : i32, i32
  }
  func.func @transform_4(%arg0: i32) -> (i32, i32) {
    %c0_i32 = arith.constant 0 : i32
    %c0_i32_0 = arith.constant 0 : i32
    %c0_i32_1 = arith.constant 0 : i32
    return %c0_i32, %c0_i32_0 : i32, i32
  }
  func.func @transform_5(%arg0: i32) -> (i32, i32) {
    %c0_i32 = arith.constant 0 : i32
    %c0_i32_0 = arith.constant 0 : i32
    %c0_i32_1 = arith.constant 0 : i32
    return %c0_i32, %c0_i32_0 : i32, i32
  }
  func.func @transform_6(%arg0: i32) -> (i32, i32) {
    %c0_i32 = arith.constant 0 : i32
    %c0_i32_0 = arith.constant 0 : i32
    return %arg0, %c0_i32 : i32, i32
  }
}

</mosaic_0001>

<bundles_post_ra>
// kernel: tpu_custom_call.1
= control target key start
LH: loop header
LB: loop body
LE: loop exit
PB: predicated region body
PF: predicated region fallthrough
CT: control target
= control target key end

     0   :  { %11 = vsyncpa [#allocation3], 0  ;;  %s9265_s0 = inlined_call_operand.vmem [shape: bf16[16,20,32], index: 0, kind: input, shape index: {}]   ;;  %s9266_s1 = inlined_call_operand.vmem [shape: bf16[5,32,384], index: 1, kind: input, shape index: {}]   ;;  %s9267_s2 = inlined_call_operand.vmem [shape: f32[1,384], index: 2, kind: input, shape index: {}]   ;;  %s9268_s3 = inlined_call_operand.hbm [shape: bf16[384,128], index: 3, kind: input, shape index: {}]   ;;  %s9269_s4 = inlined_call_operand.vmem [shape: f32[1,128], index: 4, kind: input, shape index: {}]   ;;  %s9270_s5 = inlined_call_operand.vmem [shape: f32[16,384], index: 5, kind: input, shape index: {}]   ;;  %s9271_s6 = inlined_call_operand.hbm [shape: f32[16,128], index: 6, kind: output, shape index: {}]  }
   0x1   :  { %12 = vsyncpa [#allocation4], 0  ;;  %s5749_s21 = smov [#allocation2]  }
   0x2   :  { %s24_s22 = sshll.u32 %s5749_s21, 4  ;;  %s25_s22 = int_to_ptr.vmem [resolvable:$true] %s24_s22 }
   0x3   :  { %s5713_s23 = scalar_lea.vmem %s25_s22, 3072  ;;  %p5718_p1 = scmp.lt.s32.totalorder %s25_s22, %s25_s22 }
   0x4   :  { %p5714_p0 = scmp.ne.s32.totalorder %s25_s22, %s5713_s23  ;;  %p5719_p2 = scmp.lt.s32.totalorder %s5713_s23, %s5713_s23 }
   0x6   :  { %p5720_p3 = por %p5719_p2, %p5718_p1 }
   0x8   :  { %p5721_p4 = pnand %p5720_p3, %p5714_p0 }
   0xa   :  { %5724 = shalt.err (!%p5721_p4)
}
   0xb   :  { %s5750_s24 = smov 64   ;;  %s5751_s25 = smov 4  }
   0xc   :  { %30 = dma.hbm_to_vmem [thread:$0]  %s9268_s3, 3072, %s25_s22, [#allocation3], %s5750_s24, %s5750_s24, %s5751_s25  }
   0xd   :  { %5745 = dma.done.wait [#allocation3], 3072  }
   0xe   :  { %5746 = vsyncadd [#allocation3], 4294964224  ;;  %v9322_v0 = vmov 0   ;;  %vm95_vm0 = vsmask.f32 3328  ;;  %vm571_vm4 = vcmask 261120  }
   0xf   :  { %652 = vmatprep.mubr.bf16.mxu0 %v9322_v0  ;;  %802 = vmatprep.mubr.bf16.mxu1 %v9322_v0  ;;  %vm96_vm1 = vsmask.f32 7440  ;;  %v5523_v1 = vld [vmem:[%s9266_s1 + $0x4c] ss:$12 sps:$4 sm:$0xff]   ;;  %vm2206_vm2 = vsmask.f32 2304 }
  0x10   :  { %v5525_v2 = vld [vmem:[%s9266_s1 + $0x48] ss:$12 sps:$4 sm:$0xff]   ;;  %vm2207_vm3 = vsmask.f32 6416  ;;  %632 = vmatprep.subr.bf16.mxu0 %v5523_v1  ;;  %5510 = vmatprep.subr.bf16.mxu1 %v5523_v1  ;;  %v5528_v4 = vld [vmem:[%s9266_s1 + $0x30] ss:$12 sps:$4 sm:$0xff]   ;;  %vm5839_vm5 = vmor %vm95_vm0, %vm96_vm1 }
  0x11   :  { %v5526_v3 = vld [vmem:[%s9266_s1 + $0x34] ss:$12 sps:$4 sm:$0xff]   ;;  %633 = vmatpush1.bf16.msra.mxu0 %v5525_v2  ;;  %5512 = vmatpush1.bf16.msra.mxu1 %v5525_v2  ;;  %v5823_v7 = vld [vmem:[%s9265_s0 + $0x4] sm:$0xf]  ;;  %v41_v8 = vld [vmem:[%s9265_s0 + $0x8] sm:$0x3] }
  0x12   :  { %v5813_v5 = vld [vmem:[%s9266_s1 + $0x20] ss:$12 sps:$4 sm:$0xff]   ;;  %634 = vmatprep.subr.bf16.mxu0 %v5526_v3  ;;  %5511 = vmatprep.subr.bf16.mxu1 %v5526_v3  ;;  %v108_v11 = vshll.u32 %v5823_v7, 16  ;;  %v112_v12 = vshrl.u32 %v5823_v7, 16  ;;  %v118_v13 = vshll.u32 %v41_v8, 16  ;;  %v2218_v14 = vshrl.u32 %v41_v8, 16  ;;  %vm5851_vm6 = vmor %vm2206_vm2, %vm2207_vm3 }
  0x13   :  { %v5818_v6 = vld [vmem:[%s9265_s0] sm:$0xf]  ;;  %v5835_v19 = vld [vmem:[%s9265_s0 + $0xb4] sm:$0xf]  ;;  %v5846_v25 = vld [vmem:[%s9265_s0 + $0xb8] sm:$0xf] }
  0x14   :  { %v99_v9 = vshrl.u32 %v5818_v6, 16  ;;  %v102_v10 = vshll.u32 %v5818_v6, 16  ;;  %9367 = vst [vmem:[#allocation8_spill] sm:$0xff] %v5835_v19  ;;  %v110_v21 = vrot.slane %v108_v11, 5  ;;  %v114_v22 = vrot.slane %v112_v12, 4  ;;  %9370 = vst [vmem:[#allocation9_spill] sm:$0xff] %v5846_v25 }
  0x15   :  { %635 = vmatpush1.bf16.msra.mxu0 %v5528_v4  ;;  %5513 = vmatpush1.bf16.msra.mxu1 %v5528_v4  ;;  %v120_v23 = vrot.slane %v118_v13, 5  ;;  %v2213_v24 = vrot.slane %v112_v12, 5  ;;  %v2214_v29 = vrot.slane %v108_v11, 6  ;;  %v2220_v30 = vrot.slane %v2218_v14, 5  ;;  %v5858_v33 = vld [vmem:[%s9265_s0 + $0xbc] sm:$0x3] }
  0x16   :  { %v101_v15 = vrot.slane %v99_v9, 4  ;;  %v104_v16 = vrot.slane %v102_v10, 5  ;;  %v2209_v17 = vrot.slane %v99_v9, 5  ;;  %v2210_v18 = vrot.slane %v102_v10, 6  ;;  %5346 = vmatprep.subr.bf16.mxu0 %v5813_v5  ;;  %9373 = vst [vmem:[#allocation10_spill] sm:$0xff] %v5858_v33  ;;  %s5755_s21 = smov [#allocation5]  }
  0x17   :  { %v115_v31 = vor.u32 %v114_v22, %v110_v21  ;;  %v2221_v32 = vrot.slane %v118_v13, 6  ;;  %v5863_v34 = vld [vmem:[%s9266_s1 + $0x50] ss:$12 sps:$4 sm:$0xff]   ;;  %v5867_v37 = vor.u32 %v2214_v29, %v2213_v24  ;;  %v9276_v38 = vshrl.u32 %v5835_v19, 16  ;;  %v5892_v51 = vld [vmem:[%s9265_s0 + $0xc] sm:$0xf] }
  0x18   :  { %v105_v26 = vor.u32 %v104_v16, %v101_v15  ;;  %v2211_v28 = vor.u32 %v2210_v18, %v2209_v17  ;;  %v9275_v41 = vshll.u32 %v5835_v19, 16  ;;  %v9274_v42 = vshll.u32 %v5846_v25, 16  ;;  %5310 = vmatprep.subr.bf16.mxu1 %v5863_v34  ;;  %v5902_v55 = vld [vmem:[%s9265_s0 + $0x10] sm:$0xf]  ;;  %v5909_v58 = vld [vmem:[%s9265_s0 + $0x14] sm:$0x3] }
  0x19   :  { %v116_v39 = vrot.slane %v115_v31, 4  ;;  %v2222_v40 = vor.u32 %v2221_v32, %v2220_v30  ;;  %v2217_v45 = vrot.slane %v5867_v37, 4  ;;  %v461_v46 = vrot.slane %v9276_v38, 4  ;;  %v5928_v9 = vld [vmem:[%s9265_s0 + $0x18] sm:$0xf] }
  0x1a   :  { %v106_v35 = vrot.slane %v105_v26, 4  ;;  %v5865_v36 = vrot.slane %v2211_v28, 4  ;;  %v464_v48 = vrot.slane %v9275_v41, 5  ;;  %v470_v49 = vrot.slane %v9274_v42, 5  ;;  %v5939_v13 = vld [vmem:[%s9265_s0 + $0x1c] sm:$0xf] }
  0x1b   :  { %v121_v47 = vsel %vm5839_vm5, %v116_v39, %v120_v23  ;;  %v9272_v50 = vshrl.u32 %v5846_v25, 16  ;;  %v5896_v53 = vsel %vm5851_vm6, %v2217_v45, %v2222_v40  ;;  %v9273_v54 = vshll.u32 %v5858_v33, 16  ;;  %v5944_v15 = vld [vmem:[%s9265_s0 + $0x20] sm:$0x3]  ;;  %v5531_v23 = vld [vmem:[%s9266_s1 + $0x38] ss:$12 sps:$4 sm:$0xff]  }
  0x1c   :  { %v111_v43 = vsel %vm5839_vm5, %v106_v35, %v110_v21  ;;  %v465_v56 = vor.u32 %v464_v48, %v461_v46  ;;  %v9321_v60 = vshrl.u32 %v5892_v51, 16  ;;  %v9319_v61 = vshll.u32 %v5892_v51, 16  ;;  %v5965_v35 = vld [vmem:[%s9265_s0 + $0x24] sm:$0xf]  ;;  %v5978_v45 = vld [vmem:[%s9265_s0 + $0x28] sm:$0xf] }
  0x1d   :  { %v4838_v52 = vcombine.low %v111_v43, %v121_v47  ;;  %v474_v57 = vrot.slane %v9272_v50, 4  ;;  %v480_v59 = vrot.slane %v9273_v54, 5  ;;  %v9318_v1 = vshll.u32 %v5902_v55, 16  ;;  %v5989_v48 = vld [vmem:[%s9265_s0 + $0x2c] sm:$0x3] }
  0x1e   :  { %v466_v62 = vrot.slane %v465_v56, 4  ;;  %v9311_v2 = vshrl.u32 %v5902_v55, 16  ;;  %v125_v3 = vrot.slane %v9321_v60, 4  ;;  %v128_v4 = vrot.slane %v9319_v61, 5  ;;  %9374 = vst [vmem:[#allocation11_spill] sm:$0xff] %v5989_v48 }
  0x1f   :  { %4860 = vmatmul.mubr.msk.bf16.vlgmr.msra.gmra.mxu0 %vm571_vm4, %v4838_v52  ;;  %v475_v63 = vor.u32 %v474_v57, %v470_v49  ;;  %v9317_v8 = vshll.u32 %v5909_v58, 16  ;;  %v134_v11 = vrot.slane %v9318_v1, 5  ;;  %v9310_v21 = vshrl.u32 %v5928_v9, 16  ;;  %v6364_v19 = vld [vmem:[%s9265_s0 + $0x9c] sm:$0xf] }
  0x20   :  { %5347 = vmatpush3.bf16.msra.mxu0 %v5813_v5  ;;  %662 = vmatprep.mubr.bf16.mxu0 %v9322_v0  ;;  %v471_v5 = vsel %vm5839_vm5, %v466_v62, %v470_v49  ;;  %v138_v12 = vrot.slane %v9311_v2, 4  ;;  %v129_v14 = vor.u32 %v128_v4, %v125_v3  ;;  %v9309_v26 = vshll.u32 %v5928_v9, 16  ;;  %v5994_v49 = vld [vmem:[%s9265_s0 + $0x30] sm:$0xf]  ;;  %v5563_v20 = vld [vmem:[%s9266_s1 + $0x68] ss:$12 sps:$4 sm:$0xff]  }
  0x21   :  { %v476_v10 = vrot.slane %v475_v63, 4  ;;  %v144_v18 = vrot.slane %v9317_v8, 5  ;;  %v9301_v28 = vshll.u32 %v5939_v13, 16  ;;  %v149_v30 = vrot.slane %v9310_v21, 4  ;;  %v5651_v27 = vld [vmem:[%s9265_s0 + $0x4] sm:$0xf] }
  0x22   :  { %v139_v17 = vor.u32 %v138_v12, %v134_v11  ;;  %v130_v24 = vrot.slane %v129_v14, 4  ;;  %v9299_v31 = vshrl.u32 %v5939_v13, 16  ;;  %v9300_v32 = vshll.u32 %v5944_v15, 16 }
  0x23   :  { %v481_v16 = vsel %vm5839_vm5, %v476_v10, %v480_v59  ;;  %v152_v40 = vrot.slane %v9309_v26, 5  ;;  %v158_v43 = vrot.slane %v9301_v28, 5  ;;  %v9297_v59 = vshrl.u32 %v5965_v35, 16 }
  0x24   :  { %v5951_v22 = vcombine.low %v471_v5, %v481_v16  ;;  %v140_v29 = vrot.slane %v139_v17, 4  ;;  %v135_v39 = vsel %vm5839_vm5, %v130_v24, %v134_v11  ;;  %v162_v47 = vrot.slane %v9299_v31, 4 }
  0x25   :  { %v153_v56 = vor.u32 %v152_v40, %v149_v30  ;;  %v9296_v62 = vshll.u32 %v5965_v35, 16  ;;  %v9293_v63 = vshll.u32 %v5978_v45, 16  ;;  %v9286_v4 = vshrl.u32 %v5978_v45, 16  ;;  %v6026_v30 = vld [vmem:[%s9265_s0 + $0x38] sm:$0x3] }
  0x26   :  { %4875 = vmatmul.mubr.msk.bf16.vlgmr.msra.gmra.mxu1 %vm571_vm4, %v5951_v22  ;;  %v145_v46 = vsel %vm5839_vm5, %v140_v29, %v144_v18  ;;  %v163_v57 = vor.u32 %v162_v47, %v158_v43  ;;  %v9291_v5 = vshll.u32 %v5989_v48, 16  ;;  %v9285_v10 = vshrl.u32 %v5994_v49, 16  ;;  %9375 = vst [vmem:[#allocation12_spill] sm:$0xff] %v6026_v30 }
  0x27   :  { %5311 = vmatpush3.bf16.msra.mxu1 %v5863_v34  ;;  %5314 = vmatprep.mubr.msk.bf16.mxu1 %vm571_vm4, %v4838_v52  ;;  %v4839_v34 = vcombine.low %v135_v39, %v145_v46  ;;  %v168_v52 = vrot.slane %v9300_v32, 5  ;;  %v154_v3 = vrot.slane %v153_v56, 4  ;;  %v173_v12 = vrot.slane %v9297_v59, 4  ;;  %v6031_v39 = vld [vmem:[%s9265_s0 + $0x3c] sm:$0xf] }
  0x28   :  { %5312 = vmatprep.subr.bf16.mxu1 %v5531_v23  ;;  %v164_v11 = vrot.slane %v163_v57, 4  ;;  %v176_v14 = vrot.slane %v9296_v62, 5  ;;  %v182_v16 = vrot.slane %v9293_v63, 5  ;;  %v186_v18 = vrot.slane %v9286_v4, 4  ;;  %v6143_v63 = vld [vmem:[%s9265_s0 + $0x5c] sm:$0x3] }
  0x29   :  { %4861 = vmatmul.mubr.msk.bf16.gmra.mxu0 %vm571_vm4, %v4839_v34  ;;  %v159_v17 = vsel %vm5839_vm5, %v154_v3, %v158_v43  ;;  %v192_v46 = vrot.slane %v9291_v5, 5  ;;  %v197_v47 = vrot.slane %v9285_v10, 4  ;;  %9378 = vst [vmem:[#allocation15_spill] sm:$0xff] %v6143_v63  ;;  %v6174_v62 = vld [vmem:[%s9265_s0 + $0x68] sm:$0x3]  ;;  %vm1504_vm7 = vcmask 1042432  }
  0x2a   :  { %672 = vmatprep.mubr.bf16.mxu0 %v9322_v0  ;;  %v169_v24 = vsel %vm5839_vm5, %v164_v11, %v168_v52  ;;  %v177_v29 = vor.u32 %v176_v14, %v173_v12  ;;  %v187_v43 = vor.u32 %v186_v18, %v182_v16  ;;  %v9284_v52 = vshll.u32 %v5994_v49, 16  ;;  %9379 = vst [vmem:[#allocation16_spill] sm:$0xff] %v6174_v62  ;;  %v5547_v32 = vld [vmem:[%s9266_s1 + $0x7c] ss:$12 sps:$4 sm:$0xff]  }
  0x2b   :  { %5313 = vmatpush3.bf16.msra.mxu1 %v5531_v23  ;;  %v6019_v23 = vld [vmem:[%s9265_s0 + $0x34] sm:$0xf]  ;;  %v4840_v40 = vcombine.low %v159_v17, %v169_v24  ;;  %v9278_v12 = vshrl.u32 %v6031_v39, 16  ;;  %vm1505_vm8 = vcmask 1046532   ;;  %vm3036_vm10 = vcmask 1041408  }
  0x2c   :  { %v178_v56 = vrot.slane %v177_v29, 4  ;;  %v9283_v57 = vshll.u32 %v6019_v23, 16  ;;  %v9277_v3 = vshrl.u32 %v6019_v23, 16  ;;  %v188_v11 = vrot.slane %v187_v43, 4  ;;  %v6055_v29 = vld [vmem:[%s9265_s0 + $0x40] sm:$0xf]  ;;  %vm6667_vm9 = vmor %vm1504_vm7, %vm1505_vm8 }
  0x2d   :  { %v200_v17 = vrot.slane %v9284_v52, 5  ;;  %v221_v41 = vrot.slane %v9278_v12, 4  ;;  %vm3037_vm11 = vcmask 1045508   ;;  %vm4489_vm13 = vcmask 1041409  }
  0x2e   :  { %5315 = vmatmul.mubr.msk.bf16.vlgmr.msra.gmra.mxu1 %vm571_vm4, %v4839_v34  ;;  %v9282_v34 = vshll.u32 %v6026_v30, 16  ;;  %v183_v14 = vsel %vm5839_vm5, %v178_v56, %v182_v16  ;;  %v206_v18 = vrot.slane %v9283_v57, 5  ;;  %v210_v24 = vrot.slane %v9277_v3, 4  ;;  %v6063_v16 = vld [vmem:[%s9265_s0 + $0x44] sm:$0x3]  ;;  %vm7624_vm12 = vmor %vm3036_vm10, %vm3037_vm11 }
  0x2f   :  { %5318 = vmatprep.mubr.msk.bf16.mxu1 %vm571_vm4, %v4840_v40  ;;  %v193_v43 = vsel %vm5839_vm5, %v188_v11, %v192_v46  ;;  %9376 = vst [vmem:[#allocation13_spill] sm:$0xff] %v6063_v16  ;;  %v201_v50 = vor.u32 %v200_v17, %v197_v47  ;;  %v9281_v46 = vshll.u32 %v6055_v29, 16  ;;  %v9280_v11 = vshrl.u32 %v6055_v29, 16  ;;  %v6077_v47 = vld [vmem:[%s9265_s0 + $0x48] sm:$0xf] }
  0x30   :  { %v4841_v56 = vcombine.low %v183_v14, %v193_v43  ;;  %v211_v54 = vor.u32 %v210_v24, %v206_v18  ;;  %v216_v42 = vrot.slane %v9282_v34, 5  ;;  %v9287_v14 = vshll.u32 %v6063_v16, 16 }
  0x31   :  { %4862 = vmatmul.mubr.msk.bf16.gmra.mxu0 %vm571_vm4, %v4840_v40  ;;  %v9279_v40 = vshll.u32 %v6031_v39, 16  ;;  %v202_v38 = vrot.slane %v201_v50, 4  ;;  %v230_v24 = vrot.slane %v9281_v46, 5  ;;  %v234_v43 = vrot.slane %v9280_v11, 4  ;;  %v6089_v50 = vld [vmem:[%s9265_s0 + $0x4c] sm:$0xf] }
  0x32   :  { %682 = vmatprep.mubr.bf16.mxu0 %v9322_v0  ;;  %v212_v3 = vrot.slane %v211_v54, 4  ;;  %v6103_v11 = vld [vmem:[%s9265_s0 + $0x54] sm:$0xf]  ;;  %v240_v52 = vrot.slane %v9287_v14, 5  ;;  %vm4492_vm14 = vcmask 1042434   ;;  %vm4495_vm15 = vcmask 1043459  }
  0x33   :  { %v224_v17 = vrot.slane %v9279_v40, 5  ;;  %v207_v54 = vsel %vm5839_vm5, %v202_v38, %v206_v18  ;;  %v6098_v40 = vld [vmem:[%s9265_s0 + $0x50] sm:$0x3]  ;;  %v235_v57 = vor.u32 %v234_v43, %v230_v24  ;;  %v9289_v38 = vshrl.u32 %v6077_v47, 16 }
  0x34   :  { %v217_v12 = vsel %vm5839_vm5, %v212_v3, %v216_v42  ;;  %9377 = vst [vmem:[#allocation14_spill] sm:$0xff] %v6098_v40  ;;  %v9288_v42 = vshll.u32 %v6077_v47, 16  ;;  %v9290_v3 = vshll.u32 %v6089_v50, 16  ;;  %v9292_v18 = vshrl.u32 %v6089_v50, 16 }
  0x35   :  { %v4842_v46 = vcombine.low %v207_v54, %v217_v12  ;;  %v225_v34 = vor.u32 %v224_v17, %v221_v41  ;;  %v236_v4 = vrot.slane %v235_v57, 4  ;;  %v9295_v41 = vshll.u32 %v6098_v40, 16  ;;  %v5532_v57 = vld [vmem:[%s9266_s1 + $0x8] ss:$12 sps:$4 sm:$0xff]  }
  0x36   :  { %5319 = vmatmul.mubr.msk.bf16.gmra.mxu1 %vm571_vm4, %v4841_v56  ;;  %v9294_v12 = vshrl.u32 %v6103_v11, 16  ;;  %v245_v17 = vrot.slane %v9289_v38, 4  ;;  %v248_v43 = vrot.slane %v9288_v42, 5  ;;  %v254_v54 = vrot.slane %v9290_v3, 5  ;;  %v6134_v42 = vld [vmem:[%s9265_s0 + $0x58] sm:$0xf]  ;;  %5348 = vmatprep.subr.bf16.mxu0 %v5532_v57 }
  0x37   :  { %5322 = vmatprep.mubr.msk.bf16.mxu1 %vm571_vm4, %v4842_v46  ;;  %v226_v10 = vrot.slane %v225_v34, 4  ;;  %v241_v14 = vsel %vm5839_vm5, %v236_v4, %v240_v52  ;;  %v5533_v4 = vld [vmem:[%s9266_s1 + $0x18] ss:$12 sps:$4 sm:$0xff]   ;;  %v9298_v52 = vshll.u32 %v6103_v11, 16  ;;  %5349 = vmatpush3.bf16.msra.mxu0 %v5532_v57  ;;  %vm4498_vm0 = vcmask 1044484  }
  0x38   :  { %v249_v3 = vor.u32 %v248_v43, %v245_v17  ;;  %1768 = vmatprep.subr.bf16.mxu0 %v5547_v32  ;;  %vm4501_vm1 = vcmask 1045509   ;;  %vm4504_vm2 = vcmask 1046534   ;;  %vm4507_vm3 = vcmask 1047559  }
  0x39   :  { %4863 = vmatmul.mubr.msk.bf16.gmra.mxu0 %vm571_vm4, %v4841_v56  ;;  %v258_v56 = vrot.slane %v9292_v18, 4  ;;  %v231_v34 = vsel %vm5839_vm5, %v226_v10, %v230_v24  ;;  %v264_v18 = vrot.slane %v9295_v41, 5  ;;  %v269_v10 = vrot.slane %v9294_v12, 4  ;;  %v5535_v24 = vld [vmem:[%s9266_s1 + $0x1c] ss:$12 sps:$4 sm:$0xff]  }
  0x3a   :  { %692 = vmatprep.mubr.bf16.mxu0 %v9322_v0  ;;  %v6136_v38 = vcombine.low %v231_v34, %v241_v14  ;;  %v6154_v14 = vld [vmem:[%s9265_s0 + $0x60] sm:$0xf]  ;;  %v250_v17 = vrot.slane %v249_v3, 4  ;;  %v9302_v34 = vshrl.u32 %v6134_v42, 16  ;;  %v6166_v12 = vld [vmem:[%s9265_s0 + $0x64] sm:$0xf]  ;;  %1146 = vmatprep.subr.bf16.mxu1 %v5535_v24 }
  0x3b   :  { %v259_v5 = vor.u32 %v258_v56, %v254_v54  ;;  %v9308_v56 = vshll.u32 %v6134_v42, 16  ;;  %v272_v57 = vrot.slane %v9298_v52, 5  ;;  %v9303_v41 = vshll.u32 %v6143_v63, 16  ;;  %1147 = vmatpush1.bf16.msra.mxu1 %v5533_v4  ;;  %v5536_v24 = vld [vmem:[%s9266_s1] ss:$12 sps:$4 sm:$0xff]  }
  0x3c   :  { %v255_v3 = vsel %vm5839_vm5, %v250_v17, %v254_v54  ;;  %v282_v31 = vrot.slane %v9302_v34, 4  ;;  %v9304_v4 = vshrl.u32 %v6154_v14, 16  ;;  %v6218_v34 = vld [vmem:[%s9265_s0 + $0x6c] sm:$0xf] }
  0x3d   :  { %v260_v43 = vrot.slane %v259_v5, 4  ;;  %v5538_v5 = vld [vmem:[%s9266_s1 + $0x4] ss:$12 sps:$4 sm:$0xff]   ;;  %v278_v52 = vrot.slane %v9308_v56, 5  ;;  %v288_v17 = vrot.slane %v9303_v41, 5  ;;  %v9313_v56 = vshrl.u32 %v6218_v34, 16 }
  0x3e   :  { %5323 = vmatmul.mubr.msk.bf16.gmra.mxu1 %vm571_vm4, %v6136_v38  ;;  %1148 = vmatprep.subr.bf16.mxu1 %v5538_v5  ;;  %v9315_v21 = vshll.u32 %v6218_v34, 16 }
  0x3f   :  { %v265_v59 = vsel %vm5839_vm5, %v260_v43, %v264_v18  ;;  %v273_v18 = vor.u32 %v272_v57, %v269_v10  ;;  %v283_v54 = vor.u32 %v282_v31, %v278_v52  ;;  %v9305_v43 = vshll.u32 %v6154_v14, 16  ;;  %1149 = vmatpush1.bf16.msra.mxu1 %v5536_v24 }
  0x40   :  { %v6193_v28 = vcombine.low %v255_v3, %v265_v59  ;;  %v6204_v59 = vld [vmem:[%s9266_s1 + $0x80] ss:$12 sps:$4 sm:$0xff]   ;;  %v9306_v31 = vshll.u32 %v6166_v12, 16  ;;  %v9307_v10 = vshrl.u32 %v6166_v12, 16  ;;  %v9312_v57 = vshll.u32 %v6174_v62, 16 }
  0x41   :  { %4864 = vmatmul.mubr.msk.bf16.gmra.mxu0 %vm571_vm4, %v4842_v46  ;;  %v274_v46 = vrot.slane %v273_v18, 4  ;;  %v284_v5 = vrot.slane %v283_v54, 4  ;;  %v293_v3 = vrot.slane %v9304_v4, 4  ;;  %v296_v32 = vrot.slane %v9305_v43, 5  ;;  %v6229_v4 = vld [vmem:[%s9265_s0 + $0x70] sm:$0xf]  ;;  %5382 = vmatprep.subr.bf16.mxu1 %v6204_v59 }
  0x42   :  { %702 = vmatprep.mubr.bf16.mxu0 %v9322_v0  ;;  %5326 = vmatprep.mubr.msk.bf16.mxu1 %vm571_vm4, %v6193_v28  ;;  %v302_v41 = vrot.slane %v9306_v31, 5  ;;  %v306_v54 = vrot.slane %v9307_v10, 4  ;;  %v312_v10 = vrot.slane %v9312_v57, 5  ;;  %v9314_v2 = vshll.u32 %v6229_v4, 16 }
  0x43   :  { %v279_v18 = vsel %vm5839_vm5, %v274_v46, %v278_v52  ;;  %v289_v43 = vsel %vm5839_vm5, %v284_v5, %v288_v17  ;;  %v297_v24 = vor.u32 %v296_v32, %v293_v3  ;;  %v6237_v52 = vld [vmem:[%s9265_s0 + $0x74] sm:$0x3]  ;;  %v9316_v17 = vshrl.u32 %v6229_v4, 16  ;;  %v6250_v5 = vld [vmem:[%s9265_s0 + $0x78] sm:$0xf] }
  0x44   :  { %9380 = vst [vmem:[#allocation17_spill] sm:$0xff] %v6237_v52  ;;  %v6239_v46 = vcombine.low %v279_v18, %v289_v43  ;;  %v307_v31 = vor.u32 %v306_v54, %v302_v41  ;;  %v6255_v43 = vld [vmem:[%s9265_s0 + $0x7c] sm:$0xf]  ;;  %v317_v32 = vrot.slane %v9313_v56, 4  ;;  %v9320_v18 = vshll.u32 %v6237_v52, 16 }
  0x45   :  { %v298_v26 = vrot.slane %v297_v24, 4  ;;  %v320_v24 = vrot.slane %v9315_v21, 5  ;;  %v326_v57 = vrot.slane %v9314_v2, 5  ;;  %v6278_v56 = vld [vmem:[%s9265_s0 + $0x80] sm:$0x3]  ;;  %v9324_v8 = vshrl.u32 %v6250_v5, 16 }
  0x46   :  { %5327 = vmatmul.mubr.msk.bf16.gmra.mxu1 %vm571_vm4, %v6239_v46  ;;  %v308_v3 = vrot.slane %v307_v31, 4  ;;  %v330_v31 = vrot.slane %v9316_v17, 4  ;;  %9381 = vst [vmem:[#allocation18_spill] sm:$0xff] %v6278_v56  ;;  %v336_v17 = vrot.slane %v9320_v18, 5  ;;  %v9327_v44 = vshrl.u32 %v6255_v43, 16 }
  0x47   :  { %v303_v54 = vsel %vm5839_vm5, %v298_v26, %v302_v41  ;;  %v6283_v26 = vld [vmem:[%s9265_s0 + $0x84] sm:$0xf]  ;;  %v321_v2 = vor.u32 %v320_v24, %v317_v32  ;;  %v6299_v32 = vld [vmem:[%s9265_s0 + $0x88] sm:$0xf] }
  0x48   :  { %v331_v21 = vor.u32 %v330_v31, %v326_v57  ;;  %v341_v31 = vrot.slane %v9324_v8, 4  ;;  %v9386_v33 = vshrl.u32 %v6299_v32, 16 }
  0x49   :  { %4865 = vmatmul.mubr.msk.bf16.gmra.mxu0 %vm571_vm4, %v6136_v38  ;;  %v313_v38 = vsel %vm5839_vm5, %v308_v3, %v312_v10  ;;  %v9325_v10 = vshll.u32 %v6250_v5, 16  ;;  %v9326_v3 = vshll.u32 %v6255_v43, 16  ;;  %v322_v1 = vrot.slane %v321_v2, 4 }
  0x4a   :  { %712 = vmatprep.mubr.bf16.mxu0 %v9322_v0  ;;  %v6285_v41 = vcombine.low %v303_v54, %v313_v38  ;;  %v332_v61 = vrot.slane %v331_v21, 4  ;;  %v9328_v54 = vshll.u32 %v6278_v56, 16  ;;  %v354_v2 = vrot.slane %v9327_v44, 4  ;;  %v6317_v0 = vld [vmem:[%s9265_s0 + $0x8c] sm:$0x3] }
  0x4b   :  { %v344_v38 = vrot.slane %v9325_v10, 5  ;;  %v350_v18 = vrot.slane %v9326_v3, 5  ;;  %v327_v21 = vsel %vm5839_vm5, %v322_v1, %v326_v57  ;;  %9382 = vst [vmem:[#allocation19_spill] sm:$0xff] %v6317_v0  ;;  %v9383_v1 = vshrl.u32 %v6283_v26, 16 }
  0x4c   :  { %5330 = vmatprep.mubr.msk.bf16.mxu1 %vm571_vm4, %v6285_v41  ;;  %v337_v60 = vsel %vm5839_vm5, %v332_v61, %v336_v17  ;;  %v360_v3 = vrot.slane %v9328_v54, 5  ;;  %v9332_v61 = vshll.u32 %v6283_v26, 16  ;;  %v9384_v17 = vmov 0   ;;  %v6349_v54 = vld [vmem:[%s9265_s0 + $0x98] sm:$0x3] }
  0x4d   :  { %v6319_v8 = vcombine.low %v327_v21, %v337_v60  ;;  %v345_v10 = vor.u32 %v344_v38, %v341_v31  ;;  %v355_v24 = vor.u32 %v354_v2, %v350_v18  ;;  %v365_v57 = vrot.slane %v9383_v1, 4  ;;  %v6332_v60 = vld [vmem:[%s9265_s0 + $0x90] sm:$0xf]  ;;  %v6341_v21 = vld [vmem:[%s9265_s0 + $0x94] sm:$0xf]  ;;  %9385 = vst [vmem:[#allocation20_spill] sm:$0xff] %v6349_v54 }
  0x4e   :  { %v9337_v2 = vshll.u32 %v6299_v32, 16  ;;  %v368_v1 = vrot.slane %v9332_v61, 5  ;;  %v378_v25 = vrot.slane %v9386_v33, 4  ;;  %v6373_v33 = vld [vmem:[%s9265_s0 + $0xa0] sm:$0xf]  ;;  %v9388_v52 = vshrl.u32 %v6341_v21, 16 }
  0x4f   :  { %5331 = vmatmul.mubr.msk.bf16.gmra.mxu1 %vm571_vm4, %v6319_v8  ;;  %v346_v31 = vrot.slane %v345_v10, 4  ;;  %v356_v38 = vrot.slane %v355_v24, 4  ;;  %v9389_v62 = vshll.u32 %v6349_v54, 16  ;;  %v9358_v54 = vshrl.u32 %v6373_v33, 16 }
  0x50   :  { %v369_v44 = vor.u32 %v368_v1, %v365_v57  ;;  %v9347_v1 = vshll.u32 %v6341_v21, 16 }
  0x51   :  { %4866 = vmatmul.mubr.msk.bf16.gmra.mxu0 %vm571_vm4, %v6193_v28  ;;  %v351_v10 = vsel %vm5839_vm5, %v346_v31, %v350_v18  ;;  %v361_v24 = vsel %vm5839_vm5, %v356_v38, %v360_v3  ;;  %v374_v28 = vrot.slane %v9337_v2, 5  ;;  %v9387_v18 = vshll.u32 %v6317_v0, 16 }
  0x52   :  { %722 = vmatprep.mubr.bf16.mxu0 %v9384_v17  ;;  %v6359_v61 = vcombine.low %v351_v10, %v361_v24  ;;  %v9343_v3 = vshrl.u32 %v6332_v60, 16  ;;  %v9344_v38 = vshll.u32 %v6332_v60, 16  ;;  %v370_v57 = vrot.slane %v369_v44, 4  ;;  %v6383_v24 = vld [vmem:[%s9265_s0 + $0xa4] sm:$0x3] }
  0x53   :  { %v379_v56 = vor.u32 %v378_v25, %v374_v28  ;;  %v384_v31 = vrot.slane %v9387_v18, 5  ;;  %v9349_v44 = vshrl.u32 %v6364_v19, 16  ;;  %v398_v25 = vrot.slane %v9347_v1, 5 }
  0x54   :  { %5334 = vmatprep.mubr.msk.bf16.mxu1 %vm571_vm4, %v6359_v61  ;;  %v389_v2 = vrot.slane %v9343_v3, 4  ;;  %v392_v0 = vrot.slane %v9344_v38, 5  ;;  %v375_v10 = vsel %vm5839_vm5, %v370_v57, %v374_v28  ;;  %v408_v3 = vrot.slane %v9389_v62, 5  ;;  %v6409_v57 = vld [vmem:[%s9265_s0 + $0xa8] sm:$0xf] }
  0x55   :  { %v380_v18 = vrot.slane %v379_v56, 4  ;;  %v402_v56 = vrot.slane %v9388_v52, 4  ;;  %v413_v63 = vrot.slane %v9349_v44, 4  ;;  %v9352_v28 = vshll.u32 %v6364_v19, 16 }
  0x56   :  { %v9355_v62 = vshll.u32 %v6373_v33, 16  ;;  %v9362_v48 = vshll.u32 %v6409_v57, 16 }
  0x57   :  { %v385_v38 = vsel %vm5839_vm5, %v380_v18, %v384_v31  ;;  %v403_v1 = vor.u32 %v402_v56, %v398_v25  ;;  %v416_v31 = vrot.slane %v9352_v28, 5 }
  0x58   :  { %v4849_v52 = vcombine.low %v375_v10, %v385_v38  ;;  %v422_v38 = vrot.slane %v9355_v62, 5  ;;  %v426_v10 = vrot.slane %v9358_v54, 4  ;;  %v9361_v62 = vshrl.u32 %v6409_v57, 16 }
  0x59   :  { %4867 = vmatmul.mubr.msk.bf16.gmra.mxu0 %vm571_vm4, %v6239_v46  ;;  %v393_v46 = vor.u32 %v392_v0, %v389_v2  ;;  %v6416_v0 = vld [vmem:[%s9265_s0 + $0xac] sm:$0xf]  ;;  %v404_v44 = vrot.slane %v403_v1, 4  ;;  %v417_v40 = vor.u32 %v416_v31, %v413_v63  ;;  %v9390_v1 = vshll.u32 %v6383_v24, 16 }
  0x5a   :  { %732 = vmatprep.mubr.bf16.mxu0 %v9384_v17  ;;  %5335 = vmatmul.mubr.msk.bf16.gmra.mxu1 %vm571_vm4, %v4849_v52  ;;  %v427_v18 = vor.u32 %v426_v10, %v422_v38  ;;  %v9364_v63 = vshll.u32 %v6416_v0, 16 }
  0x5b   :  { %v394_v2 = vrot.slane %v393_v46, 4  ;;  %v6431_v46 = vld [vmem:[%s9265_s0 + $0xb0] sm:$0x3]  ;;  %v409_v28 = vsel %vm5839_vm5, %v404_v44, %v408_v3  ;;  %v432_v16 = vrot.slane %v9390_v1, 5  ;;  %v418_v54 = vrot.slane %v417_v40, 4 }
  0x5c   :  { %v9365_v3 = vshrl.u32 %v6416_v0, 16  ;;  %v9363_v44 = vshll.u32 %v6431_v46, 16 }
  0x5d   :  { %v399_v56 = vsel %vm5839_vm5, %v394_v2, %v398_v25  ;;  %v428_v25 = vrot.slane %v427_v18, 4  ;;  %v437_v2 = vrot.slane %v9361_v62, 4  ;;  %v423_v40 = vsel %vm5839_vm5, %v418_v54, %v422_v38 }
  0x5e   :  { %v4850_v30 = vcombine.low %v399_v56, %v409_v28  ;;  %v440_v28 = vrot.slane %v9362_v48, 5  ;;  %v450_v18 = vrot.slane %v9365_v3, 4  ;;  %v456_v10 = vrot.slane %v9363_v44, 5 }
  0x5f   :  { %v433_v31 = vsel %vm5839_vm5, %v428_v25, %v432_v16 }
  0x60   :  { %5338 = vmatprep.mubr.msk.bf16.mxu1 %vm571_vm4, %v4850_v30  ;;  %v4851_v56 = vcombine.low %v423_v40, %v433_v31  ;;  %v441_v1 = vor.u32 %v440_v28, %v437_v2  ;;  %v4898_v2 = vcombine.low %v6077_v47, %v6089_v50  ;;  %v4899_v40 = vcombine.low %v6103_v11, %v6134_v42  ;;  %v5567_v28 = vld [vmem:[%s9266_s1 + $0xac] ss:$12 sps:$4 sm:$0xff]  }
  0x61   :  { %4868 = vmatmul.mubr.msk.bf16.gmra.mxu0 %vm571_vm4, %v6285_v41  ;;  %v446_v41 = vrot.slane %v9364_v63, 5  ;;  %v9391_v31 = vshrl.u32 %v5892_v51, 16 }
  0x62   :  { %742 = vmatprep.mubr.bf16.mxu0 %v9384_v17  ;;  %5339 = vmatmul.mubr.msk.bf16.gmra.mxu1 %vm571_vm4, %v4851_v56  ;;  %v442_v54 = vrot.slane %v441_v1, 4  ;;  %v9393_v1 = vshll.u32 %v5902_v55, 16 }
  0x63   :  { %v451_v62 = vor.u32 %v450_v18, %v446_v41  ;;  %v2224_v18 = vrot.slane %v9391_v31, 5  ;;  %v4903_v31 = vcombine.low %v6283_v26, %v6299_v32 }
  0x64   :  { %v447_v48 = vsel %vm5839_vm5, %v442_v54, %v446_v41  ;;  %v4900_v41 = vcombine.low %v6154_v14, %v6166_v12  ;;  %v2229_v54 = vrot.slane %v9393_v1, 6  ;;  %v9401_v1 = vshrl.u32 %v5939_v13, 16 }
  0x65   :  { %v452_v38 = vrot.slane %v451_v62, 4  ;;  %v6523_v62 = vld [vmem:[%s9266_s1 + $0xb0] ss:$12 sps:$4 sm:$0xff]  }
  0x67   :  { %v457_v16 = vsel %vm5839_vm5, %v452_v38, %v456_v10  ;;  %v9392_v10 = vshll.u32 %v5892_v51, 16  ;;  %v9394_v38 = vsel %vm5851_vm6, %v5865_v36, %v5867_v37  ;;  %v4902_v36 = vcombine.low %v6250_v5, %v6255_v43 }
  0x68   :  { %v4852_v25 = vcombine.low %v447_v48, %v457_v16  ;;  %v4896_v48 = vcombine.low %v5994_v49, %v6019_v23  ;;  %v6559_v16 = vcombine.low %v9394_v38, %v5896_v53  ;;  %v2248_v38 = vshrl.u32 %v5944_v15, 16 }
  0x69   :  { %4869 = vmatmul.mubr.msk.bf16.gmra.mxu0 %vm571_vm4, %v6319_v8  ;;  %v4892_v8 = vcombine.low %v5818_v6, %v5823_v7  ;;  %v4894_v6 = vcombine.low %v5928_v9, %v5939_v13  ;;  %v4895_v7 = vcombine.low %v5965_v35, %v5978_v45 }
  0x6a   :  { %752 = vmatprep.mubr.bf16.mxu0 %v9384_v17  ;;  %5342 = vmatprep.mubr.msk.bf16.mxu1 %vm571_vm4, %v4852_v25 }
  0x6b   :  { %5343 = vmatmul.mubr.msk.bf16.gmra.mxu1 %vm571_vm4, %v5951_v22  ;;  %v4893_v22 = vcombine.low %v5892_v51, %v5902_v55  ;;  %v2233_v51 = vshrl.u32 %v5909_v58, 16 }
  0x6c   :  { %1166 = vmatprep.mubr.bf16.mxu1 %v9384_v17 }
  0x71   :  { %4870 = vmatmul.mubr.msk.bf16.gmra.mxu0 %vm571_vm4, %v6359_v61  ;;  %v5553_v61 = vld [vmem:[%s9266_s1 + $0x60] ss:$12 sps:$4 sm:$0xff]  }
  0x72   :  { %762 = vmatprep.mubr.bf16.mxu0 %v9384_v17 }
  0x73   :  { %4914 = vmatmul.mubr.msk.bf16.vlgmr.msra.gmra.mxu1 %vm571_vm4, %v4892_v8 }
  0x74   :  { %1176 = vmatprep.mubr.bf16.mxu1 %v9384_v17  ;;  %5383 = vmatpush3.bf16.msra.mxu1 %v6204_v59  ;;  %v5555_v59 = vld [vmem:[%s9266_s1 + $0x64] ss:$12 sps:$4 sm:$0xff]  }
  0x75   :  { %5384 = vmatprep.subr.bf16.mxu1 %v5563_v20 }
  0x78   :  { %5385 = vmatpush3.bf16.msra.mxu1 %v5563_v20  ;;  %v9396_v20 = vshrl.u32 %v5902_v55, 16 }
  0x79   :  { %4871 = vmatmul.mubr.msk.bf16.gmra.mxu0 %vm571_vm4, %v4849_v52  ;;  %v4897_v52 = vcombine.low %v6031_v39, %v6055_v29  ;;  %2598 = vmatprep.subr.bf16.mxu1 %v5567_v28 }
  0x7a   :  { %772 = vmatprep.mubr.bf16.mxu0 %v9384_v17 }
  0x7b   :  { %4915 = vmatmul.mubr.msk.bf16.gmra.mxu1 %vm571_vm4, %v4893_v22 }
  0x7c   :  { %1186 = vmatprep.mubr.bf16.mxu1 %v9384_v17 }
  0x81   :  { %4872 = vmatmul.mubr.msk.bf16.gmra.mxu0 %vm571_vm4, %v4850_v30  ;;  %v5545_v30 = vld [vmem:[%s9266_s1 + $0x78] ss:$12 sps:$4 sm:$0xff]  }
  0x82   :  { %782 = vmatprep.mubr.bf16.mxu0 %v9384_v17 }
  0x83   :  { %4916 = vmatmul.mubr.msk.bf16.gmra.mxu1 %vm571_vm4, %v4894_v6 }
  0x84   :  { %1196 = vmatprep.mubr.bf16.mxu1 %v9384_v17 }
  0x89   :  { %4873 = vmatmul.mubr.msk.bf16.gmra.mxu0 %vm571_vm4, %v4851_v56  ;;  %v2225_v56 = vrot.slane %v9392_v10, 6  ;;  %v9400_v10 = vshll.u32 %v5944_v15, 16  ;;  %v9403_v15 = vshll.u32 %v5965_v35, 16 }
  0x8a   :  { %792 = vmatprep.mubr.bf16.mxu0 %v9384_v17 }
  0x8b   :  { %4917 = vmatmul.mubr.msk.bf16.gmra.mxu1 %vm571_vm4, %v4895_v7  ;;  %v2226_v37 = vor.u32 %v2225_v56, %v2224_v18  ;;  %v2251_v56 = vrot.slane %v9400_v10, 6 }
  0x8c   :  { %1206 = vmatprep.mubr.bf16.mxu1 %v9384_v17 }
  0x8d   :  { %v2227_v55 = vrot.slane %v2226_v37, 4 }
  0x91   :  { %4874 = vmatmul.mubr.msk.bf16.gmra.mxu0 %vm571_vm4, %v4852_v25  ;;  %v9395_v25 = vshll.u32 %v5909_v58, 16 }
  0x92   :  { %5350 = vmatprep.mubr.msk.bf16.mxu0 %vm571_vm4, %v4892_v8 }
  0x93   :  { %4918 = vmatmul.mubr.msk.bf16.gmra.mxu1 %vm571_vm4, %v4896_v48  ;;  %v2236_v8 = vrot.slane %v9395_v25, 6 }
  0x94   :  { %1216 = vmatprep.mubr.bf16.mxu1 %v9384_v17 }
  0x99   :  { %5351 = vmatmul.mubr.msk.bf16.vlgmr.msra.gmra.mxu0 %vm571_vm4, %v4893_v22  ;;  %v2228_v22 = vrot.slane %v9396_v20, 5  ;;  %v2250_v20 = vrot.slane %v2248_v38, 5 }
  0x9a   :  { %1769 = vmatpush1.bf16.msra.mxu0 %v5545_v30  ;;  %5354 = vmatprep.mubr.msk.bf16.mxu0 %vm571_vm4, %v4894_v6  ;;  %v4901_v6 = vcombine.low %v6218_v34, %v6229_v4  ;;  %v9397_v30 = vshrl.u32 %v5928_v9, 16 }
  0x9b   :  { %1770 = vmatprep.subr.bf16.mxu0 %v5555_v59  ;;  %4919 = vmatmul.mubr.msk.bf16.gmra.mxu1 %vm571_vm4, %v4897_v52  ;;  %v2230_v53 = vor.u32 %v2229_v54, %v2228_v22  ;;  %v2243_v54 = vrot.slane %v9401_v1, 5  ;;  %v2252_v37 = vor.u32 %v2251_v56, %v2250_v20 }
  0x9c   :  { %1226 = vmatprep.mubr.bf16.mxu1 %v9384_v17  ;;  %v2239_v59 = vrot.slane %v9397_v30, 5  ;;  %v6614_v30 = vcombine.low %v6364_v19, %v6373_v33 }
  0x9d   :  { %v2231_v28 = vsel %vm5851_vm6, %v2227_v55, %v2230_v53 }
  0x9e   :  { %1771 = vmatpush1.bf16.msra.mxu0 %v5553_v61  ;;  %v9398_v61 = vshll.u32 %v5928_v9, 16  ;;  %v6592_v9 = vcombine.low %v6332_v60, %v6341_v21 }
  0x9f   :  { %5418 = vmatprep.subr.bf16.mxu0 %v6523_v62 }
  0xa1   :  { %5355 = vmatmul.mubr.msk.bf16.gmra.mxu0 %vm571_vm4, %v4895_v7  ;;  %v2235_v7 = vrot.slane %v2233_v51, 5 }
  0xa2   :  { %5358 = vmatprep.mubr.msk.bf16.mxu0 %vm571_vm4, %v4896_v48  ;;  %v2232_v48 = vrot.slane %v2230_v53, 4 }
  0xa3   :  { %4920 = vmatmul.mubr.msk.bf16.gmra.mxu1 %vm571_vm4, %v4898_v2  ;;  %v2237_v58 = vor.u32 %v2236_v8, %v2235_v7  ;;  %v2255_v7 = vrot.slane %v9403_v15, 6 }
  0xa4   :  { %1236 = vmatprep.mubr.bf16.mxu1 %v9384_v17 }
  0xa9   :  { %5359 = vmatmul.mubr.msk.bf16.gmra.mxu0 %vm571_vm4, %v4897_v52  ;;  %v2240_v52 = vrot.slane %v9398_v61, 6  ;;  %v9405_v61 = vld [vmem:[#allocation11_spill] sm:$0xff] }
  0xaa   :  { %5362 = vmatprep.mubr.msk.bf16.mxu0 %vm571_vm4, %v4898_v2  ;;  %v9399_v2 = vshll.u32 %v5939_v13, 16  ;;  %v9402_v13 = vshrl.u32 %v5965_v35, 16  ;;  %v6622_v35 = vcombine.low %v6409_v57, %v6416_v0 }
  0xab   :  { %4921 = vmatmul.mubr.msk.bf16.gmra.mxu1 %vm571_vm4, %v4899_v40  ;;  %v2241_v25 = vor.u32 %v2240_v52, %v2239_v59  ;;  %v9406_v52 = vshll.u32 %v9405_v61, 16 }
  0xac   :  { %1246 = vmatprep.mubr.bf16.mxu1 %v9384_v17  ;;  %v2254_v53 = vrot.slane %v9402_v13, 5 }
  0xad   :  { %v2242_v22 = vrot.slane %v2241_v25, 4 }
  0xae   :  { %v2256_v10 = vor.u32 %v2255_v7, %v2254_v53  ;;  %v9411_v7 = vld [vmem:[#allocation12_spill] sm:$0xff] }
  0xb0   :  { %v2257_v38 = vrot.slane %v2256_v10, 4 }
  0xb1   :  { %5363 = vmatmul.mubr.msk.bf16.gmra.mxu0 %vm571_vm4, %v4899_v40  ;;  %v2244_v40 = vrot.slane %v9399_v2, 6  ;;  %v2266_v2 = vrot.slane %v9406_v52, 6 }
  0xb2   :  { %5366 = vmatprep.mubr.msk.bf16.mxu0 %vm571_vm4, %v4900_v41 }
  0xb3   :  { %4922 = vmatmul.mubr.msk.bf16.gmra.mxu1 %vm571_vm4, %v4900_v41  ;;  %v2238_v41 = vsel %vm5851_vm6, %v2232_v48, %v2237_v58  ;;  %v2245_v8 = vor.u32 %v2244_v40, %v2243_v54  ;;  %v9407_v40 = vshrl.u32 %v5978_v45, 16 }
  0xb4   :  { %1256 = vmatprep.mubr.bf16.mxu1 %v9384_v17  ;;  %v6586_v18 = vcombine.low %v2231_v28, %v2238_v41  ;;  %v2263_v41 = vshrl.u32 %v9405_v61, 16  ;;  %v5606_v61 = vld [vmem:[%s9265_s0] sm:$0xf] }
  0xb5   :  { %v2247_v51 = vrot.slane %v2245_v8, 4  ;;  %v2246_v48 = vsel %vm5851_vm6, %v2242_v22, %v2245_v8  ;;  %v2258_v28 = vrot.slane %v9407_v40, 5  ;;  %v9409_v22 = vshll.u32 %v5994_v49, 16 }
  0xb6   :  { %v2265_v1 = vrot.slane %v2263_v41, 5  ;;  %v4946_v52 = vrot.slane %v5606_v61, 9  ;;  %v5607_v41 = vld [vmem:[%s9265_s0 + $0x8] sm:$0x3] }
  0xb7   :  { %v2253_v58 = vsel %vm5851_vm6, %v2247_v51, %v2252_v37  ;;  %v2270_v51 = vrot.slane %v9409_v22, 6  ;;  %v9410_v37 = vshll.u32 %v6019_v23, 16  ;;  %v1512_v10 = vrot.slane %v5607_v41, 5  ;;  %v9419_v41 = vld [vmem:[#allocation13_spill] sm:$0xff] }
  0xb8   :  { %v6616_v59 = vcombine.low %v2246_v48, %v2253_v58  ;;  %v2267_v8 = vor.u32 %v2266_v2, %v2265_v1  ;;  %v6651_v48 = vld [vmem:[%s9265_s0 + $0xb4] sm:$0xf] }
  0xb9   :  { %5367 = vmatmul.mubr.msk.bf16.gmra.mxu0 %vm571_vm4, %v4901_v6  ;;  %v2274_v13 = vrot.slane %v9410_v37, 6 }
  0xba   :  { %5370 = vmatprep.mubr.msk.bf16.mxu0 %vm571_vm4, %v4902_v36 }
  0xbb   :  { %4923 = vmatmul.mubr.msk.bf16.gmra.mxu1 %vm571_vm4, %v4901_v6  ;;  %v9404_v6 = vshll.u32 %v5978_v45, 16  ;;  %v5603_v45 = vld [vmem:[%s9265_s0 + $0x4] sm:$0xf] }
  0xbc   :  { %1266 = vmatprep.mubr.bf16.mxu1 %v9384_v17  ;;  %v1509_v54 = vrot.slane %v5603_v45, 5  ;;  %v2278_v45 = vshrl.u32 %v9411_v7, 16 }
  0xbd   :  { %v2259_v55 = vrot.slane %v9404_v6, 6  ;;  %v9412_v6 = vshll.u32 %v9411_v7, 16 }
  0xbf   :  { %v2260_v56 = vor.u32 %v2259_v55, %v2258_v28  ;;  %v2281_v55 = vrot.slane %v9412_v6, 6  ;;  %v1511_v28 = vrot.slane %v1509_v54, 4 }
  0xc1   :  { %5371 = vmatmul.mubr.msk.bf16.gmra.mxu0 %vm571_vm4, %v4903_v31  ;;  %v2262_v25 = vrot.slane %v2260_v56, 4  ;;  %v2261_v53 = vsel %vm5851_vm6, %v2257_v38, %v2260_v56  ;;  %v9415_v56 = vshrl.u32 %v6019_v23, 16  ;;  %v5608_v23 = vld [vmem:[%s9265_s0 + $0x10] sm:$0xf] }
  0xc2   :  { %5374 = vmatprep.mubr.msk.bf16.mxu0 %vm571_vm4, %v6592_v9  ;;  %v1516_v22 = vrot.slane %v5608_v23, 5 }
  0xc3   :  { %4924 = vmatmul.mubr.msk.bf16.gmra.mxu1 %vm571_vm4, %v4902_v36  ;;  %v9408_v36 = vshrl.u32 %v5994_v49, 16  ;;  %v2268_v15 = vsel %vm5851_vm6, %v2262_v25, %v2267_v8  ;;  %v6656_v49 = vld [vmem:[%s9265_s0 + $0xb8] sm:$0xf]  ;;  %v2273_v1 = vrot.slane %v9415_v56, 5  ;;  %v2280_v8 = vrot.slane %v2278_v45, 5 }
  0xc4   :  { %1276 = vmatprep.mubr.bf16.mxu1 %v9384_v17  ;;  %v6660_v58 = vcombine.low %v6651_v48, %v6656_v49  ;;  %v6665_v2 = vcombine.low %v2261_v53, %v2268_v15  ;;  %v9417_v15 = vshll.u32 %v6031_v39, 16  ;;  %v1518_v45 = vrot.slane %v1516_v22, 4 }
  0xc5   :  { %v2269_v20 = vrot.slane %v9408_v36, 5  ;;  %v2275_v25 = vor.u32 %v2274_v13, %v2273_v1  ;;  %v1510_v36 = vsel %vm6667_vm9, %v4946_v52, %v1509_v54  ;;  %v9416_v13 = vshrl.u32 %v6031_v39, 16 }
  0xc6   :  { %v2285_v7 = vrot.slane %v9417_v15, 6  ;;  %v9418_v54 = vshll.u32 %v6055_v29, 16 }
  0xc7   :  { %v2271_v38 = vor.u32 %v2270_v51, %v2269_v20  ;;  %v2277_v20 = vrot.slane %v2275_v25, 4  ;;  %v2282_v51 = vor.u32 %v2281_v55, %v2280_v8  ;;  %v2284_v53 = vrot.slane %v9416_v13, 5  ;;  %v5609_v55 = vld [vmem:[%s9265_s0 + $0xc] sm:$0xf]  ;;  %v5611_v13 = vld [vmem:[%s9265_s0 + $0x1c] sm:$0xf] }
  0xc8   :  { %v2289_v6 = vrot.slane %v9418_v54, 6  ;;  %v4947_v39 = vrot.slane %v5609_v55, 9  ;;  %v9421_v8 = vshrl.u32 %v6055_v29, 16 }
  0xc9   :  { %5375 = vmatmul.mubr.msk.bf16.gmra.mxu0 %vm571_vm4, %v6614_v30  ;;  %v2272_v37 = vrot.slane %v2271_v38, 4  ;;  %v2283_v52 = vsel %vm5851_vm6, %v2277_v20, %v2282_v51  ;;  %v5610_v38 = vld [vmem:[%s9265_s0 + $0x14] sm:$0x3] }
  0xca   :  { %5378 = vmatprep.mubr.msk.bf16.mxu0 %vm571_vm4, %v6622_v35  ;;  %v2288_v23 = vrot.slane %v9421_v8, 5  ;;  %v1517_v29 = vsel %vm6667_vm9, %v4947_v39, %v1516_v22  ;;  %v9423_v22 = vshll.u32 %v6077_v47, 16 }
  0xcb   :  { %4925 = vmatmul.mubr.msk.bf16.gmra.mxu1 %vm571_vm4, %v4903_v31  ;;  %v1513_v31 = vsel %vm6667_vm9, %v1511_v28, %v1512_v10  ;;  %v2276_v61 = vsel %vm5851_vm6, %v2272_v37, %v2275_v25  ;;  %v9420_v28 = vshll.u32 %v9419_v41, 16  ;;  %v1519_v25 = vrot.slane %v5610_v38, 5 }
  0xcc   :  { %1286 = vmatprep.mubr.bf16.mxu1 %v9384_v17  ;;  %v6701_v56 = vcombine.low %v1510_v36, %v1513_v31  ;;  %v6706_v1 = vcombine.low %v2276_v61, %v2283_v52  ;;  %v2293_v37 = vshrl.u32 %v9419_v41, 16  ;;  %v5564_v36 = vld [vmem:[%s9266_s1 + $0x98] ss:$12 sps:$4 sm:$0xff]   ;;  %v2286_v31 = vor.u32 %v2285_v7, %v2284_v53 }
  0xcd   :  { %v2296_v10 = vrot.slane %v9420_v28, 6  ;;  %v2290_v20 = vor.u32 %v2289_v6, %v2288_v23  ;;  %v1520_v53 = vsel %vm6667_vm9, %v1518_v45, %v1519_v25  ;;  %v9422_v6 = vshrl.u32 %v6077_v47, 16  ;;  %v5613_v25 = vld [vmem:[%s9265_s0 + $0x20] sm:$0x3] }
  0xce   :  { %v2295_v51 = vrot.slane %v2293_v37, 5  ;;  %v2287_v15 = vrot.slane %v2286_v31, 4  ;;  %v2300_v52 = vrot.slane %v9423_v22, 6  ;;  %v9424_v41 = vshll.u32 %v6089_v50, 16  ;;  %v9425_v37 = vld [vmem:[#allocation14_spill] sm:$0xff] }
  0xcf   :  { %v2292_v7 = vrot.slane %v2290_v20, 4  ;;  %v2299_v61 = vrot.slane %v9422_v6, 5  ;;  %v6746_v38 = vcombine.low %v1517_v29, %v1520_v53  ;;  %v1526_v8 = vrot.slane %v5613_v25, 5 }
  0xd0   :  { %v2297_v54 = vor.u32 %v2296_v10, %v2295_v51  ;;  %v2304_v28 = vrot.slane %v9424_v41, 6  ;;  %v2291_v39 = vsel %vm5851_vm6, %v2287_v15, %v2290_v20  ;;  %v9426_v31 = vshll.u32 %v9425_v37, 16 }
  0xd1   :  { %5379 = vmatmul.mubr.msk.bf16.gmra.mxu0 %vm571_vm4, %v6660_v58  ;;  %v9427_v20 = vshrl.u32 %v6089_v50, 16  ;;  %v2308_v15 = vshrl.u32 %v9425_v37, 16  ;;  %v2301_v53 = vor.u32 %v2300_v52, %v2299_v61 }
  0xd2   :  { %1788 = vmatprep.mubr.bf16.mxu0 %v9384_v17  ;;  %v2298_v10 = vsel %vm5851_vm6, %v2292_v7, %v2297_v54  ;;  %v2311_v51 = vrot.slane %v9426_v31, 6 }
  0xd3   :  { %4926 = vmatmul.mubr.msk.bf16.gmra.mxu1 %vm571_vm4, %v6592_v9  ;;  %v1523_v9 = vrot.slane %v5611_v13, 5  ;;  %v6751_v23 = vcombine.low %v2291_v39, %v2298_v10  ;;  %v2303_v13 = vrot.slane %v9427_v20, 5  ;;  %v2310_v54 = vrot.slane %v2308_v15, 5 }
  0xd4   :  { %1296 = vmatprep.mubr.bf16.mxu1 %v9384_v17  ;;  %v2302_v61 = vrot.slane %v2301_v53, 4  ;;  %v9429_v39 = vshll.u32 %v6103_v11, 16 }
  0xd5   :  { %v1525_v47 = vrot.slane %v1523_v9, 4  ;;  %v2305_v7 = vor.u32 %v2304_v28, %v2303_v13  ;;  %v2312_v41 = vor.u32 %v2311_v51, %v2310_v54  ;;  %v9428_v28 = vshrl.u32 %v6103_v11, 16  ;;  %v5615_v11 = vld [vmem:[%s9265_s0 + $0x24] sm:$0xf]  ;;  %v5616_v13 = vld [vmem:[%s9265_s0 + $0x2c] sm:$0x3] }
  0xd6   :  { %v2315_v10 = vrot.slane %v9429_v39, 6  ;;  %v4949_v51 = vrot.slane %v5615_v11, 9  ;;  %v1533_v15 = vrot.slane %v5616_v13, 5 }
  0xd7   :  { %v2307_v52 = vrot.slane %v2305_v7, 4  ;;  %v2306_v25 = vsel %vm5851_vm6, %v2302_v61, %v2305_v7  ;;  %v9432_v7 = vld [vmem:[#allocation15_spill] sm:$0xff] }
  0xd8   :  { %v9433_v54 = vshll.u32 %v9432_v7, 16 }
  0xd9   :  { %4992 = vmatmul.mubr.msk.bf16.vlgmr.msra.gmra.mxu0 %vm571_vm4, %v6701_v56 }
  0xda   :  { %5419 = vmatpush3.bf16.msra.mxu0 %v6523_v62  ;;  %1798 = vmatprep.mubr.bf16.mxu0 %v9384_v17  ;;  %v5612_v62 = vld [vmem:[%s9265_s0 + $0x18] sm:$0xf] }
  0xdb   :  { %5420 = vmatprep.subr.bf16.mxu0 %v5564_v36  ;;  %v4948_v55 = vrot.slane %v5612_v62, 9  ;;  %4927 = vmatmul.mubr.msk.bf16.gmra.mxu1 %vm571_vm4, %v6614_v30  ;;  %v5614_v30 = vld [vmem:[%s9265_s0 + $0x28] sm:$0xf]  ;;  %v2314_v62 = vrot.slane %v9428_v28, 5 }
  0xdc   :  { %1306 = vmatprep.mubr.bf16.mxu1 %v9384_v17  ;;  %v1530_v22 = vrot.slane %v5614_v30, 5  ;;  %v9434_v30 = vshrl.u32 %v6134_v42, 16 }
  0xdd   :  { %v1524_v50 = vsel %vm6667_vm9, %v4948_v55, %v1523_v9  ;;  %v9430_v9 = vshll.u32 %v6134_v42, 16  ;;  %v2316_v28 = vor.u32 %v2315_v10, %v2314_v62  ;;  %v5617_v62 = vld [vmem:[%s9265_s0 + $0x34] sm:$0xf] }
  0xde   :  { %5421 = vmatpush3.bf16.msra.mxu0 %v5564_v36  ;;  %v1527_v36 = vsel %vm6667_vm9, %v1525_v47, %v1526_v8  ;;  %v2313_v8 = vsel %vm5851_vm6, %v2307_v52, %v2312_v41  ;;  %v1532_v20 = vrot.slane %v1530_v22, 4  ;;  %v2318_v61 = vrot.slane %v9434_v30, 5 }
  0xdf   :  { %v6744_v45 = vpop.f32.mrf.mxu0  ;;  %v2319_v55 = vrot.slane %v9430_v9, 6  ;;  %v6781_v47 = vcombine.low %v1524_v50, %v1527_v36  ;;  %v6797_v53 = vcombine.low %v2306_v25, %v2313_v8  ;;  %v2326_v50 = vrot.slane %v9433_v54, 6  ;;  %v5573_v36 = vld [vmem:[%s9266_s1 + $0xdc] ss:$12 sps:$4 sm:$0xff]  }
  0xe0   :  { %v2323_v52 = vshrl.u32 %v9432_v7, 16  ;;  %3300 = vmatprep.subr.bf16.mxu0 %v5573_v36  ;;  %v1531_v42 = vsel %vm6667_vm9, %v4949_v51, %v1530_v22  ;;  %v1537_v10 = vrot.slane %v5617_v62, 5  ;;  %v9437_v7 = vshrl.u32 %v6154_v14, 16 }
  0xe1   :  { %v6760_v29 = vpop.f32.mrf.mxu0  ;;  %4993 = vmatmul.mubr.msk.bf16.gmra.mxu0 %vm571_vm4, %v6746_v38  ;;  %v2320_v39 = vor.u32 %v2319_v55, %v2318_v61  ;;  %v2317_v55 = vrot.slane %v2316_v28, 4  ;;  %v9439_v22 = vshll.u32 %v6154_v14, 16  ;;  %v5618_v14 = vld [vmem:[%s9265_s0 + $0x30] sm:$0xf] }
  0xe2   :  { %1808 = vmatprep.mubr.bf16.mxu0 %v9384_v17  ;;  %v2325_v9 = vrot.slane %v2323_v52, 5  ;;  %v2329_v54 = vrot.slane %v9437_v7, 5 }
  0xe3   :  { %v6765_v6 = vpop.f32.mrf.mxu0  ;;  %4928 = vmatmul.mubr.msk.bf16.gmra.mxu1 %vm571_vm4, %v6622_v35  ;;  %v1534_v35 = vsel %vm6667_vm9, %v1532_v20, %v1533_v15  ;;  %v2322_v11 = vrot.slane %v2320_v39, 4  ;;  %v2330_v51 = vrot.slane %v9439_v22, 6  ;;  %v9440_v20 = vshll.u32 %v6166_v12, 16 }
  0xe4   :  { %1316 = vmatprep.mubr.bf16.mxu1 %v9384_v17  ;;  %v2327_v13 = vor.u32 %v2326_v50, %v2325_v9  ;;  %v2321_v61 = vsel %vm5851_vm6, %v2317_v55, %v2320_v39  ;;  %v9441_v50 = vld [vmem:[#allocation16_spill] sm:$0xff]  ;;  %v6846_v44 = vcombine.low %v1531_v42, %v1534_v35  ;;  %v4950_v22 = vrot.slane %v5618_v14, 9  ;;  %v5619_v55 = vld [vmem:[%s9265_s0 + $0x38] sm:$0x3] }
  0xe5   :  { %v6789_v31 = vpop.f32.mrf.mxu0  ;;  %v2334_v15 = vrot.slane %v9440_v20, 6  ;;  %v9442_v28 = vshll.u32 %v9441_v50, 16  ;;  %v1539_v39 = vrot.slane %v1537_v10, 4  ;;  %v2338_v63 = vshrl.u32 %v9441_v50, 16 }
  0xe6   :  { %v6787_v37 = vpop.f32.mrf.mxu1  ;;  %v2328_v52 = vsel %vm5851_vm6, %v2322_v11, %v2327_v13  ;;  %v1540_v11 = vrot.slane %v5619_v55, 5  ;;  %v9444_v13 = vshrl.u32 %v6166_v12, 16  ;;  %v1538_v12 = vsel %vm6667_vm9, %v4950_v22, %v1537_v10 }
  0xe7   :  { %9431 = vst [vmem:[#allocation11_spill] sm:$0xff] %v6787_v37  ;;  %v2341_v9 = vrot.slane %v9442_v28, 6  ;;  %v6851_v20 = vcombine.low %v2321_v61, %v2328_v52  ;;  %v2331_v61 = vor.u32 %v2330_v51, %v2329_v54  ;;  %v2340_v14 = vrot.slane %v2338_v63, 5 }
  0xe8   :  { %v6809_v41 = vpop.f32.mrf.mxu1  ;;  %v2333_v28 = vrot.slane %v9444_v13, 5  ;;  %v9447_v63 = vshrl.u32 %v6218_v34, 16  ;;  %v9450_v10 = vshll.u32 %v6229_v4, 16 }
  0xe9   :  { %9435 = vst [vmem:[#allocation12_spill] sm:$0xff] %v6809_v41  ;;  %v6814_v8 = vpop.f32.mrf.mxu0  ;;  %4994 = vmatmul.mubr.msk.bf16.gmra.mxu0 %vm571_vm4, %v6781_v47  ;;  %v2332_v50 = vrot.slane %v2331_v61, 4  ;;  %v2342_v54 = vor.u32 %v2341_v9, %v2340_v14  ;;  %v5565_v9 = vld [vmem:[%s9266_s1 + $0xa8] ss:$12 sps:$4 sm:$0xff]  }
  0xea   :  { %v6812_v25 = vpop.f32.mrf.mxu1  ;;  %1818 = vmatprep.mubr.bf16.mxu0 %v9384_v17  ;;  %v2335_v52 = vor.u32 %v2334_v15, %v2333_v28  ;;  %v2344_v51 = vrot.slane %v9447_v63, 5  ;;  %v9448_v15 = vshll.u32 %v6218_v34, 16  ;;  %v2349_v22 = vrot.slane %v9450_v10, 6  ;;  %v5570_v10 = vld [vmem:[%s9266_s1 + $0x94] ss:$12 sps:$4 sm:$0xff]  }
  0xeb   :  { %9436 = vst [vmem:[#allocation13_spill] sm:$0xff] %v6812_v25  ;;  %v6830_v30 = vpop.f32.mrf.mxu0  ;;  %4929 = vmatmul.mubr.msk.bf16.gmra.mxu1 %vm571_vm4, %v6660_v58  ;;  %v1541_v58 = vsel %vm6667_vm9, %v1539_v39, %v1540_v11  ;;  %v5620_v39 = vld [vmem:[%s9265_s0 + $0x40] sm:$0xf]  ;;  %v9452_v25 = vld [vmem:[#allocation17_spill] sm:$0xff] }
  0xec   :  { %v6828_v36 = vpop.f32.mrf.mxu1  ;;  %5386 = vmatprep.mubr.msk.bf16.mxu1 %vm571_vm4, %v6701_v56  ;;  %v2337_v56 = vrot.slane %v2335_v52, 4  ;;  %v2345_v13 = vrot.slane %v9448_v15, 6  ;;  %v1544_v11 = vrot.slane %v5620_v39, 5  ;;  %v2336_v34 = vsel %vm5851_vm6, %v2332_v50, %v2335_v52 }
  0xed   :  { %9438 = vst [vmem:[#allocation14_spill] sm:$0xff] %v6828_v36  ;;  %v6844_v7 = vpop.f32.mrf.mxu0  ;;  %v4974_v15 = vcombine.low %v1538_v12, %v1541_v58  ;;  %v9453_v41 = vshll.u32 %v9452_v25, 16  ;;  %v2353_v50 = vshrl.u32 %v9452_v25, 16  ;;  %v5621_v58 = vld [vmem:[%s9265_s0 + $0x3c] sm:$0xf] }
  0xee   :  { %v6842_v62 = vpop.f32.mrf.mxu1  ;;  %v2343_v61 = vsel %vm5851_vm6, %v2337_v56, %v2342_v54  ;;  %v4951_v54 = vrot.slane %v5621_v58, 9  ;;  %v1546_v25 = vrot.slane %v1544_v11, 4 }
  0xef   :  { %9443 = vst [vmem:[#allocation15_spill] sm:$0xff] %v6842_v62  ;;  %v6863_v35 = vpop.f32.mrf.mxu0  ;;  %v6905_v39 = vcombine.low %v2336_v34, %v2343_v61  ;;  %v2356_v37 = vrot.slane %v9453_v41, 6  ;;  %v5622_v41 = vld [vmem:[%s9265_s0 + $0x44] sm:$0x3]  ;;  %v2355_v61 = vrot.slane %v2353_v50, 5  ;;  %v9460_v50 = vshll.u32 %v6255_v43, 16 }
  0xf0   :  { %v6861_v42 = vpop.f32.mrf.mxu1 }
  0xf1   :  { %9445 = vst [vmem:[#allocation16_spill] sm:$0xff] %v6861_v42  ;;  %v6869_v55 = vpop.f32.mrf.mxu0  ;;  %4995 = vmatmul.mubr.msk.bf16.gmra.mxu0 %vm571_vm4, %v6846_v44 }
  0xf2   :  { %v6867_v3 = vpop.f32.mrf.mxu1  ;;  %1828 = vmatprep.mubr.bf16.mxu0 %v9384_v17 }
  0xf3   :  { %9446 = vst [vmem:[#allocation21_spill] sm:$0xff] %v6867_v3  ;;  %v6884_v36 = vpop.f32.mrf.mxu0  ;;  %5387 = vmatmul.mubr.msk.bf16.vlgmr.msra.gmra.mxu1 %vm571_vm4, %v6746_v38  ;;  %v5568_v38 = vld [vmem:[%s9266_s1 + $0x90] ss:$12 sps:$4 sm:$0xff]   ;;  %v2357_v3 = vor.u32 %v2356_v37, %v2355_v61 }
  0xf4   :  { %v6882_v28 = vpop.f32.mrf.mxu1  ;;  %5390 = vmatprep.mubr.msk.bf16.mxu1 %vm571_vm4, %v6781_v47  ;;  %2599 = vmatpush1.bf16.msra.mxu1 %v5565_v9 }
  0xf5   :  { %9449 = vst [vmem:[#allocation22_spill] sm:$0xff] %v6882_v28  ;;  %v6900_v63 = vpop.f32.mrf.mxu0  ;;  %v9454_v28 = vshrl.u32 %v6229_v4, 16  ;;  %v1547_v4 = vrot.slane %v5622_v41, 5  ;;  %v5623_v41 = vld [vmem:[%s9265_s0 + $0x4c] sm:$0xf]  ;;  %2600 = vmatprep.subr.bf16.mxu1 %v5570_v10  ;;  %v1545_v10 = vsel %vm6667_vm9, %v4951_v54, %v1544_v11 }
  0xf6   :  { %v6898_v14 = vpop.f32.mrf.mxu1  ;;  %v1551_v47 = vrot.slane %v5623_v41, 5  ;;  %v5624_v41 = vld [vmem:[%s9265_s0 + $0x48] sm:$0xf]  ;;  %v5625_v11 = vld [vmem:[%s9265_s0 + $0x50] sm:$0x3] }
  0xf7   :  { %9451 = vst [vmem:[#allocation23_spill] sm:$0xff] %v6898_v14  ;;  %v2348_v52 = vrot.slane %v9454_v28, 5  ;;  %v6916_v12 = vpop.f32.mrf.mxu0  ;;  %v2346_v28 = vor.u32 %v2345_v13, %v2344_v51  ;;  %v9458_v51 = vshrl.u32 %v6250_v5, 16  ;;  %v1554_v54 = vrot.slane %v5625_v11, 5 }
  0xf8   :  { %v6914_v56 = vpop.f32.mrf.mxu1  ;;  %2601 = vmatpush1.bf16.msra.mxu1 %v5568_v38 }
  0xf9   :  { %9455 = vst [vmem:[#allocation17_spill] sm:$0xff] %v6914_v56  ;;  %v2350_v34 = vor.u32 %v2349_v22, %v2348_v52  ;;  %v6931_v58 = vpop.f32.mrf.mxu0  ;;  %4996 = vmatmul.mubr.msk.bf16.gmra.mxu0 %vm571_vm4, %v4974_v15  ;;  %v2347_v9 = vrot.slane %v2346_v28, 4  ;;  %v2359_v13 = vrot.slane %v9458_v51, 5  ;;  %v9459_v22 = vshll.u32 %v6250_v5, 16 }
  0xfa   :  { %v6929_v56 = vpop.f32.mrf.mxu1  ;;  %9457 = vst [vmem:[#allocation25_spill] sm:$0xff] %v6931_v58  ;;  %1838 = vmatprep.mubr.bf16.mxu0 %v9384_v17  ;;  %v1548_v28 = vsel %vm6667_vm9, %v1546_v25, %v1547_v4  ;;  %v4952_v51 = vrot.slane %v5624_v41, 9  ;;  %v9464_v25 = vld [vmem:[#allocation18_spill] sm:$0xff] }
  0xfb   :  { %9456 = vst [vmem:[#allocation24_spill] sm:$0xff] %v6929_v56  ;;  %v2352_v14 = vrot.slane %v2350_v34, 4  ;;  %v2360_v52 = vrot.slane %v9459_v22, 6  ;;  %v2364_v56 = vrot.slane %v9460_v50, 6  ;;  %v6946_v62 = vpop.f32.mrf.mxu0  ;;  %v2351_v37 = vsel %vm5851_vm6, %v2347_v9, %v2350_v34  ;;  %5391 = vmatmul.mubr.msk.bf16.gmra.mxu1 %vm571_vm4, %v6846_v44 }
  0xfc   :  { %v6944_v42 = vpop.f32.mrf.mxu1  ;;  %9462 = vst [vmem:[#allocation27_spill] sm:$0xff] %v6946_v62  ;;  %v1553_v22 = vrot.slane %v1551_v47, 4  ;;  %v9465_v38 = vshll.u32 %v9464_v25, 16  ;;  %v2368_v50 = vshrl.u32 %v9464_v25, 16  ;;  %v4975_v41 = vcombine.low %v1545_v10, %v1548_v28  ;;  %5394 = vmatprep.mubr.msk.bf16.mxu1 %vm571_vm4, %v4974_v15  ;;  %v5627_v28 = vld [vmem:[%s9265_s0 + $0x64] sm:$0xf] }
  0xfd   :  { %9461 = vst [vmem:[#allocation26_spill] sm:$0xff] %v6944_v42  ;;  %v2358_v5 = vsel %vm5851_vm6, %v2352_v14, %v2357_v3  ;;  %v6956_v61 = vpop.f32.mrf.mxu0  ;;  %v9467_v3 = vshrl.u32 %v6255_v43, 16  ;;  %v1552_v25 = vsel %vm6667_vm9, %v4952_v51, %v1551_v47  ;;  %v1565_v15 = vrot.slane %v5627_v28, 5  ;;  %v5629_v28 = vld [vmem:[%s9265_s0 + $0x5c] sm:$0x3] }
  0xfe   :  { %9463 = vst [vmem:[#allocation28_spill] sm:$0xff] %v6956_v61  ;;  %v6964_v4 = vcombine.low %v2351_v37, %v2358_v5  ;;  %v2371_v34 = vrot.slane %v9465_v38, 6  ;;  %v6968_v9 = vpop.f32.mrf.mxu1  ;;  %v5626_v37 = vld [vmem:[%s9265_s0 + $0x58] sm:$0xf]  ;;  %v2361_v38 = vor.u32 %v2360_v52, %v2359_v13  ;;  %v1555_v44 = vsel %vm6667_vm9, %v1553_v22, %v1554_v54 }
  0xff   :  { %9466 = vst [vmem:[#allocation18_spill] sm:$0xff] %v6968_v9  ;;  %v2363_v14 = vrot.slane %v9467_v3, 5  ;;  %v6975_v42 = vpop.f32.mrf.mxu0  ;;  %v1558_v5 = vrot.slane %v5626_v37, 5  ;;  %v2370_v3 = vrot.slane %v2368_v50, 5  ;;  %v9471_v37 = vshrl.u32 %v6283_v26, 16 }
 0x100   :  { %9468 = vst [vmem:[#allocation29_spill] sm:$0xff] %v6975_v42  ;;  %v6981_v11 = vpop.f32.mrf.mxu1  ;;  %v2362_v47 = vrot.slane %v2361_v38, 4  ;;  %v9473_v22 = vshll.u32 %v6283_v26, 16  ;;  %v4976_v9 = vcombine.low %v1552_v25, %v1555_v44  ;;  %v5631_v25 = vld [vmem:[%s9265_s0 + $0x68] sm:$0x3] }
 0x101   :  { %9469 = vst [vmem:[#allocation30_spill] sm:$0xff] %v6981_v11  ;;  %v2365_v43 = vor.u32 %v2364_v56, %v2363_v14  ;;  %v6987_v10 = vpop.f32.mrf.mxu0  ;;  %4997 = vmatmul.mubr.msk.bf16.gmra.mxu0 %vm571_vm4, %v4975_v41  ;;  %v2374_v13 = vrot.slane %v9471_v37, 5  ;;  %v2372_v51 = vor.u32 %v2371_v34, %v2370_v3  ;;  %v5628_v14 = vld [vmem:[%s9265_s0 + $0x54] sm:$0xf]  ;;  %v1560_v11 = vrot.slane %v1558_v5, 4 }
 0x102   :  { %9470 = vst [vmem:[#allocation31_spill] sm:$0xff] %v6987_v10  ;;  %v6995_v56 = vpop.f32.mrf.mxu1  ;;  %1848 = vmatprep.mubr.bf16.mxu0 %v9384_v17  ;;  %v2375_v54 = vrot.slane %v9473_v22, 6  ;;  %v4953_v50 = vrot.slane %v5628_v14, 9  ;;  %v1561_v37 = vrot.slane %v5629_v28, 5  ;;  %v5630_v34 = vld [vmem:[%s9265_s0 + $0x60] sm:$0xf] }
 0x103   :  { %9472 = vst [vmem:[#allocation32_spill] sm:$0xff] %v6995_v56  ;;  %v2367_v52 = vrot.slane %v2365_v43, 4  ;;  %v7006_v56 = vpop.f32.mrf.mxu0  ;;  %v4954_v26 = vrot.slane %v5630_v34, 9  ;;  %v2366_v38 = vsel %vm5851_vm6, %v2362_v47, %v2365_v43  ;;  %v9475_v22 = vshll.u32 %v6299_v32, 16  ;;  %v7029_v43 = vld [vmem:[%s9266_s1 + $0xe0] ss:$12 sps:$4 sm:$0xff]   ;;  %5395 = vmatmul.mubr.msk.bf16.gmra.mxu1 %vm571_vm4, %v4975_v41 }
 0x104   :  { %9474 = vst [vmem:[#allocation33_spill] sm:$0xff] %v7006_v56  ;;  %v7017_v10 = vpop.f32.mrf.mxu1  ;;  %v1567_v56 = vrot.slane %v1565_v15, 4  ;;  %v1568_v44 = vrot.slane %v5631_v25, 5  ;;  %v9478_v47 = vld [vmem:[#allocation19_spill] sm:$0xff]  ;;  %5398 = vmatprep.mubr.msk.bf16.mxu1 %vm571_vm4, %v4976_v9  ;;  %v1562_v41 = vsel %vm6667_vm9, %v1560_v11, %v1561_v37  ;;  %5454 = vmatprep.subr.bf16.mxu1 %v7029_v43  ;;  %v5634_v11 = vld [vmem:[%s9265_s0 + $0x7c] sm:$0xf] }
 0x105   :  { %v2373_v3 = vsel %vm5851_vm6, %v2367_v52, %v2372_v51  ;;  %v2379_v14 = vrot.slane %v9475_v22, 6  ;;  %9476 = vst [vmem:[#allocation34_spill] sm:$0xff] %v7017_v10  ;;  %v7019_v28 = vpop.f32.mrf.mxu0  ;;  %v9479_v52 = vshll.u32 %v9478_v47, 16  ;;  %v1559_v22 = vsel %vm6667_vm9, %v4953_v50, %v1558_v5 }
 0x106   :  { %9477 = vst [vmem:[#allocation35_spill] sm:$0xff] %v7019_v28  ;;  %v7024_v34 = vcombine.low %v2366_v38, %v2373_v3  ;;  %v9481_v28 = vshrl.u32 %v6299_v32, 16  ;;  %v7043_v38 = vld [vmem:[%s9265_s0 + $0x8c] sm:$0x3]  ;;  %v1566_v5 = vsel %vm6667_vm9, %v4954_v26, %v1565_v15  ;;  %v5633_v32 = vld [vmem:[%s9265_s0 + $0x70] sm:$0xf]  ;;  %v7055_v47 = vpop.f32.mrf.mxu1 }
 0x107   :  { %v2386_v51 = vrot.slane %v9479_v52, 6  ;;  %v7036_v10 = vpop.f32.mrf.mxu0  ;;  %v2383_v3 = vshrl.u32 %v7043_v38, 16  ;;  %v1572_v50 = vrot.slane %v5633_v32, 5  ;;  %9482 = vst [vmem:[#allocation36_spill] sm:$0xff] %v7055_v47  ;;  %v1569_v52 = vsel %vm6667_vm9, %v1567_v56, %v1568_v44 }
 0x108   :  { %9480 = vst [vmem:[#allocation19_spill] sm:$0xff] %v7036_v10  ;;  %v2378_v25 = vrot.slane %v9481_v28, 5  ;;  %v2376_v28 = vor.u32 %v2375_v54, %v2374_v13  ;;  %v1579_v15 = vrot.slane %v5634_v11, 5  ;;  %v9484_v32 = vshrl.u32 %v6364_v19, 16 }
 0x109   :  { %v7059_v10 = vpop.f32.mrf.mxu0  ;;  %4998 = vmatmul.mubr.msk.bf16.gmra.mxu0 %vm571_vm4, %v4976_v9  ;;  %v2385_v26 = vrot.slane %v2383_v3, 5  ;;  %v9485_v13 = vshll.u32 %v6364_v19, 16  ;;  %v9486_v47 = vshll.u32 %v6373_v33, 16  ;;  %v4977_v9 = vcombine.low %v1559_v22, %v1562_v41 }
 0x10a   :  { %9483 = vst [vmem:[#allocation37_spill] sm:$0xff] %v7059_v10  ;;  %v2380_v37 = vor.u32 %v2379_v14, %v2378_v25  ;;  %v2404_v42 = vrot.slane %v9484_v32, 5  ;;  %1858 = vmatprep.mubr.bf16.mxu0 %v9384_v17  ;;  %v2377_v44 = vrot.slane %v2376_v28, 4  ;;  %v7072_v10 = vpop.f32.mrf.mxu1  ;;  %v5635_v14 = vld [vmem:[%s9265_s0 + $0x6c] sm:$0xf]  ;;  %v7079_v19 = vcombine.low %v1566_v5, %v1569_v52 }
 0x10b   :  { %v2405_v54 = vrot.slane %v9485_v13, 6  ;;  %v2409_v56 = vrot.slane %v9486_v47, 6  ;;  %9487 = vst [vmem:[#allocation38_spill] sm:$0xff] %v7072_v10  ;;  %v4955_v25 = vrot.slane %v5635_v14, 9  ;;  %v7077_v3 = vpop.f32.mrf.mxu0  ;;  %v2387_v32 = vor.u32 %v2386_v51, %v2385_v26  ;;  %v5636_v47 = vld [vmem:[%s9265_s0 + $0x74] sm:$0x3]  ;;  %5399 = vmatmul.mubr.msk.bf16.gmra.mxu1 %vm571_vm4, %v4977_v9 }
 0x10c   :  { %9488 = vst [vmem:[#allocation39_spill] sm:$0xff] %v7077_v3  ;;  %v2382_v11 = vrot.slane %v2380_v37, 4  ;;  %v1574_v13 = vrot.slane %v1572_v50, 4  ;;  %v1575_v28 = vrot.slane %v5636_v47, 5  ;;  %v2381_v22 = vsel %vm5851_vm6, %v2377_v44, %v2380_v37  ;;  %v7086_v41 = vpop.f32.mrf.mxu1  ;;  %v5637_v14 = vld [vmem:[%s9265_s0 + $0x78] sm:$0xf]  ;;  %5402 = vmatprep.mubr.msk.bf16.mxu1 %vm571_vm4, %v7079_v19 }
 0x10d   :  { %9489 = vst [vmem:[#allocation40_spill] sm:$0xff] %v7086_v41  ;;  %v7088_v10 = vpop.f32.mrf.mxu0  ;;  %v4956_v51 = vrot.slane %v5637_v14, 9  ;;  %v1581_v5 = vrot.slane %v1579_v15, 4  ;;  %v5638_v52 = vld [vmem:[%s9265_s0 + $0x80] sm:$0x3]  ;;  %v9491_v37 = vshrl.u32 %v6373_v33, 16  ;;  %v1573_v33 = vsel %vm6667_vm9, %v4955_v25, %v1572_v50 }
 0x10e   :  { %9490 = vst [vmem:[#allocation41_spill] sm:$0xff] %v7088_v10  ;;  %v1582_v26 = vrot.slane %v5638_v52, 5  ;;  %v2388_v47 = vsel %vm5851_vm6, %v2382_v11, %v2387_v32  ;;  %v9492_v41 = vshll.u32 %v6383_v24, 16  ;;  %v7105_v14 = vpop.f32.mrf.mxu1  ;;  %v5639_v52 = vld [vmem:[%s9265_s0 + $0x88] sm:$0xf]  ;;  %v2413_v11 = vshrl.u32 %v6383_v24, 16 }
 0x10f   :  { %v7098_v3 = vcombine.low %v2381_v22, %v2388_v47  ;;  %v2408_v44 = vrot.slane %v9491_v37, 5  ;;  %9493 = vst [vmem:[#allocation42_spill] sm:$0xff] %v7105_v14  ;;  %v7107_v61 = vpop.f32.mrf.mxu0  ;;  %v1586_v62 = vrot.slane %v5639_v52, 5  ;;  %v1576_v32 = vsel %vm6667_vm9, %v1574_v13, %v1575_v28  ;;  %v5640_v24 = vld [vmem:[%s9265_s0 + $0x94] sm:$0xf] }
 0x110   :  { %v2416_v10 = vrot.slane %v9492_v41, 6  ;;  %9494 = vst [vmem:[#allocation43_spill] sm:$0xff] %v7107_v61  ;;  %v2406_v22 = vor.u32 %v2405_v54, %v2404_v42  ;;  %v1580_v47 = vsel %vm6667_vm9, %v4956_v51, %v1579_v15  ;;  %v1583_v37 = vsel %vm6667_vm9, %v1581_v5, %v1582_v26  ;;  %v9496_v14 = vld [vmem:[#allocation8_spill] sm:$0xff]  ;;  %v7134_v51 = vpop.f32.mrf.mxu1 }
 0x111   :  { %v2410_v41 = vor.u32 %v2409_v56, %v2408_v44  ;;  %v7123_v52 = vpop.f32.mrf.mxu0  ;;  %4999 = vmatmul.mubr.msk.bf16.gmra.mxu0 %vm571_vm4, %v4977_v9  ;;  %v1593_v50 = vrot.slane %v5640_v24, 5  ;;  %v2415_v25 = vrot.slane %v2413_v11, 5  ;;  %v9497_v13 = vshrl.u32 %v9496_v14, 16  ;;  %9499 = vst [vmem:[#allocation8_spill] sm:$0xff] %v7134_v51  ;;  %v5641_v9 = vld [vmem:[%s9265_s0 + $0x84] sm:$0xf] }
 0x112   :  { %9495 = vst [vmem:[#allocation44_spill] sm:$0xff] %v7123_v52  ;;  %v9498_v54 = vshll.u32 %v9496_v14, 16  ;;  %1868 = vmatprep.mubr.bf16.mxu0 %v9384_v17  ;;  %v2407_v15 = vrot.slane %v2406_v22, 4  ;;  %v7136_v5 = vcombine.low %v1573_v33, %v1576_v32  ;;  %v4957_v26 = vrot.slane %v5641_v9, 9  ;;  %v5642_v22 = vld [vmem:[%s9265_s0 + $0x90] sm:$0xf]  ;;  %v7153_v9 = vpop.f32.mrf.mxu1 }
 0x113   :  { %v2434_v42 = vrot.slane %v9497_v13, 5  ;;  %v2412_v28 = vrot.slane %v2410_v41, 4  ;;  %v1588_v44 = vrot.slane %v1586_v62, 4  ;;  %v7141_v11 = vpop.f32.mrf.mxu0  ;;  %v2417_v24 = vor.u32 %v2416_v10, %v2415_v25  ;;  %v9501_v32 = vld [vmem:[#allocation9_spill] sm:$0xff] }
 0x114   :  { %v2435_v56 = vrot.slane %v9498_v54, 6  ;;  %9500 = vst [vmem:[#allocation45_spill] sm:$0xff] %v7141_v11  ;;  %v7143_v13 = vcombine.low %v1580_v47, %v1583_v37  ;;  %v1589_v14 = vrot.slane %v7043_v38, 5  ;;  %v4958_v54 = vrot.slane %v5642_v22, 9  ;;  %9503 = vst [vmem:[#allocation9_spill] sm:$0xff] %v7153_v9  ;;  %5403 = vmatmul.mubr.msk.bf16.gmra.mxu1 %vm571_vm4, %v7136_v5  ;;  %v7171_v22 = vpop.f32.mrf.mxu1 }
 0x115   :  { %v2411_v33 = vsel %vm5851_vm6, %v2407_v15, %v2410_v41  ;;  %v9502_v51 = vshll.u32 %v9501_v32, 16  ;;  %v7155_v61 = vpop.f32.mrf.mxu0  ;;  %v1595_v10 = vrot.slane %v1593_v50, 4  ;;  %v7160_v38 = vld [vmem:[%s9265_s0 + $0x98] sm:$0x3]  ;;  %v2418_v37 = vsel %vm5851_vm6, %v2412_v28, %v2417_v24  ;;  %v9505_v41 = vld [vmem:[#allocation10_spill] sm:$0xff] }
 0x116   :  { %9504 = vst [vmem:[#allocation46_spill] sm:$0xff] %v7155_v61  ;;  %v1596_v47 = vrot.slane %v7160_v38, 5  ;;  %v7165_v25 = vcombine.low %v2411_v33, %v2418_v37  ;;  %v9506_v15 = vshll.u32 %v9505_v41, 16  ;;  %9507 = vst [vmem:[#allocation10_spill] sm:$0xff] %v7171_v22  ;;  %v1587_v9 = vsel %vm6667_vm9, %v4957_v26, %v1586_v62  ;;  %v7182_v28 = vld [vmem:[%s9265_s0 + $0xbc] sm:$0x3]  ;;  %5406 = vmatprep.mubr.msk.bf16.mxu1 %vm571_vm4, %v7143_v13 }
 0x117   :  { %v2439_v52 = vrot.slane %v9502_v51, 6  ;;  %v7175_v61 = vpop.f32.mrf.mxu0  ;;  %v9509_v11 = vshrl.u32 %v9501_v32, 16  ;;  %v2443_v24 = vshrl.u32 %v7182_v28, 16  ;;  %v1590_v33 = vsel %vm6667_vm9, %v1588_v44, %v1589_v14  ;;  %v5645_v26 = vld [vmem:[%s9265_s0 + $0xa0] sm:$0xf] }
 0x118   :  { %v2446_v51 = vrot.slane %v9506_v15, 6  ;;  %9508 = vst [vmem:[#allocation47_spill] sm:$0xff] %v7175_v61  ;;  %v1594_v62 = vsel %vm6667_vm9, %v4958_v54, %v1593_v50  ;;  %v2436_v32 = vor.u32 %v2435_v56, %v2434_v42  ;;  %v1597_v37 = vsel %vm6667_vm9, %v1595_v10, %v1596_v47  ;;  %v5646_v44 = vld [vmem:[%s9265_s0 + $0xac] sm:$0xf]  ;;  %v7203_v15 = vpop.f32.mrf.mxu1  ;;  %v5647_v10 = vld [vmem:[%s9265_s0 + $0x9c] sm:$0xf] }
 0x119   :  { %v2438_v58 = vrot.slane %v9509_v11, 5  ;;  %v1600_v11 = vrot.slane %v5645_v26, 5  ;;  %v7196_v41 = vpop.f32.mrf.mxu0  ;;  %5000 = vmatmul.mubr.msk.bf16.gmra.mxu0 %vm571_vm4, %v7079_v19  ;;  %v1607_v14 = vrot.slane %v5646_v44, 5  ;;  %v2445_v54 = vrot.slane %v2443_v24, 5  ;;  %9511 = vst [vmem:[#allocation49_spill] sm:$0xff] %v7203_v15 }
 0x11a   :  { %9510 = vst [vmem:[#allocation48_spill] sm:$0xff] %v7196_v41  ;;  %1878 = vmatprep.mubr.bf16.mxu0 %v9384_v17  ;;  %v2437_v42 = vrot.slane %v2436_v32, 4  ;;  %v4981_v56 = vcombine.low %v1587_v9, %v1590_v33  ;;  %v4959_v47 = vrot.slane %v5647_v10, 9  ;;  %v7211_v41 = vcombine.low %v1594_v62, %v1597_v37  ;;  %v5649_v33 = vld [vmem:[%s9265_s0 + $0xa8] sm:$0xf] }
 0x11b   :  { %v2440_v50 = vor.u32 %v2439_v52, %v2438_v58  ;;  %v7209_v26 = vpop.f32.mrf.mxu0  ;;  %v2447_v22 = vor.u32 %v2446_v51, %v2445_v54  ;;  %v1602_v44 = vrot.slane %v1600_v11, 4  ;;  %v5648_v58 = vld [vmem:[%s9265_s0 + $0xa4] sm:$0x3]  ;;  %v4960_v32 = vrot.slane %v5649_v33, 9  ;;  %v7226_v51 = vld [vmem:[%s9265_s0 + $0xb0] sm:$0x3]  ;;  %v7231_v54 = vpop.f32.mrf.mxu1 }
 0x11c   :  { %9512 = vst [vmem:[#allocation50_spill] sm:$0xff] %v7209_v26  ;;  %v1603_v52 = vrot.slane %v5648_v58, 5  ;;  %v1609_v10 = vrot.slane %v1607_v14, 4  ;;  %v1610_v62 = vrot.slane %v7226_v51, 5  ;;  %9514 = vst [vmem:[#allocation52_spill] sm:$0xff] %v7231_v54  ;;  %5407 = vmatmul.mubr.msk.bf16.gmra.mxu1 %vm571_vm4, %v4981_v56  ;;  %v1601_v33 = vsel %vm6667_vm9, %v4959_v47, %v1600_v11 }
 0x11d   :  { %v2442_v19 = vrot.slane %v2440_v50, 4  ;;  %v2441_v9 = vsel %vm5851_vm6, %v2437_v42, %v2440_v50  ;;  %v7218_v24 = vpop.f32.mrf.mxu0  ;;  %v7238_v58 = vpop.f32.mrf.mxu1  ;;  %5410 = vmatprep.mubr.msk.bf16.mxu1 %vm571_vm4, %v7211_v41 }
 0x11e   :  { %9513 = vst [vmem:[#allocation51_spill] sm:$0xff] %v7218_v24  ;;  %9516 = vst [vmem:[#allocation54_spill] sm:$0xff] %v7238_v58  ;;  %v1604_v15 = vsel %vm6667_vm9, %v1602_v44, %v1603_v52 }
 0x11f   :  { %v2448_v37 = vsel %vm5851_vm6, %v2442_v19, %v2447_v22  ;;  %v7236_v42 = vpop.f32.mrf.mxu0  ;;  %v1614_v22 = vrot.slane %v6656_v49, 5  ;;  %v1608_v19 = vsel %vm6667_vm9, %v4960_v32, %v1607_v14  ;;  %v7255_v58 = vpop.f32.mrf.mxu1  ;;  %v4983_v11 = vcombine.low %v1601_v33, %v1604_v15 }
 0x120   :  { %v7233_v50 = vcombine.low %v2441_v9, %v2448_v37  ;;  %9515 = vst [vmem:[#allocation53_spill] sm:$0xff] %v7236_v42  ;;  %v1611_v9 = vsel %vm6667_vm9, %v1609_v10, %v1610_v62  ;;  %9518 = vst [vmem:[#allocation56_spill] sm:$0xff] %v7255_v58  ;;  %v4961_v14 = vrot.slane %v6651_v48, 9  ;;  %v1617_v32 = vrot.slane %v7182_v28, 5 }
 0x121   :  { %v7251_v37 = vpop.f32.mrf.mxu0  ;;  %5001 = vmatmul.mubr.msk.bf16.gmra.mxu0 %vm571_vm4, %v7136_v5  ;;  %v7260_v44 = vpop.f32.mrf.mxu1  ;;  %v7262_v49 = vcombine.low %v1608_v19, %v1611_v9  ;;  %v1616_v52 = vrot.slane %v1614_v22, 4 }
 0x122   :  { %9517 = vst [vmem:[#allocation55_spill] sm:$0xff] %v7251_v37  ;;  %1888 = vmatprep.mubr.bf16.mxu0 %v9384_v17  ;;  %9520 = vst [vmem:[#allocation58_spill] sm:$0xff] %v7260_v44  ;;  %v1615_v15 = vsel %vm6667_vm9, %v4961_v14, %v1614_v22 }
 0x123   :  { %v7258_v47 = vpop.f32.mrf.mxu0  ;;  %v7268_v62 = vpop.f32.mrf.mxu1  ;;  %v1618_v48 = vsel %vm6667_vm9, %v1616_v52, %v1617_v32 }
 0x124   :  { %9519 = vst [vmem:[#allocation57_spill] sm:$0xff] %v7258_v47  ;;  %9522 = vst [vmem:[#allocation60_spill] sm:$0xff] %v7268_v62  ;;  %5411 = vmatmul.mubr.msk.bf16.gmra.mxu1 %vm571_vm4, %v4983_v11  ;;  %v4985_v9 = vcombine.low %v1615_v15, %v1618_v48 }
 0x125   :  { %v7266_v10 = vpop.f32.mrf.mxu0  ;;  %5414 = vmatprep.mubr.msk.bf16.mxu1 %vm571_vm4, %v7262_v49  ;;  %v7279_v33 = vpop.f32.mrf.mxu1 }
 0x126   :  { %9521 = vst [vmem:[#allocation59_spill] sm:$0xff] %v7266_v10  ;;  %9524 = vst [vmem:[#allocation62_spill] sm:$0xff] %v7279_v33 }
 0x127   :  { %v7271_v5 = vpop.f32.mrf.mxu0  ;;  %v7286_v19 = vpop.f32.mrf.mxu1 }
 0x128   :  { %9523 = vst [vmem:[#allocation61_spill] sm:$0xff] %v7271_v5  ;;  %9526 = vst [vmem:[#allocation64_spill] sm:$0xff] %v7286_v19 }
 0x129   :  { %v7281_v28 = vpop.f32.mrf.mxu0  ;;  %5002 = vmatmul.mubr.msk.bf16.gmra.mxu0 %vm571_vm4, %v7143_v13  ;;  %v7290_v62 = vpop.f32.mrf.mxu1 }
 0x12a   :  { %9525 = vst [vmem:[#allocation63_spill] sm:$0xff] %v7281_v28  ;;  %1898 = vmatprep.mubr.bf16.mxu0 %v9384_v17  ;;  %9528 = vst [vmem:[#allocation66_spill] sm:$0xff] %v7290_v62  ;;  %v5578_v62 = vld [vmem:[%s9266_s1 + $0xc8] ss:$12 sps:$4 sm:$0xff]  }
 0x12b   :  { %v7288_v44 = vpop.f32.mrf.mxu0  ;;  %v7294_v40 = vpop.f32.mrf.mxu1 }
 0x12c   :  { %9527 = vst [vmem:[#allocation65_spill] sm:$0xff] %v7288_v44  ;;  %9530 = vst [vmem:[#allocation68_spill] sm:$0xff] %v7294_v40  ;;  %5415 = vmatmul.mubr.msk.bf16.gmra.mxu1 %vm571_vm4, %v4985_v9 }
 0x12d   :  { %v7292_v22 = vpop.f32.mrf.mxu0  ;;  %2618 = vmatprep.mubr.bf16.mxu1 %v9384_v17  ;;  %v7300_v13 = vpop.f32.mrf.mxu1 }
 0x12e   :  { %9529 = vst [vmem:[#allocation67_spill] sm:$0xff] %v7292_v22  ;;  %9532 = vst [vmem:[#allocation70_spill] sm:$0xff] %v7300_v13 }
 0x12f   :  { %v7297_v14 = vpop.f32.mrf.mxu0  ;;  %v7306_v32 = vpop.f32.mrf.mxu1 }
 0x130   :  { %9531 = vst [vmem:[#allocation69_spill] sm:$0xff] %v7297_v14  ;;  %9534 = vst [vmem:[#allocation72_spill] sm:$0xff] %v7306_v32 }
 0x131   :  { %v7302_v52 = vpop.f32.mrf.mxu0  ;;  %5003 = vmatmul.mubr.msk.bf16.gmra.mxu0 %vm571_vm4, %v4981_v56  ;;  %v7310_v48 = vpop.f32.mrf.mxu1 }
 0x132   :  { %9533 = vst [vmem:[#allocation71_spill] sm:$0xff] %v7302_v52  ;;  %1908 = vmatprep.mubr.bf16.mxu0 %v9384_v17  ;;  %9536 = vst [vmem:[#allocation74_spill] sm:$0xff] %v7310_v48 }
 0x133   :  { %v7308_v15 = vpop.f32.mrf.mxu0  ;;  %v7317_v19 = vpop.f32.mrf.mxu1 }
 0x134   :  { %9535 = vst [vmem:[#allocation73_spill] sm:$0xff] %v7308_v15  ;;  %5054 = vmatmul.mubr.msk.bf16.vlgmr.msra.gmra.mxu1 %vm571_vm4, %v6559_v16 }
 0x135   :  { %v7312_v40 = vpop.f32.mrf.mxu0  ;;  %2628 = vmatprep.mubr.bf16.mxu1 %v9384_v17  ;;  %5455 = vmatpush3.bf16.msra.mxu1 %v7029_v43  ;;  %v7325_v32 = vpop.f32.mrf.mxu1 }
 0x136   :  { %9537 = vst [vmem:[#allocation75_spill] sm:$0xff] %v7312_v40  ;;  %5456 = vmatprep.subr.bf16.mxu1 %v5578_v62 }
 0x137   :  { %v7321_v56 = vpop.f32.mrf.mxu0  ;;  %v7332_v13 = vpop.f32.mrf.mxu1 }
 0x138   :  { %9538 = vst [vmem:[#allocation76_spill] sm:$0xff] %v7321_v56 }
 0x139   :  { %v7327_v48 = vpop.f32.mrf.mxu0  ;;  %5004 = vmatmul.mubr.msk.bf16.gmra.mxu0 %vm571_vm4, %v7211_v41  ;;  %5457 = vmatpush3.bf16.msra.mxu1 %v5578_v62  ;;  %v7336_v56 = vpop.f32.mrf.mxu1 }
 0x13a   :  { %9539 = vst [vmem:[#allocation77_spill] sm:$0xff] %v7327_v48  ;;  %1918 = vmatprep.mubr.bf16.mxu0 %v9384_v17 }
 0x13b   :  { %v7334_v40 = vpop.f32.mrf.mxu0  ;;  %v7340_v43 = vpop.f32.mrf.mxu1 }
 0x13c   :  { %9540 = vst [vmem:[#allocation78_spill] sm:$0xff] %v7334_v40  ;;  %5055 = vmatmul.mubr.msk.bf16.gmra.mxu1 %vm571_vm4, %v6586_v18 }
 0x13d   :  { %v7338_v15 = vpop.f32.mrf.mxu0  ;;  %2638 = vmatprep.mubr.bf16.mxu1 %v9384_v17  ;;  %v7347_v41 = vpop.f32.mrf.mxu1 }
 0x13e   :  { %9541 = vst [vmem:[#allocation79_spill] sm:$0xff] %v7338_v15 }
 0x13f   :  { %v7344_v48 = vpop.f32.mrf.mxu0  ;;  %v7353_v62 = vpop.f32.mrf.mxu1 }
 0x140   :  { %9542 = vst [vmem:[#allocation80_spill] sm:$0xff] %v7344_v48 }
 0x141   :  { %v7349_v33 = vpop.f32.mrf.mxu0  ;;  %5005 = vmatmul.mubr.msk.bf16.gmra.mxu0 %vm571_vm4, %v4983_v11  ;;  %v7357_v40 = vpop.f32.mrf.mxu1 }
 0x142   :  { %9543 = vst [vmem:[#allocation81_spill] sm:$0xff] %v7349_v33  ;;  %1928 = vmatprep.mubr.bf16.mxu0 %v9384_v17 }
 0x143   :  { %v7355_v15 = vpop.f32.mrf.mxu0  ;;  %v7361_v14 = vpop.f32.mrf.mxu1 }
 0x144   :  { %9544 = vst [vmem:[#allocation82_spill] sm:$0xff] %v7355_v15  ;;  %5056 = vmatmul.mubr.msk.bf16.gmra.mxu1 %vm571_vm4, %v6616_v59 }
 0x145   :  { %v7359_v52 = vpop.f32.mrf.mxu0  ;;  %2648 = vmatprep.mubr.bf16.mxu1 %v9384_v17  ;;  %v7368_v11 = vpop.f32.mrf.mxu1 }
 0x146   :  { %9545 = vst [vmem:[#allocation83_spill] sm:$0xff] %v7359_v52 }
 0x147   :  { %v7365_v48 = vpop.f32.mrf.mxu0  ;;  %v7375_v15 = vpop.f32.mrf.mxu1 }
 0x148   :  { %9546 = vst [vmem:[#allocation84_spill] sm:$0xff] %v7365_v48 }
 0x149   :  { %v7370_v33 = vpop.f32.mrf.mxu0  ;;  %5006 = vmatmul.mubr.msk.bf16.gmra.mxu0 %vm571_vm4, %v7262_v49  ;;  %v7379_v22 = vpop.f32.mrf.mxu1 }
 0x14a   :  { %9547 = vst [vmem:[#allocation85_spill] sm:$0xff] %v7370_v33  ;;  %1938 = vmatprep.mubr.bf16.mxu0 %v9384_v17 }
 0x14b   :  { %v7377_v52 = vpop.f32.mrf.mxu0  ;;  %v7383_v48 = vpop.f32.mrf.mxu1 }
 0x14c   :  { %9548 = vst [vmem:[#allocation86_spill] sm:$0xff] %v7377_v52  ;;  %5057 = vmatmul.mubr.msk.bf16.gmra.mxu1 %vm571_vm4, %v6665_v2 }
 0x14d   :  { %v7381_v58 = vpop.f32.mrf.mxu0  ;;  %2658 = vmatprep.mubr.bf16.mxu1 %v9384_v17  ;;  %v7390_v49 = vpop.f32.mrf.mxu1 }
 0x14e   :  { %9549 = vst [vmem:[#allocation87_spill] sm:$0xff] %v7381_v58 }
 0x14f   :  { %v7387_v44 = vpop.f32.mrf.mxu0  ;;  %v7397_v52 = vpop.f32.mrf.mxu1 }
 0x150   :  { %9550 = vst [vmem:[#allocation88_spill] sm:$0xff] %v7387_v44  ;;  %v5571_v44 = vld [vmem:[%s9266_s1 + $0xd8] ss:$12 sps:$4 sm:$0xff]  }
 0x151   :  { %v7392_v33 = vpop.f32.mrf.mxu0  ;;  %5007 = vmatmul.mubr.msk.bf16.gmra.mxu0 %vm571_vm4, %v4985_v9  ;;  %v7401_v28 = vpop.f32.mrf.mxu1 }
 0x152   :  { %9551 = vst [vmem:[#allocation89_spill] sm:$0xff] %v7392_v33  ;;  %5422 = vmatprep.mubr.msk.bf16.mxu0 %vm571_vm4, %v6559_v16  ;;  %v5577_v16 = vld [vmem:[%s9266_s1 + $0xc4] ss:$12 sps:$4 sm:$0xff]  }
 0x153   :  { %v7399_v58 = vpop.f32.mrf.mxu0  ;;  %v7408_v5 = vpop.f32.mrf.mxu1 }
 0x154   :  { %9552 = vst [vmem:[#allocation90_spill] sm:$0xff] %v7399_v58  ;;  %5058 = vmatmul.mubr.msk.bf16.gmra.mxu1 %vm571_vm4, %v6706_v1 }
 0x155   :  { %v7403_v54 = vpop.f32.mrf.mxu0  ;;  %2668 = vmatprep.mubr.bf16.mxu1 %v9384_v17  ;;  %v7418_v58 = vpop.f32.mrf.mxu1 }
 0x156   :  { %9553 = vst [vmem:[#allocation91_spill] sm:$0xff] %v7403_v54 }
 0x157   :  { %v7412_v9 = vpop.f32.mrf.mxu0  ;;  %v7429_v33 = vpop.f32.mrf.mxu1 }
 0x158   :  { %9554 = vst [vmem:[#allocation92_spill] sm:$0xff] %v7412_v9  ;;  %v5575_v9 = vld [vmem:[%s9266_s1 + $0xc0] ss:$12 sps:$4 sm:$0xff]   ;;  %9555 = vst [vmem:[#allocation93_spill] sm:$0xff] %v7429_v33  ;;  %v9585_v33 = vshrl.u32 %v6409_v57, 16 }
 0x159   :  { %v7420_v54 = vpop.f32.mrf.mxu0  ;;  %5423 = vmatmul.mubr.msk.bf16.vlgmr.msra.gmra.mxu0 %vm571_vm4, %v6586_v18  ;;  %v7433_v47 = vpop.f32.mrf.mxu1 }
 0x15a   :  { %3301 = vmatpush1.bf16.msra.mxu0 %v5571_v44  ;;  %5426 = vmatprep.mubr.msk.bf16.mxu0 %vm571_vm4, %v6616_v59  ;;  %9556 = vst [vmem:[#allocation94_spill] sm:$0xff] %v7433_v47 }
 0x15b   :  { %v7431_v10 = vpop.f32.mrf.mxu0  ;;  %3302 = vmatprep.subr.bf16.mxu0 %v5577_v16  ;;  %v7437_v42 = vpop.f32.mrf.mxu1 }
 0x15c   :  { %9558 = vst [vmem:[#allocation96_spill] sm:$0xff] %v7437_v42  ;;  %5059 = vmatmul.mubr.msk.bf16.gmra.mxu1 %vm571_vm4, %v6751_v23  ;;  %v9576_v42 = vshrl.u32 %v6341_v21, 16 }
 0x15d   :  { %v7435_v37 = vpop.f32.mrf.mxu0  ;;  %2678 = vmatprep.mubr.bf16.mxu1 %v9384_v17  ;;  %v7444_v59 = vpop.f32.mrf.mxu1 }
 0x15e   :  { %9557 = vst [vmem:[#allocation95_spill] sm:$0xff] %v7435_v37  ;;  %3303 = vmatpush1.bf16.msra.mxu0 %v5575_v9  ;;  %9560 = vst [vmem:[#allocation98_spill] sm:$0xff] %v7444_v59  ;;  %v2419_v37 = vrot.slane %v9585_v33, 5 }
 0x15f   :  { %v7441_v18 = vpop.f32.mrf.mxu0  ;;  %v7452_v9 = vpop.f32.mrf.mxu1 }
 0x160   :  { %9559 = vst [vmem:[#allocation97_spill] sm:$0xff] %v7441_v18  ;;  %9562 = vst [vmem:[#allocation100_spill] sm:$0xff] %v7452_v9 }
 0x161   :  { %v7446_v44 = vpop.f32.mrf.mxu0  ;;  %5427 = vmatmul.mubr.msk.bf16.gmra.mxu0 %vm571_vm4, %v6665_v2  ;;  %v7456_v24 = vpop.f32.mrf.mxu1 }
 0x162   :  { %9561 = vst [vmem:[#allocation99_spill] sm:$0xff] %v7446_v44  ;;  %5430 = vmatprep.mubr.msk.bf16.mxu0 %vm571_vm4, %v6706_v1  ;;  %9564 = vst [vmem:[#allocation102_spill] sm:$0xff] %v7456_v24  ;;  %v9577_v44 = vshll.u32 %v6341_v21, 16 }
 0x163   :  { %v7454_v16 = vpop.f32.mrf.mxu0  ;;  %v7460_v61 = vpop.f32.mrf.mxu1 }
 0x164   :  { %9563 = vst [vmem:[#allocation101_spill] sm:$0xff] %v7454_v16  ;;  %9566 = vst [vmem:[#allocation104_spill] sm:$0xff] %v7460_v61  ;;  %5060 = vmatmul.mubr.msk.bf16.gmra.mxu1 %vm571_vm4, %v6797_v53 }
 0x165   :  { %v7458_v26 = vpop.f32.mrf.mxu0  ;;  %2688 = vmatprep.mubr.bf16.mxu1 %v9384_v17  ;;  %v7467_v2 = vpop.f32.mrf.mxu1 }
 0x166   :  { %9565 = vst [vmem:[#allocation103_spill] sm:$0xff] %v7458_v26  ;;  %9568 = vst [vmem:[#allocation106_spill] sm:$0xff] %v7467_v2  ;;  %v9575_v2 = vshll.u32 %v6332_v60, 16 }
 0x167   :  { %v7464_v59 = vpop.f32.mrf.mxu0  ;;  %v7475_v24 = vpop.f32.mrf.mxu1 }
 0x168   :  { %9567 = vst [vmem:[#allocation105_spill] sm:$0xff] %v7464_v59  ;;  %9570 = vst [vmem:[#allocation108_spill] sm:$0xff] %v7475_v24  ;;  %v9574_v59 = vshrl.u32 %v6332_v60, 16  ;;  %v2398_v24 = vshrl.u32 %v7160_v38, 16 }
 0x169   :  { %v7469_v1 = vpop.f32.mrf.mxu0  ;;  %5431 = vmatmul.mubr.msk.bf16.gmra.mxu0 %vm571_vm4, %v6751_v23  ;;  %v7479_v9 = vpop.f32.mrf.mxu1  ;;  %v2393_v23 = vrot.slane %v9576_v42, 5 }
 0x16a   :  { %9569 = vst [vmem:[#allocation107_spill] sm:$0xff] %v7469_v1  ;;  %5434 = vmatprep.mubr.msk.bf16.mxu0 %vm571_vm4, %v6797_v53  ;;  %9572 = vst [vmem:[#allocation110_spill] sm:$0xff] %v7479_v9  ;;  %v2389_v16 = vrot.slane %v9574_v59, 5  ;;  %v2390_v1 = vrot.slane %v9575_v2, 6  ;;  %v2394_v53 = vrot.slane %v9577_v44, 6  ;;  %v2400_v42 = vrot.slane %v2398_v24, 5 }
 0x16b   :  { %v7477_v61 = vpop.f32.mrf.mxu0  ;;  %v7492_v47 = vpop.f32.mrf.mxu1  ;;  %v9582_v44 = vld [vmem:[#allocation20_spill] sm:$0xff] }
 0x16c   :  { %9571 = vst [vmem:[#allocation109_spill] sm:$0xff] %v7477_v61  ;;  %9578 = vst [vmem:[#allocation112_spill] sm:$0xff] %v7492_v47  ;;  %5061 = vmatmul.mubr.msk.bf16.gmra.mxu1 %vm571_vm4, %v6851_v20  ;;  %v2391_v21 = vor.u32 %v2390_v1, %v2389_v16  ;;  %v2395_v38 = vor.u32 %v2394_v53, %v2393_v23  ;;  %v9583_v2 = vshll.u32 %v9582_v44, 16  ;;  %v9588_v1 = vshll.u32 %v6409_v57, 16 }
 0x16d   :  { %v7481_v26 = vpop.f32.mrf.mxu0  ;;  %2698 = vmatprep.mubr.bf16.mxu1 %v9384_v17  ;;  %v7499_v59 = vpop.f32.mrf.mxu1  ;;  %v9589_v53 = vshrl.u32 %v6416_v0, 16 }
 0x16e   :  { %9573 = vst [vmem:[#allocation111_spill] sm:$0xff] %v7481_v26  ;;  %9580 = vst [vmem:[#allocation114_spill] sm:$0xff] %v7499_v59  ;;  %v2401_v47 = vrot.slane %v9583_v2, 6  ;;  %v2397_v18 = vrot.slane %v2395_v38, 4  ;;  %v2420_v23 = vrot.slane %v9588_v1, 6 }
 0x16f   :  { %v7496_v9 = vpop.f32.mrf.mxu0  ;;  %v7509_v26 = vpop.f32.mrf.mxu1  ;;  %v2423_v44 = vrot.slane %v9589_v53, 5 }
 0x170   :  { %9579 = vst [vmem:[#allocation113_spill] sm:$0xff] %v7496_v9  ;;  %v2421_v1 = vor.u32 %v2420_v23, %v2419_v37 }
 0x171   :  { %v7501_v60 = vpop.f32.mrf.mxu0  ;;  %5435 = vmatmul.mubr.msk.bf16.gmra.mxu0 %vm571_vm4, %v6851_v20  ;;  %v7513_v61 = vpop.f32.mrf.mxu1  ;;  %v2402_v20 = vor.u32 %v2401_v47, %v2400_v42  ;;  %v2428_v47 = vshrl.u32 %v7226_v51, 16 }
 0x172   :  { %9581 = vst [vmem:[#allocation115_spill] sm:$0xff] %v7501_v60  ;;  %5438 = vmatprep.mubr.msk.bf16.mxu0 %vm571_vm4, %v6905_v39  ;;  %9584 = vst [vmem:[#allocation20_spill] sm:$0xff] %v7513_v61  ;;  %v2392_v60 = vrot.slane %v2391_v21, 4  ;;  %v9590_v21 = vshll.u32 %v6416_v0, 16 }
 0x173   :  { %v7511_v9 = vpop.f32.mrf.mxu0  ;;  %v7519_v16 = vpop.f32.mrf.mxu1  ;;  %v2403_v0 = vsel %vm5851_vm6, %v2397_v18, %v2402_v20 }
 0x174   :  { %9586 = vst [vmem:[#allocation116_spill] sm:$0xff] %v7519_v16  ;;  %5062 = vmatmul.mubr.msk.bf16.gmra.mxu1 %vm571_vm4, %v6905_v39  ;;  %v2424_v2 = vrot.slane %v9590_v21, 6  ;;  %v2396_v57 = vsel %vm5851_vm6, %v2392_v60, %v2395_v38  ;;  %v2430_v21 = vrot.slane %v2428_v47, 5  ;;  %v2422_v38 = vrot.slane %v2421_v1, 4 }
 0x175   :  { %v7515_v59 = vpop.f32.mrf.mxu0  ;;  %2708 = vmatprep.mubr.bf16.mxu1 %v9384_v17  ;;  %v7533_v33 = vpop.f32.mrf.mxu1 }
 0x176   :  { %9591 = vst [vmem:[#allocation118_spill] sm:$0xff] %v7533_v33  ;;  %v2425_v53 = vor.u32 %v2424_v2, %v2423_v44  ;;  %v9593_v33 = vshll.u32 %v6431_v46, 16 }
 0x177   :  { %v7523_v24 = vpop.f32.mrf.mxu0  ;;  %v7545_v39 = vpop.f32.mrf.mxu1 }
 0x178   :  { %9587 = vst [vmem:[#allocation117_spill] sm:$0xff] %v7523_v24  ;;  %v2431_v16 = vrot.slane %v9593_v33, 6  ;;  %v7555_v24 = vcombine.low %v2396_v57, %v2403_v0  ;;  %v2427_v37 = vrot.slane %v2425_v53, 4  ;;  %v2426_v2 = vsel %vm5851_vm6, %v2422_v38, %v2425_v53 }
 0x179   :  { %v7535_v42 = vpop.f32.mrf.mxu0  ;;  %5439 = vmatmul.mubr.msk.bf16.gmra.mxu0 %vm571_vm4, %v6964_v4  ;;  %v3041_v38 = vrot.slane %v5651_v27, 6  ;;  %v5653_v27 = vld [vmem:[%s9265_s0] sm:$0xf] }
 0x17a   :  { %9592 = vst [vmem:[#allocation119_spill] sm:$0xff] %v7535_v42  ;;  %5442 = vmatprep.mubr.msk.bf16.mxu0 %vm571_vm4, %v7024_v34  ;;  %v7551_v42 = vpop.f32.mrf.mxu1  ;;  %v2432_v20 = vor.u32 %v2431_v16, %v2430_v21 }
 0x17b   :  { %v7547_v51 = vpop.f32.mrf.mxu0 }
 0x17c   :  { %v7557_v60 = vpop.f32.mrf.mxu1  ;;  %5063 = vmatmul.mubr.msk.bf16.gmra.mxu1 %vm571_vm4, %v6964_v4  ;;  %v2433_v16 = vsel %vm5851_vm6, %v2427_v37, %v2432_v20 }
 0x17d   :  { %v7553_v61 = vpop.f32.mrf.mxu0  ;;  %2718 = vmatprep.mubr.bf16.mxu1 %v9384_v17  ;;  %v7584_v57 = vcombine.low %v2426_v2, %v2433_v16  ;;  %v5652_v16 = vld [vmem:[%s9265_s0 + $0x8] sm:$0x3] }
 0x17e   :  { %v7564_v46 = vpop.f32.mrf.mxu1 }
 0x17f   :  { %v7561_v18 = vpop.f32.mrf.mxu0 }
 0x180   :  { %9594 = vst [vmem:[#allocation120_spill] sm:$0xff] %v7561_v18  ;;  %v7572_v44 = vpop.f32.mrf.mxu1  ;;  %v5086_v18 = vrot.slane %v5653_v27, 10 }
 0x181   :  { %v7566_v23 = vpop.f32.mrf.mxu0  ;;  %5443 = vmatmul.mubr.msk.bf16.gmra.mxu0 %vm571_vm4, %v7098_v3 }
 0x182   :  { %5446 = vmatprep.mubr.msk.bf16.mxu0 %vm571_vm4, %v7555_v24  ;;  %v7580_v47 = vpop.f32.mrf.mxu1 }
 0x183   :  { %v7574_v4 = vpop.f32.mrf.mxu0  ;;  %9595 = vst [vmem:[#allocation121_spill] sm:$0xff] %v7580_v47 }
 0x184   :  { %v7586_v0 = vpop.f32.mrf.mxu1  ;;  %5064 = vmatmul.mubr.msk.bf16.gmra.mxu1 %vm571_vm4, %v7024_v34 }
 0x185   :  { %v7582_v33 = vpop.f32.mrf.mxu0  ;;  %9596 = vst [vmem:[#allocation122_spill] sm:$0xff] %v7586_v0  ;;  %2728 = vmatprep.mubr.bf16.mxu1 %v9384_v17 }
 0x186   :  { %v7593_v21 = vpop.f32.mrf.mxu1 }
 0x187   :  { %v7590_v1 = vpop.f32.mrf.mxu0  ;;  %9598 = vst [vmem:[#allocation124_spill] sm:$0xff] %v7593_v21  ;;  %v3043_v21 = vrot.slane %v3041_v38, 4 }
 0x188   :  { %9597 = vst [vmem:[#allocation123_spill] sm:$0xff] %v7590_v1  ;;  %v7604_v34 = vpop.f32.mrf.mxu1  ;;  %v3044_v1 = vrot.slane %v5652_v16, 6 }
 0x189   :  { %v7595_v53 = vpop.f32.mrf.mxu0  ;;  %5447 = vmatmul.mubr.msk.bf16.gmra.mxu0 %vm571_vm4, %v7165_v25  ;;  %9600 = vst [vmem:[#allocation126_spill] sm:$0xff] %v7604_v34 }
 0x18a   :  { %9599 = vst [vmem:[#allocation125_spill] sm:$0xff] %v7595_v53  ;;  %5450 = vmatprep.mubr.msk.bf16.mxu0 %vm571_vm4, %v7584_v57  ;;  %v7608_v20 = vpop.f32.mrf.mxu1  ;;  %v3045_v27 = vsel %vm7624_vm12, %v3043_v21, %v3044_v1 }
 0x18b   :  { %v7606_v37 = vpop.f32.mrf.mxu0  ;;  %9602 = vst [vmem:[#allocation128_spill] sm:$0xff] %v7608_v20  ;;  %v9745_v20 = vld [vmem:[#allocation73_spill] sm:$0xff] }
 0x18c   :  { %9601 = vst [vmem:[#allocation127_spill] sm:$0xff] %v7606_v37  ;;  %v7618_v34 = vpop.f32.mrf.mxu1  ;;  %5065 = vmatmul.mubr.msk.bf16.gmra.mxu1 %vm571_vm4, %v7098_v3  ;;  %v3042_v3 = vsel %vm7624_vm12, %v5086_v18, %v3041_v38  ;;  %v5655_v18 = vld [vmem:[%s9265_s0 + $0xc] sm:$0xf]  ;;  %v5656_v38 = vld [vmem:[%s9265_s0 + $0x14] sm:$0x3] }
 0x18d   :  { %v7610_v2 = vpop.f32.mrf.mxu0  ;;  %9604 = vst [vmem:[#allocation130_spill] sm:$0xff] %v7618_v34  ;;  %2738 = vmatprep.mubr.bf16.mxu1 %v9384_v17  ;;  %v5654_v34 = vld [vmem:[%s9265_s0 + $0x10] sm:$0xf]  ;;  %v7651_v47 = vcombine.low %v3042_v3, %v3045_v27  ;;  %v5087_v1 = vrot.slane %v5655_v18, 10  ;;  %v1169_v3 = vadd.f32 %v7317_v19, %v6744_v45  ;;  %v5657_v19 = vld [vmem:[%s9265_s0 + $0x1c] sm:$0xf] }
 0x18e   :  { %9603 = vst [vmem:[#allocation129_spill] sm:$0xff] %v7610_v2  ;;  %v7629_v16 = vpop.f32.mrf.mxu1 }
 0x18f   :  { %v7622_v37 = vpop.f32.mrf.mxu0  ;;  %9608 = vst [vmem:[#allocation132_spill] sm:$0xff] %v7629_v16 }
 0x190   :  { %9605 = vst [vmem:[#allocation131_spill] sm:$0xff] %v7622_v37  ;;  %v3048_v37 = vrot.slane %v5654_v34, 6  ;;  %v7643_v0 = vpop.f32.mrf.mxu1  ;;  %v3051_v34 = vrot.slane %v5656_v38, 6 }
 0x191   :  { %v7631_v2 = vpop.f32.mrf.mxu0  ;;  %5451 = vmatmul.mubr.msk.bf16.gmra.mxu0 %vm571_vm4, %v7233_v50  ;;  %9610 = vst [vmem:[#allocation134_spill] sm:$0xff] %v7643_v0 }
 0x192   :  { %9609 = vst [vmem:[#allocation133_spill] sm:$0xff] %v7631_v2  ;;  %3320 = vmatprep.mubr.bf16.mxu0 %v9384_v17  ;;  %v7647_v2 = vpop.f32.mrf.mxu1  ;;  %v3050_v21 = vrot.slane %v3048_v37, 4  ;;  %v3049_v38 = vsel %vm7624_vm12, %v5087_v1, %v3048_v37  ;;  %v1173_v37 = vadd.f32 %v7332_v13, %v6765_v6  ;;  %v5659_v6 = vld [vmem:[%s9265_s0 + $0x20] sm:$0x3] }
 0x193   :  { %v7645_v16 = vpop.f32.mrf.mxu0  ;;  %9611 = vst [vmem:[#allocation135_spill] sm:$0xff] %v7647_v2  ;;  %v3058_v13 = vrot.slane %v5659_v6, 6 }
 0x194   :  { %v7659_v0 = vpop.f32.mrf.mxu1  ;;  %5066 = vmatmul.mubr.msk.bf16.gmra.mxu1 %vm571_vm4, %v7555_v24  ;;  %v3052_v45 = vsel %vm7624_vm12, %v3050_v21, %v3051_v34  ;;  %v5658_v21 = vld [vmem:[%s9265_s0 + $0x18] sm:$0xf] }
 0x195   :  { %v7649_v53 = vpop.f32.mrf.mxu0  ;;  %9613 = vst [vmem:[#allocation137_spill] sm:$0xff] %v7659_v0  ;;  %2748 = vmatprep.mubr.bf16.mxu1 %v9384_v17  ;;  %v1171_v0 = vadd.f32 %v7325_v32, %v6760_v29  ;;  %v5088_v34 = vrot.slane %v5658_v21, 10 }
 0x196   :  { %9612 = vst [vmem:[#allocation136_spill] sm:$0xff] %v7649_v53  ;;  %v7668_v27 = vpop.f32.mrf.mxu1 }
 0x197   :  { %v7663_v2 = vpop.f32.mrf.mxu0  ;;  %9615 = vst [vmem:[#allocation139_spill] sm:$0xff] %v7668_v27  ;;  %v3055_v27 = vrot.slane %v5657_v19, 6 }
 0x198   :  { %9614 = vst [vmem:[#allocation138_spill] sm:$0xff] %v7663_v2  ;;  %v7684_v2 = vpop.f32.mrf.mxu1 }
 0x199   :  { %v1790_v18 = vpop.f32.mrf.mxu0  ;;  %5132 = vmatmul.mubr.msk.bf16.vlgmr.msra.gmra.mxu0 %vm571_vm4, %v7651_v47  ;;  %9616 = vst [vmem:[#allocation140_spill] sm:$0xff] %v7684_v2  ;;  %v3057_v2 = vrot.slane %v3055_v27, 4 }
 0x19a   :  { %v7676_v24 = vadd.f32 %v1790_v18, %v1169_v3  ;;  %3330 = vmatprep.mubr.bf16.mxu0 %v9384_v17  ;;  %v7690_v29 = vpop.f32.mrf.mxu1  ;;  %v7692_v3 = vcombine.low %v3049_v38, %v3052_v45  ;;  %v1175_v18 = vadd.f32 %v7336_v56, %v6789_v31  ;;  %v1179_v38 = vadd.f32 %v7340_v43, %v6814_v8  ;;  %v5660_v43 = vld [vmem:[%s9265_s0 + $0x28] sm:$0xf] }
 0x19b   :  { %v1792_v53 = vpop.f32.mrf.mxu0  ;;  %v3059_v8 = vsel %vm7624_vm12, %v3057_v2, %v3058_v13  ;;  %v3062_v21 = vrot.slane %v5660_v43, 6  ;;  %v5661_v2 = vld [vmem:[%s9265_s0 + $0x24] sm:$0xf] }
 0x19c   :  { %v7688_v1 = vadd.f32 %v1792_v53, %v1171_v0  ;;  %v7704_v0 = vpop.f32.mrf.mxu1  ;;  %5067 = vmatmul.mubr.msk.bf16.gmra.mxu1 %vm571_vm4, %v7165_v25  ;;  %v1181_v25 = vadd.f32 %v7347_v41, %v6830_v30  ;;  %v5089_v13 = vrot.slane %v5661_v2, 10 }
 0x19d   :  { %v1794_v32 = vpop.f32.mrf.mxu0  ;;  %2758 = vmatprep.mubr.bf16.mxu1 %v9384_v17  ;;  %v3064_v43 = vrot.slane %v3062_v21, 4 }
 0x19e   :  { %v7699_v19 = vadd.f32 %v1794_v32, %v1173_v37  ;;  %v7713_v56 = vpop.f32.mrf.mxu1  ;;  %v3056_v37 = vsel %vm7624_vm12, %v5088_v34, %v3055_v27  ;;  %v1183_v27 = vadd.f32 %v7353_v62, %v6844_v7  ;;  %v5662_v7 = vld [vmem:[%s9265_s0 + $0x2c] sm:$0x3] }
 0x19f   :  { %v1796_v53 = vpop.f32.mrf.mxu0  ;;  %v3065_v62 = vrot.slane %v5662_v7, 6 }
 0x1a0   :  { %v7711_v31 = vadd.f32 %v1796_v53, %v1175_v18  ;;  %v7729_v18 = vpop.f32.mrf.mxu1  ;;  %v7737_v53 = vcombine.low %v3056_v37, %v3059_v8  ;;  %v1189_v8 = vadd.f32 %v7361_v14, %v6869_v55  ;;  %v5663_v14 = vld [vmem:[%s9265_s0 + $0x34] sm:$0xf] }
 0x1a1   :  { %v1800_v45 = vpop.f32.mrf.mxu0  ;;  %5133 = vmatmul.mubr.msk.bf16.gmra.mxu0 %vm571_vm4, %v7692_v3  ;;  %v3066_v55 = vsel %vm7624_vm12, %v3064_v43, %v3065_v62  ;;  %v3069_v2 = vrot.slane %v5663_v14, 6  ;;  %v5664_v43 = vld [vmem:[%s9265_s0 + $0x30] sm:$0xf] }
 0x1a2   :  { %v7721_v32 = vadd.f32 %v1800_v45, %v1179_v38  ;;  %3340 = vmatprep.mubr.bf16.mxu0 %v9384_v17  ;;  %v7735_v30 = vpop.f32.mrf.mxu1  ;;  %v1185_v38 = vadd.f32 %v7357_v40, %v6863_v35  ;;  %v5090_v62 = vrot.slane %v5664_v43, 10 }
 0x1a3   :  { %v1802_v6 = vpop.f32.mrf.mxu0  ;;  %v3071_v14 = vrot.slane %v3069_v2, 4 }
 0x1a4   :  { %v7733_v34 = vadd.f32 %v1802_v6, %v1181_v25  ;;  %v7749_v25 = vpop.f32.mrf.mxu1  ;;  %5068 = vmatmul.mubr.msk.bf16.gmra.mxu1 %vm571_vm4, %v7584_v57  ;;  %v1191_v57 = vadd.f32 %v7368_v11, %v6884_v36 }
 0x1a5   :  { %v1804_v41 = vpop.f32.mrf.mxu0  ;;  %2768 = vmatprep.mubr.bf16.mxu1 %v9384_v17 }
 0x1a6   :  { %v7744_v45 = vadd.f32 %v1804_v41, %v1183_v27  ;;  %v7758_v40 = vpop.f32.mrf.mxu1  ;;  %v3063_v27 = vsel %vm7624_vm12, %v5089_v13, %v3062_v21  ;;  %v1193_v21 = vadd.f32 %v7375_v15, %v6900_v63  ;;  %v5665_v63 = vld [vmem:[%s9265_s0 + $0x38] sm:$0x3] }
 0x1a7   :  { %v1806_v37 = vpop.f32.mrf.mxu0  ;;  %v3072_v15 = vrot.slane %v5665_v63, 6 }
 0x1a8   :  { %v7756_v35 = vadd.f32 %v1806_v37, %v1185_v38  ;;  %v7774_v38 = vpop.f32.mrf.mxu1  ;;  %v7782_v37 = vcombine.low %v3063_v27, %v3066_v55  ;;  %v9621_v55 = vld [vmem:[#allocation25_spill] sm:$0xff] }
 0x1a9   :  { %v1810_v6 = vpop.f32.mrf.mxu0  ;;  %5134 = vmatmul.mubr.msk.bf16.gmra.mxu0 %vm571_vm4, %v7737_v53  ;;  %9617 = vst [vmem:[#allocation141_spill] sm:$0xff] %v7774_v38 }
 0x1aa   :  { %v7766_v41 = vadd.f32 %v1810_v6, %v1189_v8  ;;  %3350 = vmatprep.mubr.bf16.mxu0 %v9384_v17  ;;  %v7780_v36 = vpop.f32.mrf.mxu1  ;;  %v1195_v8 = vadd.f32 %v7379_v22, %v6916_v12 }
 0x1ab   :  { %v1812_v7 = vpop.f32.mrf.mxu0  ;;  %9618 = vst [vmem:[#allocation142_spill] sm:$0xff] %v7780_v36  ;;  %v9651_v36 = vld [vmem:[#allocation99_spill] sm:$0xff] }
 0x1ac   :  { %v7778_v13 = vadd.f32 %v1812_v7, %v1191_v57  ;;  %v7794_v57 = vpop.f32.mrf.mxu1  ;;  %5069 = vmatmul.mubr.msk.bf16.gmra.mxu1 %vm571_vm4, %v7233_v50  ;;  %v1199_v7 = vadd.f32 %v7383_v48, %v9621_v55  ;;  %v3070_v50 = vsel %vm7624_vm12, %v5090_v62, %v3069_v2  ;;  %v3073_v48 = vsel %vm7624_vm12, %v3071_v14, %v3072_v15  ;;  %v5667_v62 = vld [vmem:[%s9265_s0 + $0x3c] sm:$0xf] }
 0x1ad   :  { %v1814_v11 = vpop.f32.mrf.mxu0  ;;  %9620 = vst [vmem:[#allocation144_spill] sm:$0xff] %v7794_v57  ;;  %5458 = vmatprep.mubr.msk.bf16.mxu1 %vm571_vm4, %v7651_v47  ;;  %v5114_v2 = vcombine.low %v3070_v50, %v3073_v48  ;;  %v5091_v14 = vrot.slane %v5667_v62, 10  ;;  %v9630_v15 = vld [vmem:[#allocation29_spill] sm:$0xff]  ;;  %v5668_v50 = vld [vmem:[%s9265_s0 + $0x44] sm:$0x3]  ;;  %v9633_v62 = vld [vmem:[#allocation31_spill] sm:$0xff] }
 0x1ae   :  { %v7789_v6 = vadd.f32 %v1814_v11, %v1193_v21  ;;  %v7804_v22 = vpop.f32.mrf.mxu1  ;;  %v9624_v11 = vld [vmem:[#allocation27_spill] sm:$0xff]  ;;  %v3079_v48 = vrot.slane %v5668_v50, 6 }
 0x1af   :  { %v1816_v27 = vpop.f32.mrf.mxu0  ;;  %9623 = vst [vmem:[#allocation145_spill] sm:$0xff] %v7804_v22  ;;  %v1201_v43 = vadd.f32 %v7390_v49, %v9624_v11  ;;  %v9627_v22 = vld [vmem:[#allocation28_spill] sm:$0xff] }
 0x1b0   :  { %9619 = vst [vmem:[#allocation143_spill] sm:$0xff] %v7789_v6  ;;  %v7802_v12 = vadd.f32 %v1816_v27, %v1195_v8  ;;  %v7817_v47 = vpop.f32.mrf.mxu1  ;;  %v5666_v27 = vld [vmem:[%s9265_s0 + $0x40] sm:$0xf]  ;;  %v1203_v49 = vadd.f32 %v7397_v52, %v9627_v22  ;;  %v9696_v6 = vld [vmem:[#allocation36_spill] sm:$0xff] }
 0x1b1   :  { %v1820_v21 = vpop.f32.mrf.mxu0  ;;  %5135 = vmatmul.mubr.msk.bf16.gmra.mxu0 %vm571_vm4, %v7782_v37  ;;  %9626 = vst [vmem:[#allocation146_spill] sm:$0xff] %v7817_v47  ;;  %v3076_v55 = vrot.slane %v5666_v27, 6  ;;  %v1205_v47 = vadd.f32 %v7401_v28, %v9630_v15  ;;  %v5669_v28 = vld [vmem:[%s9265_s0 + $0x4c] sm:$0xf] }
 0x1b2   :  { %9622 = vst [vmem:[#allocation25_spill] sm:$0xff] %v7802_v12  ;;  %v7810_v63 = vadd.f32 %v1820_v21, %v1199_v7  ;;  %3360 = vmatprep.mubr.bf16.mxu0 %v9384_v17  ;;  %v7826_v21 = vpop.f32.mrf.mxu1  ;;  %v9650_v12 = vld [vmem:[#allocation23_spill] sm:$0xff] }
 0x1b3   :  { %v1822_v8 = vpop.f32.mrf.mxu0  ;;  %9629 = vst [vmem:[#allocation147_spill] sm:$0xff] %v7826_v21  ;;  %v9637_v21 = vld [vmem:[#allocation33_spill] sm:$0xff] }
 0x1b4   :  { %9625 = vst [vmem:[#allocation27_spill] sm:$0xff] %v7810_v63  ;;  %v7824_v7 = vadd.f32 %v1822_v8, %v1201_v43  ;;  %v9631_v63 = vld [vmem:[#allocation15_spill] sm:$0xff]  ;;  %v5388_v52 = vpop.f32.mrf.mxu1  ;;  %5459 = vmatmul.mubr.msk.bf16.vlgmr.msra.gmra.mxu1 %vm571_vm4, %v7692_v3  ;;  %v3078_v43 = vrot.slane %v3076_v55, 4  ;;  %v3083_v8 = vrot.slane %v5669_v28, 6  ;;  %v3077_v28 = vsel %vm7624_vm12, %v5091_v14, %v3076_v55 }
 0x1b5   :  { %v1824_v11 = vpop.f32.mrf.mxu0  ;;  %v1370_v27 = vadd.f32 %v7420_v54, %v9631_v63  ;;  %v1209_v54 = vadd.f32 %v7408_v5, %v9633_v62  ;;  %v9634_v63 = vld [vmem:[#allocation16_spill] sm:$0xff]  ;;  %5462 = vmatprep.mubr.msk.bf16.mxu1 %vm571_vm4, %v7737_v53  ;;  %v1211_v5 = vadd.f32 %v7418_v58, %v9637_v21  ;;  %v9638_v62 = vld [vmem:[#allocation21_spill] sm:$0xff]  ;;  %v5670_v55 = vld [vmem:[%s9265_s0 + $0x48] sm:$0xf] }
 0x1b6   :  { %9628 = vst [vmem:[#allocation28_spill] sm:$0xff] %v7824_v7  ;;  %v7835_v57 = vadd.f32 %v1824_v11, %v1203_v49  ;;  %v1362_v49 = vadd.f32 %v7431_v10, %v9634_v63  ;;  %v1983_v15 = vpop.f32.mrf.mxu1  ;;  %v5092_v14 = vrot.slane %v5670_v55, 10  ;;  %v3085_v58 = vrot.slane %v3083_v8, 4  ;;  %v9643_v63 = vld [vmem:[#allocation93_spill] sm:$0xff]  ;;  %v9649_v7 = vld [vmem:[#allocation94_spill] sm:$0xff] }
 0x1b7   :  { %v1826_v22 = vpop.f32.mrf.mxu0  ;;  %v7849_v11 = vadd.f32 %v5388_v52, %v1370_v27  ;;  %v5672_v55 = vld [vmem:[%s9265_s0 + $0x58] sm:$0xf] }
 0x1b8   :  { %9632 = vst [vmem:[#allocation29_spill] sm:$0xff] %v7835_v57  ;;  %v7853_v3 = vadd.f32 %v1826_v22, %v1205_v47  ;;  %v9639_v57 = vld [vmem:[#allocation95_spill] sm:$0xff]  ;;  %v7862_v27 = vadd.f32 %v1983_v15, %v1362_v49  ;;  %v5389_v53 = vpop.f32.mrf.mxu1  ;;  %v3080_v47 = vsel %vm7624_vm12, %v3078_v43, %v3079_v48  ;;  %v9644_v15 = vld [vmem:[#allocation22_spill] sm:$0xff] }
 0x1b9   :  { %9635 = vst [vmem:[#allocation15_spill] sm:$0xff] %v7849_v11  ;;  %v1830_v50 = vpop.f32.mrf.mxu0  ;;  %5136 = vmatmul.mubr.msk.bf16.gmra.mxu0 %vm571_vm4, %v5114_v2  ;;  %v1373_v10 = vadd.f32 %v9639_v57, %v9638_v62  ;;  %v5671_v57 = vld [vmem:[%s9265_s0 + $0x50] sm:$0x3] }
 0x1ba   :  { %9636 = vst [vmem:[#allocation31_spill] sm:$0xff] %v7853_v3  ;;  %9640 = vst [vmem:[#allocation16_spill] sm:$0xff] %v7862_v27  ;;  %v7864_v52 = vadd.f32 %v1830_v50, %v1209_v54  ;;  %3370 = vmatprep.mubr.bf16.mxu0 %v9384_v17  ;;  %v3086_v21 = vrot.slane %v5671_v57, 6  ;;  %v9642_v54 = vld [vmem:[#allocation35_spill] sm:$0xff]  ;;  %v9645_v50 = vld [vmem:[#allocation97_spill] sm:$0xff]  ;;  %v1986_v48 = vpop.f32.mrf.mxu1 }
 0x1bb   :  { %v1832_v22 = vpop.f32.mrf.mxu0  ;;  %v1213_v49 = vadd.f32 %v9643_v63, %v9642_v54  ;;  %v1365_v62 = vadd.f32 %v9645_v50, %v9644_v15  ;;  %v7879_v27 = vadd.f32 %v5389_v53, %v1373_v10  ;;  %v9648_v3 = vld [vmem:[#allocation19_spill] sm:$0xff]  ;;  %v1386_v54 = vadd.f32 %v9651_v36, %v9650_v12  ;;  %v5673_v36 = vld [vmem:[%s9265_s0 + $0x64] sm:$0xf] }
 0x1bc   :  { %9641 = vst [vmem:[#allocation33_spill] sm:$0xff] %v7864_v52  ;;  %v7881_v43 = vadd.f32 %v1832_v22, %v1211_v5  ;;  %v3090_v52 = vrot.slane %v5672_v55, 6  ;;  %v1215_v57 = vadd.f32 %v9649_v7, %v9648_v3  ;;  %v5392_v10 = vpop.f32.mrf.mxu1  ;;  %5463 = vmatmul.mubr.msk.bf16.gmra.mxu1 %vm571_vm4, %v7782_v37  ;;  %v5115_v5 = vcombine.low %v3077_v28, %v3080_v47  ;;  %v9654_v7 = vld [vmem:[#allocation37_spill] sm:$0xff] }
 0x1bd   :  { %9646 = vst [vmem:[#allocation21_spill] sm:$0xff] %v7879_v27  ;;  %v1834_v11 = vpop.f32.mrf.mxu0  ;;  %v7890_v63 = vadd.f32 %v1986_v48, %v1365_v62  ;;  %v3084_v22 = vsel %vm7624_vm12, %v5092_v14, %v3083_v8  ;;  %v3087_v50 = vsel %vm7624_vm12, %v3085_v58, %v3086_v21  ;;  %v3097_v12 = vrot.slane %v5673_v36, 6  ;;  %v9657_v62 = vld [vmem:[#allocation101_spill] sm:$0xff]  ;;  %5466 = vmatprep.mubr.msk.bf16.mxu1 %vm571_vm4, %v5114_v2  ;;  %v5674_v14 = vld [vmem:[%s9265_s0 + $0x54] sm:$0xf]  ;;  %v9661_v36 = vld [vmem:[#allocation98_spill] sm:$0xff] }
 0x1be   :  { %9647 = vst [vmem:[#allocation95_spill] sm:$0xff] %v7881_v43  ;;  %v7892_v15 = vadd.f32 %v1834_v11, %v1213_v49  ;;  %v9655_v11 = vld [vmem:[#allocation96_spill] sm:$0xff]  ;;  %v9656_v49 = vld [vmem:[#allocation17_spill] sm:$0xff]  ;;  %v7907_v37 = vadd.f32 %v5392_v10, %v1386_v54  ;;  %v1999_v8 = vpop.f32.mrf.mxu1  ;;  %v5093_v58 = vrot.slane %v5674_v14, 10  ;;  %v3092_v21 = vrot.slane %v3090_v52, 4  ;;  %v9660_v10 = vld [vmem:[#allocation39_spill] sm:$0xff] }
 0x1bf   :  { %9652 = vst [vmem:[#allocation35_spill] sm:$0xff] %v7890_v63  ;;  %v1836_v53 = vpop.f32.mrf.mxu0  ;;  %v1219_v3 = vadd.f32 %v9655_v11, %v9654_v7  ;;  %v1378_v48 = vadd.f32 %v9657_v62, %v9656_v49  ;;  %v5675_v55 = vld [vmem:[%s9265_s0 + $0x5c] sm:$0x3]  ;;  %v1221_v2 = vadd.f32 %v9661_v36, %v9660_v10  ;;  %v5116_v14 = vcombine.low %v3084_v22, %v3087_v50  ;;  %v5676_v63 = vld [vmem:[%s9265_s0 + $0x60] sm:$0xf] }
 0x1c0   :  { %9653 = vst [vmem:[#allocation93_spill] sm:$0xff] %v7892_v15  ;;  %9658 = vst [vmem:[#allocation22_spill] sm:$0xff] %v7907_v37  ;;  %v7910_v28 = vadd.f32 %v1836_v53, %v1215_v57  ;;  %v3093_v54 = vrot.slane %v5675_v55, 6  ;;  %v9662_v57 = vld [vmem:[#allocation24_spill] sm:$0xff]  ;;  %v9663_v53 = vld [vmem:[#allocation103_spill] sm:$0xff]  ;;  %v5393_v62 = vpop.f32.mrf.mxu1  ;;  %v5094_v55 = vrot.slane %v5676_v63, 10  ;;  %v3091_v63 = vsel %vm7624_vm12, %v5093_v58, %v3090_v52 }
 0x1c1   :  { %v1840_v47 = vpop.f32.mrf.mxu0  ;;  %5137 = vmatmul.mubr.msk.bf16.gmra.mxu0 %vm571_vm4, %v5115_v5  ;;  %v1389_v7 = vadd.f32 %v9663_v53, %v9662_v57  ;;  %v7923_v11 = vadd.f32 %v1999_v8, %v1378_v48  ;;  %v3099_v27 = vrot.slane %v3097_v12, 4  ;;  %v5677_v10 = vld [vmem:[%s9265_s0 + $0x68] sm:$0x3]  ;;  %v9666_v48 = vld [vmem:[#allocation41_spill] sm:$0xff]  ;;  %v9667_v8 = vld [vmem:[#allocation100_spill] sm:$0xff] }
 0x1c2   :  { %9659 = vst [vmem:[#allocation97_spill] sm:$0xff] %v7910_v28  ;;  %v7925_v49 = vadd.f32 %v1840_v47, %v1219_v3  ;;  %3380 = vmatprep.mubr.bf16.mxu0 %v9384_v17  ;;  %v3100_v36 = vrot.slane %v5677_v10, 6  ;;  %v1223_v3 = vadd.f32 %v9667_v8, %v9666_v48  ;;  %v9668_v47 = vld [vmem:[#allocation26_spill] sm:$0xff]  ;;  %v9669_v57 = vld [vmem:[#allocation105_spill] sm:$0xff]  ;;  %v2002_v50 = vpop.f32.mrf.mxu1  ;;  %v5678_v10 = vld [vmem:[%s9265_s0 + $0x70] sm:$0xf] }
 0x1c3   :  { %9664 = vst [vmem:[#allocation19_spill] sm:$0xff] %v7923_v11  ;;  %v1842_v37 = vpop.f32.mrf.mxu0  ;;  %v1381_v53 = vadd.f32 %v9669_v57, %v9668_v47  ;;  %v7938_v11 = vadd.f32 %v5393_v62, %v1389_v7  ;;  %v3104_v48 = vrot.slane %v5678_v10, 6  ;;  %v9672_v8 = vld [vmem:[#allocation43_spill] sm:$0xff]  ;;  %v9673_v15 = vld [vmem:[#allocation102_spill] sm:$0xff] }
 0x1c4   :  { %9665 = vst [vmem:[#allocation94_spill] sm:$0xff] %v7925_v49  ;;  %v7940_v22 = vadd.f32 %v1842_v37, %v1221_v2  ;;  %v3094_v49 = vsel %vm7624_vm12, %v3092_v21, %v3093_v54  ;;  %v1225_v47 = vadd.f32 %v9673_v15, %v9672_v8  ;;  %v9674_v7 = vld [vmem:[#allocation18_spill] sm:$0xff]  ;;  %v9675_v62 = vld [vmem:[#allocation107_spill] sm:$0xff]  ;;  %v5396_v52 = vpop.f32.mrf.mxu1  ;;  %5467 = vmatmul.mubr.msk.bf16.gmra.mxu1 %vm571_vm4, %v5115_v5  ;;  %v5679_v15 = vld [vmem:[%s9265_s0 + $0x7c] sm:$0xf] }
 0x1c5   :  { %9670 = vst [vmem:[#allocation23_spill] sm:$0xff] %v7938_v11  ;;  %v1844_v28 = vpop.f32.mrf.mxu0  ;;  %v1402_v37 = vadd.f32 %v9675_v62, %v9674_v7  ;;  %v7953_v2 = vadd.f32 %v2002_v50, %v1381_v53  ;;  %v3098_v21 = vsel %vm7624_vm12, %v5094_v55, %v3097_v12  ;;  %v3101_v54 = vsel %vm7624_vm12, %v3099_v27, %v3100_v36  ;;  %v9678_v8 = vld [vmem:[#allocation44_spill] sm:$0xff]  ;;  %v5680_v36 = vld [vmem:[%s9265_s0 + $0x6c] sm:$0xf] }
 0x1c6   :  { %9671 = vst [vmem:[#allocation99_spill] sm:$0xff] %v7940_v22  ;;  %v7955_v57 = vadd.f32 %v1844_v28, %v1223_v3  ;;  %v3111_v10 = vrot.slane %v5679_v15, 6  ;;  %v9679_v53 = vld [vmem:[#allocation104_spill] sm:$0xff]  ;;  %v9680_v28 = vld [vmem:[#allocation30_spill] sm:$0xff]  ;;  %v9681_v3 = vld [vmem:[#allocation109_spill] sm:$0xff]  ;;  %5470 = vmatprep.mubr.msk.bf16.mxu1 %vm571_vm4, %v5116_v14  ;;  %v2015_v12 = vpop.f32.mrf.mxu1  ;;  %v5117_v55 = vcombine.low %v3091_v63, %v3094_v49  ;;  %v5095_v15 = vrot.slane %v5680_v36, 10 }
 0x1c7   :  { %9676 = vst [vmem:[#allocation37_spill] sm:$0xff] %v7953_v2  ;;  %v1846_v58 = vpop.f32.mrf.mxu0  ;;  %v1229_v50 = vadd.f32 %v9679_v53, %v9678_v8  ;;  %v1394_v7 = vadd.f32 %v9681_v3, %v9680_v28  ;;  %v7969_v62 = vadd.f32 %v5396_v52, %v1402_v37  ;;  %v3106_v8 = vrot.slane %v3104_v48, 4  ;;  %v5681_v37 = vld [vmem:[%s9265_s0 + $0x74] sm:$0x3]  ;;  %v9684_v53 = vld [vmem:[#allocation45_spill] sm:$0xff]  ;;  %v9685_v28 = vld [vmem:[#allocation106_spill] sm:$0xff] }
 0x1c8   :  { %9677 = vst [vmem:[#allocation96_spill] sm:$0xff] %v7955_v57  ;;  %v7972_v5 = vadd.f32 %v1846_v58, %v1225_v47  ;;  %v3107_v52 = vrot.slane %v5681_v37, 6  ;;  %v1231_v47 = vadd.f32 %v9685_v28, %v9684_v53  ;;  %v9686_v58 = vld [vmem:[#allocation32_spill] sm:$0xff]  ;;  %v9687_v3 = vld [vmem:[#allocation111_spill] sm:$0xff]  ;;  %v7990_v36 = vcombine.low %v3098_v21, %v3101_v54  ;;  %v5682_v37 = vld [vmem:[%s9265_s0 + $0x78] sm:$0xf] }
 0x1c9   :  { %9682 = vst [vmem:[#allocation17_spill] sm:$0xff] %v7969_v62  ;;  %v1850_v27 = vpop.f32.mrf.mxu0  ;;  %5138 = vmatmul.mubr.msk.bf16.gmra.mxu0 %vm571_vm4, %v5116_v14  ;;  %v1405_v49 = vadd.f32 %v9687_v3, %v9686_v58  ;;  %v7985_v63 = vadd.f32 %v2015_v12, %v1394_v7  ;;  %v5397_v62 = vpop.f32.mrf.mxu1  ;;  %v5096_v11 = vrot.slane %v5682_v37, 10  ;;  %v5683_v53 = vld [vmem:[%s9265_s0 + $0x80] sm:$0x3]  ;;  %v9693_v58 = vld [vmem:[#allocation113_spill] sm:$0xff]  ;;  %v3105_v37 = vsel %vm7624_vm12, %v5095_v15, %v3104_v48  ;;  %v9694_v22 = vld [vmem:[#allocation47_spill] sm:$0xff] }
 0x1ca   :  { %9683 = vst [vmem:[#allocation101_spill] sm:$0xff] %v7972_v5  ;;  %v7987_v14 = vadd.f32 %v1850_v27, %v1229_v50  ;;  %3390 = vmatprep.mubr.bf16.mxu0 %v9384_v17  ;;  %v3113_v5 = vrot.slane %v3111_v10, 4  ;;  %v3114_v7 = vrot.slane %v5683_v53, 6  ;;  %v9690_v12 = vld [vmem:[#allocation46_spill] sm:$0xff]  ;;  %v9691_v50 = vld [vmem:[#allocation108_spill] sm:$0xff] }
 0x1cb   :  { %9688 = vst [vmem:[#allocation39_spill] sm:$0xff] %v7985_v63  ;;  %v1852_v2 = vpop.f32.mrf.mxu0  ;;  %v1233_v27 = vadd.f32 %v9691_v50, %v9690_v12  ;;  %v9692_v28 = vld [vmem:[#allocation34_spill] sm:$0xff]  ;;  %v8002_v21 = vadd.f32 %v5397_v62, %v1405_v49  ;;  %v2018_v63 = vpop.f32.mrf.mxu1  ;;  %v9697_v12 = vld [vmem:[#allocation115_spill] sm:$0xff]  ;;  %v3112_v48 = vsel %vm7624_vm12, %v5096_v11, %v3111_v10 }
 0x1cc   :  { %9689 = vst [vmem:[#allocation98_spill] sm:$0xff] %v7987_v14  ;;  %v1397_v3 = vadd.f32 %v9693_v58, %v9692_v28  ;;  %v8004_v54 = vadd.f32 %v1852_v2, %v1231_v47  ;;  %v3108_v14 = vsel %vm7624_vm12, %v3106_v8, %v3107_v52  ;;  %v9695_v53 = vld [vmem:[#allocation110_spill] sm:$0xff]  ;;  %v1418_v50 = vadd.f32 %v9697_v12, %v9696_v6  ;;  %v9698_v6 = vld [vmem:[#allocation48_spill] sm:$0xff] }
 0x1cd   :  { %v1854_v57 = vpop.f32.mrf.mxu0  ;;  %v1235_v43 = vadd.f32 %v9695_v53, %v9694_v22  ;;  %v5400_v2 = vpop.f32.mrf.mxu1  ;;  %5471 = vmatmul.mubr.msk.bf16.gmra.mxu1 %vm571_vm4, %v5117_v55  ;;  %v3115_v15 = vsel %vm7624_vm12, %v3113_v5, %v3114_v7  ;;  %v5684_v22 = vld [vmem:[%s9265_s0 + $0x88] sm:$0xf]  ;;  %v9699_v52 = vld [vmem:[#allocation112_spill] sm:$0xff]  ;;  %v8036_v5 = vcombine.low %v3105_v37, %v3108_v14 }
 0x1ce   :  { %v8014_v38 = vadd.f32 %v2018_v63, %v1397_v3  ;;  %v8016_v62 = vadd.f32 %v1854_v57, %v1233_v27  ;;  %v3118_v8 = vrot.slane %v5684_v22, 6  ;;  %v1239_v49 = vadd.f32 %v9699_v52, %v9698_v6  ;;  %v9700_v57 = vld [vmem:[#allocation38_spill] sm:$0xff]  ;;  %5474 = vmatprep.mubr.msk.bf16.mxu1 %vm571_vm4, %v7990_v36  ;;  %v5685_v28 = vld [vmem:[%s9265_s0 + $0x94] sm:$0xf]  ;;  %v5687_v6 = vld [vmem:[%s9265_s0 + $0x8c] sm:$0x3] }
 0x1cf   :  { %v1856_v47 = vpop.f32.mrf.mxu0  ;;  %v1410_v63 = vadd.f32 %v7511_v9, %v9700_v57  ;;  %v8030_v27 = vadd.f32 %v5400_v2, %v1418_v50  ;;  %v2031_v10 = vpop.f32.mrf.mxu1  ;;  %v3125_v58 = vrot.slane %v5685_v28, 6  ;;  %v9702_v3 = vld [vmem:[#allocation50_spill] sm:$0xff]  ;;  %v9704_v12 = vld [vmem:[#allocation40_spill] sm:$0xff]  ;;  %v8051_v37 = vcombine.low %v3112_v48, %v3115_v15  ;;  %v9706_v57 = vld [vmem:[#allocation51_spill] sm:$0xff] }
 0x1d0   :  { %v8034_v11 = vadd.f32 %v1856_v47, %v1235_v43  ;;  %v9703_v9 = vld [vmem:[#allocation114_spill] sm:$0xff]  ;;  %v1421_v50 = vadd.f32 %v7515_v59, %v9704_v12  ;;  %v3120_v22 = vrot.slane %v3118_v8, 4  ;;  %v3121_v59 = vrot.slane %v5687_v6, 6  ;;  %v5689_v6 = vld [vmem:[%s9265_s0 + $0x98] sm:$0x3] }
 0x1d1   :  { %9701 = vst [vmem:[#allocation24_spill] sm:$0xff] %v8030_v27  ;;  %v1860_v7 = vpop.f32.mrf.mxu0  ;;  %5139 = vmatmul.mubr.msk.bf16.gmra.mxu0 %vm571_vm4, %v5117_v55  ;;  %v1241_v53 = vadd.f32 %v9703_v9, %v9702_v3  ;;  %v8046_v2 = vadd.f32 %v2031_v10, %v1410_v63  ;;  %v5401_v14 = vpop.f32.mrf.mxu1  ;;  %v5686_v55 = vld [vmem:[%s9265_s0 + $0x84] sm:$0xf]  ;;  %v9708_v10 = vld [vmem:[#allocation117_spill] sm:$0xff]  ;;  %v5688_v9 = vld [vmem:[%s9265_s0 + $0x90] sm:$0xf] }
 0x1d2   :  { %v8048_v43 = vadd.f32 %v1860_v7, %v1239_v49  ;;  %3400 = vmatprep.mubr.bf16.mxu0 %v9384_v17  ;;  %v5097_v47 = vrot.slane %v5686_v55, 10  ;;  %v1243_v49 = vadd.f32 %v7509_v26, %v9706_v57  ;;  %v9707_v63 = vld [vmem:[#allocation42_spill] sm:$0xff]  ;;  %v8063_v48 = vadd.f32 %v5401_v14, %v1421_v50  ;;  %v9710_v57 = vld [vmem:[#allocation53_spill] sm:$0xff]  ;;  %v9712_v50 = vld [vmem:[#allocation8_spill] sm:$0xff] }
 0x1d3   :  { %9705 = vst [vmem:[#allocation103_spill] sm:$0xff] %v8046_v2  ;;  %v1862_v52 = vpop.f32.mrf.mxu0  ;;  %v1413_v7 = vadd.f32 %v9708_v10, %v9707_v63  ;;  %v2034_v28 = vpop.f32.mrf.mxu1  ;;  %v5098_v12 = vrot.slane %v5688_v9, 10  ;;  %v3127_v55 = vrot.slane %v3125_v58, 4  ;;  %v3128_v26 = vrot.slane %v5689_v6, 6  ;;  %v9711_v2 = vld [vmem:[#allocation20_spill] sm:$0xff]  ;;  %v9713_v14 = vld [vmem:[#allocation119_spill] sm:$0xff] }
 0x1d4   :  { %9709 = vst [vmem:[#allocation41_spill] sm:$0xff] %v8063_v48  ;;  %v8065_v15 = vadd.f32 %v1862_v52, %v1241_v53  ;;  %v1245_v63 = vadd.f32 %v9711_v2, %v9710_v57  ;;  %v1434_v53 = vadd.f32 %v9713_v14, %v9712_v50  ;;  %v3119_v9 = vsel %vm7624_vm12, %v5097_v47, %v3118_v8  ;;  %v5690_v2 = vld [vmem:[%s9265_s0 + $0xa0] sm:$0xf] }
 0x1d5   :  { %v1864_v3 = vpop.f32.mrf.mxu0  ;;  %v8077_v52 = vadd.f32 %v2034_v28, %v1413_v7  ;;  %v5404_v48 = vpop.f32.mrf.mxu1  ;;  %5475 = vmatmul.mubr.msk.bf16.gmra.mxu1 %vm571_vm4, %v8036_v5  ;;  %v3122_v6 = vsel %vm7624_vm12, %v3120_v22, %v3121_v59  ;;  %v3132_v57 = vrot.slane %v5690_v2, 6  ;;  %v9714_v7 = vld [vmem:[#allocation55_spill] sm:$0xff]  ;;  %v9715_v28 = vld [vmem:[#allocation116_spill] sm:$0xff]  ;;  %v3126_v22 = vsel %vm7624_vm12, %v5098_v12, %v3125_v58 }
 0x1d6   :  { %v8079_v10 = vadd.f32 %v1864_v3, %v1243_v49  ;;  %v1249_v49 = vadd.f32 %v9715_v28, %v9714_v7  ;;  %v9716_v3 = vld [vmem:[#allocation9_spill] sm:$0xff]  ;;  %v8094_v14 = vadd.f32 %v5404_v48, %v1434_v53  ;;  %5478 = vmatprep.mubr.msk.bf16.mxu1 %vm571_vm4, %v8051_v37  ;;  %v3129_v59 = vsel %vm7624_vm12, %v3127_v55, %v3128_v26  ;;  %v9719_v7 = vld [vmem:[#allocation118_spill] sm:$0xff] }
 0x1d7   :  { %v1866_v27 = vpop.f32.mrf.mxu0  ;;  %v1426_v50 = vadd.f32 %v7547_v51, %v9716_v3  ;;  %v2047_v47 = vpop.f32.mrf.mxu1  ;;  %v5691_v51 = vld [vmem:[%s9265_s0 + $0xac] sm:$0xf]  ;;  %v9718_v53 = vld [vmem:[#allocation57_spill] sm:$0xff]  ;;  %v8118_v55 = vcombine.low %v3119_v9, %v3122_v6 }
 0x1d8   :  { %9717 = vst [vmem:[#allocation100_spill] sm:$0xff] %v8094_v14  ;;  %v8098_v8 = vadd.f32 %v1866_v27, %v1245_v63  ;;  %v3139_v48 = vrot.slane %v5691_v51, 6  ;;  %v1251_v27 = vadd.f32 %v9719_v7, %v9718_v53  ;;  %v9720_v63 = vld [vmem:[#allocation10_spill] sm:$0xff]  ;;  %v3134_v51 = vrot.slane %v3132_v57, 4 }
 0x1d9   :  { %v1870_v2 = vpop.f32.mrf.mxu0  ;;  %5140 = vmatmul.mubr.msk.bf16.gmra.mxu0 %vm571_vm4, %v7990_v36  ;;  %v1437_v28 = vadd.f32 %v7553_v61, %v9720_v63  ;;  %v8113_v3 = vadd.f32 %v2047_v47, %v1426_v50  ;;  %v5405_v12 = vpop.f32.mrf.mxu1  ;;  %v5692_v36 = vld [vmem:[%s9265_s0 + $0x9c] sm:$0xf]  ;;  %v5693_v53 = vld [vmem:[%s9265_s0 + $0xa4] sm:$0x3]  ;;  %v9722_v47 = vld [vmem:[#allocation59_spill] sm:$0xff]  ;;  %v8130_v7 = vcombine.low %v3126_v22, %v3129_v59 }
 0x1da   :  { %v8115_v58 = vadd.f32 %v1870_v2, %v1249_v49  ;;  %3410 = vmatprep.mubr.bf16.mxu0 %v9384_v17  ;;  %v5099_v26 = vrot.slane %v5692_v36, 10  ;;  %v3135_v61 = vrot.slane %v5693_v53, 6  ;;  %v1253_v49 = vadd.f32 %v7545_v39, %v9722_v47  ;;  %v5694_v36 = vld [vmem:[%s9265_s0 + $0xa8] sm:$0xf]  ;;  %v5695_v53 = vld [vmem:[%s9265_s0 + $0xb0] sm:$0x3] }
 0x1db   :  { %9721 = vst [vmem:[#allocation26_spill] sm:$0xff] %v8113_v3  ;;  %v1872_v50 = vpop.f32.mrf.mxu0  ;;  %v8128_v2 = vadd.f32 %v5405_v12, %v1437_v28  ;;  %v8134_v6 = vpop.f32.mrf.mxu1  ;;  %v5100_v3 = vrot.slane %v5694_v36, 10  ;;  %v3141_v14 = vrot.slane %v3139_v48, 4  ;;  %v3142_v39 = vrot.slane %v5695_v53, 6  ;;  %v9724_v28 = vld [vmem:[#allocation61_spill] sm:$0xff]  ;;  %v9725_v59 = vld [vmem:[#allocation52_spill] sm:$0xff] }
 0x1dc   :  { %v8132_v9 = vadd.f32 %v1872_v50, %v1251_v27  ;;  %v1255_v22 = vadd.f32 %v7551_v42, %v9724_v28  ;;  %v1450_v27 = vadd.f32 %v7566_v23, %v9725_v59  ;;  %v3133_v47 = vsel %vm7624_vm12, %v5099_v26, %v3132_v57  ;;  %v5696_v42 = vld [vmem:[%s9265_s0 + $0xb8] sm:$0xf]  ;;  %v9726_v28 = vld [vmem:[#allocation63_spill] sm:$0xff] }
 0x1dd   :  { %9723 = vst [vmem:[#allocation105_spill] sm:$0xff] %v8128_v2  ;;  %v1874_v63 = vpop.f32.mrf.mxu0  ;;  %v5408_v50 = vpop.f32.mrf.mxu1  ;;  %5479 = vmatmul.mubr.msk.bf16.gmra.mxu1 %vm571_vm4, %v8118_v55  ;;  %v3136_v36 = vsel %vm7624_vm12, %v3134_v51, %v3135_v61  ;;  %v3146_v53 = vrot.slane %v5696_v42, 6  ;;  %v1259_v23 = vadd.f32 %v7557_v60, %v9726_v28  ;;  %v3140_v51 = vsel %vm7624_vm12, %v5100_v3, %v3139_v48  ;;  %v9730_v60 = vld [vmem:[#allocation65_spill] sm:$0xff] }
 0x1de   :  { %v8146_v12 = vadd.f32 %v1874_v63, %v1253_v49  ;;  %v9727_v49 = vld [vmem:[#allocation54_spill] sm:$0xff]  ;;  %v8161_v59 = vadd.f32 %v5408_v50, %v1450_v27  ;;  %5482 = vmatprep.mubr.msk.bf16.mxu1 %vm571_vm4, %v8130_v7  ;;  %v3143_v61 = vsel %vm7624_vm12, %v3141_v14, %v3142_v39  ;;  %v9731_v27 = vld [vmem:[#allocation56_spill] sm:$0xff]  ;;  %v8182_v3 = vcombine.low %v3133_v47, %v3136_v36 }
 0x1df   :  { %v1876_v2 = vpop.f32.mrf.mxu0  ;;  %v1442_v63 = vadd.f32 %v7574_v4, %v9727_v49  ;;  %v2063_v26 = vpop.f32.mrf.mxu1  ;;  %v1261_v4 = vadd.f32 %v7564_v46, %v9730_v60  ;;  %v1453_v50 = vadd.f32 %v7582_v33, %v9731_v27  ;;  %v5697_v14 = vld [vmem:[%s9265_s0 + $0xb4] sm:$0xf]  ;;  %v3148_v39 = vrot.slane %v3146_v53, 4  ;;  %v5698_v46 = vld [vmem:[%s9265_s0 + $0xbc] sm:$0x3]  ;;  %v9734_v49 = vld [vmem:[#allocation67_spill] sm:$0xff] }
 0x1e0   :  { %9728 = vst [vmem:[#allocation43_spill] sm:$0xff] %v8161_v59  ;;  %v8165_v57 = vadd.f32 %v1876_v2, %v1255_v22  ;;  %v3149_v33 = vrot.slane %v5698_v46, 6  ;;  %v9736_v60 = vld [vmem:[#allocation69_spill] sm:$0xff]  ;;  %s4818_s0 = sshll.u32 %s5755_s21, 4  ;;  %s4819_s0 = int_to_ptr.vmem [resolvable:$true] %s4818_s0 }
 0x1e1   :  { %v1880_v42 = vpop.f32.mrf.mxu0  ;;  %5141 = vmatmul.mubr.msk.bf16.gmra.mxu0 %vm571_vm4, %v8036_v5  ;;  %v8177_v28 = vadd.f32 %v2063_v26, %v1442_v63  ;;  %v5409_v48 = vpop.f32.mrf.mxu1  ;;  %v5101_v5 = vrot.slane %v5697_v14, 10  ;;  %v8194_v26 = vcombine.low %v3140_v51, %v3143_v61  ;;  %v9737_v27 = vld [vmem:[#allocation121_spill] sm:$0xff]  ;;  %s5725_s22 = scalar_lea.vmem %s4819_s0, 256  ;;  %p5730_p6 = scmp.lt.s32.totalorder %s4819_s0, %s4819_s0 }
 0x1e2   :  { %9729 = vst [vmem:[#allocation102_spill] sm:$0xff] %v8165_v57  ;;  %v8179_v2 = vadd.f32 %v1880_v42, %v1259_v23  ;;  %3420 = vmatprep.mubr.bf16.mxu0 %v9384_v17  ;;  %v1263_v23 = vadd.f32 %v7572_v44, %v9734_v49  ;;  %v8192_v63 = vadd.f32 %v5409_v48, %v1453_v50  ;;  %v9739_v59 = vld [vmem:[#allocation125_spill] sm:$0xff]  ;;  %v9741_v50 = vld [vmem:[#allocation122_spill] sm:$0xff]  ;;  %v9743_v49 = vld [vmem:[#allocation127_spill] sm:$0xff]  ;;  %p5726_p5 = scmp.ne.s32.totalorder %s4819_s0, %s5725_s22  ;;  %p5731_p7 = scmp.lt.s32.totalorder %s5725_s22, %s5725_s22 }
 0x1e3   :  { %9732 = vst [vmem:[#allocation18_spill] sm:$0xff] %v8177_v28  ;;  %v1882_v22 = vpop.f32.mrf.mxu0  ;;  %v8198_v36 = vpop.f32.mrf.mxu1  ;;  %v1265_v14 = vadd.f32 %v9737_v27, %v9736_v60  ;;  %v9738_v28 = vld [vmem:[#allocation60_spill] sm:$0xff]  ;;  %v3147_v44 = vsel %vm7624_vm12, %v5101_v5, %v3146_v53  ;;  %v3150_v51 = vsel %vm7624_vm12, %v3148_v39, %v3149_v33  ;;  %v9748_v33 = vld [vmem:[#allocation129_spill] sm:$0xff] }
 0x1e4   :  { %9733 = vst [vmem:[#allocation107_spill] sm:$0xff] %v8179_v2  ;;  %9735 = vst [vmem:[#allocation44_spill] sm:$0xff] %v8192_v63  ;;  %v8196_v47 = vadd.f32 %v1882_v22, %v1261_v4  ;;  %v1466_v2 = vadd.f32 %v9739_v59, %v9738_v28  ;;  %v9740_v4 = vld [vmem:[#allocation71_spill] sm:$0xff]  ;;  %v9742_v22 = vld [vmem:[#allocation62_spill] sm:$0xff]  ;;  %p5732_p8 = por %p5731_p7, %p5730_p6 }
 0x1e5   :  { %v1884_v42 = vpop.f32.mrf.mxu0  ;;  %v5412_v57 = vpop.f32.mrf.mxu1  ;;  %5483 = vmatmul.mubr.msk.bf16.gmra.mxu1 %vm571_vm4, %v8182_v3  ;;  %v1269_v48 = vadd.f32 %v9741_v50, %v9740_v4  ;;  %v1458_v60 = vadd.f32 %v9743_v49, %v9742_v22  ;;  %v9746_v53 = vld [vmem:[#allocation124_spill] sm:$0xff]  ;;  %v9751_v50 = vld [vmem:[#allocation75_spill] sm:$0xff]  ;;  %v9752_v22 = vld [vmem:[#allocation126_spill] sm:$0xff] }
 0x1e6   :  { %v8204_v46 = vadd.f32 %v1884_v42, %v1263_v23  ;;  %v8216_v59 = vadd.f32 %v5412_v57, %v1466_v2  ;;  %5486 = vmatprep.mubr.msk.bf16.mxu1 %vm571_vm4, %v8194_v26  ;;  %v1271_v5 = vadd.f32 %v9746_v53, %v9745_v20  ;;  %v9747_v39 = vld [vmem:[#allocation64_spill] sm:$0xff]  ;;  %v1273_v49 = vadd.f32 %v9752_v22, %v9751_v50  ;;  %p5733_p9 = pnand %p5732_p8, %p5726_p5 }
 0x1e7   :  { %v1886_v61 = vpop.f32.mrf.mxu0  ;;  %v2079_v23 = vpop.f32.mrf.mxu1  ;;  %v1469_v27 = vadd.f32 %v9748_v33, %v9747_v39  ;;  %v9758_v33 = vld [vmem:[#allocation68_spill] sm:$0xff] }
 0x1e8   :  { %9744 = vst [vmem:[#allocation104_spill] sm:$0xff] %v8216_v59  ;;  %v8220_v28 = vadd.f32 %v1886_v61, %v1265_v14  ;;  %v8228_v4 = vadd.f32 %v2079_v23, %v1458_v60  ;;  %v8233_v14 = vcombine.low %v3147_v44, %v3150_v51  ;;  %v9754_v59 = vld [vmem:[#allocation131_spill] sm:$0xff] }
 0x1e9   :  { %v1890_v42 = vpop.f32.mrf.mxu0  ;;  %5142 = vmatmul.mubr.msk.bf16.gmra.mxu0 %vm571_vm4, %v8051_v37  ;;  %v5413_v2 = vpop.f32.mrf.mxu1  ;;  %v9753_v37 = vld [vmem:[#allocation66_spill] sm:$0xff] }
 0x1ea   :  { %9749 = vst [vmem:[#allocation30_spill] sm:$0xff] %v8228_v4  ;;  %v8230_v57 = vadd.f32 %v1890_v42, %v1269_v48  ;;  %3430 = vmatprep.mubr.bf16.mxu0 %v9384_v17  ;;  %v1461_v63 = vadd.f32 %v9754_v59, %v9753_v37  ;;  %v8239_v20 = vadd.f32 %v5413_v2, %v1469_v27  ;;  %v9756_v48 = vld [vmem:[#allocation76_spill] sm:$0xff]  ;;  %v9759_v4 = vld [vmem:[#allocation133_spill] sm:$0xff] }
 0x1eb   :  { %v1892_v61 = vpop.f32.mrf.mxu0  ;;  %v2082_v60 = vpop.f32.mrf.mxu1  ;;  %v9757_v42 = vld [vmem:[#allocation128_spill] sm:$0xff]  ;;  %v1482_v44 = vadd.f32 %v9759_v4, %v9758_v33  ;;  %v9761_v27 = vld [vmem:[#allocation77_spill] sm:$0xff] }
 0x1ec   :  { %9750 = vst [vmem:[#allocation109_spill] sm:$0xff] %v8230_v57  ;;  %9755 = vst [vmem:[#allocation45_spill] sm:$0xff] %v8239_v20  ;;  %v8241_v53 = vadd.f32 %v1892_v61, %v1271_v5  ;;  %v1275_v39 = vadd.f32 %v9757_v42, %v9756_v48  ;;  %v8247_v51 = vadd.f32 %v2082_v60, %v1461_v63  ;;  %v9762_v5 = vld [vmem:[#allocation130_spill] sm:$0xff]  ;;  %v9767_v60 = vld [vmem:[#allocation132_spill] sm:$0xff] }
 0x1ed   :  { %v1894_v23 = vpop.f32.mrf.mxu0  ;;  %v5416_v50 = vpop.f32.mrf.mxu1  ;;  %5487 = vmatmul.mubr.msk.bf16.gmra.mxu1 %vm571_vm4, %v8233_v14  ;;  %v1279_v2 = vadd.f32 %v9762_v5, %v9761_v27  ;;  %v9763_v61 = vld [vmem:[#allocation70_spill] sm:$0xff]  ;;  %v9768_v42 = vld [vmem:[#allocation72_spill] sm:$0xff] }
 0x1ee   :  { %9760 = vst [vmem:[#allocation106_spill] sm:$0xff] %v8247_v51  ;;  %v8249_v57 = vadd.f32 %v1894_v23, %v1273_v49  ;;  %v1474_v22 = vadd.f32 %v7645_v16, %v9763_v61  ;;  %v8257_v37 = vadd.f32 %v5416_v50, %v1482_v44  ;;  %v9766_v49 = vld [vmem:[#allocation78_spill] sm:$0xff]  ;;  %v9769_v33 = vld [vmem:[#allocation136_spill] sm:$0xff]  ;;  %v9772_v44 = vld [vmem:[#allocation79_spill] sm:$0xff] }
 0x1ef   :  { %v1896_v59 = vpop.f32.mrf.mxu0  ;;  %v2095_v4 = vpop.f32.mrf.mxu1  ;;  %v1281_v23 = vadd.f32 %v9767_v60, %v9766_v49  ;;  %v1485_v51 = vadd.f32 %v9769_v33, %v9768_v42  ;;  %v9773_v50 = vld [vmem:[#allocation134_spill] sm:$0xff] }
 0x1f0   :  { %9764 = vst [vmem:[#allocation32_spill] sm:$0xff] %v8257_v37  ;;  %v8259_v48 = vadd.f32 %v1896_v59, %v1275_v39  ;;  %v8267_v20 = vadd.f32 %v2095_v4, %v1474_v22  ;;  %v1283_v59 = vadd.f32 %v9773_v50, %v9772_v44  ;;  %v9774_v5 = vld [vmem:[#allocation74_spill] sm:$0xff]  ;;  %v9776_v22 = vld [vmem:[#allocation80_spill] sm:$0xff]  ;;  %v9777_v4 = vld [vmem:[#allocation135_spill] sm:$0xff] }
 0x1f1   :  { %v1900_v63 = vpop.f32.mrf.mxu0  ;;  %5143 = vmatmul.mubr.msk.bf16.gmra.mxu0 %vm571_vm4, %v8118_v55  ;;  %v5417_v16 = vpop.f32.mrf.mxu1  ;;  %v9775_v61 = vld [vmem:[#allocation138_spill] sm:$0xff]  ;;  %v9779_v44 = vld [vmem:[#allocation137_spill] sm:$0xff] }
 0x1f2   :  { %9765 = vst [vmem:[#allocation111_spill] sm:$0xff] %v8259_v48  ;;  %9770 = vst [vmem:[#allocation46_spill] sm:$0xff] %v8267_v20  ;;  %v8269_v27 = vadd.f32 %v1900_v63, %v1279_v2  ;;  %3440 = vmatprep.mubr.bf16.mxu0 %v9384_v17  ;;  %v1477_v55 = vadd.f32 %v9775_v61, %v9774_v5  ;;  %v8276_v37 = vadd.f32 %v5417_v16, %v1485_v51  ;;  %v9778_v48 = vld [vmem:[#allocation81_spill] sm:$0xff]  ;;  %v9781_v61 = vld [vmem:[#allocation139_spill] sm:$0xff] }
 0x1f3   :  { %v1902_v39 = vpop.f32.mrf.mxu0  ;;  %v2098_v60 = vpop.f32.mrf.mxu1  ;;  %v1285_v2 = vadd.f32 %v9777_v4, %v9776_v22  ;;  %v1289_v50 = vadd.f32 %v9779_v44, %v9778_v48  ;;  %v9784_v44 = vld [vmem:[#allocation84_spill] sm:$0xff] }
 0x1f4   :  { %9771 = vst [vmem:[#allocation108_spill] sm:$0xff] %v8269_v27  ;;  %v8278_v49 = vadd.f32 %v1902_v39, %v1281_v23  ;;  %v8282_v63 = vadd.f32 %v2098_v60, %v1477_v55  ;;  %v9780_v39 = vld [vmem:[#allocation82_spill] sm:$0xff] }
 0x1f5   :  { %v1904_v42 = vpop.f32.mrf.mxu0  ;;  %v2620_v20 = vpop.f32.mrf.mxu1  ;;  %v1291_v55 = vadd.f32 %v9781_v61, %v9780_v39  ;;  %v9785_v61 = vld [vmem:[#allocation85_spill] sm:$0xff] }
 0x1f6   :  { %v8284_v33 = vadd.f32 %v1904_v42, %v1283_v59  ;;  %v8289_v5 = vadd.f32 %v2620_v20, %v7676_v24  ;;  %v9782_v20 = vld [vmem:[#allocation83_spill] sm:$0xff] }
 0x1f7   :  { %v1906_v27 = vpop.f32.mrf.mxu0  ;;  %v2622_v23 = vpop.f32.mrf.mxu1 }
 0x1f8   :  { %v8291_v51 = vadd.f32 %v1906_v27, %v1285_v2  ;;  %v8298_v59 = vadd.f32 %v2622_v23, %v7688_v1  ;;  %v9783_v27 = vld [vmem:[#allocation140_spill] sm:$0xff]  ;;  %v1295_v1 = vadd.f32 %v7690_v29, %v9784_v44  ;;  %v9786_v29 = vld [vmem:[#allocation86_spill] sm:$0xff] }
 0x1f9   :  { %v1910_v16 = vpop.f32.mrf.mxu0  ;;  %5144 = vmatmul.mubr.msk.bf16.gmra.mxu0 %vm571_vm4, %v8130_v7  ;;  %v2624_v48 = vpop.f32.mrf.mxu1  ;;  %v1293_v42 = vadd.f32 %v9783_v27, %v9782_v20  ;;  %v1299_v20 = vadd.f32 %v7704_v0, %v9785_v61 }
 0x1fa   :  { %v8300_v60 = vadd.f32 %v1910_v16, %v1289_v50  ;;  %3450 = vmatprep.mubr.bf16.mxu0 %v9384_v17  ;;  %v8306_v22 = vadd.f32 %v2624_v48, %v7699_v19 }
 0x1fb   :  { %v1912_v24 = vpop.f32.mrf.mxu0  ;;  %v2626_v7 = vpop.f32.mrf.mxu1 }
 0x1fc   :  { %v8308_v4 = vadd.f32 %v1912_v24, %v1291_v55  ;;  %v8313_v50 = vadd.f32 %v2626_v7, %v7711_v31  ;;  %v1301_v31 = vadd.f32 %v7713_v56, %v9786_v29  ;;  %v9787_v7 = vld [vmem:[#allocation87_spill] sm:$0xff]  ;;  %v9788_v56 = vld [vmem:[#allocation88_spill] sm:$0xff] }
 0x1fd   :  { %v1914_v2 = vpop.f32.mrf.mxu0  ;;  %v2630_v16 = vpop.f32.mrf.mxu1 }
 0x1fe   :  { %v8315_v23 = vadd.f32 %v1914_v2, %v1293_v42  ;;  %v8320_v19 = vadd.f32 %v2630_v16, %v7721_v32  ;;  %v1303_v2 = vadd.f32 %v7729_v18, %v9787_v7 }
 0x1ff   :  { %v1916_v39 = vpop.f32.mrf.mxu0  ;;  %v2632_v48 = vpop.f32.mrf.mxu1 }
 0x200   :  { %v8322_v55 = vadd.f32 %v1916_v39, %v1295_v1  ;;  %v8329_v27 = vadd.f32 %v2632_v48, %v7733_v34  ;;  %v1305_v34 = vadd.f32 %v7735_v30, %v9788_v56  ;;  %v9790_v30 = vld [vmem:[#allocation90_spill] sm:$0xff]  ;;  %v9795_v56 = vld [vmem:[#allocation143_spill] sm:$0xff] }
 0x201   :  { %v1920_v24 = vpop.f32.mrf.mxu0  ;;  %5145 = vmatmul.mubr.msk.bf16.gmra.mxu0 %vm571_vm4, %v8182_v3  ;;  %v2634_v0 = vpop.f32.mrf.mxu1 }
 0x202   :  { %v8331_v42 = vadd.f32 %v1920_v24, %v1299_v20  ;;  %3460 = vmatprep.mubr.bf16.mxu0 %v9384_v17  ;;  %v8337_v44 = vadd.f32 %v2634_v0, %v7744_v45  ;;  %v9789_v24 = vld [vmem:[#allocation89_spill] sm:$0xff] }
 0x203   :  { %v1922_v32 = vpop.f32.mrf.mxu0  ;;  %v2636_v3 = vpop.f32.mrf.mxu1  ;;  %v1309_v18 = vadd.f32 %v7749_v25, %v9789_v24  ;;  %v9798_v24 = vld [vmem:[#allocation142_spill] sm:$0xff] }
 0x204   :  { %v8339_v1 = vadd.f32 %v1922_v32, %v1301_v31  ;;  %v8344_v39 = vadd.f32 %v2636_v3, %v7756_v35  ;;  %v1311_v35 = vadd.f32 %v7758_v40, %v9790_v30  ;;  %v9794_v3 = vld [vmem:[#allocation141_spill] sm:$0xff]  ;;  %v9797_v40 = vld [vmem:[#allocation92_spill] sm:$0xff] }
 0x205   :  { %v1924_v16 = vpop.f32.mrf.mxu0  ;;  %v2640_v20 = vpop.f32.mrf.mxu1 }
 0x206   :  { %v8346_v61 = vadd.f32 %v1924_v16, %v1303_v2  ;;  %v8351_v45 = vadd.f32 %v2640_v20, %v7766_v41  ;;  %v9793_v2 = vld [vmem:[#allocation91_spill] sm:$0xff] }
 0x207   :  { %v1926_v48 = vpop.f32.mrf.mxu0  ;;  %v2642_v31 = vpop.f32.mrf.mxu1  ;;  %v1313_v16 = vadd.f32 %v9794_v3, %v9793_v2  ;;  %v9804_v3 = vld [vmem:[#allocation27_spill] sm:$0xff] }
 0x208   :  { %v8353_v29 = vadd.f32 %v1926_v48, %v1305_v34  ;;  %v8360_v32 = vadd.f32 %v2642_v31, %v7778_v13  ;;  %v1315_v13 = vadd.f32 %v9798_v24, %v9797_v40  ;;  %v9799_v31 = vld [vmem:[#allocation25_spill] sm:$0xff]  ;;  %v9807_v40 = vld [vmem:[#allocation12_spill] sm:$0xff] }
 0x209   :  { %v1930_v0 = vpop.f32.mrf.mxu0  ;;  %5146 = vmatmul.mubr.msk.bf16.gmra.mxu0 %vm571_vm4, %v8194_v26  ;;  %v2644_v25 = vpop.f32.mrf.mxu1 }
 0x20a   :  { %9791 = vst [vmem:[#allocation34_spill] sm:$0xff] %v8360_v32  ;;  %v8362_v7 = vadd.f32 %v1930_v0, %v1309_v18  ;;  %3470 = vmatprep.mubr.bf16.mxu0 %v9384_v17  ;;  %v8368_v34 = vadd.f32 %v2644_v25, %v9795_v56  ;;  %v9802_v32 = vld [vmem:[#allocation11_spill] sm:$0xff] }
 0x20b   :  { %v1932_v41 = vpop.f32.mrf.mxu0  ;;  %v2646_v26 = vpop.f32.mrf.mxu1 }
 0x20c   :  { %9792 = vst [vmem:[#allocation113_spill] sm:$0xff] %v8362_v7  ;;  %9796 = vst [vmem:[#allocation47_spill] sm:$0xff] %v8368_v34  ;;  %v8370_v20 = vadd.f32 %v1932_v41, %v1311_v35  ;;  %v8375_v18 = vadd.f32 %v2646_v26, %v9799_v31  ;;  %v9803_v7 = vld [vmem:[#allocation144_spill] sm:$0xff]  ;;  %v9808_v26 = vld [vmem:[#allocation145_spill] sm:$0xff] }
 0x20d   :  { %v1934_v48 = vpop.f32.mrf.mxu0  ;;  %v2650_v17 = vpop.f32.mrf.mxu1  ;;  %v1319_v2 = vadd.f32 %v9803_v7, %v9802_v32  ;;  %v1321_v24 = vadd.f32 %v9808_v26, %v9807_v40  ;;  %v9812_v7 = vld [vmem:[#allocation13_spill] sm:$0xff]  ;;  %v9816_v34 = vld [vmem:[#allocation14_spill] sm:$0xff]  ;;  %v9818_v26 = vld [vmem:[#allocation31_spill] sm:$0xff] }
 0x20e   :  { %9800 = vst [vmem:[#allocation110_spill] sm:$0xff] %v8375_v18  ;;  %v8377_v0 = vadd.f32 %v1934_v48, %v1313_v16  ;;  %v8382_v25 = vadd.f32 %v2650_v17, %v9804_v3  ;;  %v9809_v16 = vld [vmem:[#allocation28_spill] sm:$0xff]  ;;  %v9813_v17 = vld [vmem:[#allocation146_spill] sm:$0xff] }
 0x20f   :  { %v1936_v30 = vpop.f32.mrf.mxu0  ;;  %v2652_v41 = vpop.f32.mrf.mxu1  ;;  %v1323_v3 = vadd.f32 %v9813_v17, %v9812_v7 }
 0x210   :  { %9801 = vst [vmem:[#allocation36_spill] sm:$0xff] %v8377_v0  ;;  %9805 = vst [vmem:[#allocation115_spill] sm:$0xff] %v8382_v25  ;;  %v8384_v35 = vadd.f32 %v1936_v30, %v1315_v13  ;;  %v8391_v48 = vadd.f32 %v2652_v41, %v9809_v16  ;;  %v9814_v13 = vld [vmem:[#allocation29_spill] sm:$0xff]  ;;  %v9817_v0 = vld [vmem:[#allocation147_spill] sm:$0xff] }
 0x211   :  { %v1940_v56 = vpop.f32.mrf.mxu0  ;;  %5147 = vmatmul.mubr.msk.bf16.gmra.mxu0 %vm571_vm4, %v8233_v14  ;;  %v2654_v18 = vpop.f32.mrf.mxu1  ;;  %v1325_v40 = vadd.f32 %v9817_v0, %v9816_v34  ;;  %vm5754_vm4 = vmmov 0  }
 0x212   :  { %9806 = vst [vmem:[#allocation48_spill] sm:$0xff] %v8384_v35  ;;  %9810 = vst [vmem:[#allocation112_spill] sm:$0xff] %v8391_v48  ;;  %v8393_v31 = vadd.f32 %v1940_v56, %v1319_v2  ;;  %v8398_v30 = vadd.f32 %v2654_v18, %v9814_v13  ;;  %v9820_v48 = vld [vmem:[#allocation33_spill] sm:$0xff]  ;;  %v9824_v13 = vld [vmem:[#allocation15_spill] sm:$0xff] }
 0x213   :  { %v1942_v32 = vpop.f32.mrf.mxu0  ;;  %v2656_v35 = vpop.f32.mrf.mxu1 }
 0x214   :  { %9811 = vst [vmem:[#allocation38_spill] sm:$0xff] %v8393_v31  ;;  %9815 = vst [vmem:[#allocation50_spill] sm:$0xff] %v8398_v30  ;;  %v8400_v25 = vadd.f32 %v1942_v32, %v1321_v24  ;;  %v8405_v41 = vadd.f32 %v2656_v35, %v9818_v26  ;;  %v9822_v32 = vld [vmem:[#allocation95_spill] sm:$0xff]  ;;  %v9826_v35 = vld [vmem:[#allocation93_spill] sm:$0xff] }
 0x215   :  { %v1944_v14 = vpop.f32.mrf.mxu0  ;;  %v2660_v56 = vpop.f32.mrf.mxu1 }
 0x216   :  { %9819 = vst [vmem:[#allocation114_spill] sm:$0xff] %v8405_v41  ;;  %v8407_v2 = vadd.f32 %v1944_v14, %v1323_v3  ;;  %v8410_v31 = vadd.f32 %v2660_v56, %v9820_v48  ;;  %v9828_v14 = vld [vmem:[#allocation16_spill] sm:$0xff] }
 0x217   :  { %v1946_v16 = vpop.f32.mrf.mxu0  ;;  %v2662_v18 = vpop.f32.mrf.mxu1 }
 0x218   :  { %9821 = vst [vmem:[#allocation40_spill] sm:$0xff] %v8410_v31  ;;  %v8412_v7 = vadd.f32 %v1946_v16, %v1325_v40  ;;  %v8415_v17 = vadd.f32 %v2662_v18, %v9822_v32  ;;  %v9830_v40 = vld [vmem:[#allocation97_spill] sm:$0xff] }
 0x219   :  { %v5424_v24 = vpop.f32.mrf.mxu0  ;;  %v2664_v34 = vpop.f32.mrf.mxu1  ;;  %v9832_v31 = vld [vmem:[#allocation21_spill] sm:$0xff] }
 0x21a   :  { %9823 = vst [vmem:[#allocation51_spill] sm:$0xff] %v8415_v17  ;;  %v8418_v30 = vadd.f32 %v5424_v24, %v9824_v13  ;;  %v8421_v3 = vadd.f32 %v2664_v34, %v9826_v35  ;;  %v9834_v24 = vld [vmem:[#allocation94_spill] sm:$0xff]  ;;  %v9836_v17 = vld [vmem:[#allocation35_spill] sm:$0xff] }
 0x21b   :  { %v2813_v0 = vpop.f32.mrf.mxu0  ;;  %v2666_v48 = vpop.f32.mrf.mxu1 }
 0x21c   :  { %9825 = vst [vmem:[#allocation42_spill] sm:$0xff] %v8418_v30  ;;  %9827 = vst [vmem:[#allocation117_spill] sm:$0xff] %v8421_v3  ;;  %v8424_v26 = vadd.f32 %v2813_v0, %v9828_v14  ;;  %v8427_v16 = vadd.f32 %v2666_v48, %v9830_v40  ;;  %v9838_v0 = vld [vmem:[#allocation99_spill] sm:$0xff]  ;;  %v9840_v3 = vld [vmem:[#allocation22_spill] sm:$0xff] }
 0x21d   :  { %v5425_v56 = vpop.f32.mrf.mxu0  ;;  %v2670_v18 = vpop.f32.mrf.mxu1 }
 0x21e   :  { %9829 = vst [vmem:[#allocation53_spill] sm:$0xff] %v8424_v26  ;;  %9831 = vst [vmem:[#allocation20_spill] sm:$0xff] %v8427_v16  ;;  %v8430_v41 = vadd.f32 %v5425_v56, %v9832_v31  ;;  %v8433_v13 = vadd.f32 %v2670_v18, %v9834_v24  ;;  %v9842_v31 = vld [vmem:[#allocation96_spill] sm:$0xff]  ;;  %v9844_v16 = vld [vmem:[#allocation19_spill] sm:$0xff] }
 0x21f   :  { %v2816_v32 = vpop.f32.mrf.mxu0  ;;  %v2672_v34 = vpop.f32.mrf.mxu1 }
 0x220   :  { %9833 = vst [vmem:[#allocation8_spill] sm:$0xff] %v8430_v41  ;;  %9835 = vst [vmem:[#allocation119_spill] sm:$0xff] %v8433_v13  ;;  %v8436_v30 = vadd.f32 %v2816_v32, %v9836_v17  ;;  %v8439_v14 = vadd.f32 %v2672_v34, %v9838_v0  ;;  %v9845_v17 = vld [vmem:[#allocation101_spill] sm:$0xff]  ;;  %v9847_v13 = vld [vmem:[#allocation23_spill] sm:$0xff] }
 0x221   :  { %v5428_v35 = vpop.f32.mrf.mxu0  ;;  %v2674_v48 = vpop.f32.mrf.mxu1 }
 0x222   :  { %9837 = vst [vmem:[#allocation55_spill] sm:$0xff] %v8436_v30  ;;  %9839 = vst [vmem:[#allocation116_spill] sm:$0xff] %v8439_v14  ;;  %v8442_v26 = vadd.f32 %v5428_v35, %v9840_v3  ;;  %v8445_v56 = vadd.f32 %v2674_v48, %v9842_v31  ;;  %v9848_v3 = vld [vmem:[#allocation98_spill] sm:$0xff]  ;;  %v9850_v14 = vld [vmem:[#allocation37_spill] sm:$0xff] }
 0x223   :  { %v2829_v40 = vpop.f32.mrf.mxu0  ;;  %v2676_v18 = vpop.f32.mrf.mxu1 }
 0x224   :  { %9841 = vst [vmem:[#allocation9_spill] sm:$0xff] %v8442_v26  ;;  %9843 = vst [vmem:[#allocation57_spill] sm:$0xff] %v8445_v56  ;;  %v8448_v41 = vadd.f32 %v2829_v40, %v9844_v16  ;;  %v8451_v32 = vadd.f32 %v2676_v18, %v9845_v17  ;;  %v9852_v40 = vld [vmem:[#allocation17_spill] sm:$0xff] }
 0x225   :  { %v5429_v24 = vpop.f32.mrf.mxu0  ;;  %v2680_v34 = vpop.f32.mrf.mxu1 }
 0x226   :  { %9846 = vst [vmem:[#allocation118_spill] sm:$0xff] %v8451_v32  ;;  %v8454_v30 = vadd.f32 %v5429_v24, %v9847_v13  ;;  %v8457_v35 = vadd.f32 %v2680_v34, %v9848_v3  ;;  %v9854_v24 = vld [vmem:[#allocation39_spill] sm:$0xff] }
 0x227   :  { %v2832_v0 = vpop.f32.mrf.mxu0  ;;  %v2682_v48 = vpop.f32.mrf.mxu1 }
 0x228   :  { %9849 = vst [vmem:[#allocation10_spill] sm:$0xff] %v8457_v35  ;;  %v8460_v26 = vadd.f32 %v2832_v0, %v9850_v14  ;;  %v8463_v16 = vadd.f32 %v2682_v48, %v8004_v54 }
 0x229   :  { %v5432_v31 = vpop.f32.mrf.mxu0  ;;  %v2684_v18 = vpop.f32.mrf.mxu1 }
 0x22a   :  { %9851 = vst [vmem:[#allocation59_spill] sm:$0xff] %v8463_v16  ;;  %v8466_v56 = vadd.f32 %v5432_v31, %v9852_v40  ;;  %v8469_v13 = vadd.f32 %v2684_v18, %v8016_v62 }
 0x22b   :  { %v2845_v17 = vpop.f32.mrf.mxu0  ;;  %v2686_v34 = vpop.f32.mrf.mxu1 }
 0x22c   :  { %9853 = vst [vmem:[#allocation61_spill] sm:$0xff] %v8469_v13  ;;  %v8472_v32 = vadd.f32 %v2845_v17, %v9854_v24  ;;  %v8475_v14 = vadd.f32 %v2686_v34, %v8034_v11  ;;  %v9858_v24 = vld [vmem:[#allocation24_spill] sm:$0xff] }
 0x22d   :  { %v5433_v3 = vpop.f32.mrf.mxu0  ;;  %v2690_v54 = vpop.f32.mrf.mxu1 }
 0x22e   :  { %9855 = vst [vmem:[#allocation52_spill] sm:$0xff] %v8475_v14  ;;  %v8478_v0 = vadd.f32 %v5433_v3, %v8002_v21  ;;  %v8481_v31 = vadd.f32 %v2690_v54, %v8048_v43  ;;  %v9860_v3 = vld [vmem:[#allocation103_spill] sm:$0xff] }
 0x22f   :  { %v2848_v48 = vpop.f32.mrf.mxu0  ;;  %v2692_v62 = vpop.f32.mrf.mxu1 }
 0x230   :  { %9856 = vst [vmem:[#allocation63_spill] sm:$0xff] %v8481_v31  ;;  %v8484_v40 = vadd.f32 %v2848_v48, %v8014_v38  ;;  %v8487_v17 = vadd.f32 %v2692_v62, %v8065_v15  ;;  %v9863_v48 = vld [vmem:[#allocation41_spill] sm:$0xff] }
 0x231   :  { %v5436_v18 = vpop.f32.mrf.mxu0  ;;  %v2694_v11 = vpop.f32.mrf.mxu1 }
 0x232   :  { %9857 = vst [vmem:[#allocation54_spill] sm:$0xff] %v8487_v17  ;;  %v8490_v13 = vadd.f32 %v5436_v18, %v9858_v24  ;;  %v8493_v21 = vadd.f32 %v2694_v11, %v8079_v10 }
 0x233   :  { %v2861_v34 = vpop.f32.mrf.mxu0  ;;  %v2696_v43 = vpop.f32.mrf.mxu1 }
 0x234   :  { %9859 = vst [vmem:[#allocation65_spill] sm:$0xff] %v8493_v21  ;;  %v8496_v14 = vadd.f32 %v2861_v34, %v9860_v3  ;;  %v8499_v38 = vadd.f32 %v2696_v43, %v8098_v8  ;;  %v9868_v3 = vld [vmem:[#allocation100_spill] sm:$0xff] }
 0x235   :  { %v5437_v54 = vpop.f32.mrf.mxu0  ;;  %v2700_v15 = vpop.f32.mrf.mxu1 }
 0x236   :  { %9861 = vst [vmem:[#allocation56_spill] sm:$0xff] %v8496_v14  ;;  %9862 = vst [vmem:[#allocation67_spill] sm:$0xff] %v8499_v38  ;;  %v8502_v31 = vadd.f32 %v5437_v54, %v9863_v48  ;;  %v8505_v18 = vadd.f32 %v2700_v15, %v8115_v58  ;;  %v9870_v54 = vld [vmem:[#allocation49_spill] sm:$0xff]  ;;  %v9871_v48 = vld [vmem:[#allocation120_spill] sm:$0xff] }
 0x237   :  { %v2864_v62 = vpop.f32.mrf.mxu0  ;;  %v2702_v10 = vpop.f32.mrf.mxu1  ;;  %v1429_v38 = vadd.f32 %v9871_v48, %v9870_v54  ;;  %v9873_v58 = vld [vmem:[#allocation26_spill] sm:$0xff] }
 0x238   :  { %9864 = vst [vmem:[#allocation69_spill] sm:$0xff] %v8502_v31  ;;  %9865 = vst [vmem:[#allocation121_spill] sm:$0xff] %v8505_v18  ;;  %v8508_v24 = vadd.f32 %v2864_v62, %v8077_v52  ;;  %v8511_v34 = vadd.f32 %v2702_v10, %v8132_v9  ;;  %v9875_v9 = vld [vmem:[#allocation102_spill] sm:$0xff] }
 0x239   :  { %v5440_v11 = vpop.f32.mrf.mxu0  ;;  %v2704_v8 = vpop.f32.mrf.mxu1  ;;  %v2163_v18 = vadd.f32 %v8134_v6, %v1429_v38 }
 0x23a   :  { %9866 = vst [vmem:[#allocation60_spill] sm:$0xff] %v8508_v24  ;;  %9867 = vst [vmem:[#allocation125_spill] sm:$0xff] %v8511_v34  ;;  %v8514_v21 = vadd.f32 %v5440_v11, %v9868_v3  ;;  %v8519_v17 = vadd.f32 %v2704_v8, %v8146_v12  ;;  %v9877_v11 = vld [vmem:[#allocation105_spill] sm:$0xff] }
 0x23b   :  { %v2877_v43 = vpop.f32.mrf.mxu0  ;;  %v2706_v52 = vpop.f32.mrf.mxu1 }
 0x23c   :  { %9869 = vst [vmem:[#allocation71_spill] sm:$0xff] %v8514_v21  ;;  %9872 = vst [vmem:[#allocation122_spill] sm:$0xff] %v8519_v17  ;;  %v8522_v15 = vadd.f32 %v2877_v43, %v9873_v58  ;;  %v8526_v10 = vadd.f32 %v2706_v52, %v9875_v9  ;;  %v9879_v21 = vld [vmem:[#allocation107_spill] sm:$0xff]  ;;  %v9885_v9 = vld [vmem:[#allocation58_spill] sm:$0xff] }
 0x23d   :  { %v5441_v62 = vpop.f32.mrf.mxu0  ;;  %v2710_v34 = vpop.f32.mrf.mxu1  ;;  %v9883_v58 = vld [vmem:[#allocation43_spill] sm:$0xff]  ;;  %v9893_v17 = vld [vmem:[#allocation109_spill] sm:$0xff] }
 0x23e   :  { %9874 = vst [vmem:[#allocation62_spill] sm:$0xff] %v8522_v15  ;;  %9876 = vst [vmem:[#allocation127_spill] sm:$0xff] %v8526_v10  ;;  %v8529_v3 = vadd.f32 %v5441_v62, %v9877_v11  ;;  %v8532_v54 = vadd.f32 %v2710_v34, %v9879_v21  ;;  %v9886_v62 = vld [vmem:[#allocation123_spill] sm:$0xff]  ;;  %v9888_v21 = vld [vmem:[#allocation18_spill] sm:$0xff] }
 0x23f   :  { %v2880_v16 = vpop.f32.mrf.mxu0  ;;  %v2712_v8 = vpop.f32.mrf.mxu1  ;;  %v1445_v11 = vadd.f32 %v9886_v62, %v9885_v9 }
 0x240   :  { %9878 = vst [vmem:[#allocation73_spill] sm:$0xff] %v8529_v3  ;;  %9880 = vst [vmem:[#allocation124_spill] sm:$0xff] %v8532_v54  ;;  %v8534_v12 = vadd.f32 %v2880_v16, %v2163_v18  ;;  %v8537_v48 = vadd.f32 %v2712_v8, %v8196_v47  ;;  %v9891_v8 = vld [vmem:[#allocation44_spill] sm:$0xff] }
 0x241   :  { %v5444_v43 = vpop.f32.mrf.mxu0  ;;  %v2714_v38 = vpop.f32.mrf.mxu1  ;;  %v2175_v54 = vadd.f32 %v8198_v36, %v1445_v11 }
 0x242   :  { %9881 = vst [vmem:[#allocation64_spill] sm:$0xff] %v8534_v12  ;;  %9882 = vst [vmem:[#allocation129_spill] sm:$0xff] %v8537_v48  ;;  %v8540_v6 = vadd.f32 %v5444_v43, %v9883_v58  ;;  %v8545_v10 = vadd.f32 %v2714_v38, %v8204_v46 }
 0x243   :  { %v2893_v52 = vpop.f32.mrf.mxu0  ;;  %v2716_v16 = vpop.f32.mrf.mxu1 }
 0x244   :  { %9884 = vst [vmem:[#allocation75_spill] sm:$0xff] %v8540_v6  ;;  %9887 = vst [vmem:[#allocation126_spill] sm:$0xff] %v8545_v10  ;;  %v8548_v34 = vadd.f32 %v2893_v52, %v9888_v21  ;;  %v8552_v47 = vadd.f32 %v2716_v16, %v8220_v28  ;;  %v9897_v21 = vld [vmem:[#allocation104_spill] sm:$0xff]  ;;  %v4176_v6 = vld [vmem:[%s9267_s2] sm:$0x7] }
 0x245   :  { %v5445_v18 = vpop.f32.mrf.mxu0  ;;  %v2720_v58 = vpop.f32.mrf.mxu1 }
 0x246   :  { %9889 = vst [vmem:[#allocation66_spill] sm:$0xff] %v8548_v34  ;;  %9890 = vst [vmem:[#allocation131_spill] sm:$0xff] %v8552_v47  ;;  %v8555_v43 = vadd.f32 %v5445_v18, %v9891_v8  ;;  %v8558_v9 = vadd.f32 %v2720_v58, %v9893_v17  ;;  %v9900_v18 = vld [vmem:[#allocation30_spill] sm:$0xff] }
 0x247   :  { %v2896_v48 = vpop.f32.mrf.mxu0  ;;  %v2722_v38 = vpop.f32.mrf.mxu1 }
 0x248   :  { %9892 = vst [vmem:[#allocation76_spill] sm:$0xff] %v8555_v43  ;;  %9894 = vst [vmem:[#allocation128_spill] sm:$0xff] %v8558_v9  ;;  %v8560_v46 = vadd.f32 %v2896_v48, %v2175_v54  ;;  %v8563_v62 = vadd.f32 %v2722_v38, %v8241_v53  ;;  %v9902_v54 = vld [vmem:[#allocation111_spill] sm:$0xff]  ;;  %v9904_v9 = vld [vmem:[#allocation45_spill] sm:$0xff] }
 0x249   :  { %v5448_v52 = vpop.f32.mrf.mxu0  ;;  %v2724_v28 = vpop.f32.mrf.mxu1 }
 0x24a   :  { %9895 = vst [vmem:[#allocation68_spill] sm:$0xff] %v8560_v46  ;;  %9896 = vst [vmem:[#allocation133_spill] sm:$0xff] %v8563_v62  ;;  %v8566_v36 = vadd.f32 %v5448_v52, %v9897_v21  ;;  %v8569_v16 = vadd.f32 %v2724_v28, %v8249_v57  ;;  %v9906_v52 = vld [vmem:[#allocation108_spill] sm:$0xff]  ;;  %v9908_v62 = vld [vmem:[#allocation106_spill] sm:$0xff] }
 0x24b   :  { %v2909_v11 = vpop.f32.mrf.mxu0  ;;  %v2726_v17 = vpop.f32.mrf.mxu1 }
 0x24c   :  { %9898 = vst [vmem:[#allocation77_spill] sm:$0xff] %v8566_v36  ;;  %9899 = vst [vmem:[#allocation130_spill] sm:$0xff] %v8569_v16  ;;  %v8572_v8 = vadd.f32 %v2909_v11, %v9900_v18  ;;  %v8575_v48 = vadd.f32 %v2726_v17, %v9902_v54  ;;  %v9910_v11 = vld [vmem:[#allocation32_spill] sm:$0xff]  ;;  %v9912_v17 = vld [vmem:[#allocation46_spill] sm:$0xff] }
 0x24d   :  { %v5449_v58 = vpop.f32.mrf.mxu0  ;;  %v2730_v53 = vpop.f32.mrf.mxu1 }
 0x24e   :  { %9901 = vst [vmem:[#allocation70_spill] sm:$0xff] %v8572_v8  ;;  %9903 = vst [vmem:[#allocation78_spill] sm:$0xff] %v8575_v48  ;;  %v8578_v47 = vadd.f32 %v5449_v58, %v9904_v9  ;;  %v8581_v21 = vadd.f32 %v2730_v53, %v9906_v52 }
 0x24f   :  { %v2912_v38 = vpop.f32.mrf.mxu0  ;;  %v2732_v57 = vpop.f32.mrf.mxu1 }
 0x250   :  { %9905 = vst [vmem:[#allocation132_spill] sm:$0xff] %v8578_v47  ;;  %9907 = vst [vmem:[#allocation72_spill] sm:$0xff] %v8581_v21  ;;  %v8584_v10 = vadd.f32 %v2912_v38, %v9908_v62 }
 0x251   :  { %v5452_v28 = vpop.f32.mrf.mxu0  ;;  %v2734_v16 = vpop.f32.mrf.mxu1 }
 0x252   :  { %9909 = vst [vmem:[#allocation136_spill] sm:$0xff] %v8584_v10  ;;  %v8587_v18 = vadd.f32 %v5452_v28, %v9910_v11  ;;  %v4178_v10 = vlaneseq }
 0x253   :  { %v2925_v8 = vpop.f32.mrf.mxu0  ;;  %v2736_v9 = vpop.f32.mrf.mxu1 }
 0x254   :  { %9911 = vst [vmem:[#allocation79_spill] sm:$0xff] %v8587_v18  ;;  %v8590_v54 = vadd.f32 %v2925_v8, %v9912_v17 }
 0x255   :  { %v5453_v58 = vpop.f32.mrf.mxu0  ;;  %v2740_v53 = vpop.f32.mrf.mxu1 }
 0x256   :  { %9913 = vst [vmem:[#allocation134_spill] sm:$0xff] %v8590_v54  ;;  %v8593_v48 = vadd.f32 %v5453_v58, %v8276_v37  ;;  %v8603_v37 = vld [vmem:[%s9270_s5] sm:$0xff] }
 0x257   :  { %v2928_v52 = vpop.f32.mrf.mxu0  ;;  %v2742_v38 = vpop.f32.mrf.mxu1 }
 0x258   :  { %9914 = vst [vmem:[#allocation74_spill] sm:$0xff] %v8593_v48  ;;  %v8596_v62 = vadd.f32 %v2928_v52, %v8282_v63  ;;  %v8608_v63 = vld [vmem:[%s9270_s5 + $0x18] sm:$0xff]  ;;  %v4179_v52 = vshrl.u32 %v4178_v10, 7 }
 0x259   :  { %v3322_v21 = vpop.f32.mrf.mxu0  ;;  %v2744_v11 = vpop.f32.mrf.mxu1 }
 0x25a   :  { %9915 = vst [vmem:[#allocation138_spill] sm:$0xff] %v8596_v62  ;;  %v3642_v28 = vadd.f32 %v3322_v21, %v8289_v5  ;;  %v4188_v46 = vsub.s32 2, %v4179_v52 }
 0x25b   :  { %v3324_v18 = vpop.f32.mrf.mxu0  ;;  %v2746_v17 = vpop.f32.mrf.mxu1 }
 0x25c   :  { %v3643_v8 = vadd.f32 %v3324_v18, %v8298_v59  ;;  %v8614_v59 = vld [vmem:[%s9270_s5 + $0x8] sm:$0xff]  ;;  %v8619_v18 = vld [vmem:[%s9270_s5 + $0x20] sm:$0xff]  ;;  %v3744_v48 = vadd.f32 %v8603_v37, %v3642_v28  ;;  %v8636_v14 = vrot.slane %v4176_v6, %v4188_v46 }
 0x25d   :  { %v3326_v58 = vpop.f32.mrf.mxu0  ;;  %v2750_v5 = vpop.f32.mrf.mxu1 }
 0x25e   :  { %v3645_v62 = vadd.f32 %v3326_v58, %v8306_v22  ;;  %v4180_v22 = vsub.s32 0, %v4179_v52  ;;  %v4184_v58 = vsub.s32 1, %v4179_v52  ;;  %v3745_v43 = vadd.f32 %v8614_v59, %v3643_v8 }
 0x25f   :  { %v3328_v21 = vpop.f32.mrf.mxu0  ;;  %v2752_v47 = vpop.f32.mrf.mxu1 }
 0x260   :  { %v3747_v54 = vadd.f32 %v8608_v63, %v3645_v62  ;;  %v3646_v10 = vadd.f32 %v3328_v21, %v8313_v50  ;;  %v8630_v35 = vrot.slane %v4176_v6, %v4180_v22  ;;  %v8632_v24 = vrot.slane %v4176_v6, %v4184_v58 }
 0x261   :  { %v3332_v36 = vpop.f32.mrf.mxu0  ;;  %v2754_v3 = vpop.f32.mrf.mxu1 }
 0x262   :  { %v3840_v34 = vmax.f32 %v3744_v48, %v3747_v54  ;;  %v3748_v12 = vadd.f32 %v8619_v18, %v3646_v10  ;;  %v3648_v28 = vadd.f32 %v3332_v36, %v8320_v19  ;;  %v8639_v19 = vadd.f32 %v2732_v57, %v8278_v49 }
 0x263   :  { %v3334_v62 = vpop.f32.mrf.mxu0  ;;  %v2756_v21 = vpop.f32.mrf.mxu1  ;;  %v8642_v36 = vadd.f32 %v2734_v16, %v8284_v33  ;;  %v8653_v49 = vadd.f32 %v2742_v38, %v8308_v4  ;;  %v8656_v33 = vadd.f32 %v2744_v11, %v8315_v23  ;;  %v8663_v57 = vadd.f32 %v2750_v5, %v8331_v42 }
 0x264   :  { %v3841_v15 = vrot.slane %v3840_v34, 4  ;;  %v3847_v50 = vmax.f32 %v3745_v43, %v3748_v12  ;;  %v3649_v8 = vadd.f32 %v3334_v62, %v8329_v27  ;;  %v8645_v12 = vadd.f32 %v2736_v9, %v8291_v51 }
 0x265   :  { %v3336_v48 = vpop.f32.mrf.mxu0  ;;  %v8648_v43 = vadd.f32 %v2740_v53, %v8300_v60  ;;  %v2760_v27 = vpop.f32.mrf.mxu1  ;;  %v8659_v51 = vadd.f32 %v2746_v17, %v8322_v55  ;;  %v8675_v58 = vadd.f32 %v2756_v21, %v8353_v29 }
 0x266   :  { %v3842_v54 = vmax.f32 %v3840_v34, %v3841_v15  ;;  %v3848_v52 = vrot.slane %v3847_v50, 4  ;;  %v3651_v31 = vadd.f32 %v3336_v48, %v8337_v44  ;;  %v3750_v44 = vadd.f32 %v8603_v37, %v3648_v28  ;;  %v9919_v28 = vld [vmem:[#allocation113_spill] sm:$0xff] }
 0x267   :  { %v3338_v10 = vpop.f32.mrf.mxu0  ;;  %v2762_v46 = vpop.f32.mrf.mxu1  ;;  %v3751_v23 = vadd.f32 %v8614_v59, %v3649_v8  ;;  %9918 = vst [vmem:[#allocation81_spill] sm:$0xff] %v8675_v58 }
 0x268   :  { %v3843_v15 = vrot.slane %v3842_v54, 2  ;;  %v3849_v34 = vmax.f32 %v3847_v50, %v3848_v52  ;;  %v3753_v6 = vadd.f32 %v8608_v63, %v3651_v31  ;;  %v3652_v60 = vadd.f32 %v3338_v10, %v8344_v39  ;;  %v9921_v50 = vld [vmem:[#allocation34_spill] sm:$0xff]  ;;  %v9923_v52 = vld [vmem:[#allocation36_spill] sm:$0xff] }
 0x269   :  { %v3342_v16 = vpop.f32.mrf.mxu0  ;;  %v8666_v31 = vadd.f32 %v2752_v47, %v8339_v1  ;;  %v2764_v4 = vpop.f32.mrf.mxu1  ;;  %v8672_v39 = vadd.f32 %v2754_v3, %v8346_v61  ;;  %v8678_v1 = vadd.f32 %v2760_v27, %v9919_v28  ;;  %v9925_v27 = vld [vmem:[#allocation47_spill] sm:$0xff] }
 0x26a   :  { %v3844_v9 = vmax.f32 %v3842_v54, %v3843_v15  ;;  %v3850_v53 = vrot.slane %v3849_v34, 2  ;;  %v3861_v22 = vmax.f32 %v3750_v44, %v3753_v6  ;;  %v3754_v38 = vadd.f32 %v8619_v18, %v3652_v60  ;;  %v9926_v60 = vld [vmem:[#allocation48_spill] sm:$0xff] }
 0x26b   :  { %9916 = vst [vmem:[#allocation80_spill] sm:$0xff] %v8666_v31  ;;  %v3654_v55 = vadd.f32 %v3342_v16, %v8351_v45  ;;  %v3344_v11 = vpop.f32.mrf.mxu0  ;;  %9917 = vst [vmem:[#allocation135_spill] sm:$0xff] %v8672_v39  ;;  %v2766_v47 = vpop.f32.mrf.mxu1  ;;  %v8682_v45 = vadd.f32 %v2762_v46, %v8370_v20  ;;  %v8685_v10 = vadd.f32 %v2764_v4, %v9923_v52  ;;  %v9946_v39 = vld [vmem:[#allocation40_spill] sm:$0xff] }
 0x26c   :  { %v3845_v17 = vrot.slane %v3844_v9, 1  ;;  %v3851_v42 = vmax.f32 %v3849_v34, %v3850_v53  ;;  %v3862_v5 = vrot.slane %v3861_v22, 4  ;;  %9920 = vst [vmem:[#allocation137_spill] sm:$0xff] %v8678_v1  ;;  %v3868_v62 = vmax.f32 %v3751_v23, %v3754_v38  ;;  %v9928_v23 = vld [vmem:[#allocation110_spill] sm:$0xff] }
 0x26d   :  { %v3655_v8 = vadd.f32 %v3344_v11, %v9921_v50  ;;  %v3346_v48 = vpop.f32.mrf.mxu0  ;;  %9922 = vst [vmem:[#allocation82_spill] sm:$0xff] %v8682_v45  ;;  %9924 = vst [vmem:[#allocation139_spill] sm:$0xff] %v8685_v10  ;;  %v2770_v15 = vpop.f32.mrf.mxu1  ;;  %v3756_v21 = vadd.f32 %v8603_v37, %v3654_v55  ;;  %v8691_v16 = vadd.f32 %v2766_v47, %v9926_v60 }
 0x26e   :  { %v3846_v54 = vmax.f32 %v3844_v9, %v3845_v17  ;;  %v3852_v61 = vrot.slane %v3851_v42, 1  ;;  %v3863_v3 = vmax.f32 %v3861_v22, %v3862_v5  ;;  %v3869_v29 = vrot.slane %v3868_v62, 4  ;;  %v9929_v5 = vld [vmem:[#allocation38_spill] sm:$0xff] }
 0x26f   :  { %v3657_v34 = vadd.f32 %v3346_v48, %v9925_v27  ;;  %v3348_v44 = vpop.f32.mrf.mxu0  ;;  %9927 = vst [vmem:[#allocation83_spill] sm:$0xff] %v8691_v16  ;;  %v2772_v9 = vpop.f32.mrf.mxu1  ;;  %v3757_v22 = vadd.f32 %v8614_v59, %v3655_v8  ;;  %v8698_v28 = vadd.f32 %v2770_v15, %v9929_v5 }
 0x270   :  { %v4193_v6 = vadd.f32 %v8630_v35, %v3846_v54  ;;  %v3853_v20 = vmax.f32 %v3851_v42, %v3852_v61  ;;  %v3864_v46 = vrot.slane %v3863_v3, 2  ;;  %v3870_v53 = vmax.f32 %v3868_v62, %v3869_v29  ;;  %v9931_v62 = vld [vmem:[#allocation115_spill] sm:$0xff] }
 0x271   :  { %v3759_v4 = vadd.f32 %v8608_v63, %v3657_v34  ;;  %v3658_v38 = vadd.f32 %v3348_v44, %v9928_v23  ;;  %v3352_v11 = vpop.f32.mrf.mxu0  ;;  %9930 = vst [vmem:[#allocation140_spill] sm:$0xff] %v8698_v28  ;;  %v2774_v47 = vpop.f32.mrf.mxu1  ;;  %v8705_v27 = vadd.f32 %v2772_v9, %v8400_v25 }
 0x272   :  { %v4241_v55 = vmax.f32 %v4193_v6, 0.0  ;;  %v4194_v17 = vadd.f32 %v8632_v24, %v3853_v20  ;;  %v3865_v50 = vmax.f32 %v3863_v3, %v3864_v46  ;;  %v3871_v48 = vrot.slane %v3870_v53, 2 }
 0x273   :  { %v3882_v42 = vmax.f32 %v3756_v21, %v3759_v4  ;;  %v3760_v54 = vadd.f32 %v8619_v18, %v3658_v38  ;;  %v3660_v61 = vadd.f32 %v3352_v11, %v9931_v62  ;;  %v3354_v8 = vpop.f32.mrf.mxu0  ;;  %9932 = vst [vmem:[#allocation84_spill] sm:$0xff] %v8705_v27  ;;  %v8708_v44 = vadd.f32 %v2774_v47, %v8407_v2  ;;  %v2776_v15 = vpop.f32.mrf.mxu1  ;;  %v8717_v2 = vld [vmem:[%s9270_s5 + $0x10] sm:$0xff] }
 0x274   :  { %v8702_v52 = vpack.c.bf16 %v4241_v55, %v4241_v55  ;;  %v4242_v29 = vmax.f32 %v4194_v17, 0.0  ;;  %v3866_v34 = vrot.slane %v3865_v50, 1  ;;  %v3872_v3 = vmax.f32 %v3870_v53, %v3871_v48  ;;  %v9935_v11 = vld [vmem:[#allocation112_spill] sm:$0xff]  ;;  %v9938_v48 = vld [vmem:[#allocation50_spill] sm:$0xff] }
 0x275   :  { %9933 = vst [vmem:[#allocation85_spill] sm:$0xff] %v8708_v44  ;;  %v3883_v6 = vrot.slane %v3882_v42, 4  ;;  %v3889_v60 = vmax.f32 %v3757_v22, %v3760_v54  ;;  %v3356_v21 = vpop.f32.mrf.mxu0  ;;  %v3762_v23 = vadd.f32 %v8603_v37, %v3660_v61  ;;  %v5460_v25 = vpop.f32.mrf.mxu1  ;;  %v3661_v22 = vadd.f32 %v3354_v8, %v9935_v11  ;;  %v9939_v11 = vld [vmem:[#allocation53_spill] sm:$0xff] }
 0x276   :  { %v8711_v46 = vpack.c.bf16 %v4242_v29, %v4242_v29  ;;  %v3867_v4 = vmax.f32 %v3865_v50, %v3866_v34  ;;  %v3873_v38 = vrot.slane %v3872_v3, 1  ;;  %v8722_v5 = vadd.f32 %v2776_v15, %v8412_v7  ;;  %v9937_v50 = vld [vmem:[#allocation42_spill] sm:$0xff] }
 0x277   :  { %v3884_v9 = vmax.f32 %v3882_v42, %v3883_v6  ;;  %v3890_v53 = vrot.slane %v3889_v60, 4  ;;  %v3358_v55 = vpop.f32.mrf.mxu0  ;;  %v3650_v47 = vadd.f32 %v5460_v25, %v9937_v50  ;;  %v3663_v54 = vadd.f32 %v3356_v21, %v9938_v48  ;;  %v3515_v61 = vpop.f32.mrf.mxu1  ;;  %v9940_v21 = vld [vmem:[#allocation114_spill] sm:$0xff] }
 0x278   :  { %9934 = vst [vmem:[#allocation86_spill] sm:$0xff] %v8711_v46  ;;  %v4196_v17 = vadd.f32 %v8630_v35, %v3867_v4  ;;  %9936 = vst [vmem:[#allocation87_spill] sm:$0xff] %v8722_v5  ;;  %v3874_v62 = vmax.f32 %v3872_v3, %v3873_v38  ;;  %v3763_v20 = vadd.f32 %v8614_v59, %v3661_v22  ;;  %v8736_v3 = vld [vmem:[%s9270_s5 + $0x28] sm:$0xff] }
 0x279   :  { %v3885_v29 = vrot.slane %v3884_v9, 2  ;;  %v3891_v34 = vmax.f32 %v3889_v60, %v3890_v53  ;;  %v8727_v42 = vpop.f32.mrf.mxu0  ;;  %v3752_v8 = vadd.f32 %v8717_v2, %v3650_v47  ;;  %v3644_v4 = vadd.f32 %v3515_v61, %v9939_v11  ;;  %v5461_v50 = vpop.f32.mrf.mxu1  ;;  %v9941_v47 = vld [vmem:[#allocation8_spill] sm:$0xff] }
 0x27a   :  { %v4244_v6 = vmax.f32 %v4196_v17, 0.0  ;;  %v3765_v7 = vadd.f32 %v8608_v63, %v3663_v54  ;;  %v4197_v15 = vadd.f32 %v8632_v24, %v3874_v62  ;;  %v3664_v38 = vadd.f32 %v3358_v55, %v9940_v21  ;;  %v9942_v55 = vld [vmem:[#allocation55_spill] sm:$0xff] }
 0x27b   :  { %v3886_v25 = vmax.f32 %v3884_v9, %v3885_v29  ;;  %v3892_v60 = vrot.slane %v3891_v34, 2  ;;  %v8739_v53 = vpop.f32.mrf.mxu0  ;;  %v3746_v17 = vadd.f32 %v8717_v2, %v3644_v4  ;;  %v3653_v48 = vadd.f32 %v5461_v50, %v9941_v47  ;;  %v3518_v29 = vpop.f32.mrf.mxu1 }
 0x27c   :  { %v4292_v22 = vpack.c.bf16 %v4244_v6, %v4244_v6  ;;  %v3903_v54 = vmax.f32 %v3762_v23, %v3765_v7  ;;  %v4245_v61 = vmax.f32 %v4197_v15, 0.0  ;;  %v3766_v11 = vadd.f32 %v8619_v18, %v3664_v38 }
 0x27d   :  { %v3887_v62 = vrot.slane %v3886_v25, 1  ;;  %v3893_v9 = vmax.f32 %v3891_v34, %v3892_v60  ;;  %v8744_v5 = vpop.f32.mrf.mxu0  ;;  %v3755_v27 = vadd.f32 %v8736_v3, %v3653_v48  ;;  %v3647_v21 = vadd.f32 %v3518_v29, %v9942_v55  ;;  %v5464_v10 = vpop.f32.mrf.mxu1  ;;  %v9943_v60 = vld [vmem:[#allocation9_spill] sm:$0xff] }
 0x27e   :  { %v4443_v44 = vunpack.c.l.b16 %v4292_v22  ;;  %v3904_v28 = vrot.slane %v3903_v54, 4  ;;  %v4293_v6 = vpack.c.bf16 %v4245_v61, %v4245_v61  ;;  %v3910_v50 = vmax.f32 %v3763_v20, %v3766_v11 }
 0x27f   :  { %v3888_v16 = vmax.f32 %v3886_v25, %v3887_v62  ;;  %v3894_v4 = vrot.slane %v3893_v9, 1  ;;  %v8748_v23 = vpop.f32.mrf.mxu0  ;;  %v3875_v34 = vmax.f32 %v3752_v8, %v3755_v27  ;;  %v3749_v15 = vadd.f32 %v8736_v3, %v3647_v21  ;;  %v3531_v29 = vpop.f32.mrf.mxu1 }
 0x280   :  { %v4488_v7 = vrot.slane %v4443_v44, 7  ;;  %v3662_v38 = vadd.f32 %v5464_v10, %v9943_v60  ;;  %v4444_v22 = vunpack.c.l.b16 %v4293_v6  ;;  %v3905_v55 = vmax.f32 %v3903_v54, %v3904_v28 }
 0x281   :  { %v4199_v47 = vadd.f32 %v8630_v35, %v3888_v16  ;;  %v3895_v48 = vmax.f32 %v3893_v9, %v3894_v4  ;;  %v8753_v61 = vpop.f32.mrf.mxu0  ;;  %v9944_v20 = vunpack.c.l.b16 %v8702_v52  ;;  %v3876_v62 = vrot.slane %v3875_v34, 4  ;;  %v5465_v9 = vpop.f32.mrf.mxu1 }
 0x282   :  { %v3854_v27 = vmax.f32 %v3746_v17, %v3749_v15  ;;  %v8759_v8 = vrot.slane %v4444_v22, 7  ;;  %v3764_v16 = vadd.f32 %v8717_v2, %v3662_v38  ;;  %v3906_v6 = vrot.slane %v3905_v55, 2 }
 0x283   :  { %v4490_v44 = vsel %vm4489_vm13, %v4488_v7, %v9944_v20  ;;  %v4247_v11 = vmax.f32 %v4199_v47, 0.0  ;;  %v4200_v10 = vadd.f32 %v8632_v24, %v3895_v48  ;;  %v8763_v21 = vpop.f32.mrf.mxu0  ;;  %v3877_v28 = vmax.f32 %v3875_v34, %v3876_v62  ;;  %v3534_v15 = vpop.f32.mrf.mxu1 }
 0x284   :  { %9945 = vst [vmem:[#allocation88_spill] sm:$0xff] %v8759_v8  ;;  %v3855_v54 = vrot.slane %v3854_v27, 4  ;;  %v3665_v4 = vadd.f32 %v5465_v9, %v8454_v30  ;;  %v3656_v7 = vadd.f32 %v3531_v29, %v8448_v41  ;;  %v3911_v17 = vrot.slane %v3910_v50, 4 }
 0x285   :  { %v4295_v52 = vpack.c.bf16 %v4247_v11, %v4247_v11  ;;  %v4248_v60 = vmax.f32 %v4200_v10, 0.0  ;;  %v8767_v22 = vpop.f32.mrf.mxu0  ;;  %v3878_v47 = vrot.slane %v3877_v28, 2  ;;  %v3907_v20 = vmax.f32 %v3905_v55, %v3906_v6  ;;  %v5468_v46 = vpop.f32.mrf.mxu1 }
 0x286   :  { %v3856_v48 = vmax.f32 %v3854_v27, %v3855_v54  ;;  %v3767_v38 = vadd.f32 %v8736_v3, %v3665_v4  ;;  %v3912_v34 = vmax.f32 %v3910_v50, %v3911_v17  ;;  %v3659_v62 = vadd.f32 %v3534_v15, %v8460_v26 }
 0x287   :  { %v4446_v25 = vunpack.c.l.b16 %v4295_v52  ;;  %v4296_v8 = vpack.c.bf16 %v4248_v60, %v4248_v60  ;;  %v8771_v30 = vpop.f32.mrf.mxu0  ;;  %v3879_v11 = vmax.f32 %v3877_v28, %v3878_v47  ;;  %v3908_v41 = vrot.slane %v3907_v20, 1  ;;  %v3547_v27 = vpop.f32.mrf.mxu1 }
 0x288   :  { %v3857_v10 = vrot.slane %v3856_v48, 2  ;;  %v3917_v29 = vmax.f32 %v3764_v16, %v3767_v38  ;;  %v3758_v45 = vadd.f32 %v8717_v2, %v3656_v7  ;;  %v3913_v1 = vrot.slane %v3912_v34, 2 }
 0x289   :  { %v4491_v9 = vrot.slane %v4446_v25, 6  ;;  %v3761_v55 = vadd.f32 %v8736_v3, %v3659_v62  ;;  %v8775_v54 = vpop.f32.mrf.mxu0  ;;  %v3880_v6 = vrot.slane %v3879_v11, 1  ;;  %v3909_v4 = vmax.f32 %v3907_v20, %v3908_v41  ;;  %v5469_v38 = vpop.f32.mrf.mxu1 }
 0x28a   :  { %v3858_v50 = vmax.f32 %v3856_v48, %v3857_v10  ;;  %v3918_v26 = vrot.slane %v3917_v29, 4  ;;  %v4447_v60 = vunpack.c.l.b16 %v4296_v8  ;;  %v3914_v28 = vmax.f32 %v3912_v34, %v3913_v1 }
 0x28b   :  { %v4493_v52 = vsel %vm4492_vm14, %v4491_v9, %v4490_v44  ;;  %v3896_v17 = vmax.f32 %v3758_v45, %v3761_v55  ;;  %v8778_v16 = vpop.f32.mrf.mxu0  ;;  %v3881_v25 = vmax.f32 %v3879_v11, %v3880_v6  ;;  %v4202_v15 = vadd.f32 %v8630_v35, %v3909_v4 }
 0x28c   :  { %v3859_v7 = vrot.slane %v3858_v50, 1  ;;  %v3919_v47 = vmax.f32 %v3917_v29, %v3918_v26  ;;  %v3915_v62 = vrot.slane %v3914_v28, 1  ;;  %v3666_v48 = vadd.f32 %v8727_v42, %v9946_v39  ;;  %v9948_v26 = vld [vmem:[#allocation51_spill] sm:$0xff] }
 0x28d   :  { %v3897_v58 = vrot.slane %v3896_v17, 4  ;;  %v3674_v20 = vadd.f32 %v5468_v46, %v8466_v56  ;;  %v8784_v44 = vpop.f32.mrf.mxu0  ;;  %v4198_v1 = vadd.f32 %v8636_v14, %v3881_v25  ;;  %v4250_v8 = vmax.f32 %v4202_v15, 0.0  ;;  %v3550_v46 = vpop.f32.mrf.mxu1 }
 0x28e   :  { %v3860_v45 = vmax.f32 %v3858_v50, %v3859_v7  ;;  %v3920_v34 = vrot.slane %v3919_v47, 2  ;;  %v8787_v11 = vrot.slane %v4447_v60, 6  ;;  %v3916_v10 = vmax.f32 %v3914_v28, %v3915_v62 }
 0x28f   :  { %v3898_v41 = vmax.f32 %v3896_v17, %v3897_v58  ;;  %v3768_v29 = vadd.f32 %v8603_v37, %v3666_v48  ;;  %v8790_v9 = vpop.f32.mrf.mxu0  ;;  %v4246_v55 = vmax.f32 %v4198_v1, 0.0  ;;  %v4298_v42 = vpack.c.bf16 %v4250_v8, %v4250_v8 }
 0x290   :  { %9947 = vst [vmem:[#allocation89_spill] sm:$0xff] %v8787_v11  ;;  %v4195_v39 = vadd.f32 %v8636_v14, %v3860_v45  ;;  %v3921_v56 = vmax.f32 %v3919_v47, %v3920_v34  ;;  %v4203_v6 = vadd.f32 %v8632_v24, %v3916_v10  ;;  %v3776_v50 = vadd.f32 %v8717_v2, %v3674_v20  ;;  %v5472_v10 = vpop.f32.mrf.mxu1 }
 0x291   :  { %v3899_v4 = vrot.slane %v3898_v41, 2  ;;  %v3667_v60 = vadd.f32 %v8739_v53, %v9948_v26  ;;  %v8797_v28 = vpop.f32.mrf.mxu0  ;;  %v4294_v58 = vpack.c.bf16 %v4246_v55, %v4246_v55  ;;  %v4449_v25 = vunpack.c.l.b16 %v4298_v42  ;;  %v5579_v53 = vld [vmem:[#allocation2 + $0x78] sm:$0xff]  }
 0x292   :  { %v4243_v17 = vmax.f32 %v4195_v39, 0.0  ;;  %v3922_v7 = vrot.slane %v3921_v56, 1  ;;  %v4251_v15 = vmax.f32 %v4203_v6, 0.0  ;;  %v3668_v47 = vadd.f32 %v3547_v27, %v8472_v32  ;;  %v5580_v26 = vld [vmem:[#allocation2 + $0x38] sm:$0xff]   ;;  %5279 = vmatprep.subr.bf16.mxu1 %v5579_v53 }
 0x293   :  { %v3900_v62 = vmax.f32 %v3898_v41, %v3899_v4  ;;  %v3769_v48 = vadd.f32 %v8614_v59, %v3667_v60  ;;  %v8801_v1 = vpop.f32.mrf.mxu0  ;;  %v4445_v45 = vunpack.c.l.b16 %v4294_v58  ;;  %v4494_v20 = vrot.slane %v4449_v25, 5  ;;  %v9949_v39 = vld [vmem:[#allocation117_spill] sm:$0xff]  ;;  %5280 = vmatpush3.bf16.msra.mxu1 %v5580_v26 }
 0x294   :  { %v4291_v8 = vpack.c.bf16 %v4243_v17, %v4243_v17  ;;  %v3923_v34 = vmax.f32 %v3921_v56, %v3922_v7  ;;  %v8803_v11 = vpack.c.bf16 %v4251_v15, %v4251_v15  ;;  %v3669_v42 = vadd.f32 %v8744_v5, %v9949_v39  ;;  %v9950_v7 = vld [vmem:[#allocation20_spill] sm:$0xff] }
 0x295   :  { %v3901_v55 = vrot.slane %v3900_v62, 1  ;;  %v3677_v41 = vadd.f32 %v5469_v38, %v8478_v0  ;;  %v8808_v6 = vpop.f32.mrf.mxu0  ;;  %v4523_v32 = vrot.slane %v4445_v45, 7  ;;  %v8811_v4 = vsel %vm4495_vm15, %v4494_v20, %v4493_v52  ;;  %v3563_v45 = vpop.f32.mrf.mxu1 }
 0x296   :  { %v4442_v27 = vunpack.c.l.b16 %v4291_v8  ;;  %v4204_v56 = vadd.f32 %v8636_v14, %v3923_v34  ;;  %v3770_v58 = vadd.f32 %v8717_v2, %v3668_v47  ;;  %v3771_v17 = vadd.f32 %v8608_v63, %v3669_v42  ;;  %v5581_v42 = vld [vmem:[#allocation2 + $0x70] sm:$0xff]  }
 0x297   :  { %v3902_v60 = vmax.f32 %v3900_v62, %v3901_v55  ;;  %v3779_v25 = vadd.f32 %v8736_v3, %v3677_v41  ;;  %v8817_v5 = vpop.f32.mrf.mxu0  ;;  %v3670_v52 = vadd.f32 %v8748_v23, %v9950_v7  ;;  %v3671_v15 = vadd.f32 %v3550_v46, %v8484_v40  ;;  %v9951_v55 = vld [vmem:[#allocation119_spill] sm:$0xff]  ;;  %v5582_v41 = vld [vmem:[#allocation2 + $0x30] sm:$0xff]   ;;  %5281 = vmatprep.subr.bf16.mxu1 %v5581_v42  ;;  %v9955_v62 = vld [vmem:[#allocation69_spill] sm:$0xff] }
 0x298   :  { %v4524_v0 = vsel %vm4489_vm13, %v4523_v32, %v4442_v27  ;;  %v4252_v38 = vmax.f32 %v4204_v56, 0.0  ;;  %v3924_v8 = vmax.f32 %v3768_v29, %v3771_v17  ;;  %v3672_v39 = vadd.f32 %v8753_v61, %v9951_v55  ;;  %v5473_v17 = vpop.f32.mrf.mxu1  ;;  %5282 = vmatpush3.bf16.msra.mxu1 %v5582_v41  ;;  %v9952_v55 = vld [vmem:[#allocation116_spill] sm:$0xff]  ;;  %v5584_v42 = vld [vmem:[#allocation2 + $0x28] sm:$0xff]   ;;  %v9954_v41 = vld [vmem:[#allocation57_spill] sm:$0xff] }
 0x299   :  { %v4201_v47 = vadd.f32 %v8636_v14, %v3902_v60  ;;  %v3959_v20 = vmax.f32 %v3776_v50, %v3779_v25  ;;  %v3772_v53 = vadd.f32 %v8619_v18, %v3670_v52  ;;  %v3773_v26 = vadd.f32 %v8736_v3, %v3671_v15  ;;  %v8830_v27 = vpop.f32.mrf.mxu0 }
 0x29a   :  { %v4300_v34 = vpack.c.bf16 %v4252_v38, %v4252_v38  ;;  %v3925_v32 = vrot.slane %v3924_v8, 4  ;;  %v3686_v46 = vadd.f32 %v5472_v10, %v8490_v13  ;;  %v3774_v60 = vadd.f32 %v8603_v37, %v3672_v39  ;;  %v5583_v39 = vld [vmem:[#allocation2 + $0x68] sm:$0xff]  }
 0x29b   :  { %v4249_v23 = vmax.f32 %v4201_v47, 0.0  ;;  %v3960_v40 = vrot.slane %v3959_v20, 4  ;;  %v3931_v29 = vmax.f32 %v3769_v48, %v3772_v53  ;;  %v3938_v50 = vmax.f32 %v3770_v58, %v3773_v26  ;;  %v9953_v58 = vld [vmem:[#allocation56_spill] sm:$0xff]  ;;  %v8837_v26 = vpop.f32.mrf.mxu0  ;;  %5283 = vmatprep.subr.bf16.mxu1 %v5583_v39 }
 0x29c   :  { %v4451_v56 = vunpack.c.l.b16 %v4300_v34  ;;  %v3926_v38 = vmax.f32 %v3924_v8, %v3925_v32  ;;  %v3788_v61 = vadd.f32 %v8717_v2, %v3686_v46  ;;  %v3673_v13 = vadd.f32 %v8763_v21, %v9952_v55  ;;  %5284 = vmatpush3.bf16.msra.mxu1 %v5584_v42 }
 0x29d   :  { %v4297_v25 = vpack.c.bf16 %v4249_v23, %v4249_v23  ;;  %v3961_v7 = vmax.f32 %v3959_v20, %v3960_v40  ;;  %v3932_v15 = vrot.slane %v3931_v29, 4  ;;  %v3939_v47 = vrot.slane %v3938_v50, 4  ;;  %v3566_v40 = vpop.f32.mrf.mxu1 }
 0x29e   :  { %v4527_v52 = vrot.slane %v4451_v56, 5  ;;  %v3927_v34 = vrot.slane %v3926_v38, 2  ;;  %v3680_v53 = vadd.f32 %v3563_v45, %v9953_v58  ;;  %v3775_v23 = vadd.f32 %v8614_v59, %v3673_v13  ;;  %v8848_v13 = vpop.f32.mrf.mxu0 }
 0x29f   :  { %v4448_v10 = vunpack.c.l.b16 %v4297_v25  ;;  %v3962_v48 = vrot.slane %v3961_v7, 2  ;;  %v3933_v8 = vmax.f32 %v3931_v29, %v3932_v15  ;;  %v3940_v20 = vmax.f32 %v3938_v50, %v3939_v47  ;;  %v9956_v47 = vld [vmem:[#allocation118_spill] sm:$0xff] }
 0x2a0   :  { %v3675_v32 = vadd.f32 %v8767_v22, %v9954_v41  ;;  %v3928_v56 = vmax.f32 %v3926_v38, %v3927_v34  ;;  %v3782_v25 = vadd.f32 %v8717_v2, %v3680_v53  ;;  %v3689_v31 = vadd.f32 %v5473_v17, %v9955_v62  ;;  %v9957_v41 = vld [vmem:[#allocation60_spill] sm:$0xff] }
 0x2a1   :  { %v4525_v46 = vrot.slane %v4448_v10, 6  ;;  %v3963_v21 = vmax.f32 %v3961_v7, %v3962_v48  ;;  %v3934_v55 = vrot.slane %v3933_v8, 2  ;;  %v3941_v45 = vrot.slane %v3940_v20, 2  ;;  %v8853_v48 = vpop.f32.mrf.mxu1 }
 0x2a2   :  { %v3777_v58 = vadd.f32 %v8608_v63, %v3675_v32  ;;  %v3929_v50 = vrot.slane %v3928_v56, 1  ;;  %v3676_v22 = vadd.f32 %v8771_v30, %v9956_v47  ;;  %v3791_v17 = vadd.f32 %v8736_v3, %v3689_v31 }
 0x2a3   :  { %v4526_v29 = vsel %vm4492_vm14, %v4525_v46, %v4524_v0  ;;  %v3964_v15 = vrot.slane %v3963_v21, 1  ;;  %v3935_v38 = vmax.f32 %v3933_v8, %v3934_v55  ;;  %v3942_v7 = vmax.f32 %v3940_v20, %v3941_v45  ;;  %v5585_v8 = vld [vmem:[#allocation2 + $0x60] sm:$0xff]   ;;  %v8860_v55 = vpop.f32.mrf.mxu0 }
 0x2a4   :  { %v8851_v10 = vsel %vm4495_vm15, %v4527_v52, %v4526_v29  ;;  %v3945_v34 = vmax.f32 %v3774_v60, %v3777_v58  ;;  %v3930_v53 = vmax.f32 %v3928_v56, %v3929_v50  ;;  %v3778_v0 = vadd.f32 %v8619_v18, %v3676_v22  ;;  %v5586_v56 = vld [vmem:[#allocation2 + $0x20] sm:$0xff]   ;;  %v8863_v29 = vpop.f32.mrf.mxu1  ;;  %5285 = vmatprep.subr.bf16.mxu1 %v5585_v8 }
 0x2a5   :  { %v3965_v62 = vmax.f32 %v3963_v21, %v3964_v15  ;;  %v3936_v39 = vrot.slane %v3935_v38, 1  ;;  %v3943_v42 = vrot.slane %v3942_v7, 1  ;;  %v3683_v32 = vadd.f32 %v3566_v40, %v9957_v41  ;;  %5286 = vmatpush3.bf16.msra.mxu1 %v5586_v56 }
 0x2a6   :  { %v3946_v30 = vrot.slane %v3945_v34, 4  ;;  %v4205_v20 = vadd.f32 %v8630_v35, %v3930_v53  ;;  %v4001_v60 = vmax.f32 %v3788_v61, %v3791_v17  ;;  %v3952_v46 = vmax.f32 %v3775_v23, %v3778_v0  ;;  %v8867_v0 = vpop.f32.mrf.mxu0  ;;  %v5477_v8 = vpop.f32.mrf.mxu1 }
 0x2a7   :  { %v4210_v52 = vadd.f32 %v8636_v14, %v3965_v62  ;;  %v3937_v21 = vmax.f32 %v3935_v38, %v3936_v39  ;;  %v3944_v31 = vmax.f32 %v3942_v7, %v3943_v42  ;;  %v3785_v58 = vadd.f32 %v8736_v3, %v3683_v32  ;;  %v5587_v62 = vld [vmem:[#allocation2 + $0x58] sm:$0xff]  }
 0x2a8   :  { %v3947_v45 = vmax.f32 %v3945_v34, %v3946_v30  ;;  %v4253_v50 = vmax.f32 %v4205_v20, 0.0  ;;  %v4002_v15 = vrot.slane %v4001_v60, 4  ;;  %v3953_v47 = vrot.slane %v3952_v46, 4  ;;  %v5588_v39 = vld [vmem:[#allocation2 + $0x18] sm:$0xff]   ;;  %5287 = vmatprep.subr.bf16.mxu1 %v5587_v62 }
 0x2a9   :  { %v4258_v40 = vmax.f32 %v4210_v52, 0.0  ;;  %v4206_v22 = vadd.f32 %v8632_v24, %v3937_v21  ;;  %v4207_v61 = vadd.f32 %v8636_v14, %v3944_v31  ;;  %v3980_v53 = vmax.f32 %v3782_v25, %v3785_v58  ;;  %5288 = vmatpush3.bf16.msra.mxu1 %v5588_v39  ;;  %v3582_v39 = vpop.f32.mrf.mxu1 }
 0x2aa   :  { %v3948_v23 = vrot.slane %v3947_v45, 2  ;;  %v4301_v38 = vpack.c.bf16 %v4253_v50, %v4253_v50  ;;  %v4003_v34 = vmax.f32 %v4001_v60, %v4002_v15  ;;  %v3954_v17 = vmax.f32 %v3952_v46, %v3953_v47  ;;  %v5589_v60 = vld [vmem:[#allocation2 + $0x50] sm:$0xff]  }
 0x2ab   :  { %v4306_v7 = vpack.c.bf16 %v4258_v40, %v4258_v40  ;;  %v4254_v42 = vmax.f32 %v4206_v22, 0.0  ;;  %v4255_v30 = vmax.f32 %v4207_v61, 0.0  ;;  %v3981_v32 = vrot.slane %v3980_v53, 4  ;;  %v8873_v22 = vpop.f32.mrf.mxu0  ;;  %v5590_v61 = vld [vmem:[#allocation2 + $0x10] sm:$0xff]   ;;  %5289 = vmatprep.subr.bf16.mxu1 %v5589_v60  ;;  %v9963_v60 = vld [vmem:[#allocation71_spill] sm:$0xff] }
 0x2ac   :  { %v3949_v41 = vmax.f32 %v3947_v45, %v3948_v23  ;;  %v4452_v20 = vunpack.c.l.b16 %v4301_v38  ;;  %v4004_v56 = vrot.slane %v4003_v34, 2  ;;  %v3955_v21 = vrot.slane %v3954_v17, 2 }
 0x2ad   :  { %v4457_v52 = vunpack.c.l.b16 %v4306_v7  ;;  %v4302_v25 = vpack.c.bf16 %v4254_v42, %v4254_v42  ;;  %v4303_v31 = vpack.c.bf16 %v4255_v30, %v4255_v30  ;;  %v3982_v50 = vmax.f32 %v3980_v53, %v3981_v32  ;;  %v9960_v30 = vld [vmem:[#allocation10_spill] sm:$0xff]  ;;  %5290 = vmatpush3.bf16.msra.mxu1 %v5590_v61 }
 0x2ae   :  { %v3950_v58 = vrot.slane %v3949_v41, 1  ;;  %v9958_v46 = vunpack.c.l.b16 %v8803_v11  ;;  %v4497_v15 = vrot.slane %v4452_v20, 4  ;;  %v4005_v47 = vmax.f32 %v4003_v34, %v4004_v56 }
 0x2af   :  { %v3956_v45 = vmax.f32 %v3954_v17, %v3955_v21  ;;  %v4453_v23 = vunpack.c.l.b16 %v4302_v25  ;;  %v4454_v62 = vunpack.c.l.b16 %v4303_v31  ;;  %v3983_v7 = vrot.slane %v3982_v50, 2  ;;  %v5592_v21 = vld [vmem:[#allocation2 + $0x8] sm:$0xff]   ;;  %v5593_v25 = vld [vmem:[#allocation2 + $0x40] sm:$0xff]  }
 0x2b0   :  { %v8871_v40 = vrot.slane %v9958_v46, 5  ;;  %v3951_v38 = vmax.f32 %v3949_v41, %v3950_v58  ;;  %v8877_v53 = vsel %vm4498_vm0, %v4497_v15, %v8811_v4  ;;  %v4006_v42 = vrot.slane %v4005_v47, 1  ;;  %v5591_v41 = vld [vmem:[#allocation2 + $0x48] sm:$0xff]   ;;  %v8888_v15 = vpop.f32.mrf.mxu0 }
 0x2b1   :  { %9959 = vst [vmem:[#allocation90_spill] sm:$0xff] %v8877_v53  ;;  %v3957_v11 = vrot.slane %v3956_v45, 1  ;;  %v3678_v32 = vadd.f32 %v8775_v54, %v9960_v30  ;;  %v8881_v34 = vrot.slane %v4457_v52, 3  ;;  %v4529_v17 = vrot.slane %v4454_v62, 4  ;;  %v9965_v62 = vld [vmem:[#allocation59_spill] sm:$0xff]  ;;  %5291 = vmatprep.subr.bf16.mxu1 %v5591_v41 }
 0x2b2   :  { %v4208_v20 = vadd.f32 %v8630_v35, %v3951_v38  ;;  %v3984_v56 = vmax.f32 %v3982_v50, %v3983_v7  ;;  %v8884_v31 = vrot.slane %v4453_v23, 4  ;;  %v4007_v58 = vmax.f32 %v4005_v47, %v4006_v42  ;;  %v5480_v38 = vpop.f32.mrf.mxu1  ;;  %5292 = vmatpush3.bf16.msra.mxu1 %v5592_v21  ;;  %v5594_v7 = vld [vmem:[#allocation2] sm:$0xff]  }
 0x2b3   :  { %9961 = vst [vmem:[#allocation91_spill] sm:$0xff] %v8881_v34  ;;  %v3958_v4 = vmax.f32 %v3956_v45, %v3957_v11  ;;  %v3698_v46 = vadd.f32 %v8853_v48, %v9963_v60  ;;  %v8892_v54 = vsel %vm4498_vm0, %v4529_v17, %v8851_v10  ;;  %v3679_v50 = vadd.f32 %v8778_v16, %v9965_v62  ;;  %v9966_v11 = vld [vmem:[#allocation62_spill] sm:$0xff]  ;;  %v9967_v17 = vld [vmem:[#allocation61_spill] sm:$0xff] }
 0x2b4   :  { %9962 = vst [vmem:[#allocation141_spill] sm:$0xff] %v8884_v31  ;;  %9964 = vst [vmem:[#allocation143_spill] sm:$0xff] %v8892_v54  ;;  %v4256_v52 = vmax.f32 %v4208_v20, 0.0  ;;  %v3985_v61 = vrot.slane %v3984_v56, 1  ;;  %v4216_v23 = vadd.f32 %v8636_v14, %v4007_v58  ;;  %v3780_v45 = vadd.f32 %v8603_v37, %v3678_v32  ;;  %5293 = vmatprep.subr.bf16.mxu1 %v5593_v25  ;;  %v8906_v32 = vpop.f32.mrf.mxu0 }
 0x2b5   :  { %v4209_v47 = vadd.f32 %v8632_v24, %v3958_v4  ;;  %v3800_v48 = vadd.f32 %v8717_v2, %v3698_v46  ;;  %v3692_v30 = vadd.f32 %v8863_v29, %v9966_v11  ;;  %v3681_v16 = vadd.f32 %v8784_v44, %v9967_v17  ;;  %v9968_v4 = vld [vmem:[#allocation73_spill] sm:$0xff] }
 0x2b6   :  { %v4304_v42 = vpack.c.bf16 %v4256_v52, %v4256_v52  ;;  %v3986_v10 = vmax.f32 %v3984_v56, %v3985_v61  ;;  %v4264_v20 = vmax.f32 %v4216_v23, 0.0  ;;  %v3781_v58 = vadd.f32 %v8614_v59, %v3679_v50  ;;  %v9969_v52 = vld [vmem:[#allocation52_spill] sm:$0xff]  ;;  %v3595_v61 = vpop.f32.mrf.mxu1  ;;  %5294 = vmatpush3.bf16.msra.mxu1 %v5594_v7 }
 0x2b7   :  { %v4257_v41 = vmax.f32 %v4209_v47, 0.0  ;;  %v3701_v60 = vadd.f32 %v5477_v8, %v9968_v4  ;;  %v3783_v56 = vadd.f32 %v8608_v63, %v3681_v16  ;;  %v3682_v29 = vadd.f32 %v8790_v9, %v9969_v52  ;;  %v9970_v23 = vld [vmem:[#allocation64_spill] sm:$0xff] }
 0x2b8   :  { %v4455_v46 = vunpack.c.l.b16 %v4304_v42  ;;  %v4213_v21 = vadd.f32 %v8636_v14, %v3986_v10  ;;  %v4312_v62 = vpack.c.bf16 %v4264_v20, %v4264_v20  ;;  %v3695_v50 = vadd.f32 %v3582_v39, %v9970_v23  ;;  %v8921_v20 = vpop.f32.mrf.mxu0  ;;  %v9972_v39 = vld [vmem:[#allocation63_spill] sm:$0xff] }
 0x2b9   :  { %v8912_v44 = vpack.c.bf16 %v4257_v41, %v4257_v41  ;;  %v3803_v25 = vadd.f32 %v8736_v3, %v3701_v60  ;;  %v3794_v47 = vadd.f32 %v8717_v2, %v3692_v30  ;;  %v3966_v42 = vmax.f32 %v3780_v45, %v3783_v56 }
 0x2ba   :  { %v4261_v8 = vmax.f32 %v4213_v21, 0.0  ;;  %v3784_v10 = vadd.f32 %v8619_v18, %v3682_v29  ;;  %v8918_v11 = vrot.slane %v4455_v46, 3  ;;  %v4463_v17 = vunpack.c.l.b16 %v4312_v62  ;;  %v5481_v21 = vpop.f32.mrf.mxu1  ;;  %v9973_v46 = vld [vmem:[#allocation75_spill] sm:$0xff] }
 0x2bb   :  { %v4043_v16 = vmax.f32 %v3800_v48, %v3803_v25  ;;  %v3797_v9 = vadd.f32 %v8736_v3, %v3695_v50  ;;  %v3967_v4 = vrot.slane %v3966_v42, 4  ;;  %v3684_v7 = vadd.f32 %v8797_v28, %v9972_v39  ;;  %v9975_v50 = vld [vmem:[#allocation54_spill] sm:$0xff] }
 0x2bc   :  { %9971 = vst [vmem:[#allocation92_spill] sm:$0xff] %v8918_v11  ;;  %v8923_v41 = vpack.c.bf16 %v4261_v8, %v4261_v8  ;;  %v3973_v60 = vmax.f32 %v3781_v58, %v3784_v10  ;;  %v3710_v56 = vadd.f32 %v5480_v38, %v9973_v46  ;;  %v8929_v52 = vrot.slane %v4463_v17, 1  ;;  %v8935_v8 = vpop.f32.mrf.mxu0  ;;  %v9976_v38 = vld [vmem:[#allocation66_spill] sm:$0xff] }
 0x2bd   :  { %v4044_v30 = vrot.slane %v4043_v16, 4  ;;  %v4022_v18 = vmax.f32 %v3794_v47, %v3797_v9  ;;  %v3968_v29 = vmax.f32 %v3966_v42, %v3967_v4  ;;  %v3786_v58 = vadd.f32 %v8603_v37, %v3684_v7  ;;  %v3598_v9 = vpop.f32.mrf.mxu1 }
 0x2be   :  { %9974 = vst [vmem:[#allocation142_spill] sm:$0xff] %v8929_v52  ;;  %v4460_v48 = vunpack.c.l.b16 %v8923_v41  ;;  %v3974_v62 = vrot.slane %v3973_v60, 4  ;;  %v3685_v28 = vadd.f32 %v8801_v1, %v9975_v50  ;;  %v3812_v47 = vadd.f32 %v8717_v2, %v3710_v56 }
 0x2bf   :  { %v4045_v25 = vmax.f32 %v4043_v16, %v4044_v30  ;;  %v4023_v23 = vrot.slane %v4022_v18, 4  ;;  %v3969_v10 = vrot.slane %v3968_v29, 2  ;;  %v3704_v17 = vadd.f32 %v3595_v61, %v9976_v38  ;;  %v9977_v16 = vld [vmem:[#allocation65_spill] sm:$0xff]  ;;  %v9978_v30 = vld [vmem:[#allocation76_spill] sm:$0xff]  ;;  %v8947_v38 = vpop.f32.mrf.mxu0 }
 0x2c0   :  { %v3975_v39 = vmax.f32 %v3973_v60, %v3974_v62  ;;  %v3787_v42 = vadd.f32 %v8614_v59, %v3685_v28  ;;  %v3687_v4 = vadd.f32 %v8808_v6, %v9977_v16  ;;  %v3713_v50 = vadd.f32 %v5481_v21, %v9978_v30  ;;  %v9979_v62 = vld [vmem:[#allocation67_spill] sm:$0xff]  ;;  %v9980_v6 = vld [vmem:[#allocation68_spill] sm:$0xff]  ;;  %v8951_v28 = vpop.f32.mrf.mxu1 }
 0x2c1   :  { %v4046_v46 = vrot.slane %v4045_v25, 2  ;;  %v4024_v41 = vmax.f32 %v4022_v18, %v4023_v23  ;;  %v3970_v37 = vmax.f32 %v3968_v29, %v3969_v10  ;;  %v3806_v1 = vadd.f32 %v8717_v2, %v3704_v17 }
 0x2c2   :  { %v3976_v7 = vrot.slane %v3975_v39, 2  ;;  %v3789_v56 = vadd.f32 %v8608_v63, %v3687_v4  ;;  %v3688_v61 = vadd.f32 %v8817_v5, %v9979_v62  ;;  %v3815_v23 = vadd.f32 %v8736_v3, %v3713_v50  ;;  %v8956_v63 = vld [vmem:[%s9270_s5 + $0x20] sm:$0xff]  ;;  %v8960_v50 = vpop.f32.mrf.mxu0  ;;  %v3611_v62 = vpop.f32.mrf.mxu1 }
 0x2c3   :  { %v4047_v45 = vmax.f32 %v4045_v25, %v4046_v46  ;;  %v4025_v60 = vrot.slane %v4024_v41, 2  ;;  %v3971_v18 = vrot.slane %v3970_v37, 1  ;;  %v3707_v29 = vadd.f32 %v3598_v9, %v9980_v6 }
 0x2c4   :  { %v3977_v59 = vmax.f32 %v3975_v39, %v3976_v7  ;;  %v3987_v21 = vmax.f32 %v3786_v58, %v3789_v56  ;;  %v3790_v5 = vadd.f32 %v8956_v63, %v3688_v61  ;;  %v4085_v16 = vmax.f32 %v3812_v47, %v3815_v23 }
 0x2c5   :  { %v4048_v10 = vrot.slane %v4047_v45, 1  ;;  %v4026_v17 = vmax.f32 %v4024_v41, %v4025_v60  ;;  %v3972_v25 = vmax.f32 %v3970_v37, %v3971_v18  ;;  %v3809_v39 = vadd.f32 %v8736_v3, %v3707_v29 }
 0x2c6   :  { %v3978_v46 = vrot.slane %v3977_v59, 1  ;;  %v3988_v9 = vrot.slane %v3987_v21, 4  ;;  %v3994_v30 = vmax.f32 %v3787_v42, %v3790_v5  ;;  %v4086_v60 = vrot.slane %v4085_v16, 4 }
 0x2c7   :  { %v4049_v4 = vmax.f32 %v4047_v45, %v4048_v10  ;;  %v4027_v7 = vrot.slane %v4026_v17, 1  ;;  %v4211_v58 = vadd.f32 %v8630_v35, %v3972_v25  ;;  %v4064_v56 = vmax.f32 %v3806_v1, %v3809_v39  ;;  %v8967_v25 = vpop.f32.mrf.mxu0 }
 0x2c8   :  { %v3979_v41 = vmax.f32 %v3977_v59, %v3978_v46  ;;  %v3989_v37 = vmax.f32 %v3987_v21, %v3988_v9  ;;  %v3995_v18 = vrot.slane %v3994_v30, 4  ;;  %v8964_v47 = vrot.slane %v4460_v48, 2  ;;  %v5485_v21 = vpop.f32.mrf.mxu1 }
 0x2c9   :  { %v4222_v6 = vadd.f32 %v8636_v14, %v4049_v4  ;;  %v4028_v61 = vmax.f32 %v4026_v17, %v4027_v7  ;;  %v4259_v23 = vmax.f32 %v4211_v58, 0.0  ;;  %v4087_v45 = vmax.f32 %v4085_v16, %v4086_v60  ;;  %v9982_v60 = vld [vmem:[#allocation121_spill] sm:$0xff] }
 0x2ca   :  { %9981 = vst [vmem:[#allocation25_spill] sm:$0xff] %v8964_v47  ;;  %v4065_v29 = vrot.slane %v4064_v56, 4  ;;  %v3990_v5 = vrot.slane %v3989_v37, 2  ;;  %v3996_v52 = vmax.f32 %v3994_v30, %v3995_v18  ;;  %v8970_v1 = vadd.f32 %v8632_v24, %v3979_v41  ;;  %v8974_v47 = vpop.f32.mrf.mxu0 }
 0x2cb   :  { %v4270_v10 = vmax.f32 %v4222_v6, 0.0  ;;  %v4219_v42 = vadd.f32 %v8636_v14, %v4028_v61  ;;  %v4307_v59 = vpack.c.bf16 %v4259_v23, %v4259_v23  ;;  %v4088_v46 = vrot.slane %v4087_v45, 2 }
 0x2cc   :  { %v4066_v17 = vmax.f32 %v4064_v56, %v4065_v29  ;;  %v3991_v4 = vmax.f32 %v3989_v37, %v3990_v5  ;;  %v3997_v7 = vrot.slane %v3996_v52, 2  ;;  %v3690_v6 = vadd.f32 %v8830_v27, %v9982_v60  ;;  %v3614_v37 = vpop.f32.mrf.mxu1  ;;  %v8982_v27 = vld [vmem:[%s9270_s5] sm:$0xff] }
 0x2cd   :  { %v4318_v39 = vpack.c.bf16 %v4270_v10, %v4270_v10  ;;  %v4267_v48 = vmax.f32 %v4219_v42, 0.0  ;;  %v4458_v16 = vunpack.c.l.b16 %v4307_v59  ;;  %v4089_v9 = vmax.f32 %v4087_v45, %v4088_v46  ;;  %v9986_v60 = vld [vmem:[#allocation70_spill] sm:$0xff] }
 0x2ce   :  { %v4067_v58 = vrot.slane %v4066_v17, 2  ;;  %v3992_v18 = vrot.slane %v3991_v4, 1  ;;  %v3998_v23 = vmax.f32 %v3996_v52, %v3997_v7  ;;  %v3792_v59 = vadd.f32 %v8982_v27, %v3690_v6  ;;  %v9985_v7 = vld [vmem:[#allocation125_spill] sm:$0xff] }
 0x2cf   :  { %v4469_v30 = vunpack.c.l.b16 %v4318_v39  ;;  %v4315_v61 = vpack.c.bf16 %v4267_v48, %v4267_v48  ;;  %v8976_v41 = vrot.slane %v4458_v16, 2  ;;  %v4090_v29 = vrot.slane %v4089_v9, 1  ;;  %v9984_v39 = vld [vmem:[#allocation77_spill] sm:$0xff] }
 0x2d0   :  { %v4068_v10 = vmax.f32 %v4066_v17, %v4067_v58  ;;  %v3993_v45 = vmax.f32 %v3991_v4, %v3992_v18  ;;  %v3722_v48 = vadd.f32 %v8951_v28, %v9984_v39  ;;  %v3691_v16 = vadd.f32 %v8837_v26, %v9985_v7  ;;  %v8999_v28 = vld [vmem:[%s9270_s5 + $0x8] sm:$0xff]  ;;  %v9988_v39 = vld [vmem:[#allocation132_spill] sm:$0xff] }
 0x2d1   :  { %9983 = vst [vmem:[#allocation11_spill] sm:$0xff] %v8976_v41  ;;  %v4565_v42 = vrot.slane %v4469_v30, 7  ;;  %v4466_v5 = vunpack.c.l.b16 %v4315_v61  ;;  %v4091_v52 = vmax.f32 %v4089_v9, %v4090_v29  ;;  %v3999_v4 = vrot.slane %v3998_v23, 1  ;;  %v8992_v61 = vpop.f32.mrf.mxu0  ;;  %v5488_v29 = vpop.f32.mrf.mxu1 }
 0x2d2   :  { %v4069_v46 = vrot.slane %v4068_v10, 1  ;;  %v4214_v58 = vadd.f32 %v8630_v35, %v3993_v45  ;;  %v3716_v30 = vadd.f32 %v3611_v62, %v9986_v60  ;;  %v3824_v9 = vadd.f32 %v8717_v2, %v3722_v48  ;;  %v9987_v45 = vld [vmem:[#allocation122_spill] sm:$0xff]  ;;  %v9990_v60 = vld [vmem:[#allocation136_spill] sm:$0xff] }
 0x2d3   :  { %v4566_v17 = vsel %vm4489_vm13, %v4565_v42, %v4466_v5  ;;  %v4228_v18 = vadd.f32 %v8636_v14, %v4091_v52  ;;  %v3793_v26 = vadd.f32 %v8999_v28, %v3691_v16  ;;  %v3693_v62 = vadd.f32 %v8848_v13, %v9987_v45  ;;  %v9015_v16 = vld [vmem:[%s9270_s5 + $0x18] sm:$0xff]  ;;  %v3627_v45 = vpop.f32.mrf.mxu1 }
 0x2d4   :  { %v4070_v6 = vmax.f32 %v4068_v10, %v4069_v46  ;;  %v4262_v42 = vmax.f32 %v4214_v58, 0.0  ;;  %v3818_v5 = vadd.f32 %v8717_v2, %v3716_v30  ;;  %v3725_v7 = vadd.f32 %v5485_v21, %v9988_v39  ;;  %v9989_v46 = vld [vmem:[#allocation127_spill] sm:$0xff]  ;;  %v9991_v21 = vld [vmem:[#allocation124_spill] sm:$0xff] }
 0x2d5   :  { %v4276_v52 = vmax.f32 %v4228_v18, 0.0  ;;  %v3694_v48 = vadd.f32 %v8860_v55, %v9989_v46  ;;  %v3719_v56 = vadd.f32 %v3614_v37, %v9990_v60  ;;  %v3795_v58 = vadd.f32 %v9015_v16, %v3693_v62  ;;  %v9021_v18 = vpop.f32.mrf.mxu0 }
 0x2d6   :  { %v4225_v10 = vadd.f32 %v8636_v14, %v4070_v6  ;;  %v9010_v34 = vpack.c.bf16 %v4262_v42, %v4262_v42  ;;  %v3827_v13 = vadd.f32 %v8736_v3, %v3725_v7  ;;  %v3696_v30 = vadd.f32 %v8867_v0, %v9991_v21 }
 0x2d7   :  { %v4324_v6 = vpack.c.bf16 %v4276_v52, %v4276_v52  ;;  %v3796_v37 = vadd.f32 %v8956_v63, %v3694_v48  ;;  %v3821_v42 = vadd.f32 %v8736_v3, %v3719_v56  ;;  %v9026_v46 = vmax.f32 %v3998_v23, %v3999_v4  ;;  %v9030_v48 = vpop.f32.mrf.mxu0  ;;  %v5489_v23 = vpop.f32.mrf.mxu1 }
 0x2d8   :  { %v4273_v55 = vmax.f32 %v4225_v10, 0.0  ;;  %v4008_v60 = vmax.f32 %v3792_v59, %v3795_v58  ;;  %v4127_v62 = vmax.f32 %v3824_v9, %v3827_v13  ;;  %v3798_v52 = vadd.f32 %v8982_v27, %v3696_v30  ;;  %v9992_v10 = vld [vmem:[#allocation79_spill] sm:$0xff]  ;;  %v9993_v58 = vld [vmem:[#allocation129_spill] sm:$0xff]  ;;  %v9994_v30 = vld [vmem:[#allocation134_spill] sm:$0xff] }
 0x2d9   :  { %v4475_v54 = vunpack.c.l.b16 %v4324_v6  ;;  %v4015_v41 = vmax.f32 %v3793_v26, %v3796_v37  ;;  %v4106_v11 = vmax.f32 %v3818_v5, %v3821_v42  ;;  %v3734_v53 = vadd.f32 %v5488_v29, %v9992_v10  ;;  %v9995_v42 = vld [vmem:[#allocation126_spill] sm:$0xff]  ;;  %v9039_v10 = vpop.f32.mrf.mxu0 }
 0x2da   :  { %v4321_v7 = vpack.c.bf16 %v4273_v55, %v4273_v55  ;;  %v4009_v0 = vrot.slane %v4008_v60, 4  ;;  %v4128_v21 = vrot.slane %v4127_v62, 4  ;;  %v3697_v26 = vadd.f32 %v8873_v22, %v9993_v58  ;;  %v5703_v22 = vld [vmem:[%s9270_s5 + $0x10] sm:$0xff] }
 0x2db   :  { %v4569_v3 = vrot.slane %v4475_v54, 5  ;;  %v4016_v31 = vrot.slane %v4015_v41, 4  ;;  %v4107_v39 = vrot.slane %v4106_v11, 4  ;;  %v3836_v9 = vadd.f32 %v8717_v2, %v3734_v53 }
 0x2dc   :  { %v4472_v56 = vunpack.c.l.b16 %v4321_v7  ;;  %v4010_v4 = vmax.f32 %v4008_v60, %v4009_v0  ;;  %v4129_v59 = vmax.f32 %v4127_v62, %v4128_v21  ;;  %v3728_v55 = vadd.f32 %v3627_v45, %v9994_v30  ;;  %v9996_v21 = vld [vmem:[#allocation74_spill] sm:$0xff] }
 0x2dd   :  { %v4017_v13 = vmax.f32 %v4015_v41, %v4016_v31  ;;  %v4108_v6 = vmax.f32 %v4106_v11, %v4107_v39  ;;  %v3799_v54 = vadd.f32 %v8999_v28, %v3697_v26  ;;  %v3699_v7 = vadd.f32 %v8888_v15, %v9995_v42  ;;  %v3630_v11 = vpop.f32.mrf.mxu1  ;;  %v9998_v42 = vld [vmem:[#allocation138_spill] sm:$0xff] }
 0x2de   :  { %v4567_v5 = vrot.slane %v4472_v56, 6  ;;  %v4011_v29 = vrot.slane %v4010_v4, 2  ;;  %v4130_v37 = vrot.slane %v4129_v59, 2  ;;  %v3830_v31 = vadd.f32 %v5703_v22, %v3728_v55  ;;  %v9053_v22 = vpop.f32.mrf.mxu0 }
 0x2df   :  { %v4018_v2 = vrot.slane %v4017_v13, 2  ;;  %v4109_v53 = vrot.slane %v4108_v6, 2  ;;  %v3801_v62 = vadd.f32 %v9015_v16, %v3699_v7  ;;  %v3737_v56 = vadd.f32 %v5489_v23, %v9996_v21 }
 0x2e0   :  { %v4568_v60 = vsel %vm4492_vm14, %v4567_v5, %v4566_v17  ;;  %v4012_v41 = vmax.f32 %v4010_v4, %v4011_v29  ;;  %v4131_v45 = vmax.f32 %v4129_v59, %v4130_v37  ;;  %v9997_v17 = vld [vmem:[#allocation131_spill] sm:$0xff]  ;;  %v3731_v55 = vadd.f32 %v3630_v11, %v9998_v42 }
 0x2e1   :  { %v9046_v39 = vsel %vm4495_vm15, %v4569_v3, %v4568_v60  ;;  %v4019_v15 = vmax.f32 %v4017_v13, %v4018_v2  ;;  %v4110_v0 = vmax.f32 %v4108_v6, %v4109_v53  ;;  %v3700_v58 = vadd.f32 %v8906_v32, %v9997_v17  ;;  %v5704_v3 = vld [vmem:[%s9270_s5 + $0x28] sm:$0xff]  ;;  %v9061_v17 = vpop.f32.mrf.mxu0 }
 0x2e2   :  { %v4013_v26 = vrot.slane %v4012_v41, 1  ;;  %v4132_v5 = vrot.slane %v4131_v45, 1  ;;  %v4029_v30 = vmax.f32 %v3798_v52, %v3801_v62  ;;  %v3839_v13 = vadd.f32 %v5704_v3, %v3737_v56 }
 0x2e3   :  { %v4020_v4 = vrot.slane %v4019_v15, 1  ;;  %v4111_v59 = vrot.slane %v4110_v0, 1  ;;  %v3802_v6 = vadd.f32 %v8956_v63, %v3700_v58  ;;  %v3833_v32 = vadd.f32 %v5704_v3, %v3731_v55  ;;  %v9067_v3 = vpop.f32.mrf.mxu0 }
 0x2e4   :  { %v4014_v23 = vmax.f32 %v4012_v41, %v4013_v26  ;;  %v4133_v29 = vmax.f32 %v4131_v45, %v4132_v5  ;;  %v4030_v37 = vrot.slane %v4029_v30, 4  ;;  %v4169_v52 = vmax.f32 %v3836_v9, %v3839_v13 }
 0x2e5   :  { %v4021_v7 = vmax.f32 %v4019_v15, %v4020_v4  ;;  %v4112_v60 = vmax.f32 %v4110_v0, %v4111_v59  ;;  %v4036_v2 = vmax.f32 %v3799_v54, %v3802_v6  ;;  %v4148_v21 = vmax.f32 %v3830_v31, %v3833_v32 }
 0x2e6   :  { %v4217_v53 = vadd.f32 %v8630_v35, %v4014_v23  ;;  %v4234_v11 = vadd.f32 %v8636_v14, %v4133_v29  ;;  %v4031_v62 = vmax.f32 %v4029_v30, %v4030_v37  ;;  %v4170_v41 = vrot.slane %v4169_v52, 4 }
 0x2e7   :  { %v4218_v56 = vadd.f32 %v8632_v24, %v4021_v7  ;;  %v4231_v58 = vadd.f32 %v8636_v14, %v4112_v60  ;;  %v4037_v45 = vrot.slane %v4036_v2, 4  ;;  %v4149_v0 = vrot.slane %v4148_v21, 4 }
 0x2e8   :  { %v4265_v26 = vmax.f32 %v4217_v53, 0.0  ;;  %v4282_v5 = vmax.f32 %v4234_v11, 0.0  ;;  %v4032_v15 = vrot.slane %v4031_v62, 2  ;;  %v4171_v42 = vmax.f32 %v4169_v52, %v4170_v41  ;;  %v10000_v41 = vld [vmem:[#allocation128_spill] sm:$0xff] }
 0x2e9   :  { %v4266_v9 = vmax.f32 %v4218_v56, 0.0  ;;  %v4279_v54 = vmax.f32 %v4231_v58, 0.0  ;;  %v4038_v55 = vmax.f32 %v4036_v2, %v4037_v45  ;;  %v4150_v59 = vmax.f32 %v4148_v21, %v4149_v0  ;;  %v10001_v0 = vld [vmem:[#allocation133_spill] sm:$0xff] }
 0x2ea   :  { %v9065_v4 = vpack.c.bf16 %v4265_v26, %v4265_v26  ;;  %v4330_v30 = vpack.c.bf16 %v4282_v5, %v4282_v5  ;;  %v4033_v31 = vmax.f32 %v4031_v62, %v4032_v15  ;;  %v4172_v23 = vrot.slane %v4171_v42, 2  ;;  %v9079_v26 = vpop.f32.mrf.mxu0 }
 0x2eb   :  { %v9069_v13 = vpack.c.bf16 %v4266_v9, %v4266_v9  ;;  %v4327_v6 = vpack.c.bf16 %v4279_v54, %v4279_v54  ;;  %v4039_v29 = vrot.slane %v4038_v55, 2  ;;  %v9999_v37 = vunpack.c.l.b16 %v9010_v34 }
 0x2ec   :  { %v4481_v7 = vunpack.c.l.b16 %v4330_v30  ;;  %v4034_v60 = vrot.slane %v4033_v31, 1  ;;  %v4151_v52 = vrot.slane %v4150_v59, 2  ;;  %v4464_v2 = vunpack.c.l.b16 %v9065_v4  ;;  %v10002_v4 = vld [vmem:[#allocation130_spill] sm:$0xff] }
 0x2ed   :  { %v9073_v32 = vrot.slane %v9999_v37, 1  ;;  %v4478_v53 = vunpack.c.l.b16 %v4327_v6  ;;  %v4173_v11 = vmax.f32 %v4171_v42, %v4172_v23  ;;  %v4040_v62 = vmax.f32 %v4038_v55, %v4039_v29  ;;  %v10003_v37 = vld [vmem:[#allocation78_spill] sm:$0xff] }
 0x2ee   :  { %v4465_v21 = vunpack.c.l.b16 %v9069_v13  ;;  %v4035_v56 = vmax.f32 %v4033_v31, %v4034_v60  ;;  %v4152_v58 = vmax.f32 %v4150_v59, %v4151_v52  ;;  %v3702_v45 = vadd.f32 %v8921_v20, %v10000_v41  ;;  %v9096_v60 = vpop.f32.mrf.mxu0 }
 0x2ef   :  { %v4571_v34 = vrot.slane %v4478_v53, 4  ;;  %v4174_v5 = vrot.slane %v4173_v11, 1  ;;  %v4041_v15 = vrot.slane %v4040_v62, 1  ;;  %v3703_v9 = vadd.f32 %v8935_v8, %v10001_v0  ;;  %v10004_v53 = vld [vmem:[#allocation72_spill] sm:$0xff] }
 0x2f0   :  { %v9083_v54 = vrot.slane %v4481_v7, 3  ;;  %v4220_v42 = vadd.f32 %v8630_v35, %v4035_v56  ;;  %v4153_v55 = vrot.slane %v4152_v58, 1  ;;  %v3705_v30 = vadd.f32 %v8947_v38, %v10002_v4 }
 0x2f1   :  { %v9090_v31 = vsel %vm4498_vm0, %v4571_v34, %v9046_v39  ;;  %v4175_v20 = vmax.f32 %v4173_v11, %v4174_v5  ;;  %v4042_v59 = vmax.f32 %v4040_v62, %v4041_v15  ;;  %v3804_v6 = vadd.f32 %v8982_v27, %v3702_v45 }
 0x2f2   :  { %v4268_v23 = vmax.f32 %v4220_v42, 0.0  ;;  %v4154_v29 = vmax.f32 %v4152_v58, %v4153_v55  ;;  %v3807_v8 = vadd.f32 %v9015_v16, %v3705_v30  ;;  %v3706_v7 = vadd.f32 %v8960_v50, %v10003_v37  ;;  %v9108_v55 = vpop.f32.mrf.mxu0 }
 0x2f3   :  { %v4240_v52 = vadd.f32 %v8636_v14, %v4175_v20  ;;  %v4221_v38 = vadd.f32 %v8632_v24, %v4042_v59  ;;  %v3805_v39 = vadd.f32 %v8999_v28, %v3703_v9  ;;  %v3708_v11 = vadd.f32 %v8967_v25, %v10004_v53 }
 0x2f4   :  { %v4316_v62 = vpack.c.bf16 %v4268_v23, %v4268_v23  ;;  %v4237_v56 = vadd.f32 %v8636_v14, %v4154_v29  ;;  %v4050_v58 = vmax.f32 %v3804_v6, %v3807_v8  ;;  %v3808_v41 = vadd.f32 %v8956_v63, %v3706_v7 }
 0x2f5   :  { %v4288_v45 = vmax.f32 %v4240_v52, 0.0  ;;  %v4269_v34 = vmax.f32 %v4221_v38, 0.0  ;;  %v3810_v50 = vadd.f32 %v8982_v27, %v3708_v11  ;;  %v3709_v5 = vadd.f32 %v8974_v47, %v8639_v19 }
 0x2f6   :  { %v4467_v15 = vunpack.c.l.b16 %v4316_v62  ;;  %v4285_v0 = vmax.f32 %v4237_v56, 0.0  ;;  %v4051_v42 = vrot.slane %v4050_v58, 4  ;;  %v4057_v9 = vmax.f32 %v3805_v39, %v3808_v41 }
 0x2f7   :  { %v9110_v25 = vpack.c.bf16 %v4288_v45, %v4288_v45  ;;  %v4317_v4 = vpack.c.bf16 %v4269_v34, %v4269_v34  ;;  %v3711_v14 = vadd.f32 %v8992_v61, %v8642_v36  ;;  %v3712_v30 = vadd.f32 %v9021_v18, %v8645_v12  ;;  %v9122_v61 = vpop.f32.mrf.mxu0 }
 0x2f8   :  { %v4537_v20 = vrot.slane %v4467_v15, 7  ;;  %v4333_v59 = vpack.c.bf16 %v4285_v0, %v4285_v0  ;;  %v4052_v6 = vmax.f32 %v4050_v58, %v4051_v42  ;;  %v4058_v23 = vrot.slane %v4057_v9, 4 }
 0x2f9   :  { %v4468_v19 = vunpack.c.l.b16 %v4317_v4  ;;  %v3811_v47 = vadd.f32 %v8999_v28, %v3709_v5  ;;  %v3813_v29 = vadd.f32 %v9015_v16, %v3711_v14  ;;  %v3814_v8 = vadd.f32 %v8956_v63, %v3712_v30  ;;  %v9138_v0 = vpop.f32.mrf.mxu0 }
 0x2fa   :  { %v9120_v37 = vsel %vm4489_vm13, %v4537_v20, %v4464_v2  ;;  %v4484_v7 = vunpack.c.l.b16 %v4333_v59  ;;  %v4053_v52 = vrot.slane %v4052_v6, 2  ;;  %v4059_v36 = vmax.f32 %v4057_v9, %v4058_v23  ;;  %v10005_v20 = vld [vmem:[#allocation80_spill] sm:$0xff] }
 0x2fb   :  { %v4487_v12 = vunpack.c.l.b16 %v9110_v25  ;;  %v9125_v18 = vrot.slane %v4468_v19, 7  ;;  %v4071_v38 = vmax.f32 %v3810_v50, %v3813_v29  ;;  %v4078_v39 = vmax.f32 %v3811_v47, %v3814_v8  ;;  %v9149_v19 = vpop.f32.mrf.mxu0  ;;  %v10028_v25 = vld [vmem:[#allocation25_spill] sm:$0xff] }
 0x2fc   :  { %v9127_v53 = vrot.slane %v4484_v7, 2  ;;  %v4054_v11 = vmax.f32 %v4052_v6, %v4053_v52  ;;  %v4060_v62 = vrot.slane %v4059_v36, 2  ;;  %v3714_v56 = vadd.f32 %v9030_v48, %v8648_v43 }
 0x2fd   :  { %v4072_v2 = vrot.slane %v4071_v38, 4  ;;  %v4079_v58 = vrot.slane %v4078_v39, 4  ;;  %v3715_v41 = vadd.f32 %v9039_v10, %v8653_v49  ;;  %v3717_v45 = vadd.f32 %v9053_v22, %v8656_v33 }
 0x2fe   :  { %v4055_v34 = vrot.slane %v4054_v11, 1  ;;  %v4061_v5 = vmax.f32 %v4059_v36, %v4060_v62  ;;  %v3816_v50 = vadd.f32 %v8982_v27, %v3714_v56  ;;  %v3718_v15 = vadd.f32 %v9061_v17, %v8659_v51  ;;  %v10006_v36 = vld [vmem:[#allocation135_spill] sm:$0xff]  ;;  %v10007_v62 = vld [vmem:[#allocation81_spill] sm:$0xff] }
 0x2ff   :  { %v4073_v42 = vmax.f32 %v4071_v38, %v4072_v2  ;;  %v4080_v9 = vmax.f32 %v4078_v39, %v4079_v58  ;;  %v3817_v43 = vadd.f32 %v8999_v28, %v3715_v41  ;;  %v3819_v48 = vadd.f32 %v9015_v16, %v3717_v45 }
 0x300   :  { %v4056_v4 = vmax.f32 %v4054_v11, %v4055_v34  ;;  %v4062_v49 = vrot.slane %v4061_v5, 1  ;;  %v3820_v10 = vadd.f32 %v8956_v63, %v3718_v15  ;;  %v3720_v33 = vadd.f32 %v9067_v3, %v8663_v57  ;;  %v3468_v34 = vpop.f32.mrf.mxu0 }
 0x301   :  { %v4074_v22 = vrot.slane %v4073_v42, 2  ;;  %v4081_v14 = vrot.slane %v4080_v9, 2  ;;  %v4092_v30 = vmax.f32 %v3816_v50, %v3819_v48  ;;  %v3721_v51 = vadd.f32 %v9079_v26, %v10005_v20 }
 0x302   :  { %v4223_v17 = vadd.f32 %v8630_v35, %v4056_v4  ;;  %v4063_v59 = vmax.f32 %v4061_v5, %v4062_v49  ;;  %v4099_v6 = vmax.f32 %v3817_v43, %v3820_v10  ;;  %v3822_v23 = vadd.f32 %v8982_v27, %v3720_v33  ;;  %v3472_v20 = vpop.f32.mrf.mxu0 }
 0x303   :  { %v4075_v47 = vmax.f32 %v4073_v42, %v4074_v22  ;;  %v4082_v29 = vmax.f32 %v4080_v9, %v4081_v14  ;;  %v4093_v8 = vrot.slane %v4092_v30, 4  ;;  %v3823_v7 = vadd.f32 %v8999_v28, %v3721_v51 }
 0x304   :  { %v4271_v57 = vmax.f32 %v4223_v17, 0.0  ;;  %v4224_v3 = vadd.f32 %v8632_v24, %v4063_v59  ;;  %v4100_v52 = vrot.slane %v4099_v6, 4  ;;  %v3723_v26 = vadd.f32 %v9096_v60, %v10006_v36 }
 0x305   :  { %v4076_v38 = vrot.slane %v4075_v47, 1  ;;  %v4083_v39 = vrot.slane %v4082_v29, 1  ;;  %v4094_v11 = vmax.f32 %v4092_v30, %v4093_v8  ;;  %v3724_v56 = vadd.f32 %v9108_v55, %v10007_v62 }
 0x306   :  { %v4319_v2 = vpack.c.bf16 %v4271_v57, %v4271_v57  ;;  %v4272_v58 = vmax.f32 %v4224_v3, 0.0  ;;  %v4101_v41 = vmax.f32 %v4099_v6, %v4100_v52  ;;  %v3825_v45 = vadd.f32 %v9015_v16, %v3723_v26 }
 0x307   :  { %v4077_v5 = vmax.f32 %v4075_v47, %v4076_v38  ;;  %v4084_v50 = vmax.f32 %v4082_v29, %v4083_v39  ;;  %v4095_v15 = vrot.slane %v4094_v11, 2  ;;  %v3826_v42 = vadd.f32 %v8956_v63, %v3724_v56  ;;  %v10008_v38 = vld [vmem:[#allocation137_spill] sm:$0xff]  ;;  %v3474_v56 = vpop.f32.mrf.mxu0 }
 0x308   :  { %v4470_v9 = vunpack.c.l.b16 %v4319_v2  ;;  %v4320_v43 = vpack.c.bf16 %v4272_v58, %v4272_v58  ;;  %v4102_v60 = vrot.slane %v4101_v41, 2  ;;  %v4113_v48 = vmax.f32 %v3822_v23, %v3825_v45 }
 0x309   :  { %v4226_v4 = vadd.f32 %v8630_v35, %v4077_v5  ;;  %v4227_v49 = vadd.f32 %v8632_v24, %v4084_v50  ;;  %v4096_v55 = vmax.f32 %v4094_v11, %v4095_v15  ;;  %v4120_v10 = vmax.f32 %v3823_v7, %v3826_v42  ;;  %v10009_v11 = vld [vmem:[#allocation82_spill] sm:$0xff] }
 0x30a   :  { %v4539_v33 = vrot.slane %v4470_v9, 6  ;;  %v4471_v22 = vunpack.c.l.b16 %v4320_v43  ;;  %v4103_v14 = vmax.f32 %v4101_v41, %v4102_v60  ;;  %v4114_v30 = vrot.slane %v4113_v48, 4 }
 0x30b   :  { %v4274_v51 = vmax.f32 %v4226_v4, 0.0  ;;  %v4275_v17 = vmax.f32 %v4227_v49, 0.0  ;;  %v4097_v59 = vrot.slane %v4096_v55, 1  ;;  %v4121_v6 = vrot.slane %v4120_v10, 4  ;;  %v10011_v49 = vld [vmem:[#allocation83_spill] sm:$0xff] }
 0x30c   :  { %v4540_v47 = vsel %vm4492_vm14, %v4539_v33, %v9120_v37  ;;  %v9163_v29 = vrot.slane %v4471_v22, 6  ;;  %v4104_v23 = vrot.slane %v4103_v14, 1  ;;  %v4115_v8 = vmax.f32 %v4113_v48, %v4114_v30  ;;  %v10010_v48 = vld [vmem:[#allocation139_spill] sm:$0xff]  ;;  %v10012_v30 = vld [vmem:[#allocation140_spill] sm:$0xff] }
 0x30d   :  { %v4322_v57 = vpack.c.bf16 %v4274_v51, %v4274_v51  ;;  %v4323_v3 = vpack.c.bf16 %v4275_v17, %v4275_v17  ;;  %v4098_v52 = vmax.f32 %v4096_v55, %v4097_v59  ;;  %v4122_v7 = vmax.f32 %v4120_v10, %v4121_v6  ;;  %v3476_v10 = vpop.f32.mrf.mxu0 }
 0x30e   :  { %v4105_v36 = vmax.f32 %v4103_v14, %v4104_v23  ;;  %v4116_v26 = vrot.slane %v4115_v8, 2  ;;  %v3726_v39 = vadd.f32 %v9122_v61, %v10008_v38  ;;  %v3727_v62 = vadd.f32 %v9138_v0, %v10009_v11  ;;  %v10014_v11 = vld [vmem:[#allocation85_spill] sm:$0xff] }
 0x30f   :  { %v4473_v2 = vunpack.c.l.b16 %v4322_v57  ;;  %v4474_v58 = vunpack.c.l.b16 %v4323_v3  ;;  %v4229_v37 = vadd.f32 %v8630_v35, %v4098_v52  ;;  %v4123_v41 = vrot.slane %v4122_v7, 2 }
 0x310   :  { %v4230_v45 = vadd.f32 %v8632_v24, %v4105_v36  ;;  %v4117_v5 = vmax.f32 %v4115_v8, %v4116_v26  ;;  %v3828_v50 = vadd.f32 %v8982_v27, %v3726_v39  ;;  %v3829_v15 = vadd.f32 %v8999_v28, %v3727_v62  ;;  %v3478_v26 = vpop.f32.mrf.mxu0 }
 0x311   :  { %v4541_v42 = vrot.slane %v4473_v2, 5  ;;  %v9173_v9 = vrot.slane %v4474_v58, 5  ;;  %v4277_v61 = vmax.f32 %v4229_v37, 0.0  ;;  %v4124_v43 = vmax.f32 %v4122_v7, %v4123_v41 }
 0x312   :  { %v4278_v60 = vmax.f32 %v4230_v45, 0.0  ;;  %v4118_v0 = vrot.slane %v4117_v5, 1  ;;  %v3729_v4 = vadd.f32 %v9149_v19, %v10010_v48  ;;  %v3730_v55 = vadd.f32 %v3468_v34, %v10011_v49  ;;  %v10013_v19 = vld [vmem:[#allocation84_spill] sm:$0xff] }
 0x313   :  { %v4542_v33 = vsel %vm4495_vm15, %v4541_v42, %v4540_v47  ;;  %v4325_v22 = vpack.c.bf16 %v4277_v61, %v4277_v61  ;;  %v4125_v14 = vrot.slane %v4124_v43, 1  ;;  %v3732_v51 = vadd.f32 %v3472_v20, %v10012_v30 }
 0x314   :  { %v4326_v17 = vpack.c.bf16 %v4278_v60, %v4278_v60  ;;  %v4119_v59 = vmax.f32 %v4117_v5, %v4118_v0  ;;  %v3831_v6 = vadd.f32 %v9015_v16, %v3729_v4  ;;  %v3832_v23 = vadd.f32 %v8956_v63, %v3730_v55  ;;  %v10015_v5 = vld [vmem:[#allocation87_spill] sm:$0xff] }
 0x315   :  { %v4476_v8 = vunpack.c.l.b16 %v4325_v22  ;;  %v4126_v57 = vmax.f32 %v4124_v43, %v4125_v14  ;;  %v3834_v3 = vadd.f32 %v8982_v27, %v3732_v51  ;;  %v3733_v52 = vadd.f32 %v3474_v56, %v10013_v19  ;;  %v10017_v19 = vld [vmem:[#allocation86_spill] sm:$0xff] }
 0x316   :  { %v4477_v34 = vunpack.c.l.b16 %v4326_v17  ;;  %v4232_v7 = vadd.f32 %v8630_v35, %v4119_v59  ;;  %v4134_v47 = vmax.f32 %v3828_v50, %v3831_v6  ;;  %v4141_v36 = vmax.f32 %v3829_v15, %v3832_v23 }
 0x317   :  { %v4543_v38 = vrot.slane %v4476_v8, 4  ;;  %v4233_v20 = vadd.f32 %v8632_v24, %v4126_v57  ;;  %v3835_v39 = vadd.f32 %v8999_v28, %v3733_v52  ;;  %v3735_v62 = vadd.f32 %v3476_v10, %v10014_v11 }
 0x318   :  { %v9188_v2 = vrot.slane %v4477_v34, 4  ;;  %v4280_v58 = vmax.f32 %v4232_v7, 0.0  ;;  %v4135_v37 = vrot.slane %v4134_v47, 4  ;;  %v4142_v27 = vrot.slane %v4141_v36, 4  ;;  %v10019_v34 = vld [vmem:[#allocation88_spill] sm:$0xff] }
 0x319   :  { %v9191_v56 = vsel %vm4498_vm0, %v4543_v38, %v4542_v33  ;;  %v4281_v41 = vmax.f32 %v4233_v20, 0.0  ;;  %v3837_v45 = vadd.f32 %v9015_v16, %v3735_v62  ;;  %v3736_v50 = vadd.f32 %v3478_v26, %v10015_v5  ;;  %v10021_v20 = vld [vmem:[#allocation89_spill] sm:$0xff] }
 0x31a   :  { %v4328_v15 = vpack.c.bf16 %v4280_v58, %v4280_v58  ;;  %v4136_v42 = vmax.f32 %v4134_v47, %v4135_v37  ;;  %v4143_v61 = vmax.f32 %v4141_v36, %v4142_v27  ;;  %v4215_v28 = vadd.f32 %v8632_v24, %v9026_v46  ;;  %v10022_v5 = vld [vmem:[#allocation141_spill] sm:$0xff] }
 0x31b   :  { %v4329_v43 = vpack.c.bf16 %v4281_v41, %v4281_v41  ;;  %v4155_v60 = vmax.f32 %v3834_v3, %v3837_v45  ;;  %v3838_v0 = vadd.f32 %v8956_v63, %v3736_v50  ;;  %v10016_v48 = vmax.f32 %v8970_v1, 0.0 }
 0x31c   :  { %v4479_v49 = vunpack.c.l.b16 %v4328_v15  ;;  %v4137_v55 = vrot.slane %v4136_v42, 2  ;;  %v4144_v10 = vrot.slane %v4143_v61, 2  ;;  %v4263_v16 = vmax.f32 %v4215_v28, 0.0 }
 0x31d   :  { %v4308_v4 = vpack.c.bf16 %v10016_v48, %v10016_v48  ;;  %v4480_v33 = vunpack.c.l.b16 %v4329_v43  ;;  %v4156_v22 = vrot.slane %v4155_v60, 4  ;;  %v4162_v14 = vmax.f32 %v3835_v39, %v3838_v0 }
 0x31e   :  { %v4545_v51 = vrot.slane %v4479_v49, 3  ;;  %v4138_v17 = vmax.f32 %v4136_v42, %v4137_v55  ;;  %v4145_v59 = vmax.f32 %v4143_v61, %v4144_v10  ;;  %v4311_v46 = vpack.c.bf16 %v4263_v16, %v4263_v16 }
 0x31f   :  { %v4459_v30 = vunpack.c.l.b16 %v4308_v4  ;;  %v4157_v6 = vmax.f32 %v4155_v60, %v4156_v22  ;;  %v4163_v23 = vrot.slane %v4162_v14, 4  ;;  %v10018_v52 = vunpack.c.l.b16 %v10017_v19  ;;  %v10023_v22 = vld [vmem:[#allocation90_spill] sm:$0xff] }
 0x320   :  { %v4139_v63 = vrot.slane %v4138_v17, 1  ;;  %v4146_v1 = vrot.slane %v4145_v59, 1  ;;  %v4462_v8 = vunpack.c.l.b16 %v4311_v46  ;;  %v10020_v47 = vunpack.c.l.b16 %v8912_v44 }
 0x321   :  { %v4158_v57 = vrot.slane %v4157_v6, 2  ;;  %v4164_v3 = vmax.f32 %v4162_v14, %v4163_v23  ;;  %v4510_v7 = vsel %vm4489_vm13, %v10019_v34, %v10018_v52  ;;  %v4519_v11 = vrot.slane %v4459_v30, 2  ;;  %v10024_v14 = vld [vmem:[#allocation92_spill] sm:$0xff] }
 0x322   :  { %v4517_v36 = vrot.slane %v10020_v47, 3  ;;  %v4140_v26 = vmax.f32 %v4138_v17, %v4139_v63  ;;  %v4147_v38 = vmax.f32 %v4145_v59, %v4146_v1  ;;  %v4512_v39 = vsel %vm4492_vm14, %v10021_v20, %v4510_v7  ;;  %v10029_v7 = vld [vmem:[#allocation142_spill] sm:$0xff] }
 0x323   :  { %v4159_v62 = vmax.f32 %v4157_v6, %v4158_v57  ;;  %v4165_v58 = vrot.slane %v4164_v3, 2  ;;  %v4514_v37 = vsel %vm4495_vm15, %v8871_v40, %v4512_v39  ;;  %v4521_v27 = vrot.slane %v4462_v8, 1  ;;  %v10026_v57 = vld [vmem:[#allocation143_spill] sm:$0xff] }
 0x324   :  { %v4235_v41 = vadd.f32 %v8630_v35, %v4140_v26  ;;  %v4236_v45 = vadd.f32 %v8632_v24, %v4147_v38  ;;  %v4516_v44 = vsel %vm4498_vm0, %v10022_v5, %v4514_v37  ;;  %v4552_v50 = vsel %vm4489_vm13, %v9125_v18, %v4465_v21  ;;  %v5595_v37 = vld [vmem:[#allocation2 + $0xb8] sm:$0xff]  }
 0x325   :  { %v4160_v15 = vrot.slane %v4159_v62, 1  ;;  %v4166_v42 = vmax.f32 %v4164_v3, %v4165_v58  ;;  %v4518_v61 = vsel %vm4501_vm1, %v4517_v36, %v4516_v44  ;;  %v4554_v40 = vsel %vm4492_vm14, %v9163_v29, %v4552_v50  ;;  %v5599_v5 = vld [vmem:[#allocation2 + $0x98] sm:$0xff]   ;;  %v5600_v44 = vld [vmem:[#allocation2 + $0x90] sm:$0xff]   ;;  %v5601_v50 = vld [vmem:[#allocation2 + $0x88] sm:$0xff]  }
 0x326   :  { %v4283_v28 = vmax.f32 %v4235_v41, 0.0  ;;  %v4284_v43 = vmax.f32 %v4236_v45, 0.0  ;;  %v4520_v60 = vsel %vm4504_vm2, %v4519_v11, %v4518_v61  ;;  %v4556_v0 = vsel %vm4495_vm15, %v9173_v9, %v4554_v40  ;;  %v5597_v41 = vld [vmem:[#allocation2 + $0xa8] sm:$0xff]   ;;  %v5598_v45 = vld [vmem:[#allocation2 + $0xa0] sm:$0xff]  }
 0x327   :  { %v4161_v48 = vmax.f32 %v4159_v62, %v4160_v15  ;;  %v4167_v4 = vrot.slane %v4166_v42, 1  ;;  %v4522_v13 = vsel %vm4507_vm3, %v4521_v27, %v4520_v60  ;;  %v4558_v21 = vsel %vm4498_vm0, %v9188_v2, %v4556_v0  ;;  %v10025_v2 = vld [vmem:[#allocation11_spill] sm:$0xff]  ;;  %v5596_v27 = vld [vmem:[#allocation2 + $0xb0] sm:$0xff]   ;;  %v5602_v15 = vld [vmem:[#allocation2 + $0x80] sm:$0xff]  }
 0x328   :  { %v4331_v18 = vpack.c.bf16 %v4283_v28, %v4283_v28  ;;  %v4332_v49 = vpack.c.bf16 %v4284_v43, %v4284_v43  ;;  %v4559_v55 = vrot.slane %v4480_v33, 3  ;;  %v5753_v16 = vmov 0.0   ;;  %v5164_v60 = vld [vmem:[%s9269_s4] ss:$0 sm:$0xff] }
 0x329   :  { %v4238_v10 = vadd.f32 %v8630_v35, %v4161_v48  ;;  %v4168_v29 = vmax.f32 %v4166_v42, %v4167_v4  ;;  %5490 = vmatprep.subr.bf16.mxu1 %v5753_v16  ;;  %v4502_v30 = vsel %vm4501_vm1, %v10024_v14, %v10023_v22  ;;  %v4546_v9 = vsel %vm4501_vm1, %v4545_v51, %v9191_v56  ;;  %v10027_v56 = vld [vmem:[#allocation91_spill] sm:$0xff] }
 0x32a   :  { %v4482_v17 = vunpack.c.l.b16 %v4331_v18  ;;  %v4483_v59 = vunpack.c.l.b16 %v4332_v49  ;;  %v4560_v46 = vsel %vm4501_vm1, %v4559_v55, %v4558_v21  ;;  %v4505_v6 = vsel %vm4504_vm2, %v10025_v2, %v4502_v30 }
 0x32b   :  { %v4577_v35 = vrot.slane %v4487_v12, 1  ;;  %v4286_v33 = vmax.f32 %v4238_v10, 0.0  ;;  %v4239_v23 = vadd.f32 %v8632_v24, %v4168_v29  ;;  %v4508_v63 = vsel %vm4507_vm3, %v9073_v32, %v4505_v6 }
 0x32c   :  { %v4547_v1 = vrot.slane %v4482_v17, 2  ;;  %v4561_v8 = vrot.slane %v4483_v59, 2  ;;  %v4532_v51 = vsel %vm4501_vm1, %v10027_v56, %v10026_v57  ;;  %v4574_v3 = vsel %vm4501_vm1, %v9083_v54, %v9090_v31 }
 0x32d   :  { %v4334_v19 = vpack.c.bf16 %v4286_v33, %v4286_v33  ;;  %v4287_v52 = vmax.f32 %v4239_v23, 0.0  ;;  %v4534_v12 = vsel %vm4504_vm2, %v10028_v25, %v4532_v51  ;;  %v4576_v24 = vsel %vm4504_vm2, %v9127_v53, %v4574_v3 }
 0x32e   :  { %v4562_v32 = vsel %vm4504_vm2, %v4561_v8, %v4560_v46  ;;  %v4548_v34 = vsel %vm4504_vm2, %v4547_v1, %v4546_v9  ;;  %v4536_v47 = vsel %vm4507_vm3, %v10029_v7, %v4534_v12  ;;  %v4578_v36 = vsel %vm4507_vm3, %v4577_v35, %v4576_v24 }
 0x32f   :  { %v4485_v26 = vunpack.c.l.b16 %v4334_v19  ;;  %v4335_v38 = vpack.c.bf16 %v4287_v52, %v4287_v52  ;;  %v4581_v54 = vpack.c.b16 %v4578_v36, %v4536_v47 }
 0x331   :  { %v4549_v31 = vrot.slane %v4485_v26, 1  ;;  %v4486_v20 = vunpack.c.l.b16 %v4335_v38 }
 0x333   :  { %v4563_v39 = vrot.slane %v4486_v20, 1  ;;  %v4550_v11 = vsel %vm4507_vm3, %v4549_v31, %v4548_v34 }
 0x334   :  { %v4579_v62 = vpack.c.b16 %v4550_v11, %v4508_v63 }
 0x335   :  { %v4564_v53 = vsel %vm4507_vm3, %v4563_v39, %v4562_v32 }
 0x336   :  { %v4580_v58 = vpack.c.b16 %v4564_v53, %v4522_v13 }
 0x338   :  { %4761 = vmatprep.mubr.bf16.mxu1 %v4580_v58 }
 0x339   :  { %4762 = vmatmul.mubr.bf16.vlgmr.msra.gmra.mxu1 %v4579_v62 }
 0x33a   :  { %5491 = vmatpush3.bf16.msra.mxu1 %v5595_v37  ;;  %5506 = vmatprep.mubr.msk.bf16.mxu1 %vm5754_vm4, %v5753_v16 }
 0x33b   :  { %5492 = vmatprep.subr.bf16.mxu1 %v5753_v16 }
 0x33e   :  { %5493 = vmatpush3.bf16.msra.mxu1 %v5596_v27 }
 0x33f   :  { %5494 = vmatprep.subr.bf16.mxu1 %v5753_v16 }
 0x342   :  { %5495 = vmatpush3.bf16.msra.mxu1 %v5597_v41 }
 0x343   :  { %5496 = vmatprep.subr.bf16.mxu1 %v5753_v16 }
 0x346   :  { %5497 = vmatpush3.bf16.msra.mxu1 %v5598_v45 }
 0x347   :  { %5498 = vmatprep.subr.bf16.mxu1 %v5753_v16 }
 0x34a   :  { %5499 = vmatpush3.bf16.msra.mxu1 %v5599_v5 }
 0x34b   :  { %5500 = vmatprep.subr.bf16.mxu1 %v5753_v16 }
 0x34e   :  { %5501 = vmatpush3.bf16.msra.mxu1 %v5600_v44 }
 0x34f   :  { %5502 = vmatprep.subr.bf16.mxu1 %v5753_v16 }
 0x352   :  { %5503 = vmatpush3.bf16.msra.mxu1 %v5601_v50 }
 0x353   :  { %5504 = vmatprep.subr.bf16.mxu1 %v5753_v16 }
 0x356   :  { %5505 = vmatpush3.bf16.msra.mxu1 %v5602_v15 }
 0x359   :  { %5507 = vmatmul.mubr.bf16.vlgmr.msra.gmra.mxu1 %v4581_v54 }
 0x3f9   :  { %v5295_v42 = vpop.f32.mrf.mxu1 }
 0x3fb   :  { %v5296_v61 = vpop.f32.mrf.mxu1 }
 0x3fc   :  { %v5297_v28 = vadd.f32 %v5296_v61, %v5295_v42 }
 0x3fd   :  { %v5298_v40 = vpop.f32.mrf.mxu1 }
 0x3fe   :  { %v4764_v48 = vadd.f32 %v5297_v28, %v5164_v60 }
 0x3ff   :  { %v5299_v43 = vpop.f32.mrf.mxu1 }
 0x400   :  { %v5300_v0 = vadd.f32 %v5299_v43, %v5298_v40 }
 0x402   :  { %v4767_v18 = vadd.f32 %v5300_v0, %v5164_v60 }
 0x419   :  { %v4804_v4 = vpop.f32.mrf.mxu1 }
 0x41a   :  { %v4805_v13 = vadd.f32 %v4804_v4, %v4764_v48 }
 0x41b   :  { %v5508_v21 = vpop.f32.mrf.mxu1 }
 0x41c   :  { %4811 = vst [vmem:[#allocation5] sm:$0xff] %v4805_v13 }
 0x41d   :  { %v4807_v49 = vpop.f32.mrf.mxu1 }
 0x41e   :  { %v4808_v55 = vadd.f32 %v4807_v49, %v4767_v18 }
 0x41f   :  { %v5509_v10 = vpop.f32.mrf.mxu1 }
 0x420   :  { %4812 = vst [vmem:[#allocation5 + $0x8] sm:$0xff] %v4808_v55 }
 0x421   :  { %5736 = shalt.err (!%p5733_p9)
}
 0x422   :  { %s5756_s4 = smov 128   ;;  %s5757_s23 = smov 8  }
 0x423   :  { %4824 = dma.vmem_to_hbm [thread:$0]  %s4819_s0, 256, %s9271_s6, [#allocation4], %s5756_s4, %s5756_s4, %s5757_s23  }
 0x424   :  { %5747 = dma.done.wait [#allocation4], 256  }
 0x425   :  { %5748 = vsyncadd [#allocation4], 4294967040 }
 0x426   :  { %4828 = vsyncpa [#allocation3], 1 }
 0x427   :  { %4829 = vsyncpa [#allocation4], 1 }

// kernel: tpu_custom_call.1
= control target key start
LH: loop header
LB: loop body
LE: loop exit
PB: predicated region body
PF: predicated region fallthrough
CT: control target
= control target key end

     0   :  { %11 = vsyncpa [#allocation3], 0  ;;  %s9265_s0 = inlined_call_operand.vmem [shape: bf16[16,20,32], index: 0, kind: input, shape index: {}]   ;;  %s9266_s1 = inlined_call_operand.vmem [shape: bf16[5,32,384], index: 1, kind: input, shape index: {}]   ;;  %s9267_s2 = inlined_call_operand.vmem [shape: f32[1,384], index: 2, kind: input, shape index: {}]   ;;  %s9268_s3 = inlined_call_operand.hbm [shape: bf16[384,128], index: 3, kind: input, shape index: {}]   ;;  %s9269_s4 = inlined_call_operand.vmem [shape: f32[1,128], index: 4, kind: input, shape index: {}]   ;;  %s9270_s5 = inlined_call_operand.vmem [shape: f32[16,384], index: 5, kind: input, shape index: {}]   ;;  %s9271_s6 = inlined_call_operand.hbm [shape: f32[16,128], index: 6, kind: output, shape index: {}]  }
   0x1   :  { %12 = vsyncpa [#allocation4], 0  ;;  %s5749_s21 = smov [#allocation2]  }
   0x2   :  { %s24_s22 = sshll.u32 %s5749_s21, 4  ;;  %s25_s22 = int_to_ptr.vmem [resolvable:$true] %s24_s22 }
   0x3   :  { %s5713_s23 = scalar_lea.vmem %s25_s22, 3072  ;;  %p5718_p1 = scmp.lt.s32.totalorder %s25_s22, %s25_s22 }
   0x4   :  { %p5714_p0 = scmp.ne.s32.totalorder %s25_s22, %s5713_s23  ;;  %p5719_p2 = scmp.lt.s32.totalorder %s5713_s23, %s5713_s23 }
   0x6   :  { %p5720_p3 = por %p5719_p2, %p5718_p1 }
   0x8   :  { %p5721_p4 = pnand %p5720_p3, %p5714_p0 }
   0xa   :  { %5724 = shalt.err (!%p5721_p4)
}
   0xb   :  { %s5750_s24 = smov 64   ;;  %s5751_s25 = smov 4  }
   0xc   :  { %30 = dma.hbm_to_vmem [thread:$0]  %s9268_s3, 3072, %s25_s22, [#allocation3], %s5750_s24, %s5750_s24, %s5751_s25  }
   0xd   :  { %5745 = dma.done.wait [#allocation3], 3072  }
   0xe   :  { %5746 = vsyncadd [#allocation3], 4294964224  ;;  %v9322_v0 = vmov 0   ;;  %vm95_vm0 = vsmask.f32 3328  ;;  %vm571_vm4 = vcmask 261120  }
   0xf   :  { %652 = vmatprep.mubr.bf16.mxu0 %v9322_v0  ;;  %802 = vmatprep.mubr.bf16.mxu1 %v9322_v0  ;;  %vm96_vm1 = vsmask.f32 7440  ;;  %v5523_v1 = vld [vmem:[%s9266_s1 + $0x4c] ss:$12 sps:$4 sm:$0xff]   ;;  %vm2206_vm2 = vsmask.f32 2304 }
  0x10   :  { %v5525_v2 = vld [vmem:[%s9266_s1 + $0x48] ss:$12 sps:$4 sm:$0xff]   ;;  %vm2207_vm3 = vsmask.f32 6416  ;;  %632 = vmatprep.subr.bf16.mxu0 %v5523_v1  ;;  %5510 = vmatprep.subr.bf16.mxu1 %v5523_v1  ;;  %v5528_v4 = vld [vmem:[%s9266_s1 + $0x30] ss:$12 sps:$4 sm:$0xff]   ;;  %vm5839_vm5 = vmor %vm95_vm0, %vm96_vm1 }
  0x11   :  { %v5526_v3 = vld [vmem:[%s9266_s1 + $0x34] ss:$12 sps:$4 sm:$0xff]   ;;  %633 = vmatpush1.bf16.msra.mxu0 %v5525_v2  ;;  %5512 = vmatpush1.bf16.msra.mxu1 %v5525_v2  ;;  %v5823_v7 = vld [vmem:[%s9265_s0 + $0x4] sm:$0xf]  ;;  %v41_v8 = vld [vmem:[%s9265_s0 + $0x8] sm:$0x3] }
  0x12   :  { %v5813_v5 = vld [vmem:[%s9266_s1 + $0x20] ss:$12 sps:$4 sm:$0xff]   ;;  %634 = vmatprep.subr.bf16.mxu0 %v5526_v3  ;;  %5511 = vmatprep.subr.bf16.mxu1 %v5526_v3  ;;  %v108_v11 = vshll.u32 %v5823_v7, 16  ;;  %v112_v12 = vshrl.u32 %v5823_v7, 16  ;;  %v118_v13 = vshll.u32 %v41_v8, 16  ;;  %v2218_v14 = vshrl.u32 %v41_v8, 16  ;;  %vm5851_vm6 = vmor %vm2206_vm2, %vm2207_vm3 }
  0x13   :  { %v5818_v6 = vld [vmem:[%s9265_s0] sm:$0xf]  ;;  %v5835_v19 = vld [vmem:[%s9265_s0 + $0xb4] sm:$0xf]  ;;  %v5846_v25 = vld [vmem:[%s9265_s0 + $0xb8] sm:$0xf] }
  0x14   :  { %v99_v9 = vshrl.u32 %v5818_v6, 16  ;;  %v102_v10 = vshll.u32 %v5818_v6, 16  ;;  %9367 = vst [vmem:[#allocation8_spill] sm:$0xff] %v5835_v19  ;;  %v110_v21 = vrot.slane %v108_v11, 5  ;;  %v114_v22 = vrot.slane %v112_v12, 4  ;;  %9370 = vst [vmem:[#allocation9_spill] sm:$0xff] %v5846_v25 }
  0x15   :  { %635 = vmatpush1.bf16.msra.mxu0 %v5528_v4  ;;  %5513 = vmatpush1.bf16.msra.mxu1 %v5528_v4  ;;  %v120_v23 = vrot.slane %v118_v13, 5  ;;  %v2213_v24 = vrot.slane %v112_v12, 5  ;;  %v2214_v29 = vrot.slane %v108_v11, 6  ;;  %v2220_v30 = vrot.slane %v2218_v14, 5  ;;  %v5858_v33 = vld [vmem:[%s9265_s0 + $0xbc] sm:$0x3] }
  0x16   :  { %v101_v15 = vrot.slane %v99_v9, 4  ;;  %v104_v16 = vrot.slane %v102_v10, 5  ;;  %v2209_v17 = vrot.slane %v99_v9, 5  ;;  %v2210_v18 = vrot.slane %v102_v10, 6  ;;  %5346 = vmatprep.subr.bf16.mxu0 %v5813_v5  ;;  %9373 = vst [vmem:[#allocation10_spill] sm:$0xff] %v5858_v33  ;;  %s5755_s21 = smov [#allocation5]  }
  0x17   :  { %v115_v31 = vor.u32 %v114_v22, %v110_v21  ;;  %v2221_v32 = vrot.slane %v118_v13, 6  ;;  %v5863_v34 = vld [vmem:[%s9266_s1 + $0x50] ss:$12 sps:$4 sm:$0xff]   ;;  %v5867_v37 = vor.u32 %v2214_v29, %v2213_v24  ;;  %v9276_v38 = vshrl.u32 %v5835_v19, 16  ;;  %v5892_v51 = vld [vmem:[%s9265_s0 + $0xc] sm:$0xf] }
  0x18   :  { %v105_v26 = vor.u32 %v104_v16, %v101_v15  ;;  %v2211_v28 = vor.u32 %v2210_v18, %v2209_v17  ;;  %v9275_v41 = vshll.u32 %v5835_v19, 16  ;;  %v9274_v42 = vshll.u32 %v5846_v25, 16  ;;  %5310 = vmatprep.subr.bf16.mxu1 %v5863_v34  ;;  %v5902_v55 = vld [vmem:[%s9265_s0 + $0x10] sm:$0xf]  ;;  %v5909_v58 = vld [vmem:[%s9265_s0 + $0x14] sm:$0x3] }
  0x19   :  { %v116_v39 = vrot.slane %v115_v31, 4  ;;  %v2222_v40 = vor.u32 %v2221_v32, %v2220_v30  ;;  %v2217_v45 = vrot.slane %v5867_v37, 4  ;;  %v461_v46 = vrot.slane %v9276_v38, 4  ;;  %v5928_v9 = vld [vmem:[%s9265_s0 + $0x18] sm:$0xf] }
  0x1a   :  { %v106_v35 = vrot.slane %v105_v26, 4  ;;  %v5865_v36 = vrot.slane %v2211_v28, 4  ;;  %v464_v48 = vrot.slane %v9275_v41, 5  ;;  %v470_v49 = vrot.slane %v9274_v42, 5  ;;  %v5939_v13 = vld [vmem:[%s9265_s0 + $0x1c] sm:$0xf] }
  0x1b   :  { %v121_v47 = vsel %vm5839_vm5, %v116_v39, %v120_v23  ;;  %v9272_v50 = vshrl.u32 %v5846_v25, 16  ;;  %v5896_v53 = vsel %vm5851_vm6, %v2217_v45, %v2222_v40  ;;  %v9273_v54 = vshll.u32 %v5858_v33, 16  ;;  %v5944_v15 = vld [vmem:[%s9265_s0 + $0x20] sm:$0x3]  ;;  %v5531_v23 = vld [vmem:[%s9266_s1 + $0x38] ss:$12 sps:$4 sm:$0xff]  }
  0x1c   :  { %v111_v43 = vsel %vm5839_vm5, %v106_v35, %v110_v21  ;;  %v465_v56 = vor.u32 %v464_v48, %v461_v46  ;;  %v9321_v60 = vshrl.u32 %v5892_v51, 16  ;;  %v9319_v61 = vshll.u32 %v5892_v51, 16  ;;  %v5965_v35 = vld [vmem:[%s9265_s0 + $0x24] sm:$0xf]  ;;  %v5978_v45 = vld [vmem:[%s9265_s0 + $0x28] sm:$0xf] }
  0x1d   :  { %v4838_v52 = vcombine.low %v111_v43, %v121_v47  ;;  %v474_v57 = vrot.slane %v9272_v50, 4  ;;  %v480_v59 = vrot.slane %v9273_v54, 5  ;;  %v9318_v1 = vshll.u32 %v5902_v55, 16  ;;  %v5989_v48 = vld [vmem:[%s9265_s0 + $0x2c] sm:$0x3] }
  0x1e   :  { %v466_v62 = vrot.slane %v465_v56, 4  ;;  %v9311_v2 = vshrl.u32 %v5902_v55, 16  ;;  %v125_v3 = vrot.slane %v9321_v60, 4  ;;  %v128_v4 = vrot.slane %v9319_v61, 5  ;;  %9374 = vst [vmem:[#allocation11_spill] sm:$0xff] %v5989_v48 }
  0x1f   :  { %4860 = vmatmul.mubr.msk.bf16.vlgmr.msra.gmra.mxu0 %vm571_vm4, %v4838_v52  ;;  %v475_v63 = vor.u32 %v474_v57, %v470_v49  ;;  %v9317_v8 = vshll.u32 %v5909_v58, 16  ;;  %v134_v11 = vrot.slane %v9318_v1, 5  ;;  %v9310_v21 = vshrl.u32 %v5928_v9, 16  ;;  %v6364_v19 = vld [vmem:[%s9265_s0 + $0x9c] sm:$0xf] }
  0x20   :  { %5347 = vmatpush3.bf16.msra.mxu0 %v5813_v5  ;;  %662 = vmatprep.mubr.bf16.mxu0 %v9322_v0  ;;  %v471_v5 = vsel %vm5839_vm5, %v466_v62, %v470_v49  ;;  %v138_v12 = vrot.slane %v9311_v2, 4  ;;  %v129_v14 = vor.u32 %v128_v4, %v125_v3  ;;  %v9309_v26 = vshll.u32 %v5928_v9, 16  ;;  %v5994_v49 = vld [vmem:[%s9265_s0 + $0x30] sm:$0xf]  ;;  %v5563_v20 = vld [vmem:[%s9266_s1 + $0x68] ss:$12 sps:$4 sm:$0xff]  }
  0x21   :  { %v476_v10 = vrot.slane %v475_v63, 4  ;;  %v144_v18 = vrot.slane %v9317_v8, 5  ;;  %v9301_v28 = vshll.u32 %v5939_v13, 16  ;;  %v149_v30 = vrot.slane %v9310_v21, 4  ;;  %v5651_v27 = vld [vmem:[%s9265_s0 + $0x4] sm:$0xf] }
  0x22   :  { %v139_v17 = vor.u32 %v138_v12, %v134_v11  ;;  %v130_v24 = vrot.slane %v129_v14, 4  ;;  %v9299_v31 = vshrl.u32 %v5939_v13, 16  ;;  %v9300_v32 = vshll.u32 %v5944_v15, 16 }
  0x23   :  { %v481_v16 = vsel %vm5839_vm5, %v476_v10, %v480_v59  ;;  %v152_v40 = vrot.slane %v9309_v26, 5  ;;  %v158_v43 = vrot.slane %v9301_v28, 5  ;;  %v9297_v59 = vshrl.u32 %v5965_v35, 16 }
  0x24   :  { %v5951_v22 = vcombine.low %v471_v5, %v481_v16  ;;  %v140_v29 = vrot.slane %v139_v17, 4  ;;  %v135_v39 = vsel %vm5839_vm5, %v130_v24, %v134_v11  ;;  %v162_v47 = vrot.slane %v9299_v31, 4 }
  0x25   :  { %v153_v56 = vor.u32 %v152_v40, %v149_v30  ;;  %v9296_v62 = vshll.u32 %v5965_v35, 16  ;;  %v9293_v63 = vshll.u32 %v5978_v45, 16  ;;  %v9286_v4 = vshrl.u32 %v5978_v45, 16  ;;  %v6026_v30 = vld [vmem:[%s9265_s0 + $0x38] sm:$0x3] }
  0x26   :  { %4875 = vmatmul.mubr.msk.bf16.vlgmr.msra.gmra.mxu1 %vm571_vm4, %v5951_v22  ;;  %v145_v46 = vsel %vm5839_vm5, %v140_v29, %v144_v18  ;;  %v163_v57 = vor.u32 %v162_v47, %v158_v43  ;;  %v9291_v5 = vshll.u32 %v5989_v48, 16  ;;  %v9285_v10 = vshrl.u32 %v5994_v49, 16  ;;  %9375 = vst [vmem:[#allocation12_spill] sm:$0xff] %v6026_v30 }
  0x27   :  { %5311 = vmatpush3.bf16.msra.mxu1 %v5863_v34  ;;  %5314 = vmatprep.mubr.msk.bf16.mxu1 %vm571_vm4, %v4838_v52  ;;  %v4839_v34 = vcombine.low %v135_v39, %v145_v46  ;;  %v168_v52 = vrot.slane %v9300_v32, 5  ;;  %v154_v3 = vrot.slane %v153_v56, 4  ;;  %v173_v12 = vrot.slane %v9297_v59, 4  ;;  %v6031_v39 = vld [vmem:[%s9265_s0 + $0x3c] sm:$0xf] }
  0x28   :  { %5312 = vmatprep.subr.bf16.mxu1 %v5531_v23  ;;  %v164_v11 = vrot.slane %v163_v57, 4  ;;  %v176_v14 = vrot.slane %v9296_v62, 5  ;;  %v182_v16 = vrot.slane %v9293_v63, 5  ;;  %v186_v18 = vrot.slane %v9286_v4, 4  ;;  %v6143_v63 = vld [vmem:[%s9265_s0 + $0x5c] sm:$0x3] }
  0x29   :  { %4861 = vmatmul.mubr.msk.bf16.gmra.mxu0 %vm571_vm4, %v4839_v34  ;;  %v159_v17 = vsel %vm5839_vm5, %v154_v3, %v158_v43  ;;  %v192_v46 = vrot.slane %v9291_v5, 5  ;;  %v197_v47 = vrot.slane %v9285_v10, 4  ;;  %9378 = vst [vmem:[#allocation15_spill] sm:$0xff] %v6143_v63  ;;  %v6174_v62 = vld [vmem:[%s9265_s0 + $0x68] sm:$0x3]  ;;  %vm1504_vm7 = vcmask 1042432  }
  0x2a   :  { %672 = vmatprep.mubr.bf16.mxu0 %v9322_v0  ;;  %v169_v24 = vsel %vm5839_vm5, %v164_v11, %v168_v52  ;;  %v177_v29 = vor.u32 %v176_v14, %v173_v12  ;;  %v187_v43 = vor.u32 %v186_v18, %v182_v16  ;;  %v9284_v52 = vshll.u32 %v5994_v49, 16  ;;  %9379 = vst [vmem:[#allocation16_spill] sm:$0xff] %v6174_v62  ;;  %v5547_v32 = vld [vmem:[%s9266_s1 + $0x7c] ss:$12 sps:$4 sm:$0xff]  }
  0x2b   :  { %5313 = vmatpush3.bf16.msra.mxu1 %v5531_v23  ;;  %v6019_v23 = vld [vmem:[%s9265_s0 + $0x34] sm:$0xf]  ;;  %v4840_v40 = vcombine.low %v159_v17, %v169_v24  ;;  %v9278_v12 = vshrl.u32 %v6031_v39, 16  ;;  %vm1505_vm8 = vcmask 1046532   ;;  %vm3036_vm10 = vcmask 1041408  }
  0x2c   :  { %v178_v56 = vrot.slane %v177_v29, 4  ;;  %v9283_v57 = vshll.u32 %v6019_v23, 16  ;;  %v9277_v3 = vshrl.u32 %v6019_v23, 16  ;;  %v188_v11 = vrot.slane %v187_v43, 4  ;;  %v6055_v29 = vld [vmem:[%s9265_s0 + $0x40] sm:$0xf]  ;;  %vm6667_vm9 = vmor %vm1504_vm7, %vm1505_vm8 }
  0x2d   :  { %v200_v17 = vrot.slane %v9284_v52, 5  ;;  %v221_v41 = vrot.slane %v9278_v12, 4  ;;  %vm3037_vm11 = vcmask 1045508   ;;  %vm4489_vm13 = vcmask 1041409  }
  0x2e   :  { %5315 = vmatmul.mubr.msk.bf16.vlgmr.msra.gmra.mxu1 %vm571_vm4, %v4839_v34  ;;  %v9282_v34 = vshll.u32 %v6026_v30, 16  ;;  %v183_v14 = vsel %vm5839_vm5, %v178_v56, %v182_v16  ;;  %v206_v18 = vrot.slane %v9283_v57, 5  ;;  %v210_v24 = vrot.slane %v9277_v3, 4  ;;  %v6063_v16 = vld [vmem:[%s9265_s0 + $0x44] sm:$0x3]  ;;  %vm7624_vm12 = vmor %vm3036_vm10, %vm3037_vm11 }
  0x2f   :  { %5318 = vmatprep.mubr.msk.bf16.mxu1 %vm571_vm4, %v4840_v40  ;;  %v193_v43 = vsel %vm5839_vm5, %v188_v11, %v192_v46  ;;  %9376 = vst [vmem:[#allocation13_spill] sm:$0xff] %v6063_v16  ;;  %v201_v50 = vor.u32 %v200_v17, %v197_v47  ;;  %v9281_v46 = vshll.u32 %v6055_v29, 16  ;;  %v9280_v11 = vshrl.u32 %v6055_v29, 16  ;;  %v6077_v47 = vld [vmem:[%s9265_s0 + $0x48] sm:$0xf] }
  0x30   :  { %v4841_v56 = vcombine.low %v183_v14, %v193_v43  ;;  %v211_v54 = vor.u32 %v210_v24, %v206_v18  ;;  %v216_v42 = vrot.slane %v9282_v34, 5  ;;  %v9287_v14 = vshll.u32 %v6063_v16, 16 }
  0x31   :  { %4862 = vmatmul.mubr.msk.bf16.gmra.mxu0 %vm571_vm4, %v4840_v40  ;;  %v9279_v40 = vshll.u32 %v6031_v39, 16  ;;  %v202_v38 = vrot.slane %v201_v50, 4  ;;  %v230_v24 = vrot.slane %v9281_v46, 5  ;;  %v234_v43 = vrot.slane %v9280_v11, 4  ;;  %v6089_v50 = vld [vmem:[%s9265_s0 + $0x4c] sm:$0xf] }
  0x32   :  { %682 = vmatprep.mubr.bf16.mxu0 %v9322_v0  ;;  %v212_v3 = vrot.slane %v211_v54, 4  ;;  %v6103_v11 = vld [vmem:[%s9265_s0 + $0x54] sm:$0xf]  ;;  %v240_v52 = vrot.slane %v9287_v14, 5  ;;  %vm4492_vm14 = vcmask 1042434   ;;  %vm4495_vm15 = vcmask 1043459  }
  0x33   :  { %v224_v17 = vrot.slane %v9279_v40, 5  ;;  %v207_v54 = vsel %vm5839_vm5, %v202_v38, %v206_v18  ;;  %v6098_v40 = vld [vmem:[%s9265_s0 + $0x50] sm:$0x3]  ;;  %v235_v57 = vor.u32 %v234_v43, %v230_v24  ;;  %v9289_v38 = vshrl.u32 %v6077_v47, 16 }
  0x34   :  { %v217_v12 = vsel %vm5839_vm5, %v212_v3, %v216_v42  ;;  %9377 = vst [vmem:[#allocation14_spill] sm:$0xff] %v6098_v40  ;;  %v9288_v42 = vshll.u32 %v6077_v47, 16  ;;  %v9290_v3 = vshll.u32 %v6089_v50, 16  ;;  %v9292_v18 = vshrl.u32 %v6089_v50, 16 }
  0x35   :  { %v4842_v46 = vcombine.low %v207_v54, %v217_v12  ;;  %v225_v34 = vor.u32 %v224_v17, %v221_v41  ;;  %v236_v4 = vrot.slane %v235_v57, 4  ;;  %v9295_v41 = vshll.u32 %v6098_v40, 16  ;;  %v5532_v57 = vld [vmem:[%s9266_s1 + $0x8] ss:$12 sps:$4 sm:$0xff]  }
  0x36   :  { %5319 = vmatmul.mubr.msk.bf16.gmra.mxu1 %vm571_vm4, %v4841_v56  ;;  %v9294_v12 = vshrl.u32 %v6103_v11, 16  ;;  %v245_v17 = vrot.slane %v9289_v38, 4  ;;  %v248_v43 = vrot.slane %v9288_v42, 5  ;;  %v254_v54 = vrot.slane %v9290_v3, 5  ;;  %v6134_v42 = vld [vmem:[%s9265_s0 + $0x58] sm:$0xf]  ;;  %5348 = vmatprep.subr.bf16.mxu0 %v5532_v57 }
  0x37   :  { %5322 = vmatprep.mubr.msk.bf16.mxu1 %vm571_vm4, %v4842_v46  ;;  %v226_v10 = vrot.slane %v225_v34, 4  ;;  %v241_v14 = vsel %vm5839_vm5, %v236_v4, %v240_v52  ;;  %v5533_v4 = vld [vmem:[%s9266_s1 + $0x18] ss:$12 sps:$4 sm:$0xff]   ;;  %v9298_v52 = vshll.u32 %v6103_v11, 16  ;;  %5349 = vmatpush3.bf16.msra.mxu0 %v5532_v57  ;;  %vm4498_vm0 = vcmask 1044484  }
  0x38   :  { %v249_v3 = vor.u32 %v248_v43, %v245_v17  ;;  %1768 = vmatprep.subr.bf16.mxu0 %v5547_v32  ;;  %vm4501_vm1 = vcmask 1045509   ;;  %vm4504_vm2 = vcmask 1046534   ;;  %vm4507_vm3 = vcmask 1047559  }
  0x39   :  { %4863 = vmatmul.mubr.msk.bf16.gmra.mxu0 %vm571_vm4, %v4841_v56  ;;  %v258_v56 = vrot.slane %v9292_v18, 4  ;;  %v231_v34 = vsel %vm5839_vm5, %v226_v10, %v230_v24  ;;  %v264_v18 = vrot.slane %v9295_v41, 5  ;;  %v269_v10 = vrot.slane %v9294_v12, 4  ;;  %v5535_v24 = vld [vmem:[%s9266_s1 + $0x1c] ss:$12 sps:$4 sm:$0xff]  }
  0x3a   :  { %692 = vmatprep.mubr.bf16.mxu0 %v9322_v0  ;;  %v6136_v38 = vcombine.low %v231_v34, %v241_v14  ;;  %v6154_v14 = vld [vmem:[%s9265_s0 + $0x60] sm:$0xf]  ;;  %v250_v17 = vrot.slane %v249_v3, 4  ;;  %v9302_v34 = vshrl.u32 %v6134_v42, 16  ;;  %v6166_v12 = vld [vmem:[%s9265_s0 + $0x64] sm:$0xf]  ;;  %1146 = vmatprep.subr.bf16.mxu1 %v5535_v24 }
  0x3b   :  { %v259_v5 = vor.u32 %v258_v56, %v254_v54  ;;  %v9308_v56 = vshll.u32 %v6134_v42, 16  ;;  %v272_v57 = vrot.slane %v9298_v52, 5  ;;  %v9303_v41 = vshll.u32 %v6143_v63, 16  ;;  %1147 = vmatpush1.bf16.msra.mxu1 %v5533_v4  ;;  %v5536_v24 = vld [vmem:[%s9266_s1] ss:$12 sps:$4 sm:$0xff]  }
  0x3c   :  { %v255_v3 = vsel %vm5839_vm5, %v250_v17, %v254_v54  ;;  %v282_v31 = vrot.slane %v9302_v34, 4  ;;  %v9304_v4 = vshrl.u32 %v6154_v14, 16  ;;  %v6218_v34 = vld [vmem:[%s9265_s0 + $0x6c] sm:$0xf] }
  0x3d   :  { %v260_v43 = vrot.slane %v259_v5, 4  ;;  %v5538_v5 = vld [vmem:[%s9266_s1 + $0x4] ss:$12 sps:$4 sm:$0xff]   ;;  %v278_v52 = vrot.slane %v9308_v56, 5  ;;  %v288_v17 = vrot.slane %v9303_v41, 5  ;;  %v9313_v56 = vshrl.u32 %v6218_v34, 16 }
  0x3e   :  { %5323 = vmatmul.mubr.msk.bf16.gmra.mxu1 %vm571_vm4, %v6136_v38  ;;  %1148 = vmatprep.subr.bf16.mxu1 %v5538_v5  ;;  %v9315_v21 = vshll.u32 %v6218_v34, 16 }
  0x3f   :  { %v265_v59 = vsel %vm5839_vm5, %v260_v43, %v264_v18  ;;  %v273_v18 = vor.u32 %v272_v57, %v269_v10  ;;  %v283_v54 = vor.u32 %v282_v31, %v278_v52  ;;  %v9305_v43 = vshll.u32 %v6154_v14, 16  ;;  %1149 = vmatpush1.bf16.msra.mxu1 %v5536_v24 }
  0x40   :  { %v6193_v28 = vcombine.low %v255_v3, %v265_v59  ;;  %v6204_v59 = vld [vmem:[%s9266_s1 + $0x80] ss:$12 sps:$4 sm:$0xff]   ;;  %v9306_v31 = vshll.u32 %v6166_v12, 16  ;;  %v9307_v10 = vshrl.u32 %v6166_v12, 16  ;;  %v9312_v57 = vshll.u32 %v6174_v62, 16 }
  0x41   :  { %4864 = vmatmul.mubr.msk.bf16.gmra.mxu0 %vm571_vm4, %v4842_v46  ;;  %v274_v46 = vrot.slane %v273_v18, 4  ;;  %v284_v5 = vrot.slane %v283_v54, 4  ;;  %v293_v3 = vrot.slane %v9304_v4, 4  ;;  %v296_v32 = vrot.slane %v9305_v43, 5  ;;  %v6229_v4 = vld [vmem:[%s9265_s0 + $0x70] sm:$0xf]  ;;  %5382 = vmatprep.subr.bf16.mxu1 %v6204_v59 }
  0x42   :  { %702 = vmatprep.mubr.bf16.mxu0 %v9322_v0  ;;  %5326 = vmatprep.mubr.msk.bf16.mxu1 %vm571_vm4, %v6193_v28  ;;  %v302_v41 = vrot.slane %v9306_v31, 5  ;;  %v306_v54 = vrot.slane %v9307_v10, 4  ;;  %v312_v10 = vrot.slane %v9312_v57, 5  ;;  %v9314_v2 = vshll.u32 %v6229_v4, 16 }
  0x43   :  { %v279_v18 = vsel %vm5839_vm5, %v274_v46, %v278_v52  ;;  %v289_v43 = vsel %vm5839_vm5, %v284_v5, %v288_v17  ;;  %v297_v24 = vor.u32 %v296_v32, %v293_v3  ;;  %v6237_v52 = vld [vmem:[%s9265_s0 + $0x74] sm:$0x3]  ;;  %v9316_v17 = vshrl.u32 %v6229_v4, 16  ;;  %v6250_v5 = vld [vmem:[%s9265_s0 + $0x78] sm:$0xf] }
  0x44   :  { %9380 = vst [vmem:[#allocation17_spill] sm:$0xff] %v6237_v52  ;;  %v6239_v46 = vcombine.low %v279_v18, %v289_v43  ;;  %v307_v31 = vor.u32 %v306_v54, %v302_v41  ;;  %v6255_v43 = vld [vmem:[%s9265_s0 + $0x7c] sm:$0xf]  ;;  %v317_v32 = vrot.slane %v9313_v56, 4  ;;  %v9320_v18 = vshll.u32 %v6237_v52, 16 }
  0x45   :  { %v298_v26 = vrot.slane %v297_v24, 4  ;;  %v320_v24 = vrot.slane %v9315_v21, 5  ;;  %v326_v57 = vrot.slane %v9314_v2, 5  ;;  %v6278_v56 = vld [vmem:[%s9265_s0 + $0x80] sm:$0x3]  ;;  %v9324_v8 = vshrl.u32 %v6250_v5, 16 }
  0x46   :  { %5327 = vmatmul.mubr.msk.bf16.gmra.mxu1 %vm571_vm4, %v6239_v46  ;;  %v308_v3 = vrot.slane %v307_v31, 4  ;;  %v330_v31 = vrot.slane %v9316_v17, 4  ;;  %9381 = vst [vmem:[#allocation18_spill] sm:$0xff] %v6278_v56  ;;  %v336_v17 = vrot.slane %v9320_v18, 5  ;;  %v9327_v44 = vshrl.u32 %v6255_v43, 16 }
  0x47   :  { %v303_v54 = vsel %vm5839_vm5, %v298_v26, %v302_v41  ;;  %v6283_v26 = vld [vmem:[%s9265_s0 + $0x84] sm:$0xf]  ;;  %v321_v2 = vor.u32 %v320_v24, %v317_v32  ;;  %v6299_v32 = vld [vmem:[%s9265_s0 + $0x88] sm:$0xf] }
  0x48   :  { %v331_v21 = vor.u32 %v330_v31, %v326_v57  ;;  %v341_v31 = vrot.slane %v9324_v8, 4  ;;  %v9386_v33 = vshrl.u32 %v6299_v32, 16 }
  0x49   :  { %4865 = vmatmul.mubr.msk.bf16.gmra.mxu0 %vm571_vm4, %v6136_v38  ;;  %v313_v38 = vsel %vm5839_vm5, %v308_v3, %v312_v10  ;;  %v9325_v10 = vshll.u32 %v6250_v5, 16  ;;  %v9326_v3 = vshll.u32 %v6255_v43, 16  ;;  %v322_v1 = vrot.slane %v321_v2, 4 }
  0x4a   :  { %712 = vmatprep.mubr.bf16.mxu0 %v9322_v0  ;;  %v6285_v41 = vcombine.low %v303_v54, %v313_v38  ;;  %v332_v61 = vrot.slane %v331_v21, 4  ;;  %v9328_v54 = vshll.u32 %v6278_v56, 16  ;;  %v354_v2 = vrot.slane %v9327_v44, 4  ;;  %v6317_v0 = vld [vmem:[%s9265_s0 + $0x8c] sm:$0x3] }
  0x4b   :  { %v344_v38 = vrot.slane %v9325_v10, 5  ;;  %v350_v18 = vrot.slane %v9326_v3, 5  ;;  %v327_v21 = vsel %vm5839_vm5, %v322_v1, %v326_v57  ;;  %9382 = vst [vmem:[#allocation19_spill] sm:$0xff] %v6317_v0  ;;  %v9383_v1 = vshrl.u32 %v6283_v26, 16 }
  0x4c   :  { %5330 = vmatprep.mubr.msk.bf16.mxu1 %vm571_vm4, %v6285_v41  ;;  %v337_v60 = vsel %vm5839_vm5, %v332_v61, %v336_v17  ;;  %v360_v3 = vrot.slane %v9328_v54, 5  ;;  %v9332_v61 = vshll.u32 %v6283_v26, 16  ;;  %v9384_v17 = vmov 0   ;;  %v6349_v54 = vld [vmem:[%s9265_s0 + $0x98] sm:$0x3] }
  0x4d   :  { %v6319_v8 = vcombine.low %v327_v21, %v337_v60  ;;  %v345_v10 = vor.u32 %v344_v38, %v341_v31  ;;  %v355_v24 = vor.u32 %v354_v2, %v350_v18  ;;  %v365_v57 = vrot.slane %v9383_v1, 4  ;;  %v6332_v60 = vld [vmem:[%s9265_s0 + $0x90] sm:$0xf]  ;;  %v6341_v21 = vld [vmem:[%s9265_s0 + $0x94] sm:$0xf]  ;;  %9385 = vst [vmem:[#allocation20_spill] sm:$0xff] %v6349_v54 }
  0x4e   :  { %v9337_v2 = vshll.u32 %v6299_v32, 16  ;;  %v368_v1 = vrot.slane %v9332_v61, 5  ;;  %v378_v25 = vrot.slane %v9386_v33, 4  ;;  %v6373_v33 = vld [vmem:[%s9265_s0 + $0xa0] sm:$0xf]  ;;  %v9388_v52 = vshrl.u32 %v6341_v21, 16 }
  0x4f   :  { %5331 = vmatmul.mubr.msk.bf16.gmra.mxu1 %vm571_vm4, %v6319_v8  ;;  %v346_v31 = vrot.slane %v345_v10, 4  ;;  %v356_v38 = vrot.slane %v355_v24, 4  ;;  %v9389_v62 = vshll.u32 %v6349_v54, 16  ;;  %v9358_v54 = vshrl.u32 %v6373_v33, 16 }
  0x50   :  { %v369_v44 = vor.u32 %v368_v1, %v365_v57  ;;  %v9347_v1 = vshll.u32 %v6341_v21, 16 }
  0x51   :  { %4866 = vmatmul.mubr.msk.bf16.gmra.mxu0 %vm571_vm4, %v6193_v28  ;;  %v351_v10 = vsel %vm5839_vm5, %v346_v31, %v350_v18  ;;  %v361_v24 = vsel %vm5839_vm5, %v356_v38, %v360_v3  ;;  %v374_v28 = vrot.slane %v9337_v2, 5  ;;  %v9387_v18 = vshll.u32 %v6317_v0, 16 }
  0x52   :  { %722 = vmatprep.mubr.bf16.mxu0 %v9384_v17  ;;  %v6359_v61 = vcombine.low %v351_v10, %v361_v24  ;;  %v9343_v3 = vshrl.u32 %v6332_v60, 16  ;;  %v9344_v38 = vshll.u32 %v6332_v60, 16  ;;  %v370_v57 = vrot.slane %v369_v44, 4  ;;  %v6383_v24 = vld [vmem:[%s9265_s0 + $0xa4] sm:$0x3] }
  0x53   :  { %v379_v56 = vor.u32 %v378_v25, %v374_v28  ;;  %v384_v31 = vrot.slane %v9387_v18, 5  ;;  %v9349_v44 = vshrl.u32 %v6364_v19, 16  ;;  %v398_v25 = vrot.slane %v9347_v1, 5 }
  0x54   :  { %5334 = vmatprep.mubr.msk.bf16.mxu1 %vm571_vm4, %v6359_v61  ;;  %v389_v2 = vrot.slane %v9343_v3, 4  ;;  %v392_v0 = vrot.slane %v9344_v38, 5  ;;  %v375_v10 = vsel %vm5839_vm5, %v370_v57, %v374_v28  ;;  %v408_v3 = vrot.slane %v9389_v62, 5  ;;  %v6409_v57 = vld [vmem:[%s9265_s0 + $0xa8] sm:$0xf] }
  0x55   :  { %v380_v18 = vrot.slane %v379_v56, 4  ;;  %v402_v56 = vrot.slane %v9388_v52, 4  ;;  %v413_v63 = vrot.slane %v9349_v44, 4  ;;  %v9352_v28 = vshll.u32 %v6364_v19, 16 }
  0x56   :  { %v9355_v62 = vshll.u32 %v6373_v33, 16  ;;  %v9362_v48 = vshll.u32 %v6409_v57, 16 }
  0x57   :  { %v385_v38 = vsel %vm5839_vm5, %v380_v18, %v384_v31  ;;  %v403_v1 = vor.u32 %v402_v56, %v398_v25  ;;  %v416_v31 = vrot.slane %v9352_v28, 5 }
  0x58   :  { %v4849_v52 = vcombine.low %v375_v10, %v385_v38  ;;  %v422_v38 = vrot.slane %v9355_v62, 5  ;;  %v426_v10 = vrot.slane %v9358_v54, 4  ;;  %v9361_v62 = vshrl.u32 %v6409_v57, 16 }
  0x59   :  { %4867 = vmatmul.mubr.msk.bf16.gmra.mxu0 %vm571_vm4, %v6239_v46  ;;  %v393_v46 = vor.u32 %v392_v0, %v389_v2  ;;  %v6416_v0 = vld [vmem:[%s9265_s0 + $0xac] sm:$0xf]  ;;  %v404_v44 = vrot.slane %v403_v1, 4  ;;  %v417_v40 = vor.u32 %v416_v31, %v413_v63  ;;  %v9390_v1 = vshll.u32 %v6383_v24, 16 }
  0x5a   :  { %732 = vmatprep.mubr.bf16.mxu0 %v9384_v17  ;;  %5335 = vmatmul.mubr.msk.bf16.gmra.mxu1 %vm571_vm4, %v4849_v52  ;;  %v427_v18 = vor.u32 %v426_v10, %v422_v38  ;;  %v9364_v63 = vshll.u32 %v6416_v0, 16 }
  0x5b   :  { %v394_v2 = vrot.slane %v393_v46, 4  ;;  %v6431_v46 = vld [vmem:[%s9265_s0 + $0xb0] sm:$0x3]  ;;  %v409_v28 = vsel %vm5839_vm5, %v404_v44, %v408_v3  ;;  %v432_v16 = vrot.slane %v9390_v1, 5  ;;  %v418_v54 = vrot.slane %v417_v40, 4 }
  0x5c   :  { %v9365_v3 = vshrl.u32 %v6416_v0, 16  ;;  %v9363_v44 = vshll.u32 %v6431_v46, 16 }
  0x5d   :  { %v399_v56 = vsel %vm5839_vm5, %v394_v2, %v398_v25  ;;  %v428_v25 = vrot.slane %v427_v18, 4  ;;  %v437_v2 = vrot.slane %v9361_v62, 4  ;;  %v423_v40 = vsel %vm5839_vm5, %v418_v54, %v422_v38 }
  0x5e   :  { %v4850_v30 = vcombine.low %v399_v56, %v409_v28  ;;  %v440_v28 = vrot.slane %v9362_v48, 5  ;;  %v450_v18 = vrot.slane %v9365_v3, 4  ;;  %v456_v10 = vrot.slane %v9363_v44, 5 }
  0x5f   :  { %v433_v31 = vsel %vm5839_vm5, %v428_v25, %v432_v16 }
  0x60   :  { %5338 = vmatprep.mubr.msk.bf16.mxu1 %vm571_vm4, %v4850_v30  ;;  %v4851_v56 = vcombine.low %v423_v40, %v433_v31  ;;  %v441_v1 = vor.u32 %v440_v28, %v437_v2  ;;  %v4898_v2 = vcombine.low %v6077_v47, %v6089_v50  ;;  %v4899_v40 = vcombine.low %v6103_v11, %v6134_v42  ;;  %v5567_v28 = vld [vmem:[%s9266_s1 + $0xac] ss:$12 sps:$4 sm:$0xff]  }
  0x61   :  { %4868 = vmatmul.mubr.msk.bf16.gmra.mxu0 %vm571_vm4, %v6285_v41  ;;  %v446_v41 = vrot.slane %v9364_v63, 5  ;;  %v9391_v31 = vshrl.u32 %v5892_v51, 16 }
  0x62   :  { %742 = vmatprep.mubr.bf16.mxu0 %v9384_v17  ;;  %5339 = vmatmul.mubr.msk.bf16.gmra.mxu1 %vm571_vm4, %v4851_v56  ;;  %v442_v54 = vrot.slane %v441_v1, 4  ;;  %v9393_v1 = vshll.u32 %v5902_v55, 16 }
  0x63   :  { %v451_v62 = vor.u32 %v450_v18, %v446_v41  ;;  %v2224_v18 = vrot.slane %v9391_v31, 5  ;;  %v4903_v31 = vcombine.low %v6283_v26, %v6299_v32 }
  0x64   :  { %v447_v48 = vsel %vm5839_vm5, %v442_v54, %v446_v41  ;;  %v4900_v41 = vcombine.low %v6154_v14, %v6166_v12  ;;  %v2229_v54 = vrot.slane %v9393_v1, 6  ;;  %v9401_v1 = vshrl.u32 %v5939_v13, 16 }
  0x65   :  { %v452_v38 = vrot.slane %v451_v62, 4  ;;  %v6523_v62 = vld [vmem:[%s9266_s1 + $0xb0] ss:$12 sps:$4 sm:$0xff]  }
  0x67   :  { %v457_v16 = vsel %vm5839_vm5, %v452_v38, %v456_v10  ;;  %v9392_v10 = vshll.u32 %v5892_v51, 16  ;;  %v9394_v38 = vsel %vm5851_vm6, %v5865_v36, %v5867_v37  ;;  %v4902_v36 = vcombine.low %v6250_v5, %v6255_v43 }
  0x68   :  { %v4852_v25 = vcombine.low %v447_v48, %v457_v16  ;;  %v4896_v48 = vcombine.low %v5994_v49, %v6019_v23  ;;  %v6559_v16 = vcombine.low %v9394_v38, %v5896_v53  ;;  %v2248_v38 = vshrl.u32 %v5944_v15, 16 }
  0x69   :  { %4869 = vmatmul.mubr.msk.bf16.gmra.mxu0 %vm571_vm4, %v6319_v8  ;;  %v4892_v8 = vcombine.low %v5818_v6, %v5823_v7  ;;  %v4894_v6 = vcombine.low %v5928_v9, %v5939_v13  ;;  %v4895_v7 = vcombine.low %v5965_v35, %v5978_v45 }
  0x6a   :  { %752 = vmatprep.mubr.bf16.mxu0 %v9384_v17  ;;  %5342 = vmatprep.mubr.msk.bf16.mxu1 %vm571_vm4, %v4852_v25 }
  0x6b   :  { %5343 = vmatmul.mubr.msk.bf16.gmra.mxu1 %vm571_vm4, %v5951_v22  ;;  %v4893_v22 = vcombine.low %v5892_v51, %v5902_v55  ;;  %v2233_v51 = vshrl.u32 %v5909_v58, 16 }
  0x6c   :  { %1166 = vmatprep.mubr.bf16.mxu1 %v9384_v17 }
  0x71   :  { %4870 = vmatmul.mubr.msk.bf16.gmra.mxu0 %vm571_vm4, %v6359_v61  ;;  %v5553_v61 = vld [vmem:[%s9266_s1 + $0x60] ss:$12 sps:$4 sm:$0xff]  }
  0x72   :  { %762 = vmatprep.mubr.bf16.mxu0 %v9384_v17 }
  0x73   :  { %4914 = vmatmul.mubr.msk.bf16.vlgmr.msra.gmra.mxu1 %vm571_vm4, %v4892_v8 }
  0x74   :  { %1176 = vmatprep.mubr.bf16.mxu1 %v9384_v17  ;;  %5383 = vmatpush3.bf16.msra.mxu1 %v6204_v59  ;;  %v5555_v59 = vld [vmem:[%s9266_s1 + $0x64] ss:$12 sps:$4 sm:$0xff]  }
  0x75   :  { %5384 = vmatprep.subr.bf16.mxu1 %v5563_v20 }
  0x78   :  { %5385 = vmatpush3.bf16.msra.mxu1 %v5563_v20  ;;  %v9396_v20 = vshrl.u32 %v5902_v55, 16 }
  0x79   :  { %4871 = vmatmul.mubr.msk.bf16.gmra.mxu0 %vm571_vm4, %v4849_v52  ;;  %v4897_v52 = vcombine.low %v6031_v39, %v6055_v29  ;;  %2598 = vmatprep.subr.bf16.mxu1 %v5567_v28 }
  0x7a   :  { %772 = vmatprep.mubr.bf16.mxu0 %v9384_v17 }
  0x7b   :  { %4915 = vmatmul.mubr.msk.bf16.gmra.mxu1 %vm571_vm4, %v4893_v22 }
  0x7c   :  { %1186 = vmatprep.mubr.bf16.mxu1 %v9384_v17 }
  0x81   :  { %4872 = vmatmul.mubr.msk.bf16.gmra.mxu0 %vm571_vm4, %v4850_v30  ;;  %v5545_v30 = vld [vmem:[%s9266_s1 + $0x78] ss:$12 sps:$4 sm:$0xff]  }
  0x82   :  { %782 = vmatprep.mubr.bf16.mxu0 %v9384_v17 }
  0x83   :  { %4916 = vmatmul.mubr.msk.bf16.gmra.mxu1 %vm571_vm4, %v4894_v6 }
  0x84   :  { %1196 = vmatprep.mubr.bf16.mxu1 %v9384_v17 }
  0x89   :  { %4873 = vmatmul.mubr.msk.bf16.gmra.mxu0 %vm571_vm4, %v4851_v56  ;;  %v2225_v56 = vrot.slane %v9392_v10, 6  ;;  %v9400_v10 = vshll.u32 %v5944_v15, 16  ;;  %v9403_v15 = vshll.u32 %v5965_v35, 16 }
  0x8a   :  { %792 = vmatprep.mubr.bf16.mxu0 %v9384_v17 }
  0x8b   :  { %4917 = vmatmul.mubr.msk.bf16.gmra.mxu1 %vm571_vm4, %v4895_v7  ;;  %v2226_v37 = vor.u32 %v2225_v56, %v2224_v18  ;;  %v2251_v56 = vrot.slane %v9400_v10, 6 }
  0x8c   :  { %1206 = vmatprep.mubr.bf16.mxu1 %v9384_v17 }
  0x8d   :  { %v2227_v55 = vrot.slane %v2226_v37, 4 }
  0x91   :  { %4874 = vmatmul.mubr.msk.bf16.gmra.mxu0 %vm571_vm4, %v4852_v25  ;;  %v9395_v25 = vshll.u32 %v5909_v58, 16 }
  0x92   :  { %5350 = vmatprep.mubr.msk.bf16.mxu0 %vm571_vm4, %v4892_v8 }
  0x93   :  { %4918 = vmatmul.mubr.msk.bf16.gmra.mxu1 %vm571_vm4, %v4896_v48  ;;  %v2236_v8 = vrot.slane %v9395_v25, 6 }
  0x94   :  { %1216 = vmatprep.mubr.bf16.mxu1 %v9384_v17 }
  0x99   :  { %5351 = vmatmul.mubr.msk.bf16.vlgmr.msra.gmra.mxu0 %vm571_vm4, %v4893_v22  ;;  %v2228_v22 = vrot.slane %v9396_v20, 5  ;;  %v2250_v20 = vrot.slane %v2248_v38, 5 }
  0x9a   :  { %1769 = vmatpush1.bf16.msra.mxu0 %v5545_v30  ;;  %5354 = vmatprep.mubr.msk.bf16.mxu0 %vm571_vm4, %v4894_v6  ;;  %v4901_v6 = vcombine.low %v6218_v34, %v6229_v4  ;;  %v9397_v30 = vshrl.u32 %v5928_v9, 16 }
  0x9b   :  { %1770 = vmatprep.subr.bf16.mxu0 %v5555_v59  ;;  %4919 = vmatmul.mubr.msk.bf16.gmra.mxu1 %vm571_vm4, %v4897_v52  ;;  %v2230_v53 = vor.u32 %v2229_v54, %v2228_v22  ;;  %v2243_v54 = vrot.slane %v9401_v1, 5  ;;  %v2252_v37 = vor.u32 %v2251_v56, %v2250_v20 }
  0x9c   :  { %1226 = vmatprep.mubr.bf16.mxu1 %v9384_v17  ;;  %v2239_v59 = vrot.slane %v9397_v30, 5  ;;  %v6614_v30 = vcombine.low %v6364_v19, %v6373_v33 }
  0x9d   :  { %v2231_v28 = vsel %vm5851_vm6, %v2227_v55, %v2230_v53 }
  0x9e   :  { %1771 = vmatpush1.bf16.msra.mxu0 %v5553_v61  ;;  %v9398_v61 = vshll.u32 %v5928_v9, 16  ;;  %v6592_v9 = vcombine.low %v6332_v60, %v6341_v21 }
  0x9f   :  { %5418 = vmatprep.subr.bf16.mxu0 %v6523_v62 }
  0xa1   :  { %5355 = vmatmul.mubr.msk.bf16.gmra.mxu0 %vm571_vm4, %v4895_v7  ;;  %v2235_v7 = vrot.slane %v2233_v51, 5 }
  0xa2   :  { %5358 = vmatprep.mubr.msk.bf16.mxu0 %vm571_vm4, %v4896_v48  ;;  %v2232_v48 = vrot.slane %v2230_v53, 4 }
  0xa3   :  { %4920 = vmatmul.mubr.msk.bf16.gmra.mxu1 %vm571_vm4, %v4898_v2  ;;  %v2237_v58 = vor.u32 %v2236_v8, %v2235_v7  ;;  %v2255_v7 = vrot.slane %v9403_v15, 6 }
  0xa4   :  { %1236 = vmatprep.mubr.bf16.mxu1 %v9384_v17 }
  0xa9   :  { %5359 = vmatmul.mubr.msk.bf16.gmra.mxu0 %vm571_vm4, %v4897_v52  ;;  %v2240_v52 = vrot.slane %v9398_v61, 6  ;;  %v9405_v61 = vld [vmem:[#allocation11_spill] sm:$0xff] }
  0xaa   :  { %5362 = vmatprep.mubr.msk.bf16.mxu0 %vm571_vm4, %v4898_v2  ;;  %v9399_v2 = vshll.u32 %v5939_v13, 16  ;;  %v9402_v13 = vshrl.u32 %v5965_v35, 16  ;;  %v6622_v35 = vcombine.low %v6409_v57, %v6416_v0 }
  0xab   :  { %4921 = vmatmul.mubr.msk.bf16.gmra.mxu1 %vm571_vm4, %v4899_v40  ;;  %v2241_v25 = vor.u32 %v2240_v52, %v2239_v59  ;;  %v9406_v52 = vshll.u32 %v9405_v61, 16 }
  0xac   :  { %1246 = vmatprep.mubr.bf16.mxu1 %v9384_v17  ;;  %v2254_v53 = vrot.slane %v9402_v13, 5 }
  0xad   :  { %v2242_v22 = vrot.slane %v2241_v25, 4 }
  0xae   :  { %v2256_v10 = vor.u32 %v2255_v7, %v2254_v53  ;;  %v9411_v7 = vld [vmem:[#allocation12_spill] sm:$0xff] }
  0xb0   :  { %v2257_v38 = vrot.slane %v2256_v10, 4 }
  0xb1   :  { %5363 = vmatmul.mubr.msk.bf16.gmra.mxu0 %vm571_vm4, %v4899_v40  ;;  %v2244_v40 = vrot.slane %v9399_v2, 6  ;;  %v2266_v2 = vrot.slane %v9406_v52, 6 }
  0xb2   :  { %5366 = vmatprep.mubr.msk.bf16.mxu0 %vm571_vm4, %v4900_v41 }
  0xb3   :  { %4922 = vmatmul.mubr.msk.bf16.gmra.mxu1 %vm571_vm4, %v4900_v41  ;;  %v2238_v41 = vsel %vm5851_vm6, %v2232_v48, %v2237_v58  ;;  %v2245_v8 = vor.u32 %v2244_v40, %v2243_v54  ;;  %v9407_v40 = vshrl.u32 %v5978_v45, 16 }
  0xb4   :  { %1256 = vmatprep.mubr.bf16.mxu1 %v9384_v17  ;;  %v6586_v18 = vcombine.low %v2231_v28, %v2238_v41  ;;  %v2263_v41 = vshrl.u32 %v9405_v61, 16  ;;  %v5606_v61 = vld [vmem:[%s9265_s0] sm:$0xf] }
  0xb5   :  { %v2247_v51 = vrot.slane %v2245_v8, 4  ;;  %v2246_v48 = vsel %vm5851_vm6, %v2242_v22, %v2245_v8  ;;  %v2258_v28 = vrot.slane %v9407_v40, 5  ;;  %v9409_v22 = vshll.u32 %v5994_v49, 16 }
  0xb6   :  { %v2265_v1 = vrot.slane %v2263_v41, 5  ;;  %v4946_v52 = vrot.slane %v5606_v61, 9  ;;  %v5607_v41 = vld [vmem:[%s9265_s0 + $0x8] sm:$0x3] }
  0xb7   :  { %v2253_v58 = vsel %vm5851_vm6, %v2247_v51, %v2252_v37  ;;  %v2270_v51 = vrot.slane %v9409_v22, 6  ;;  %v9410_v37 = vshll.u32 %v6019_v23, 16  ;;  %v1512_v10 = vrot.slane %v5607_v41, 5  ;;  %v9419_v41 = vld [vmem:[#allocation13_spill] sm:$0xff] }
  0xb8   :  { %v6616_v59 = vcombine.low %v2246_v48, %v2253_v58  ;;  %v2267_v8 = vor.u32 %v2266_v2, %v2265_v1  ;;  %v6651_v48 = vld [vmem:[%s9265_s0 + $0xb4] sm:$0xf] }
  0xb9   :  { %5367 = vmatmul.mubr.msk.bf16.gmra.mxu0 %vm571_vm4, %v4901_v6  ;;  %v2274_v13 = vrot.slane %v9410_v37, 6 }
  0xba   :  { %5370 = vmatprep.mubr.msk.bf16.mxu0 %vm571_vm4, %v4902_v36 }
  0xbb   :  { %4923 = vmatmul.mubr.msk.bf16.gmra.mxu1 %vm571_vm4, %v4901_v6  ;;  %v9404_v6 = vshll.u32 %v5978_v45, 16  ;;  %v5603_v45 = vld [vmem:[%s9265_s0 + $0x4] sm:$0xf] }
  0xbc   :  { %1266 = vmatprep.mubr.bf16.mxu1 %v9384_v17  ;;  %v1509_v54 = vrot.slane %v5603_v45, 5  ;;  %v2278_v45 = vshrl.u32 %v9411_v7, 16 }
  0xbd   :  { %v2259_v55 = vrot.slane %v9404_v6, 6  ;;  %v9412_v6 = vshll.u32 %v9411_v7, 16 }
  0xbf   :  { %v2260_v56 = vor.u32 %v2259_v55, %v2258_v28  ;;  %v2281_v55 = vrot.slane %v9412_v6, 6  ;;  %v1511_v28 = vrot.slane %v1509_v54, 4 }
  0xc1   :  { %5371 = vmatmul.mubr.msk.bf16.gmra.mxu0 %vm571_vm4, %v4903_v31  ;;  %v2262_v25 = vrot.slane %v2260_v56, 4  ;;  %v2261_v53 = vsel %vm5851_vm6, %v2257_v38, %v2260_v56  ;;  %v9415_v56 = vshrl.u32 %v6019_v23, 16  ;;  %v5608_v23 = vld [vmem:[%s9265_s0 + $0x10] sm:$0xf] }
  0xc2   :  { %5374 = vmatprep.mubr.msk.bf16.mxu0 %vm571_vm4, %v6592_v9  ;;  %v1516_v22 = vrot.slane %v5608_v23, 5 }
  0xc3   :  { %4924 = vmatmul.mubr.msk.bf16.gmra.mxu1 %vm571_vm4, %v4902_v36  ;;  %v9408_v36 = vshrl.u32 %v5994_v49, 16  ;;  %v2268_v15 = vsel %vm5851_vm6, %v2262_v25, %v2267_v8  ;;  %v6656_v49 = vld [vmem:[%s9265_s0 + $0xb8] sm:$0xf]  ;;  %v2273_v1 = vrot.slane %v9415_v56, 5  ;;  %v2280_v8 = vrot.slane %v2278_v45, 5 }
  0xc4   :  { %1276 = vmatprep.mubr.bf16.mxu1 %v9384_v17  ;;  %v6660_v58 = vcombine.low %v6651_v48, %v6656_v49  ;;  %v6665_v2 = vcombine.low %v2261_v53, %v2268_v15  ;;  %v9417_v15 = vshll.u32 %v6031_v39, 16  ;;  %v1518_v45 = vrot.slane %v1516_v22, 4 }
  0xc5   :  { %v2269_v20 = vrot.slane %v9408_v36, 5  ;;  %v2275_v25 = vor.u32 %v2274_v13, %v2273_v1  ;;  %v1510_v36 = vsel %vm6667_vm9, %v4946_v52, %v1509_v54  ;;  %v9416_v13 = vshrl.u32 %v6031_v39, 16 }
  0xc6   :  { %v2285_v7 = vrot.slane %v9417_v15, 6  ;;  %v9418_v54 = vshll.u32 %v6055_v29, 16 }
  0xc7   :  { %v2271_v38 = vor.u32 %v2270_v51, %v2269_v20  ;;  %v2277_v20 = vrot.slane %v2275_v25, 4  ;;  %v2282_v51 = vor.u32 %v2281_v55, %v2280_v8  ;;  %v2284_v53 = vrot.slane %v9416_v13, 5  ;;  %v5609_v55 = vld [vmem:[%s9265_s0 + $0xc] sm:$0xf]  ;;  %v5611_v13 = vld [vmem:[%s9265_s0 + $0x1c] sm:$0xf] }
  0xc8   :  { %v2289_v6 = vrot.slane %v9418_v54, 6  ;;  %v4947_v39 = vrot.slane %v5609_v55, 9  ;;  %v9421_v8 = vshrl.u32 %v6055_v29, 16 }
  0xc9   :  { %5375 = vmatmul.mubr.msk.bf16.gmra.mxu0 %vm571_vm4, %v6614_v30  ;;  %v2272_v37 = vrot.slane %v2271_v38, 4  ;;  %v2283_v52 = vsel %vm5851_vm6, %v2277_v20, %v2282_v51  ;;  %v5610_v38 = vld [vmem:[%s9265_s0 + $0x14] sm:$0x3] }
  0xca   :  { %5378 = vmatprep.mubr.msk.bf16.mxu0 %vm571_vm4, %v6622_v35  ;;  %v2288_v23 = vrot.slane %v9421_v8, 5  ;;  %v1517_v29 = vsel %vm6667_vm9, %v4947_v39, %v1516_v22  ;;  %v9423_v22 = vshll.u32 %v6077_v47, 16 }
  0xcb   :  { %4925 = vmatmul.mubr.msk.bf16.gmra.mxu1 %vm571_vm4, %v4903_v31  ;;  %v1513_v31 = vsel %vm6667_vm9, %v1511_v28, %v1512_v10  ;;  %v2276_v61 = vsel %vm5851_vm6, %v2272_v37, %v2275_v25  ;;  %v9420_v28 = vshll.u32 %v9419_v41, 16  ;;  %v1519_v25 = vrot.slane %v5610_v38, 5 }
  0xcc   :  { %1286 = vmatprep.mubr.bf16.mxu1 %v9384_v17  ;;  %v6701_v56 = vcombine.low %v1510_v36, %v1513_v31  ;;  %v6706_v1 = vcombine.low %v2276_v61, %v2283_v52  ;;  %v2293_v37 = vshrl.u32 %v9419_v41, 16  ;;  %v5564_v36 = vld [vmem:[%s9266_s1 + $0x98] ss:$12 sps:$4 sm:$0xff]   ;;  %v2286_v31 = vor.u32 %v2285_v7, %v2284_v53 }
  0xcd   :  { %v2296_v10 = vrot.slane %v9420_v28, 6  ;;  %v2290_v20 = vor.u32 %v2289_v6, %v2288_v23  ;;  %v1520_v53 = vsel %vm6667_vm9, %v1518_v45, %v1519_v25  ;;  %v9422_v6 = vshrl.u32 %v6077_v47, 16  ;;  %v5613_v25 = vld [vmem:[%s9265_s0 + $0x20] sm:$0x3] }
  0xce   :  { %v2295_v51 = vrot.slane %v2293_v37, 5  ;;  %v2287_v15 = vrot.slane %v2286_v31, 4  ;;  %v2300_v52 = vrot.slane %v9423_v22, 6  ;;  %v9424_v41 = vshll.u32 %v6089_v50, 16  ;;  %v9425_v37 = vld [vmem:[#allocation14_spill] sm:$0xff] }
  0xcf   :  { %v2292_v7 = vrot.slane %v2290_v20, 4  ;;  %v2299_v61 = vrot.slane %v9422_v6, 5  ;;  %v6746_v38 = vcombine.low %v1517_v29, %v1520_v53  ;;  %v1526_v8 = vrot.slane %v5613_v25, 5 }
  0xd0   :  { %v2297_v54 = vor.u32 %v2296_v10, %v2295_v51  ;;  %v2304_v28 = vrot.slane %v9424_v41, 6  ;;  %v2291_v39 = vsel %vm5851_vm6, %v2287_v15, %v2290_v20  ;;  %v9426_v31 = vshll.u32 %v9425_v37, 16 }
  0xd1   :  { %5379 = vmatmul.mubr.msk.bf16.gmra.mxu0 %vm571_vm4, %v6660_v58  ;;  %v9427_v20 = vshrl.u32 %v6089_v50, 16  ;;  %v2308_v15 = vshrl.u32 %v9425_v37, 16  ;;  %v2301_v53 = vor.u32 %v2300_v52, %v2299_v61 }
  0xd2   :  { %1788 = vmatprep.mubr.bf16.mxu0 %v9384_v17  ;;  %v2298_v10 = vsel %vm5851_vm6, %v2292_v7, %v2297_v54  ;;  %v2311_v51 = vrot.slane %v9426_v31, 6 }
  0xd3   :  { %4926 = vmatmul.mubr.msk.bf16.gmra.mxu1 %vm571_vm4, %v6592_v9  ;;  %v1523_v9 = vrot.slane %v5611_v13, 5  ;;  %v6751_v23 = vcombine.low %v2291_v39, %v2298_v10  ;;  %v2303_v13 = vrot.slane %v9427_v20, 5  ;;  %v2310_v54 = vrot.slane %v2308_v15, 5 }
  0xd4   :  { %1296 = vmatprep.mubr.bf16.mxu1 %v9384_v17  ;;  %v2302_v61 = vrot.slane %v2301_v53, 4  ;;  %v9429_v39 = vshll.u32 %v6103_v11, 16 }
  0xd5   :  { %v1525_v47 = vrot.slane %v1523_v9, 4  ;;  %v2305_v7 = vor.u32 %v2304_v28, %v2303_v13  ;;  %v2312_v41 = vor.u32 %v2311_v51, %v2310_v54  ;;  %v9428_v28 = vshrl.u32 %v6103_v11, 16  ;;  %v5615_v11 = vld [vmem:[%s9265_s0 + $0x24] sm:$0xf]  ;;  %v5616_v13 = vld [vmem:[%s9265_s0 + $0x2c] sm:$0x3] }
  0xd6   :  { %v2315_v10 = vrot.slane %v9429_v39, 6  ;;  %v4949_v51 = vrot.slane %v5615_v11, 9  ;;  %v1533_v15 = vrot.slane %v5616_v13, 5 }
  0xd7   :  { %v2307_v52 = vrot.slane %v2305_v7, 4  ;;  %v2306_v25 = vsel %vm5851_vm6, %v2302_v61, %v2305_v7  ;;  %v9432_v7 = vld [vmem:[#allocation15_spill] sm:$0xff] }
  0xd8   :  { %v9433_v54 = vshll.u32 %v9432_v7, 16 }
  0xd9   :  { %4992 = vmatmul.mubr.msk.bf16.vlgmr.msra.gmra.mxu0 %vm571_vm4, %v6701_v56 }
  0xda   :  { %5419 = vmatpush3.bf16.msra.mxu0 %v6523_v62  ;;  %1798 = vmatprep.mubr.bf16.mxu0 %v9384_v17  ;;  %v5612_v62 = vld [vmem:[%s9265_s0 + $0x18] sm:$0xf] }
  0xdb   :  { %5420 = vmatprep.subr.bf16.mxu0 %v5564_v36  ;;  %v4948_v55 = vrot.slane %v5612_v62, 9  ;;  %4927 = vmatmul.mubr.msk.bf16.gmra.mxu1 %vm571_vm4, %v6614_v30  ;;  %v5614_v30 = vld [vmem:[%s9265_s0 + $0x28] sm:$0xf]  ;;  %v2314_v62 = vrot.slane %v9428_v28, 5 }
  0xdc   :  { %1306 = vmatprep.mubr.bf16.mxu1 %v9384_v17  ;;  %v1530_v22 = vrot.slane %v5614_v30, 5  ;;  %v9434_v30 = vshrl.u32 %v6134_v42, 16 }
  0xdd   :  { %v1524_v50 = vsel %vm6667_vm9, %v4948_v55, %v1523_v9  ;;  %v9430_v9 = vshll.u32 %v6134_v42, 16  ;;  %v2316_v28 = vor.u32 %v2315_v10, %v2314_v62  ;;  %v5617_v62 = vld [vmem:[%s9265_s0 + $0x34] sm:$0xf] }
  0xde   :  { %5421 = vmatpush3.bf16.msra.mxu0 %v5564_v36  ;;  %v1527_v36 = vsel %vm6667_vm9, %v1525_v47, %v1526_v8  ;;  %v2313_v8 = vsel %vm5851_vm6, %v2307_v52, %v2312_v41  ;;  %v1532_v20 = vrot.slane %v1530_v22, 4  ;;  %v2318_v61 = vrot.slane %v9434_v30, 5 }
  0xdf   :  { %v6744_v45 = vpop.f32.mrf.mxu0  ;;  %v2319_v55 = vrot.slane %v9430_v9, 6  ;;  %v6781_v47 = vcombine.low %v1524_v50, %v1527_v36  ;;  %v6797_v53 = vcombine.low %v2306_v25, %v2313_v8  ;;  %v2326_v50 = vrot.slane %v9433_v54, 6  ;;  %v5573_v36 = vld [vmem:[%s9266_s1 + $0xdc] ss:$12 sps:$4 sm:$0xff]  }
  0xe0   :  { %v2323_v52 = vshrl.u32 %v9432_v7, 16  ;;  %3300 = vmatprep.subr.bf16.mxu0 %v5573_v36  ;;  %v1531_v42 = vsel %vm6667_vm9, %v4949_v51, %v1530_v22  ;;  %v1537_v10 = vrot.slane %v5617_v62, 5  ;;  %v9437_v7 = vshrl.u32 %v6154_v14, 16 }
  0xe1   :  { %v6760_v29 = vpop.f32.mrf.mxu0  ;;  %4993 = vmatmul.mubr.msk.bf16.gmra.mxu0 %vm571_vm4, %v6746_v38  ;;  %v2320_v39 = vor.u32 %v2319_v55, %v2318_v61  ;;  %v2317_v55 = vrot.slane %v2316_v28, 4  ;;  %v9439_v22 = vshll.u32 %v6154_v14, 16  ;;  %v5618_v14 = vld [vmem:[%s9265_s0 + $0x30] sm:$0xf] }
  0xe2   :  { %1808 = vmatprep.mubr.bf16.mxu0 %v9384_v17  ;;  %v2325_v9 = vrot.slane %v2323_v52, 5  ;;  %v2329_v54 = vrot.slane %v9437_v7, 5 }
  0xe3   :  { %v6765_v6 = vpop.f32.mrf.mxu0  ;;  %4928 = vmatmul.mubr.msk.bf16.gmra.mxu1 %vm571_vm4, %v6622_v35  ;;  %v1534_v35 = vsel %vm6667_vm9, %v1532_v20, %v1533_v15  ;;  %v2322_v11 = vrot.slane %v2320_v39, 4  ;;  %v2330_v51 = vrot.slane %v9439_v22, 6  ;;  %v9440_v20 = vshll.u32 %v6166_v12, 16 }
  0xe4   :  { %1316 = vmatprep.mubr.bf16.mxu1 %v9384_v17  ;;  %v2327_v13 = vor.u32 %v2326_v50, %v2325_v9  ;;  %v2321_v61 = vsel %vm5851_vm6, %v2317_v55, %v2320_v39  ;;  %v9441_v50 = vld [vmem:[#allocation16_spill] sm:$0xff]  ;;  %v6846_v44 = vcombine.low %v1531_v42, %v1534_v35  ;;  %v4950_v22 = vrot.slane %v5618_v14, 9  ;;  %v5619_v55 = vld [vmem:[%s9265_s0 + $0x38] sm:$0x3] }
  0xe5   :  { %v6789_v31 = vpop.f32.mrf.mxu0  ;;  %v2334_v15 = vrot.slane %v9440_v20, 6  ;;  %v9442_v28 = vshll.u32 %v9441_v50, 16  ;;  %v1539_v39 = vrot.slane %v1537_v10, 4  ;;  %v2338_v63 = vshrl.u32 %v9441_v50, 16 }
  0xe6   :  { %v6787_v37 = vpop.f32.mrf.mxu1  ;;  %v2328_v52 = vsel %vm5851_vm6, %v2322_v11, %v2327_v13  ;;  %v1540_v11 = vrot.slane %v5619_v55, 5  ;;  %v9444_v13 = vshrl.u32 %v6166_v12, 16  ;;  %v1538_v12 = vsel %vm6667_vm9, %v4950_v22, %v1537_v10 }
  0xe7   :  { %9431 = vst [vmem:[#allocation11_spill] sm:$0xff] %v6787_v37  ;;  %v2341_v9 = vrot.slane %v9442_v28, 6  ;;  %v6851_v20 = vcombine.low %v2321_v61, %v2328_v52  ;;  %v2331_v61 = vor.u32 %v2330_v51, %v2329_v54  ;;  %v2340_v14 = vrot.slane %v2338_v63, 5 }
  0xe8   :  { %v6809_v41 = vpop.f32.mrf.mxu1  ;;  %v2333_v28 = vrot.slane %v9444_v13, 5  ;;  %v9447_v63 = vshrl.u32 %v6218_v34, 16  ;;  %v9450_v10 = vshll.u32 %v6229_v4, 16 }
  0xe9   :  { %9435 = vst [vmem:[#allocation12_spill] sm:$0xff] %v6809_v41  ;;  %v6814_v8 = vpop.f32.mrf.mxu0  ;;  %4994 = vmatmul.mubr.msk.bf16.gmra.mxu0 %vm571_vm4, %v6781_v47  ;;  %v2332_v50 = vrot.slane %v2331_v61, 4  ;;  %v2342_v54 = vor.u32 %v2341_v9, %v2340_v14  ;;  %v5565_v9 = vld [vmem:[%s9266_s1 + $0xa8] ss:$12 sps:$4 sm:$0xff]  }
  0xea   :  { %v6812_v25 = vpop.f32.mrf.mxu1  ;;  %1818 = vmatprep.mubr.bf16.mxu0 %v9384_v17  ;;  %v2335_v52 = vor.u32 %v2334_v15, %v2333_v28  ;;  %v2344_v51 = vrot.slane %v9447_v63, 5  ;;  %v9448_v15 = vshll.u32 %v6218_v34, 16  ;;  %v2349_v22 = vrot.slane %v9450_v10, 6  ;;  %v5570_v10 = vld [vmem:[%s9266_s1 + $0x94] ss:$12 sps:$4 sm:$0xff]  }
  0xeb   :  { %9436 = vst [vmem:[#allocation13_spill] sm:$0xff] %v6812_v25  ;;  %v6830_v30 = vpop.f32.mrf.mxu0  ;;  %4929 = vmatmul.mubr.msk.bf16.gmra.mxu1 %vm571_vm4, %v6660_v58  ;;  %v1541_v58 = vsel %vm6667_vm9, %v1539_v39, %v1540_v11  ;;  %v5620_v39 = vld [vmem:[%s9265_s0 + $0x40] sm:$0xf]  ;;  %v9452_v25 = vld [vmem:[#allocation17_spill] sm:$0xff] }
  0xec   :  { %v6828_v36 = vpop.f32.mrf.mxu1  ;;  %5386 = vmatprep.mubr.msk.bf16.mxu1 %vm571_vm4, %v6701_v56  ;;  %v2337_v56 = vrot.slane %v2335_v52, 4  ;;  %v2345_v13 = vrot.slane %v9448_v15, 6  ;;  %v1544_v11 = vrot.slane %v5620_v39, 5  ;;  %v2336_v34 = vsel %vm5851_vm6, %v2332_v50, %v2335_v52 }
  0xed   :  { %9438 = vst [vmem:[#allocation14_spill] sm:$0xff] %v6828_v36  ;;  %v6844_v7 = vpop.f32.mrf.mxu0  ;;  %v4974_v15 = vcombine.low %v1538_v12, %v1541_v58  ;;  %v9453_v41 = vshll.u32 %v9452_v25, 16  ;;  %v2353_v50 = vshrl.u32 %v9452_v25, 16  ;;  %v5621_v58 = vld [vmem:[%s9265_s0 + $0x3c] sm:$0xf] }
  0xee   :  { %v6842_v62 = vpop.f32.mrf.mxu1  ;;  %v2343_v61 = vsel %vm5851_vm6, %v2337_v56, %v2342_v54  ;;  %v4951_v54 = vrot.slane %v5621_v58, 9  ;;  %v1546_v25 = vrot.slane %v1544_v11, 4 }
  0xef   :  { %9443 = vst [vmem:[#allocation15_spill] sm:$0xff] %v6842_v62  ;;  %v6863_v35 = vpop.f32.mrf.mxu0  ;;  %v6905_v39 = vcombine.low %v2336_v34, %v2343_v61  ;;  %v2356_v37 = vrot.slane %v9453_v41, 6  ;;  %v5622_v41 = vld [vmem:[%s9265_s0 + $0x44] sm:$0x3]  ;;  %v2355_v61 = vrot.slane %v2353_v50, 5  ;;  %v9460_v50 = vshll.u32 %v6255_v43, 16 }
  0xf0   :  { %v6861_v42 = vpop.f32.mrf.mxu1 }
  0xf1   :  { %9445 = vst [vmem:[#allocation16_spill] sm:$0xff] %v6861_v42  ;;  %v6869_v55 = vpop.f32.mrf.mxu0  ;;  %4995 = vmatmul.mubr.msk.bf16.gmra.mxu0 %vm571_vm4, %v6846_v44 }
  0xf2   :  { %v6867_v3 = vpop.f32.mrf.mxu1  ;;  %1828 = vmatprep.mubr.bf16.mxu0 %v9384_v17 }
  0xf3   :  { %9446 = vst [vmem:[#allocation21_spill] sm:$0xff] %v6867_v3  ;;  %v6884_v36 = vpop.f32.mrf.mxu0  ;;  %5387 = vmatmul.mubr.msk.bf16.vlgmr.msra.gmra.mxu1 %vm571_vm4, %v6746_v38  ;;  %v5568_v38 = vld [vmem:[%s9266_s1 + $0x90] ss:$12 sps:$4 sm:$0xff]   ;;  %v2357_v3 = vor.u32 %v2356_v37, %v2355_v61 }
  0xf4   :  { %v6882_v28 = vpop.f32.mrf.mxu1  ;;  %5390 = vmatprep.mubr.msk.bf16.mxu1 %vm571_vm4, %v6781_v47  ;;  %2599 = vmatpush1.bf16.msra.mxu1 %v5565_v9 }
  0xf5   :  { %9449 = vst [vmem:[#allocation22_spill] sm:$0xff] %v6882_v28  ;;  %v6900_v63 = vpop.f32.mrf.mxu0  ;;  %v9454_v28 = vshrl.u32 %v6229_v4, 16  ;;  %v1547_v4 = vrot.slane %v5622_v41, 5  ;;  %v5623_v41 = vld [vmem:[%s9265_s0 + $0x4c] sm:$0xf]  ;;  %2600 = vmatprep.subr.bf16.mxu1 %v5570_v10  ;;  %v1545_v10 = vsel %vm6667_vm9, %v4951_v54, %v1544_v11 }
  0xf6   :  { %v6898_v14 = vpop.f32.mrf.mxu1  ;;  %v1551_v47 = vrot.slane %v5623_v41, 5  ;;  %v5624_v41 = vld [vmem:[%s9265_s0 + $0x48] sm:$0xf]  ;;  %v5625_v11 = vld [vmem:[%s9265_s0 + $0x50] sm:$0x3] }
  0xf7   :  { %9451 = vst [vmem:[#allocation23_spill] sm:$0xff] %v6898_v14  ;;  %v2348_v52 = vrot.slane %v9454_v28, 5  ;;  %v6916_v12 = vpop.f32.mrf.mxu0  ;;  %v2346_v28 = vor.u32 %v2345_v13, %v2344_v51  ;;  %v9458_v51 = vshrl.u32 %v6250_v5, 16  ;;  %v1554_v54 = vrot.slane %v5625_v11, 5 }
  0xf8   :  { %v6914_v56 = vpop.f32.mrf.mxu1  ;;  %2601 = vmatpush1.bf16.msra.mxu1 %v5568_v38 }
  0xf9   :  { %9455 = vst [vmem:[#allocation17_spill] sm:$0xff] %v6914_v56  ;;  %v2350_v34 = vor.u32 %v2349_v22, %v2348_v52  ;;  %v6931_v58 = vpop.f32.mrf.mxu0  ;;  %4996 = vmatmul.mubr.msk.bf16.gmra.mxu0 %vm571_vm4, %v4974_v15  ;;  %v2347_v9 = vrot.slane %v2346_v28, 4  ;;  %v2359_v13 = vrot.slane %v9458_v51, 5  ;;  %v9459_v22 = vshll.u32 %v6250_v5, 16 }
  0xfa   :  { %v6929_v56 = vpop.f32.mrf.mxu1  ;;  %9457 = vst [vmem:[#allocation25_spill] sm:$0xff] %v6931_v58  ;;  %1838 = vmatprep.mubr.bf16.mxu0 %v9384_v17  ;;  %v1548_v28 = vsel %vm6667_vm9, %v1546_v25, %v1547_v4  ;;  %v4952_v51 = vrot.slane %v5624_v41, 9  ;;  %v9464_v25 = vld [vmem:[#allocation18_spill] sm:$0xff] }
  0xfb   :  { %9456 = vst [vmem:[#allocation24_spill] sm:$0xff] %v6929_v56  ;;  %v2352_v14 = vrot.slane %v2350_v34, 4  ;;  %v2360_v52 = vrot.slane %v9459_v22, 6  ;;  %v2364_v56 = vrot.slane %v9460_v50, 6  ;;  %v6946_v62 = vpop.f32.mrf.mxu0  ;;  %v2351_v37 = vsel %vm5851_vm6, %v2347_v9, %v2350_v34  ;;  %5391 = vmatmul.mubr.msk.bf16.gmra.mxu1 %vm571_vm4, %v6846_v44 }
  0xfc   :  { %v6944_v42 = vpop.f32.mrf.mxu1  ;;  %9462 = vst [vmem:[#allocation27_spill] sm:$0xff] %v6946_v62  ;;  %v1553_v22 = vrot.slane %v1551_v47, 4  ;;  %v9465_v38 = vshll.u32 %v9464_v25, 16  ;;  %v2368_v50 = vshrl.u32 %v9464_v25, 16  ;;  %v4975_v41 = vcombine.low %v1545_v10, %v1548_v28  ;;  %5394 = vmatprep.mubr.msk.bf16.mxu1 %vm571_vm4, %v4974_v15  ;;  %v5627_v28 = vld [vmem:[%s9265_s0 + $0x64] sm:$0xf] }
  0xfd   :  { %9461 = vst [vmem:[#allocation26_spill] sm:$0xff] %v6944_v42  ;;  %v2358_v5 = vsel %vm5851_vm6, %v2352_v14, %v2357_v3  ;;  %v6956_v61 = vpop.f32.mrf.mxu0  ;;  %v9467_v3 = vshrl.u32 %v6255_v43, 16  ;;  %v1552_v25 = vsel %vm6667_vm9, %v4952_v51, %v1551_v47  ;;  %v1565_v15 = vrot.slane %v5627_v28, 5  ;;  %v5629_v28 = vld [vmem:[%s9265_s0 + $0x5c] sm:$0x3] }
  0xfe   :  { %9463 = vst [vmem:[#allocation28_spill] sm:$0xff] %v6956_v61  ;;  %v6964_v4 = vcombine.low %v2351_v37, %v2358_v5  ;;  %v2371_v34 = vrot.slane %v9465_v38, 6  ;;  %v6968_v9 = vpop.f32.mrf.mxu1  ;;  %v5626_v37 = vld [vmem:[%s9265_s0 + $0x58] sm:$0xf]  ;;  %v2361_v38 = vor.u32 %v2360_v52, %v2359_v13  ;;  %v1555_v44 = vsel %vm6667_vm9, %v1553_v22, %v1554_v54 }
  0xff   :  { %9466 = vst [vmem:[#allocation18_spill] sm:$0xff] %v6968_v9  ;;  %v2363_v14 = vrot.slane %v9467_v3, 5  ;;  %v6975_v42 = vpop.f32.mrf.mxu0  ;;  %v1558_v5 = vrot.slane %v5626_v37, 5  ;;  %v2370_v3 = vrot.slane %v2368_v50, 5  ;;  %v9471_v37 = vshrl.u32 %v6283_v26, 16 }
 0x100   :  { %9468 = vst [vmem:[#allocation29_spill] sm:$0xff] %v6975_v42  ;;  %v6981_v11 = vpop.f32.mrf.mxu1  ;;  %v2362_v47 = vrot.slane %v2361_v38, 4  ;;  %v9473_v22 = vshll.u32 %v6283_v26, 16  ;;  %v4976_v9 = vcombine.low %v1552_v25, %v1555_v44  ;;  %v5631_v25 = vld [vmem:[%s9265_s0 + $0x68] sm:$0x3] }
 0x101   :  { %9469 = vst [vmem:[#allocation30_spill] sm:$0xff] %v6981_v11  ;;  %v2365_v43 = vor.u32 %v2364_v56, %v2363_v14  ;;  %v6987_v10 = vpop.f32.mrf.mxu0  ;;  %4997 = vmatmul.mubr.msk.bf16.gmra.mxu0 %vm571_vm4, %v4975_v41  ;;  %v2374_v13 = vrot.slane %v9471_v37, 5  ;;  %v2372_v51 = vor.u32 %v2371_v34, %v2370_v3  ;;  %v5628_v14 = vld [vmem:[%s9265_s0 + $0x54] sm:$0xf]  ;;  %v1560_v11 = vrot.slane %v1558_v5, 4 }
 0x102   :  { %9470 = vst [vmem:[#allocation31_spill] sm:$0xff] %v6987_v10  ;;  %v6995_v56 = vpop.f32.mrf.mxu1  ;;  %1848 = vmatprep.mubr.bf16.mxu0 %v9384_v17  ;;  %v2375_v54 = vrot.slane %v9473_v22, 6  ;;  %v4953_v50 = vrot.slane %v5628_v14, 9  ;;  %v1561_v37 = vrot.slane %v5629_v28, 5  ;;  %v5630_v34 = vld [vmem:[%s9265_s0 + $0x60] sm:$0xf] }
 0x103   :  { %9472 = vst [vmem:[#allocation32_spill] sm:$0xff] %v6995_v56  ;;  %v2367_v52 = vrot.slane %v2365_v43, 4  ;;  %v7006_v56 = vpop.f32.mrf.mxu0  ;;  %v4954_v26 = vrot.slane %v5630_v34, 9  ;;  %v2366_v38 = vsel %vm5851_vm6, %v2362_v47, %v2365_v43  ;;  %v9475_v22 = vshll.u32 %v6299_v32, 16  ;;  %v7029_v43 = vld [vmem:[%s9266_s1 + $0xe0] ss:$12 sps:$4 sm:$0xff]   ;;  %5395 = vmatmul.mubr.msk.bf16.gmra.mxu1 %vm571_vm4, %v4975_v41 }
 0x104   :  { %9474 = vst [vmem:[#allocation33_spill] sm:$0xff] %v7006_v56  ;;  %v7017_v10 = vpop.f32.mrf.mxu1  ;;  %v1567_v56 = vrot.slane %v1565_v15, 4  ;;  %v1568_v44 = vrot.slane %v5631_v25, 5  ;;  %v9478_v47 = vld [vmem:[#allocation19_spill] sm:$0xff]  ;;  %5398 = vmatprep.mubr.msk.bf16.mxu1 %vm571_vm4, %v4976_v9  ;;  %v1562_v41 = vsel %vm6667_vm9, %v1560_v11, %v1561_v37  ;;  %5454 = vmatprep.subr.bf16.mxu1 %v7029_v43  ;;  %v5634_v11 = vld [vmem:[%s9265_s0 + $0x7c] sm:$0xf] }
 0x105   :  { %v2373_v3 = vsel %vm5851_vm6, %v2367_v52, %v2372_v51  ;;  %v2379_v14 = vrot.slane %v9475_v22, 6  ;;  %9476 = vst [vmem:[#allocation34_spill] sm:$0xff] %v7017_v10  ;;  %v7019_v28 = vpop.f32.mrf.mxu0  ;;  %v9479_v52 = vshll.u32 %v9478_v47, 16  ;;  %v1559_v22 = vsel %vm6667_vm9, %v4953_v50, %v1558_v5 }
 0x106   :  { %9477 = vst [vmem:[#allocation35_spill] sm:$0xff] %v7019_v28  ;;  %v7024_v34 = vcombine.low %v2366_v38, %v2373_v3  ;;  %v9481_v28 = vshrl.u32 %v6299_v32, 16  ;;  %v7043_v38 = vld [vmem:[%s9265_s0 + $0x8c] sm:$0x3]  ;;  %v1566_v5 = vsel %vm6667_vm9, %v4954_v26, %v1565_v15  ;;  %v5633_v32 = vld [vmem:[%s9265_s0 + $0x70] sm:$0xf]  ;;  %v7055_v47 = vpop.f32.mrf.mxu1 }
 0x107   :  { %v2386_v51 = vrot.slane %v9479_v52, 6  ;;  %v7036_v10 = vpop.f32.mrf.mxu0  ;;  %v2383_v3 = vshrl.u32 %v7043_v38, 16  ;;  %v1572_v50 = vrot.slane %v5633_v32, 5  ;;  %9482 = vst [vmem:[#allocation36_spill] sm:$0xff] %v7055_v47  ;;  %v1569_v52 = vsel %vm6667_vm9, %v1567_v56, %v1568_v44 }
 0x108   :  { %9480 = vst [vmem:[#allocation19_spill] sm:$0xff] %v7036_v10  ;;  %v2378_v25 = vrot.slane %v9481_v28, 5  ;;  %v2376_v28 = vor.u32 %v2375_v54, %v2374_v13  ;;  %v1579_v15 = vrot.slane %v5634_v11, 5  ;;  %v9484_v32 = vshrl.u32 %v6364_v19, 16 }
 0x109   :  { %v7059_v10 = vpop.f32.mrf.mxu0  ;;  %4998 = vmatmul.mubr.msk.bf16.gmra.mxu0 %vm571_vm4, %v4976_v9  ;;  %v2385_v26 = vrot.slane %v2383_v3, 5  ;;  %v9485_v13 = vshll.u32 %v6364_v19, 16  ;;  %v9486_v47 = vshll.u32 %v6373_v33, 16  ;;  %v4977_v9 = vcombine.low %v1559_v22, %v1562_v41 }
 0x10a   :  { %9483 = vst [vmem:[#allocation37_spill] sm:$0xff] %v7059_v10  ;;  %v2380_v37 = vor.u32 %v2379_v14, %v2378_v25  ;;  %v2404_v42 = vrot.slane %v9484_v32, 5  ;;  %1858 = vmatprep.mubr.bf16.mxu0 %v9384_v17  ;;  %v2377_v44 = vrot.slane %v2376_v28, 4  ;;  %v7072_v10 = vpop.f32.mrf.mxu1  ;;  %v5635_v14 = vld [vmem:[%s9265_s0 + $0x6c] sm:$0xf]  ;;  %v7079_v19 = vcombine.low %v1566_v5, %v1569_v52 }
 0x10b   :  { %v2405_v54 = vrot.slane %v9485_v13, 6  ;;  %v2409_v56 = vrot.slane %v9486_v47, 6  ;;  %9487 = vst [vmem:[#allocation38_spill] sm:$0xff] %v7072_v10  ;;  %v4955_v25 = vrot.slane %v5635_v14, 9  ;;  %v7077_v3 = vpop.f32.mrf.mxu0  ;;  %v2387_v32 = vor.u32 %v2386_v51, %v2385_v26  ;;  %v5636_v47 = vld [vmem:[%s9265_s0 + $0x74] sm:$0x3]  ;;  %5399 = vmatmul.mubr.msk.bf16.gmra.mxu1 %vm571_vm4, %v4977_v9 }
 0x10c   :  { %9488 = vst [vmem:[#allocation39_spill] sm:$0xff] %v7077_v3  ;;  %v2382_v11 = vrot.slane %v2380_v37, 4  ;;  %v1574_v13 = vrot.slane %v1572_v50, 4  ;;  %v1575_v28 = vrot.slane %v5636_v47, 5  ;;  %v2381_v22 = vsel %vm5851_vm6, %v2377_v44, %v2380_v37  ;;  %v7086_v41 = vpop.f32.mrf.mxu1  ;;  %v5637_v14 = vld [vmem:[%s9265_s0 + $0x78] sm:$0xf]  ;;  %5402 = vmatprep.mubr.msk.bf16.mxu1 %vm571_vm4, %v7079_v19 }
 0x10d   :  { %9489 = vst [vmem:[#allocation40_spill] sm:$0xff] %v7086_v41  ;;  %v7088_v10 = vpop.f32.mrf.mxu0  ;;  %v4956_v51 = vrot.slane %v5637_v14, 9  ;;  %v1581_v5 = vrot.slane %v1579_v15, 4  ;;  %v5638_v52 = vld [vmem:[%s9265_s0 + $0x80] sm:$0x3]  ;;  %v9491_v37 = vshrl.u32 %v6373_v33, 16  ;;  %v1573_v33 = vsel %vm6667_vm9, %v4955_v25, %v1572_v50 }
 0x10e   :  { %9490 = vst [vmem:[#allocation41_spill] sm:$0xff] %v7088_v10  ;;  %v1582_v26 = vrot.slane %v5638_v52, 5  ;;  %v2388_v47 = vsel %vm5851_vm6, %v2382_v11, %v2387_v32  ;;  %v9492_v41 = vshll.u32 %v6383_v24, 16  ;;  %v7105_v14 = vpop.f32.mrf.mxu1  ;;  %v5639_v52 = vld [vmem:[%s9265_s0 + $0x88] sm:$0xf]  ;;  %v2413_v11 = vshrl.u32 %v6383_v24, 16 }
 0x10f   :  { %v7098_v3 = vcombine.low %v2381_v22, %v2388_v47  ;;  %v2408_v44 = vrot.slane %v9491_v37, 5  ;;  %9493 = vst [vmem:[#allocation42_spill] sm:$0xff] %v7105_v14  ;;  %v7107_v61 = vpop.f32.mrf.mxu0  ;;  %v1586_v62 = vrot.slane %v5639_v52, 5  ;;  %v1576_v32 = vsel %vm6667_vm9, %v1574_v13, %v1575_v28  ;;  %v5640_v24 = vld [vmem:[%s9265_s0 + $0x94] sm:$0xf] }
 0x110   :  { %v2416_v10 = vrot.slane %v9492_v41, 6  ;;  %9494 = vst [vmem:[#allocation43_spill] sm:$0xff] %v7107_v61  ;;  %v2406_v22 = vor.u32 %v2405_v54, %v2404_v42  ;;  %v1580_v47 = vsel %vm6667_vm9, %v4956_v51, %v1579_v15  ;;  %v1583_v37 = vsel %vm6667_vm9, %v1581_v5, %v1582_v26  ;;  %v9496_v14 = vld [vmem:[#allocation8_spill] sm:$0xff]  ;;  %v7134_v51 = vpop.f32.mrf.mxu1 }
 0x111   :  { %v2410_v41 = vor.u32 %v2409_v56, %v2408_v44  ;;  %v7123_v52 = vpop.f32.mrf.mxu0  ;;  %4999 = vmatmul.mubr.msk.bf16.gmra.mxu0 %vm571_vm4, %v4977_v9  ;;  %v1593_v50 = vrot.slane %v5640_v24, 5  ;;  %v2415_v25 = vrot.slane %v2413_v11, 5  ;;  %v9497_v13 = vshrl.u32 %v9496_v14, 16  ;;  %9499 = vst [vmem:[#allocation8_spill] sm:$0xff] %v7134_v51  ;;  %v5641_v9 = vld [vmem:[%s9265_s0 + $0x84] sm:$0xf] }
 0x112   :  { %9495 = vst [vmem:[#allocation44_spill] sm:$0xff] %v7123_v52  ;;  %v9498_v54 = vshll.u32 %v9496_v14, 16  ;;  %1868 = vmatprep.mubr.bf16.mxu0 %v9384_v17  ;;  %v2407_v15 = vrot.slane %v2406_v22, 4  ;;  %v7136_v5 = vcombine.low %v1573_v33, %v1576_v32  ;;  %v4957_v26 = vrot.slane %v5641_v9, 9  ;;  %v5642_v22 = vld [vmem:[%s9265_s0 + $0x90] sm:$0xf]  ;;  %v7153_v9 = vpop.f32.mrf.mxu1 }
 0x113   :  { %v2434_v42 = vrot.slane %v9497_v13, 5  ;;  %v2412_v28 = vrot.slane %v2410_v41, 4  ;;  %v1588_v44 = vrot.slane %v1586_v62, 4  ;;  %v7141_v11 = vpop.f32.mrf.mxu0  ;;  %v2417_v24 = vor.u32 %v2416_v10, %v2415_v25  ;;  %v9501_v32 = vld [vmem:[#allocation9_spill] sm:$0xff] }
 0x114   :  { %v2435_v56 = vrot.slane %v9498_v54, 6  ;;  %9500 = vst [vmem:[#allocation45_spill] sm:$0xff] %v7141_v11  ;;  %v7143_v13 = vcombine.low %v1580_v47, %v1583_v37  ;;  %v1589_v14 = vrot.slane %v7043_v38, 5  ;;  %v4958_v54 = vrot.slane %v5642_v22, 9  ;;  %9503 = vst [vmem:[#allocation9_spill] sm:$0xff] %v7153_v9  ;;  %5403 = vmatmul.mubr.msk.bf16.gmra.mxu1 %vm571_vm4, %v7136_v5  ;;  %v7171_v22 = vpop.f32.mrf.mxu1 }
 0x115   :  { %v2411_v33 = vsel %vm5851_vm6, %v2407_v15, %v2410_v41  ;;  %v9502_v51 = vshll.u32 %v9501_v32, 16  ;;  %v7155_v61 = vpop.f32.mrf.mxu0  ;;  %v1595_v10 = vrot.slane %v1593_v50, 4  ;;  %v7160_v38 = vld [vmem:[%s9265_s0 + $0x98] sm:$0x3]  ;;  %v2418_v37 = vsel %vm5851_vm6, %v2412_v28, %v2417_v24  ;;  %v9505_v41 = vld [vmem:[#allocation10_spill] sm:$0xff] }
 0x116   :  { %9504 = vst [vmem:[#allocation46_spill] sm:$0xff] %v7155_v61  ;;  %v1596_v47 = vrot.slane %v7160_v38, 5  ;;  %v7165_v25 = vcombine.low %v2411_v33, %v2418_v37  ;;  %v9506_v15 = vshll.u32 %v9505_v41, 16  ;;  %9507 = vst [vmem:[#allocation10_spill] sm:$0xff] %v7171_v22  ;;  %v1587_v9 = vsel %vm6667_vm9, %v4957_v26, %v1586_v62  ;;  %v7182_v28 = vld [vmem:[%s9265_s0 + $0xbc] sm:$0x3]  ;;  %5406 = vmatprep.mubr.msk.bf16.mxu1 %vm571_vm4, %v7143_v13 }
 0x117   :  { %v2439_v52 = vrot.slane %v9502_v51, 6  ;;  %v7175_v61 = vpop.f32.mrf.mxu0  ;;  %v9509_v11 = vshrl.u32 %v9501_v32, 16  ;;  %v2443_v24 = vshrl.u32 %v7182_v28, 16  ;;  %v1590_v33 = vsel %vm6667_vm9, %v1588_v44, %v1589_v14  ;;  %v5645_v26 = vld [vmem:[%s9265_s0 + $0xa0] sm:$0xf] }
 0x118   :  { %v2446_v51 = vrot.slane %v9506_v15, 6  ;;  %9508 = vst [vmem:[#allocation47_spill] sm:$0xff] %v7175_v61  ;;  %v1594_v62 = vsel %vm6667_vm9, %v4958_v54, %v1593_v50  ;;  %v2436_v32 = vor.u32 %v2435_v56, %v2434_v42  ;;  %v1597_v37 = vsel %vm6667_vm9, %v1595_v10, %v1596_v47  ;;  %v5646_v44 = vld [vmem:[%s9265_s0 + $0xac] sm:$0xf]  ;;  %v7203_v15 = vpop.f32.mrf.mxu1  ;;  %v5647_v10 = vld [vmem:[%s9265_s0 + $0x9c] sm:$0xf] }
 0x119   :  { %v2438_v58 = vrot.slane %v9509_v11, 5  ;;  %v1600_v11 = vrot.slane %v5645_v26, 5  ;;  %v7196_v41 = vpop.f32.mrf.mxu0  ;;  %5000 = vmatmul.mubr.msk.bf16.gmra.mxu0 %vm571_vm4, %v7079_v19  ;;  %v1607_v14 = vrot.slane %v5646_v44, 5  ;;  %v2445_v54 = vrot.slane %v2443_v24, 5  ;;  %9511 = vst [vmem:[#allocation49_spill] sm:$0xff] %v7203_v15 }
 0x11a   :  { %9510 = vst [vmem:[#allocation48_spill] sm:$0xff] %v7196_v41  ;;  %1878 = vmatprep.mubr.bf16.mxu0 %v9384_v17  ;;  %v2437_v42 = vrot.slane %v2436_v32, 4  ;;  %v4981_v56 = vcombine.low %v1587_v9, %v1590_v33  ;;  %v4959_v47 = vrot.slane %v5647_v10, 9  ;;  %v7211_v41 = vcombine.low %v1594_v62, %v1597_v37  ;;  %v5649_v33 = vld [vmem:[%s9265_s0 + $0xa8] sm:$0xf] }
 0x11b   :  { %v2440_v50 = vor.u32 %v2439_v52, %v2438_v58  ;;  %v7209_v26 = vpop.f32.mrf.mxu0  ;;  %v2447_v22 = vor.u32 %v2446_v51, %v2445_v54  ;;  %v1602_v44 = vrot.slane %v1600_v11, 4  ;;  %v5648_v58 = vld [vmem:[%s9265_s0 + $0xa4] sm:$0x3]  ;;  %v4960_v32 = vrot.slane %v5649_v33, 9  ;;  %v7226_v51 = vld [vmem:[%s9265_s0 + $0xb0] sm:$0x3]  ;;  %v7231_v54 = vpop.f32.mrf.mxu1 }
 0x11c   :  { %9512 = vst [vmem:[#allocation50_spill] sm:$0xff] %v7209_v26  ;;  %v1603_v52 = vrot.slane %v5648_v58, 5  ;;  %v1609_v10 = vrot.slane %v1607_v14, 4  ;;  %v1610_v62 = vrot.slane %v7226_v51, 5  ;;  %9514 = vst [vmem:[#allocation52_spill] sm:$0xff] %v7231_v54  ;;  %5407 = vmatmul.mubr.msk.bf16.gmra.mxu1 %vm571_vm4, %v4981_v56  ;;  %v1601_v33 = vsel %vm6667_vm9, %v4959_v47, %v1600_v11 }
 0x11d   :  { %v2442_v19 = vrot.slane %v2440_v50, 4  ;;  %v2441_v9 = vsel %vm5851_vm6, %v2437_v42, %v2440_v50  ;;  %v7218_v24 = vpop.f32.mrf.mxu0  ;;  %v7238_v58 = vpop.f32.mrf.mxu1  ;;  %5410 = vmatprep.mubr.msk.bf16.mxu1 %vm571_vm4, %v7211_v41 }
 0x11e   :  { %9513 = vst [vmem:[#allocation51_spill] sm:$0xff] %v7218_v24  ;;  %9516 = vst [vmem:[#allocation54_spill] sm:$0xff] %v7238_v58  ;;  %v1604_v15 = vsel %vm6667_vm9, %v1602_v44, %v1603_v52 }
 0x11f   :  { %v2448_v37 = vsel %vm5851_vm6, %v2442_v19, %v2447_v22  ;;  %v7236_v42 = vpop.f32.mrf.mxu0  ;;  %v1614_v22 = vrot.slane %v6656_v49, 5  ;;  %v1608_v19 = vsel %vm6667_vm9, %v4960_v32, %v1607_v14  ;;  %v7255_v58 = vpop.f32.mrf.mxu1  ;;  %v4983_v11 = vcombine.low %v1601_v33, %v1604_v15 }
 0x120   :  { %v7233_v50 = vcombine.low %v2441_v9, %v2448_v37  ;;  %9515 = vst [vmem:[#allocation53_spill] sm:$0xff] %v7236_v42  ;;  %v1611_v9 = vsel %vm6667_vm9, %v1609_v10, %v1610_v62  ;;  %9518 = vst [vmem:[#allocation56_spill] sm:$0xff] %v7255_v58  ;;  %v4961_v14 = vrot.slane %v6651_v48, 9  ;;  %v1617_v32 = vrot.slane %v7182_v28, 5 }
 0x121   :  { %v7251_v37 = vpop.f32.mrf.mxu0  ;;  %5001 = vmatmul.mubr.msk.bf16.gmra.mxu0 %vm571_vm4, %v7136_v5  ;;  %v7260_v44 = vpop.f32.mrf.mxu1  ;;  %v7262_v49 = vcombine.low %v1608_v19, %v1611_v9  ;;  %v1616_v52 = vrot.slane %v1614_v22, 4 }
 0x122   :  { %9517 = vst [vmem:[#allocation55_spill] sm:$0xff] %v7251_v37  ;;  %1888 = vmatprep.mubr.bf16.mxu0 %v9384_v17  ;;  %9520 = vst [vmem:[#allocation58_spill] sm:$0xff] %v7260_v44  ;;  %v1615_v15 = vsel %vm6667_vm9, %v4961_v14, %v1614_v22 }
 0x123   :  { %v7258_v47 = vpop.f32.mrf.mxu0  ;;  %v7268_v62 = vpop.f32.mrf.mxu1  ;;  %v1618_v48 = vsel %vm6667_vm9, %v1616_v52, %v1617_v32 }
 0x124   :  { %9519 = vst [vmem:[#allocation57_spill] sm:$0xff] %v7258_v47  ;;  %9522 = vst [vmem:[#allocation60_spill] sm:$0xff] %v7268_v62  ;;  %5411 = vmatmul.mubr.msk.bf16.gmra.mxu1 %vm571_vm4, %v4983_v11  ;;  %v4985_v9 = vcombine.low %v1615_v15, %v1618_v48 }
 0x125   :  { %v7266_v10 = vpop.f32.mrf.mxu0  ;;  %5414 = vmatprep.mubr.msk.bf16.mxu1 %vm571_vm4, %v7262_v49  ;;  %v7279_v33 = vpop.f32.mrf.mxu1 }
 0x126   :  { %9521 = vst [vmem:[#allocation59_spill] sm:$0xff] %v7266_v10  ;;  %9524 = vst [vmem:[#allocation62_spill] sm:$0xff] %v7279_v33 }
 0x127   :  { %v7271_v5 = vpop.f32.mrf.mxu0  ;;  %v7286_v19 = vpop.f32.mrf.mxu1 }
 0x128   :  { %9523 = vst [vmem:[#allocation61_spill] sm:$0xff] %v7271_v5  ;;  %9526 = vst [vmem:[#allocation64_spill] sm:$0xff] %v7286_v19 }
 0x129   :  { %v7281_v28 = vpop.f32.mrf.mxu0  ;;  %5002 = vmatmul.mubr.msk.bf16.gmra.mxu0 %vm571_vm4, %v7143_v13  ;;  %v7290_v62 = vpop.f32.mrf.mxu1 }
 0x12a   :  { %9525 = vst [vmem:[#allocation63_spill] sm:$0xff] %v7281_v28  ;;  %1898 = vmatprep.mubr.bf16.mxu0 %v9384_v17  ;;  %9528 = vst [vmem:[#allocation66_spill] sm:$0xff] %v7290_v62  ;;  %v5578_v62 = vld [vmem:[%s9266_s1 + $0xc8] ss:$12 sps:$4 sm:$0xff]  }
 0x12b   :  { %v7288_v44 = vpop.f32.mrf.mxu0  ;;  %v7294_v40 = vpop.f32.mrf.mxu1 }
 0x12c   :  { %9527 = vst [vmem:[#allocation65_spill] sm:$0xff] %v7288_v44  ;;  %9530 = vst [vmem:[#allocation68_spill] sm:$0xff] %v7294_v40  ;;  %5415 = vmatmul.mubr.msk.bf16.gmra.mxu1 %vm571_vm4, %v4985_v9 }
 0x12d   :  { %v7292_v22 = vpop.f32.mrf.mxu0  ;;  %2618 = vmatprep.mubr.bf16.mxu1 %v9384_v17  ;;  %v7300_v13 = vpop.f32.mrf.mxu1 }
 0x12e   :  { %9529 = vst [vmem:[#allocation67_spill] sm:$0xff] %v7292_v22  ;;  %9532 = vst [vmem:[#allocation70_spill] sm:$0xff] %v7300_v13 }
 0x12f   :  { %v7297_v14 = vpop.f32.mrf.mxu0  ;;  %v7306_v32 = vpop.f32.mrf.mxu1 }
 0x130   :  { %9531 = vst [vmem:[#allocation69_spill] sm:$0xff] %v7297_v14  ;;  %9534 = vst [vmem:[#allocation72_spill] sm:$0xff] %v7306_v32 }
 0x131   :  { %v7302_v52 = vpop.f32.mrf.mxu0  ;;  %5003 = vmatmul.mubr.msk.bf16.gmra.mxu0 %vm571_vm4, %v4981_v56  ;;  %v7310_v48 = vpop.f32.mrf.mxu1 }
 0x132   :  { %9533 = vst [vmem:[#allocation71_spill] sm:$0xff] %v7302_v52  ;;  %1908 = vmatprep.mubr.bf16.mxu0 %v9384_v17  ;;  %9536 = vst [vmem:[#allocation74_spill] sm:$0xff] %v7310_v48 }
 0x133   :  { %v7308_v15 = vpop.f32.mrf.mxu0  ;;  %v7317_v19 = vpop.f32.mrf.mxu1 }
 0x134   :  { %9535 = vst [vmem:[#allocation73_spill] sm:$0xff] %v7308_v15  ;;  %5054 = vmatmul.mubr.msk.bf16.vlgmr.msra.gmra.mxu1 %vm571_vm4, %v6559_v16 }
 0x135   :  { %v7312_v40 = vpop.f32.mrf.mxu0  ;;  %2628 = vmatprep.mubr.bf16.mxu1 %v9384_v17  ;;  %5455 = vmatpush3.bf16.msra.mxu1 %v7029_v43  ;;  %v7325_v32 = vpop.f32.mrf.mxu1 }
 0x136   :  { %9537 = vst [vmem:[#allocation75_spill] sm:$0xff] %v7312_v40  ;;  %5456 = vmatprep.subr.bf16.mxu1 %v5578_v62 }
 0x137   :  { %v7321_v56 = vpop.f32.mrf.mxu0  ;;  %v7332_v13 = vpop.f32.mrf.mxu1 }
 0x138   :  { %9538 = vst [vmem:[#allocation76_spill] sm:$0xff] %v7321_v56 }
 0x139   :  { %v7327_v48 = vpop.f32.mrf.mxu0  ;;  %5004 = vmatmul.mubr.msk.bf16.gmra.mxu0 %vm571_vm4, %v7211_v41  ;;  %5457 = vmatpush3.bf16.msra.mxu1 %v5578_v62  ;;  %v7336_v56 = vpop.f32.mrf.mxu1 }
 0x13a   :  { %9539 = vst [vmem:[#allocation77_spill] sm:$0xff] %v7327_v48  ;;  %1918 = vmatprep.mubr.bf16.mxu0 %v9384_v17 }
 0x13b   :  { %v7334_v40 = vpop.f32.mrf.mxu0  ;;  %v7340_v43 = vpop.f32.mrf.mxu1 }
 0x13c   :  { %9540 = vst [vmem:[#allocation78_spill] sm:$0xff] %v7334_v40  ;;  %5055 = vmatmul.mubr.msk.bf16.gmra.mxu1 %vm571_vm4, %v6586_v18 }
 0x13d   :  { %v7338_v15 = vpop.f32.mrf.mxu0  ;;  %2638 = vmatprep.mubr.bf16.mxu1 %v9384_v17  ;;  %v7347_v41 = vpop.f32.mrf.mxu1 }
 0x13e   :  { %9541 = vst [vmem:[#allocation79_spill] sm:$0xff] %v7338_v15 }
 0x13f   :  { %v7344_v48 = vpop.f32.mrf.mxu0  ;;  %v7353_v62 = vpop.f32.mrf.mxu1 }
 0x140   :  { %9542 = vst [vmem:[#allocation80_spill] sm:$0xff] %v7344_v48 }
 0x141   :  { %v7349_v33 = vpop.f32.mrf.mxu0  ;;  %5005 = vmatmul.mubr.msk.bf16.gmra.mxu0 %vm571_vm4, %v4983_v11  ;;  %v7357_v40 = vpop.f32.mrf.mxu1 }
 0x142   :  { %9543 = vst [vmem:[#allocation81_spill] sm:$0xff] %v7349_v33  ;;  %1928 = vmatprep.mubr.bf16.mxu0 %v9384_v17 }
 0x143   :  { %v7355_v15 = vpop.f32.mrf.mxu0  ;;  %v7361_v14 = vpop.f32.mrf.mxu1 }
 0x144   :  { %9544 = vst [vmem:[#allocation82_spill] sm:$0xff] %v7355_v15  ;;  %5056 = vmatmul.mubr.msk.bf16.gmra.mxu1 %vm571_vm4, %v6616_v59 }
 0x145   :  { %v7359_v52 = vpop.f32.mrf.mxu0  ;;  %2648 = vmatprep.mubr.bf16.mxu1 %v9384_v17  ;;  %v7368_v11 = vpop.f32.mrf.mxu1 }
 0x146   :  { %9545 = vst [vmem:[#allocation83_spill] sm:$0xff] %v7359_v52 }
 0x147   :  { %v7365_v48 = vpop.f32.mrf.mxu0  ;;  %v7375_v15 = vpop.f32.mrf.mxu1 }
 0x148   :  { %9546 = vst [vmem:[#allocation84_spill] sm:$0xff] %v7365_v48 }
 0x149   :  { %v7370_v33 = vpop.f32.mrf.mxu0  ;;  %5006 = vmatmul.mubr.msk.bf16.gmra.mxu0 %vm571_vm4, %v7262_v49  ;;  %v7379_v22 = vpop.f32.mrf.mxu1 }
 0x14a   :  { %9547 = vst [vmem:[#allocation85_spill] sm:$0xff] %v7370_v33  ;;  %1938 = vmatprep.mubr.bf16.mxu0 %v9384_v17 }
 0x14b   :  { %v7377_v52 = vpop.f32.mrf.mxu0  ;;  %v7383_v48 = vpop.f32.mrf.mxu1 }
 0x14c   :  { %9548 = vst [vmem:[#allocation86_spill] sm:$0xff] %v7377_v52  ;;  %5057 = vmatmul.mubr.msk.bf16.gmra.mxu1 %vm571_vm4, %v6665_v2 }
 0x14d   :  { %v7381_v58 = vpop.f32.mrf.mxu0  ;;  %2658 = vmatprep.mubr.bf16.mxu1 %v9384_v17  ;;  %v7390_v49 = vpop.f32.mrf.mxu1 }
 0x14e   :  { %9549 = vst [vmem:[#allocation87_spill] sm:$0xff] %v7381_v58 }
 0x14f   :  { %v7387_v44 = vpop.f32.mrf.mxu0  ;;  %v7397_v52 = vpop.f32.mrf.mxu1 }
 0x150   :  { %9550 = vst [vmem:[#allocation88_spill] sm:$0xff] %v7387_v44  ;;  %v5571_v44 = vld [vmem:[%s9266_s1 + $0xd8] ss:$12 sps:$4 sm:$0xff]  }
 0x151   :  { %v7392_v33 = vpop.f32.mrf.mxu0  ;;  %5007 = vmatmul.mubr.msk.bf16.gmra.mxu0 %vm571_vm4, %v4985_v9  ;;  %v7401_v28 = vpop.f32.mrf.mxu1 }
 0x152   :  { %9551 = vst [vmem:[#allocation89_spill] sm:$0xff] %v7392_v33  ;;  %5422 = vmatprep.mubr.msk.bf16.mxu0 %vm571_vm4, %v6559_v16  ;;  %v5577_v16 = vld [vmem:[%s9266_s1 + $0xc4] ss:$12 sps:$4 sm:$0xff]  }
 0x153   :  { %v7399_v58 = vpop.f32.mrf.mxu0  ;;  %v7408_v5 = vpop.f32.mrf.mxu1 }
 0x154   :  { %9552 = vst [vmem:[#allocation90_spill] sm:$0xff] %v7399_v58  ;;  %5058 = vmatmul.mubr.msk.bf16.gmra.mxu1 %vm571_vm4, %v6706_v1 }
 0x155   :  { %v7403_v54 = vpop.f32.mrf.mxu0  ;;  %2668 = vmatprep.mubr.bf16.mxu1 %v9384_v17  ;;  %v7418_v58 = vpop.f32.mrf.mxu1 }
 0x156   :  { %9553 = vst [vmem:[#allocation91_spill] sm:$0xff] %v7403_v54 }
 0x157   :  { %v7412_v9 = vpop.f32.mrf.mxu0  ;;  %v7429_v33 = vpop.f32.mrf.mxu1 }
 0x158   :  { %9554 = vst [vmem:[#allocation92_spill] sm:$0xff] %v7412_v9  ;;  %v5575_v9 = vld [vmem:[%s9266_s1 + $0xc0] ss:$12 sps:$4 sm:$0xff]   ;;  %9555 = vst [vmem:[#allocation93_spill] sm:$0xff] %v7429_v33  ;;  %v9585_v33 = vshrl.u32 %v6409_v57, 16 }
 0x159   :  { %v7420_v54 = vpop.f32.mrf.mxu0  ;;  %5423 = vmatmul.mubr.msk.bf16.vlgmr.msra.gmra.mxu0 %vm571_vm4, %v6586_v18  ;;  %v7433_v47 = vpop.f32.mrf.mxu1 }
 0x15a   :  { %3301 = vmatpush1.bf16.msra.mxu0 %v5571_v44  ;;  %5426 = vmatprep.mubr.msk.bf16.mxu0 %vm571_vm4, %v6616_v59  ;;  %9556 = vst [vmem:[#allocation94_spill] sm:$0xff] %v7433_v47 }
 0x15b   :  { %v7431_v10 = vpop.f32.mrf.mxu0  ;;  %3302 = vmatprep.subr.bf16.mxu0 %v5577_v16  ;;  %v7437_v42 = vpop.f32.mrf.mxu1 }
 0x15c   :  { %9558 = vst [vmem:[#allocation96_spill] sm:$0xff] %v7437_v42  ;;  %5059 = vmatmul.mubr.msk.bf16.gmra.mxu1 %vm571_vm4, %v6751_v23  ;;  %v9576_v42 = vshrl.u32 %v6341_v21, 16 }
 0x15d   :  { %v7435_v37 = vpop.f32.mrf.mxu0  ;;  %2678 = vmatprep.mubr.bf16.mxu1 %v9384_v17  ;;  %v7444_v59 = vpop.f32.mrf.mxu1 }
 0x15e   :  { %9557 = vst [vmem:[#allocation95_spill] sm:$0xff] %v7435_v37  ;;  %3303 = vmatpush1.bf16.msra.mxu0 %v5575_v9  ;;  %9560 = vst [vmem:[#allocation98_spill] sm:$0xff] %v7444_v59  ;;  %v2419_v37 = vrot.slane %v9585_v33, 5 }
 0x15f   :  { %v7441_v18 = vpop.f32.mrf.mxu0  ;;  %v7452_v9 = vpop.f32.mrf.mxu1 }
 0x160   :  { %9559 = vst [vmem:[#allocation97_spill] sm:$0xff] %v7441_v18  ;;  %9562 = vst [vmem:[#allocation100_spill] sm:$0xff] %v7452_v9 }
 0x161   :  { %v7446_v44 = vpop.f32.mrf.mxu0  ;;  %5427 = vmatmul.mubr.msk.bf16.gmra.mxu0 %vm571_vm4, %v6665_v2  ;;  %v7456_v24 = vpop.f32.mrf.mxu1 }
 0x162   :  { %9561 = vst [vmem:[#allocation99_spill] sm:$0xff] %v7446_v44  ;;  %5430 = vmatprep.mubr.msk.bf16.mxu0 %vm571_vm4, %v6706_v1  ;;  %9564 = vst [vmem:[#allocation102_spill] sm:$0xff] %v7456_v24  ;;  %v9577_v44 = vshll.u32 %v6341_v21, 16 }
 0x163   :  { %v7454_v16 = vpop.f32.mrf.mxu0  ;;  %v7460_v61 = vpop.f32.mrf.mxu1 }
 0x164   :  { %9563 = vst [vmem:[#allocation101_spill] sm:$0xff] %v7454_v16  ;;  %9566 = vst [vmem:[#allocation104_spill] sm:$0xff] %v7460_v61  ;;  %5060 = vmatmul.mubr.msk.bf16.gmra.mxu1 %vm571_vm4, %v6797_v53 }
 0x165   :  { %v7458_v26 = vpop.f32.mrf.mxu0  ;;  %2688 = vmatprep.mubr.bf16.mxu1 %v9384_v17  ;;  %v7467_v2 = vpop.f32.mrf.mxu1 }
 0x166   :  { %9565 = vst [vmem:[#allocation103_spill] sm:$0xff] %v7458_v26  ;;  %9568 = vst [vmem:[#allocation106_spill] sm:$0xff] %v7467_v2  ;;  %v9575_v2 = vshll.u32 %v6332_v60, 16 }
 0x167   :  { %v7464_v59 = vpop.f32.mrf.mxu0  ;;  %v7475_v24 = vpop.f32.mrf.mxu1 }
 0x168   :  { %9567 = vst [vmem:[#allocation105_spill] sm:$0xff] %v7464_v59  ;;  %9570 = vst [vmem:[#allocation108_spill] sm:$0xff] %v7475_v24  ;;  %v9574_v59 = vshrl.u32 %v6332_v60, 16  ;;  %v2398_v24 = vshrl.u32 %v7160_v38, 16 }
 0x169   :  { %v7469_v1 = vpop.f32.mrf.mxu0  ;;  %5431 = vmatmul.mubr.msk.bf16.gmra.mxu0 %vm571_vm4, %v6751_v23  ;;  %v7479_v9 = vpop.f32.mrf.mxu1  ;;  %v2393_v23 = vrot.slane %v9576_v42, 5 }
 0x16a   :  { %9569 = vst [vmem:[#allocation107_spill] sm:$0xff] %v7469_v1  ;;  %5434 = vmatprep.mubr.msk.bf16.mxu0 %vm571_vm4, %v6797_v53  ;;  %9572 = vst [vmem:[#allocation110_spill] sm:$0xff] %v7479_v9  ;;  %v2389_v16 = vrot.slane %v9574_v59, 5  ;;  %v2390_v1 = vrot.slane %v9575_v2, 6  ;;  %v2394_v53 = vrot.slane %v9577_v44, 6  ;;  %v2400_v42 = vrot.slane %v2398_v24, 5 }
 0x16b   :  { %v7477_v61 = vpop.f32.mrf.mxu0  ;;  %v7492_v47 = vpop.f32.mrf.mxu1  ;;  %v9582_v44 = vld [vmem:[#allocation20_spill] sm:$0xff] }
 0x16c   :  { %9571 = vst [vmem:[#allocation109_spill] sm:$0xff] %v7477_v61  ;;  %9578 = vst [vmem:[#allocation112_spill] sm:$0xff] %v7492_v47  ;;  %5061 = vmatmul.mubr.msk.bf16.gmra.mxu1 %vm571_vm4, %v6851_v20  ;;  %v2391_v21 = vor.u32 %v2390_v1, %v2389_v16  ;;  %v2395_v38 = vor.u32 %v2394_v53, %v2393_v23  ;;  %v9583_v2 = vshll.u32 %v9582_v44, 16  ;;  %v9588_v1 = vshll.u32 %v6409_v57, 16 }
 0x16d   :  { %v7481_v26 = vpop.f32.mrf.mxu0  ;;  %2698 = vmatprep.mubr.bf16.mxu1 %v9384_v17  ;;  %v7499_v59 = vpop.f32.mrf.mxu1  ;;  %v9589_v53 = vshrl.u32 %v6416_v0, 16 }
 0x16e   :  { %9573 = vst [vmem:[#allocation111_spill] sm:$0xff] %v7481_v26  ;;  %9580 = vst [vmem:[#allocation114_spill] sm:$0xff] %v7499_v59  ;;  %v2401_v47 = vrot.slane %v9583_v2, 6  ;;  %v2397_v18 = vrot.slane %v2395_v38, 4  ;;  %v2420_v23 = vrot.slane %v9588_v1, 6 }
 0x16f   :  { %v7496_v9 = vpop.f32.mrf.mxu0  ;;  %v7509_v26 = vpop.f32.mrf.mxu1  ;;  %v2423_v44 = vrot.slane %v9589_v53, 5 }
 0x170   :  { %9579 = vst [vmem:[#allocation113_spill] sm:$0xff] %v7496_v9  ;;  %v2421_v1 = vor.u32 %v2420_v23, %v2419_v37 }
 0x171   :  { %v7501_v60 = vpop.f32.mrf.mxu0  ;;  %5435 = vmatmul.mubr.msk.bf16.gmra.mxu0 %vm571_vm4, %v6851_v20  ;;  %v7513_v61 = vpop.f32.mrf.mxu1  ;;  %v2402_v20 = vor.u32 %v2401_v47, %v2400_v42  ;;  %v2428_v47 = vshrl.u32 %v7226_v51, 16 }
 0x172   :  { %9581 = vst [vmem:[#allocation115_spill] sm:$0xff] %v7501_v60  ;;  %5438 = vmatprep.mubr.msk.bf16.mxu0 %vm571_vm4, %v6905_v39  ;;  %9584 = vst [vmem:[#allocation20_spill] sm:$0xff] %v7513_v61  ;;  %v2392_v60 = vrot.slane %v2391_v21, 4  ;;  %v9590_v21 = vshll.u32 %v6416_v0, 16 }
 0x173   :  { %v7511_v9 = vpop.f32.mrf.mxu0  ;;  %v7519_v16 = vpop.f32.mrf.mxu1  ;;  %v2403_v0 = vsel %vm5851_vm6, %v2397_v18, %v2402_v20 }
 0x174   :  { %9586 = vst [vmem:[#allocation116_spill] sm:$0xff] %v7519_v16  ;;  %5062 = vmatmul.mubr.msk.bf16.gmra.mxu1 %vm571_vm4, %v6905_v39  ;;  %v2424_v2 = vrot.slane %v9590_v21, 6  ;;  %v2396_v57 = vsel %vm5851_vm6, %v2392_v60, %v2395_v38  ;;  %v2430_v21 = vrot.slane %v2428_v47, 5  ;;  %v2422_v38 = vrot.slane %v2421_v1, 4 }
 0x175   :  { %v7515_v59 = vpop.f32.mrf.mxu0  ;;  %2708 = vmatprep.mubr.bf16.mxu1 %v9384_v17  ;;  %v7533_v33 = vpop.f32.mrf.mxu1 }
 0x176   :  { %9591 = vst [vmem:[#allocation118_spill] sm:$0xff] %v7533_v33  ;;  %v2425_v53 = vor.u32 %v2424_v2, %v2423_v44  ;;  %v9593_v33 = vshll.u32 %v6431_v46, 16 }
 0x177   :  { %v7523_v24 = vpop.f32.mrf.mxu0  ;;  %v7545_v39 = vpop.f32.mrf.mxu1 }
 0x178   :  { %9587 = vst [vmem:[#allocation117_spill] sm:$0xff] %v7523_v24  ;;  %v2431_v16 = vrot.slane %v9593_v33, 6  ;;  %v7555_v24 = vcombine.low %v2396_v57, %v2403_v0  ;;  %v2427_v37 = vrot.slane %v2425_v53, 4  ;;  %v2426_v2 = vsel %vm5851_vm6, %v2422_v38, %v2425_v53 }
 0x179   :  { %v7535_v42 = vpop.f32.mrf.mxu0  ;;  %5439 = vmatmul.mubr.msk.bf16.gmra.mxu0 %vm571_vm4, %v6964_v4  ;;  %v3041_v38 = vrot.slane %v5651_v27, 6  ;;  %v5653_v27 = vld [vmem:[%s9265_s0] sm:$0xf] }
 0x17a   :  { %9592 = vst [vmem:[#allocation119_spill] sm:$0xff] %v7535_v42  ;;  %5442 = vmatprep.mubr.msk.bf16.mxu0 %vm571_vm4, %v7024_v34  ;;  %v7551_v42 = vpop.f32.mrf.mxu1  ;;  %v2432_v20 = vor.u32 %v2431_v16, %v2430_v21 }
 0x17b   :  { %v7547_v51 = vpop.f32.mrf.mxu0 }
 0x17c   :  { %v7557_v60 = vpop.f32.mrf.mxu1  ;;  %5063 = vmatmul.mubr.msk.bf16.gmra.mxu1 %vm571_vm4, %v6964_v4  ;;  %v2433_v16 = vsel %vm5851_vm6, %v2427_v37, %v2432_v20 }
 0x17d   :  { %v7553_v61 = vpop.f32.mrf.mxu0  ;;  %2718 = vmatprep.mubr.bf16.mxu1 %v9384_v17  ;;  %v7584_v57 = vcombine.low %v2426_v2, %v2433_v16  ;;  %v5652_v16 = vld [vmem:[%s9265_s0 + $0x8] sm:$0x3] }
 0x17e   :  { %v7564_v46 = vpop.f32.mrf.mxu1 }
 0x17f   :  { %v7561_v18 = vpop.f32.mrf.mxu0 }
 0x180   :  { %9594 = vst [vmem:[#allocation120_spill] sm:$0xff] %v7561_v18  ;;  %v7572_v44 = vpop.f32.mrf.mxu1  ;;  %v5086_v18 = vrot.slane %v5653_v27, 10 }
 0x181   :  { %v7566_v23 = vpop.f32.mrf.mxu0  ;;  %5443 = vmatmul.mubr.msk.bf16.gmra.mxu0 %vm571_vm4, %v7098_v3 }
 0x182   :  { %5446 = vmatprep.mubr.msk.bf16.mxu0 %vm571_vm4, %v7555_v24  ;;  %v7580_v47 = vpop.f32.mrf.mxu1 }
 0x183   :  { %v7574_v4 = vpop.f32.mrf.mxu0  ;;  %9595 = vst [vmem:[#allocation121_spill] sm:$0xff] %v7580_v47 }
 0x184   :  { %v7586_v0 = vpop.f32.mrf.mxu1  ;;  %5064 = vmatmul.mubr.msk.bf16.gmra.mxu1 %vm571_vm4, %v7024_v34 }
 0x185   :  { %v7582_v33 = vpop.f32.mrf.mxu0  ;;  %9596 = vst [vmem:[#allocation122_spill] sm:$0xff] %v7586_v0  ;;  %2728 = vmatprep.mubr.bf16.mxu1 %v9384_v17 }
 0x186   :  { %v7593_v21 = vpop.f32.mrf.mxu1 }
 0x187   :  { %v7590_v1 = vpop.f32.mrf.mxu0  ;;  %9598 = vst [vmem:[#allocation124_spill] sm:$0xff] %v7593_v21  ;;  %v3043_v21 = vrot.slane %v3041_v38, 4 }
 0x188   :  { %9597 = vst [vmem:[#allocation123_spill] sm:$0xff] %v7590_v1  ;;  %v7604_v34 = vpop.f32.mrf.mxu1  ;;  %v3044_v1 = vrot.slane %v5652_v16, 6 }
 0x189   :  { %v7595_v53 = vpop.f32.mrf.mxu0  ;;  %5447 = vmatmul.mubr.msk.bf16.gmra.mxu0 %vm571_vm4, %v7165_v25  ;;  %9600 = vst [vmem:[#allocation126_spill] sm:$0xff] %v7604_v34 }
 0x18a   :  { %9599 = vst [vmem:[#allocation125_spill] sm:$0xff] %v7595_v53  ;;  %5450 = vmatprep.mubr.msk.bf16.mxu0 %vm571_vm4, %v7584_v57  ;;  %v7608_v20 = vpop.f32.mrf.mxu1  ;;  %v3045_v27 = vsel %vm7624_vm12, %v3043_v21, %v3044_v1 }
 0x18b   :  { %v7606_v37 = vpop.f32.mrf.mxu0  ;;  %9602 = vst [vmem:[#allocation128_spill] sm:$0xff] %v7608_v20  ;;  %v9745_v20 = vld [vmem:[#allocation73_spill] sm:$0xff] }
 0x18c   :  { %9601 = vst [vmem:[#allocation127_spill] sm:$0xff] %v7606_v37  ;;  %v7618_v34 = vpop.f32.mrf.mxu1  ;;  %5065 = vmatmul.mubr.msk.bf16.gmra.mxu1 %vm571_vm4, %v7098_v3  ;;  %v3042_v3 = vsel %vm7624_vm12, %v5086_v18, %v3041_v38  ;;  %v5655_v18 = vld [vmem:[%s9265_s0 + $0xc] sm:$0xf]  ;;  %v5656_v38 = vld [vmem:[%s9265_s0 + $0x14] sm:$0x3] }
 0x18d   :  { %v7610_v2 = vpop.f32.mrf.mxu0  ;;  %9604 = vst [vmem:[#allocation130_spill] sm:$0xff] %v7618_v34  ;;  %2738 = vmatprep.mubr.bf16.mxu1 %v9384_v17  ;;  %v5654_v34 = vld [vmem:[%s9265_s0 + $0x10] sm:$0xf]  ;;  %v7651_v47 = vcombine.low %v3042_v3, %v3045_v27  ;;  %v5087_v1 = vrot.slane %v5655_v18, 10  ;;  %v1169_v3 = vadd.f32 %v7317_v19, %v6744_v45  ;;  %v5657_v19 = vld [vmem:[%s9265_s0 + $0x1c] sm:$0xf] }
 0x18e   :  { %9603 = vst [vmem:[#allocation129_spill] sm:$0xff] %v7610_v2  ;;  %v7629_v16 = vpop.f32.mrf.mxu1 }
 0x18f   :  { %v7622_v37 = vpop.f32.mrf.mxu0  ;;  %9608 = vst [vmem:[#allocation132_spill] sm:$0xff] %v7629_v16 }
 0x190   :  { %9605 = vst [vmem:[#allocation131_spill] sm:$0xff] %v7622_v37  ;;  %v3048_v37 = vrot.slane %v5654_v34, 6  ;;  %v7643_v0 = vpop.f32.mrf.mxu1  ;;  %v3051_v34 = vrot.slane %v5656_v38, 6 }
 0x191   :  { %v7631_v2 = vpop.f32.mrf.mxu0  ;;  %5451 = vmatmul.mubr.msk.bf16.gmra.mxu0 %vm571_vm4, %v7233_v50  ;;  %9610 = vst [vmem:[#allocation134_spill] sm:$0xff] %v7643_v0 }
 0x192   :  { %9609 = vst [vmem:[#allocation133_spill] sm:$0xff] %v7631_v2  ;;  %3320 = vmatprep.mubr.bf16.mxu0 %v9384_v17  ;;  %v7647_v2 = vpop.f32.mrf.mxu1  ;;  %v3050_v21 = vrot.slane %v3048_v37, 4  ;;  %v3049_v38 = vsel %vm7624_vm12, %v5087_v1, %v3048_v37  ;;  %v1173_v37 = vadd.f32 %v7332_v13, %v6765_v6  ;;  %v5659_v6 = vld [vmem:[%s9265_s0 + $0x20] sm:$0x3] }
 0x193   :  { %v7645_v16 = vpop.f32.mrf.mxu0  ;;  %9611 = vst [vmem:[#allocation135_spill] sm:$0xff] %v7647_v2  ;;  %v3058_v13 = vrot.slane %v5659_v6, 6 }
 0x194   :  { %v7659_v0 = vpop.f32.mrf.mxu1  ;;  %5066 = vmatmul.mubr.msk.bf16.gmra.mxu1 %vm571_vm4, %v7555_v24  ;;  %v3052_v45 = vsel %vm7624_vm12, %v3050_v21, %v3051_v34  ;;  %v5658_v21 = vld [vmem:[%s9265_s0 + $0x18] sm:$0xf] }
 0x195   :  { %v7649_v53 = vpop.f32.mrf.mxu0  ;;  %9613 = vst [vmem:[#allocation137_spill] sm:$0xff] %v7659_v0  ;;  %2748 = vmatprep.mubr.bf16.mxu1 %v9384_v17  ;;  %v1171_v0 = vadd.f32 %v7325_v32, %v6760_v29  ;;  %v5088_v34 = vrot.slane %v5658_v21, 10 }
 0x196   :  { %9612 = vst [vmem:[#allocation136_spill] sm:$0xff] %v7649_v53  ;;  %v7668_v27 = vpop.f32.mrf.mxu1 }
 0x197   :  { %v7663_v2 = vpop.f32.mrf.mxu0  ;;  %9615 = vst [vmem:[#allocation139_spill] sm:$0xff] %v7668_v27  ;;  %v3055_v27 = vrot.slane %v5657_v19, 6 }
 0x198   :  { %9614 = vst [vmem:[#allocation138_spill] sm:$0xff] %v7663_v2  ;;  %v7684_v2 = vpop.f32.mrf.mxu1 }
 0x199   :  { %v1790_v18 = vpop.f32.mrf.mxu0  ;;  %5132 = vmatmul.mubr.msk.bf16.vlgmr.msra.gmra.mxu0 %vm571_vm4, %v7651_v47  ;;  %9616 = vst [vmem:[#allocation140_spill] sm:$0xff] %v7684_v2  ;;  %v3057_v2 = vrot.slane %v3055_v27, 4 }
 0x19a   :  { %v7676_v24 = vadd.f32 %v1790_v18, %v1169_v3  ;;  %3330 = vmatprep.mubr.bf16.mxu0 %v9384_v17  ;;  %v7690_v29 = vpop.f32.mrf.mxu1  ;;  %v7692_v3 = vcombine.low %v3049_v38, %v3052_v45  ;;  %v1175_v18 = vadd.f32 %v7336_v56, %v6789_v31  ;;  %v1179_v38 = vadd.f32 %v7340_v43, %v6814_v8  ;;  %v5660_v43 = vld [vmem:[%s9265_s0 + $0x28] sm:$0xf] }
 0x19b   :  { %v1792_v53 = vpop.f32.mrf.mxu0  ;;  %v3059_v8 = vsel %vm7624_vm12, %v3057_v2, %v3058_v13  ;;  %v3062_v21 = vrot.slane %v5660_v43, 6  ;;  %v5661_v2 = vld [vmem:[%s9265_s0 + $0x24] sm:$0xf] }
 0x19c   :  { %v7688_v1 = vadd.f32 %v1792_v53, %v1171_v0  ;;  %v7704_v0 = vpop.f32.mrf.mxu1  ;;  %5067 = vmatmul.mubr.msk.bf16.gmra.mxu1 %vm571_vm4, %v7165_v25  ;;  %v1181_v25 = vadd.f32 %v7347_v41, %v6830_v30  ;;  %v5089_v13 = vrot.slane %v5661_v2, 10 }
 0x19d   :  { %v1794_v32 = vpop.f32.mrf.mxu0  ;;  %2758 = vmatprep.mubr.bf16.mxu1 %v9384_v17  ;;  %v3064_v43 = vrot.slane %v3062_v21, 4 }
 0x19e   :  { %v7699_v19 = vadd.f32 %v1794_v32, %v1173_v37  ;;  %v7713_v56 = vpop.f32.mrf.mxu1  ;;  %v3056_v37 = vsel %vm7624_vm12, %v5088_v34, %v3055_v27  ;;  %v1183_v27 = vadd.f32 %v7353_v62, %v6844_v7  ;;  %v5662_v7 = vld [vmem:[%s9265_s0 + $0x2c] sm:$0x3] }
 0x19f   :  { %v1796_v53 = vpop.f32.mrf.mxu0  ;;  %v3065_v62 = vrot.slane %v5662_v7, 6 }
 0x1a0   :  { %v7711_v31 = vadd.f32 %v1796_v53, %v1175_v18  ;;  %v7729_v18 = vpop.f32.mrf.mxu1  ;;  %v7737_v53 = vcombine.low %v3056_v37, %v3059_v8  ;;  %v1189_v8 = vadd.f32 %v7361_v14, %v6869_v55  ;;  %v5663_v14 = vld [vmem:[%s9265_s0 + $0x34] sm:$0xf] }
 0x1a1   :  { %v1800_v45 = vpop.f32.mrf.mxu0  ;;  %5133 = vmatmul.mubr.msk.bf16.gmra.mxu0 %vm571_vm4, %v7692_v3  ;;  %v3066_v55 = vsel %vm7624_vm12, %v3064_v43, %v3065_v62  ;;  %v3069_v2 = vrot.slane %v5663_v14, 6  ;;  %v5664_v43 = vld [vmem:[%s9265_s0 + $0x30] sm:$0xf] }
 0x1a2   :  { %v7721_v32 = vadd.f32 %v1800_v45, %v1179_v38  ;;  %3340 = vmatprep.mubr.bf16.mxu0 %v9384_v17  ;;  %v7735_v30 = vpop.f32.mrf.mxu1  ;;  %v1185_v38 = vadd.f32 %v7357_v40, %v6863_v35  ;;  %v5090_v62 = vrot.slane %v5664_v43, 10 }
 0x1a3   :  { %v1802_v6 = vpop.f32.mrf.mxu0  ;;  %v3071_v14 = vrot.slane %v3069_v2, 4 }
 0x1a4   :  { %v7733_v34 = vadd.f32 %v1802_v6, %v1181_v25  ;;  %v7749_v25 = vpop.f32.mrf.mxu1  ;;  %5068 = vmatmul.mubr.msk.bf16.gmra.mxu1 %vm571_vm4, %v7584_v57  ;;  %v1191_v57 = vadd.f32 %v7368_v11, %v6884_v36 }
 0x1a5   :  { %v1804_v41 = vpop.f32.mrf.mxu0  ;;  %2768 = vmatprep.mubr.bf16.mxu1 %v9384_v17 }
 0x1a6   :  { %v7744_v45 = vadd.f32 %v1804_v41, %v1183_v27  ;;  %v7758_v40 = vpop.f32.mrf.mxu1  ;;  %v3063_v27 = vsel %vm7624_vm12, %v5089_v13, %v3062_v21  ;;  %v1193_v21 = vadd.f32 %v7375_v15, %v6900_v63  ;;  %v5665_v63 = vld [vmem:[%s9265_s0 + $0x38] sm:$0x3] }
 0x1a7   :  { %v1806_v37 = vpop.f32.mrf.mxu0  ;;  %v3072_v15 = vrot.slane %v5665_v63, 6 }
 0x1a8   :  { %v7756_v35 = vadd.f32 %v1806_v37, %v1185_v38  ;;  %v7774_v38 = vpop.f32.mrf.mxu1  ;;  %v7782_v37 = vcombine.low %v3063_v27, %v3066_v55  ;;  %v9621_v55 = vld [vmem:[#allocation25_spill] sm:$0xff] }
 0x1a9   :  { %v1810_v6 = vpop.f32.mrf.mxu0  ;;  %5134 = vmatmul.mubr.msk.bf16.gmra.mxu0 %vm571_vm4, %v7737_v53  ;;  %9617 = vst [vmem:[#allocation141_spill] sm:$0xff] %v7774_v38 }
 0x1aa   :  { %v7766_v41 = vadd.f32 %v1810_v6, %v1189_v8  ;;  %3350 = vmatprep.mubr.bf16.mxu0 %v9384_v17  ;;  %v7780_v36 = vpop.f32.mrf.mxu1  ;;  %v1195_v8 = vadd.f32 %v7379_v22, %v6916_v12 }
 0x1ab   :  { %v1812_v7 = vpop.f32.mrf.mxu0  ;;  %9618 = vst [vmem:[#allocation142_spill] sm:$0xff] %v7780_v36  ;;  %v9651_v36 = vld [vmem:[#allocation99_spill] sm:$0xff] }
 0x1ac   :  { %v7778_v13 = vadd.f32 %v1812_v7, %v1191_v57  ;;  %v7794_v57 = vpop.f32.mrf.mxu1  ;;  %5069 = vmatmul.mubr.msk.bf16.gmra.mxu1 %vm571_vm4, %v7233_v50  ;;  %v1199_v7 = vadd.f32 %v7383_v48, %v9621_v55  ;;  %v3070_v50 = vsel %vm7624_vm12, %v5090_v62, %v3069_v2  ;;  %v3073_v48 = vsel %vm7624_vm12, %v3071_v14, %v3072_v15  ;;  %v5667_v62 = vld [vmem:[%s9265_s0 + $0x3c] sm:$0xf] }
 0x1ad   :  { %v1814_v11 = vpop.f32.mrf.mxu0  ;;  %9620 = vst [vmem:[#allocation144_spill] sm:$0xff] %v7794_v57  ;;  %5458 = vmatprep.mubr.msk.bf16.mxu1 %vm571_vm4, %v7651_v47  ;;  %v5114_v2 = vcombine.low %v3070_v50, %v3073_v48  ;;  %v5091_v14 = vrot.slane %v5667_v62, 10  ;;  %v9630_v15 = vld [vmem:[#allocation29_spill] sm:$0xff]  ;;  %v5668_v50 = vld [vmem:[%s9265_s0 + $0x44] sm:$0x3]  ;;  %v9633_v62 = vld [vmem:[#allocation31_spill] sm:$0xff] }
 0x1ae   :  { %v7789_v6 = vadd.f32 %v1814_v11, %v1193_v21  ;;  %v7804_v22 = vpop.f32.mrf.mxu1  ;;  %v9624_v11 = vld [vmem:[#allocation27_spill] sm:$0xff]  ;;  %v3079_v48 = vrot.slane %v5668_v50, 6 }
 0x1af   :  { %v1816_v27 = vpop.f32.mrf.mxu0  ;;  %9623 = vst [vmem:[#allocation145_spill] sm:$0xff] %v7804_v22  ;;  %v1201_v43 = vadd.f32 %v7390_v49, %v9624_v11  ;;  %v9627_v22 = vld [vmem:[#allocation28_spill] sm:$0xff] }
 0x1b0   :  { %9619 = vst [vmem:[#allocation143_spill] sm:$0xff] %v7789_v6  ;;  %v7802_v12 = vadd.f32 %v1816_v27, %v1195_v8  ;;  %v7817_v47 = vpop.f32.mrf.mxu1  ;;  %v5666_v27 = vld [vmem:[%s9265_s0 + $0x40] sm:$0xf]  ;;  %v1203_v49 = vadd.f32 %v7397_v52, %v9627_v22  ;;  %v9696_v6 = vld [vmem:[#allocation36_spill] sm:$0xff] }
 0x1b1   :  { %v1820_v21 = vpop.f32.mrf.mxu0  ;;  %5135 = vmatmul.mubr.msk.bf16.gmra.mxu0 %vm571_vm4, %v7782_v37  ;;  %9626 = vst [vmem:[#allocation146_spill] sm:$0xff] %v7817_v47  ;;  %v3076_v55 = vrot.slane %v5666_v27, 6  ;;  %v1205_v47 = vadd.f32 %v7401_v28, %v9630_v15  ;;  %v5669_v28 = vld [vmem:[%s9265_s0 + $0x4c] sm:$0xf] }
 0x1b2   :  { %9622 = vst [vmem:[#allocation25_spill] sm:$0xff] %v7802_v12  ;;  %v7810_v63 = vadd.f32 %v1820_v21, %v1199_v7  ;;  %3360 = vmatprep.mubr.bf16.mxu0 %v9384_v17  ;;  %v7826_v21 = vpop.f32.mrf.mxu1  ;;  %v9650_v12 = vld [vmem:[#allocation23_spill] sm:$0xff] }
 0x1b3   :  { %v1822_v8 = vpop.f32.mrf.mxu0  ;;  %9629 = vst [vmem:[#allocation147_spill] sm:$0xff] %v7826_v21  ;;  %v9637_v21 = vld [vmem:[#allocation33_spill] sm:$0xff] }
 0x1b4   :  { %9625 = vst [vmem:[#allocation27_spill] sm:$0xff] %v7810_v63  ;;  %v7824_v7 = vadd.f32 %v1822_v8, %v1201_v43  ;;  %v9631_v63 = vld [vmem:[#allocation15_spill] sm:$0xff]  ;;  %v5388_v52 = vpop.f32.mrf.mxu1  ;;  %5459 = vmatmul.mubr.msk.bf16.vlgmr.msra.gmra.mxu1 %vm571_vm4, %v7692_v3  ;;  %v3078_v43 = vrot.slane %v3076_v55, 4  ;;  %v3083_v8 = vrot.slane %v5669_v28, 6  ;;  %v3077_v28 = vsel %vm7624_vm12, %v5091_v14, %v3076_v55 }
 0x1b5   :  { %v1824_v11 = vpop.f32.mrf.mxu0  ;;  %v1370_v27 = vadd.f32 %v7420_v54, %v9631_v63  ;;  %v1209_v54 = vadd.f32 %v7408_v5, %v9633_v62  ;;  %v9634_v63 = vld [vmem:[#allocation16_spill] sm:$0xff]  ;;  %5462 = vmatprep.mubr.msk.bf16.mxu1 %vm571_vm4, %v7737_v53  ;;  %v1211_v5 = vadd.f32 %v7418_v58, %v9637_v21  ;;  %v9638_v62 = vld [vmem:[#allocation21_spill] sm:$0xff]  ;;  %v5670_v55 = vld [vmem:[%s9265_s0 + $0x48] sm:$0xf] }
 0x1b6   :  { %9628 = vst [vmem:[#allocation28_spill] sm:$0xff] %v7824_v7  ;;  %v7835_v57 = vadd.f32 %v1824_v11, %v1203_v49  ;;  %v1362_v49 = vadd.f32 %v7431_v10, %v9634_v63  ;;  %v1983_v15 = vpop.f32.mrf.mxu1  ;;  %v5092_v14 = vrot.slane %v5670_v55, 10  ;;  %v3085_v58 = vrot.slane %v3083_v8, 4  ;;  %v9643_v63 = vld [vmem:[#allocation93_spill] sm:$0xff]  ;;  %v9649_v7 = vld [vmem:[#allocation94_spill] sm:$0xff] }
 0x1b7   :  { %v1826_v22 = vpop.f32.mrf.mxu0  ;;  %v7849_v11 = vadd.f32 %v5388_v52, %v1370_v27  ;;  %v5672_v55 = vld [vmem:[%s9265_s0 + $0x58] sm:$0xf] }
 0x1b8   :  { %9632 = vst [vmem:[#allocation29_spill] sm:$0xff] %v7835_v57  ;;  %v7853_v3 = vadd.f32 %v1826_v22, %v1205_v47  ;;  %v9639_v57 = vld [vmem:[#allocation95_spill] sm:$0xff]  ;;  %v7862_v27 = vadd.f32 %v1983_v15, %v1362_v49  ;;  %v5389_v53 = vpop.f32.mrf.mxu1  ;;  %v3080_v47 = vsel %vm7624_vm12, %v3078_v43, %v3079_v48  ;;  %v9644_v15 = vld [vmem:[#allocation22_spill] sm:$0xff] }
 0x1b9   :  { %9635 = vst [vmem:[#allocation15_spill] sm:$0xff] %v7849_v11  ;;  %v1830_v50 = vpop.f32.mrf.mxu0  ;;  %5136 = vmatmul.mubr.msk.bf16.gmra.mxu0 %vm571_vm4, %v5114_v2  ;;  %v1373_v10 = vadd.f32 %v9639_v57, %v9638_v62  ;;  %v5671_v57 = vld [vmem:[%s9265_s0 + $0x50] sm:$0x3] }
 0x1ba   :  { %9636 = vst [vmem:[#allocation31_spill] sm:$0xff] %v7853_v3  ;;  %9640 = vst [vmem:[#allocation16_spill] sm:$0xff] %v7862_v27  ;;  %v7864_v52 = vadd.f32 %v1830_v50, %v1209_v54  ;;  %3370 = vmatprep.mubr.bf16.mxu0 %v9384_v17  ;;  %v3086_v21 = vrot.slane %v5671_v57, 6  ;;  %v9642_v54 = vld [vmem:[#allocation35_spill] sm:$0xff]  ;;  %v9645_v50 = vld [vmem:[#allocation97_spill] sm:$0xff]  ;;  %v1986_v48 = vpop.f32.mrf.mxu1 }
 0x1bb   :  { %v1832_v22 = vpop.f32.mrf.mxu0  ;;  %v1213_v49 = vadd.f32 %v9643_v63, %v9642_v54  ;;  %v1365_v62 = vadd.f32 %v9645_v50, %v9644_v15  ;;  %v7879_v27 = vadd.f32 %v5389_v53, %v1373_v10  ;;  %v9648_v3 = vld [vmem:[#allocation19_spill] sm:$0xff]  ;;  %v1386_v54 = vadd.f32 %v9651_v36, %v9650_v12  ;;  %v5673_v36 = vld [vmem:[%s9265_s0 + $0x64] sm:$0xf] }
 0x1bc   :  { %9641 = vst [vmem:[#allocation33_spill] sm:$0xff] %v7864_v52  ;;  %v7881_v43 = vadd.f32 %v1832_v22, %v1211_v5  ;;  %v3090_v52 = vrot.slane %v5672_v55, 6  ;;  %v1215_v57 = vadd.f32 %v9649_v7, %v9648_v3  ;;  %v5392_v10 = vpop.f32.mrf.mxu1  ;;  %5463 = vmatmul.mubr.msk.bf16.gmra.mxu1 %vm571_vm4, %v7782_v37  ;;  %v5115_v5 = vcombine.low %v3077_v28, %v3080_v47  ;;  %v9654_v7 = vld [vmem:[#allocation37_spill] sm:$0xff] }
 0x1bd   :  { %9646 = vst [vmem:[#allocation21_spill] sm:$0xff] %v7879_v27  ;;  %v1834_v11 = vpop.f32.mrf.mxu0  ;;  %v7890_v63 = vadd.f32 %v1986_v48, %v1365_v62  ;;  %v3084_v22 = vsel %vm7624_vm12, %v5092_v14, %v3083_v8  ;;  %v3087_v50 = vsel %vm7624_vm12, %v3085_v58, %v3086_v21  ;;  %v3097_v12 = vrot.slane %v5673_v36, 6  ;;  %v9657_v62 = vld [vmem:[#allocation101_spill] sm:$0xff]  ;;  %5466 = vmatprep.mubr.msk.bf16.mxu1 %vm571_vm4, %v5114_v2  ;;  %v5674_v14 = vld [vmem:[%s9265_s0 + $0x54] sm:$0xf]  ;;  %v9661_v36 = vld [vmem:[#allocation98_spill] sm:$0xff] }
 0x1be   :  { %9647 = vst [vmem:[#allocation95_spill] sm:$0xff] %v7881_v43  ;;  %v7892_v15 = vadd.f32 %v1834_v11, %v1213_v49  ;;  %v9655_v11 = vld [vmem:[#allocation96_spill] sm:$0xff]  ;;  %v9656_v49 = vld [vmem:[#allocation17_spill] sm:$0xff]  ;;  %v7907_v37 = vadd.f32 %v5392_v10, %v1386_v54  ;;  %v1999_v8 = vpop.f32.mrf.mxu1  ;;  %v5093_v58 = vrot.slane %v5674_v14, 10  ;;  %v3092_v21 = vrot.slane %v3090_v52, 4  ;;  %v9660_v10 = vld [vmem:[#allocation39_spill] sm:$0xff] }
 0x1bf   :  { %9652 = vst [vmem:[#allocation35_spill] sm:$0xff] %v7890_v63  ;;  %v1836_v53 = vpop.f32.mrf.mxu0  ;;  %v1219_v3 = vadd.f32 %v9655_v11, %v9654_v7  ;;  %v1378_v48 = vadd.f32 %v9657_v62, %v9656_v49  ;;  %v5675_v55 = vld [vmem:[%s9265_s0 + $0x5c] sm:$0x3]  ;;  %v1221_v2 = vadd.f32 %v9661_v36, %v9660_v10  ;;  %v5116_v14 = vcombine.low %v3084_v22, %v3087_v50  ;;  %v5676_v63 = vld [vmem:[%s9265_s0 + $0x60] sm:$0xf] }
 0x1c0   :  { %9653 = vst [vmem:[#allocation93_spill] sm:$0xff] %v7892_v15  ;;  %9658 = vst [vmem:[#allocation22_spill] sm:$0xff] %v7907_v37  ;;  %v7910_v28 = vadd.f32 %v1836_v53, %v1215_v57  ;;  %v3093_v54 = vrot.slane %v5675_v55, 6  ;;  %v9662_v57 = vld [vmem:[#allocation24_spill] sm:$0xff]  ;;  %v9663_v53 = vld [vmem:[#allocation103_spill] sm:$0xff]  ;;  %v5393_v62 = vpop.f32.mrf.mxu1  ;;  %v5094_v55 = vrot.slane %v5676_v63, 10  ;;  %v3091_v63 = vsel %vm7624_vm12, %v5093_v58, %v3090_v52 }
 0x1c1   :  { %v1840_v47 = vpop.f32.mrf.mxu0  ;;  %5137 = vmatmul.mubr.msk.bf16.gmra.mxu0 %vm571_vm4, %v5115_v5  ;;  %v1389_v7 = vadd.f32 %v9663_v53, %v9662_v57  ;;  %v7923_v11 = vadd.f32 %v1999_v8, %v1378_v48  ;;  %v3099_v27 = vrot.slane %v3097_v12, 4  ;;  %v5677_v10 = vld [vmem:[%s9265_s0 + $0x68] sm:$0x3]  ;;  %v9666_v48 = vld [vmem:[#allocation41_spill] sm:$0xff]  ;;  %v9667_v8 = vld [vmem:[#allocation100_spill] sm:$0xff] }
 0x1c2   :  { %9659 = vst [vmem:[#allocation97_spill] sm:$0xff] %v7910_v28  ;;  %v7925_v49 = vadd.f32 %v1840_v47, %v1219_v3  ;;  %3380 = vmatprep.mubr.bf16.mxu0 %v9384_v17  ;;  %v3100_v36 = vrot.slane %v5677_v10, 6  ;;  %v1223_v3 = vadd.f32 %v9667_v8, %v9666_v48  ;;  %v9668_v47 = vld [vmem:[#allocation26_spill] sm:$0xff]  ;;  %v9669_v57 = vld [vmem:[#allocation105_spill] sm:$0xff]  ;;  %v2002_v50 = vpop.f32.mrf.mxu1  ;;  %v5678_v10 = vld [vmem:[%s9265_s0 + $0x70] sm:$0xf] }
 0x1c3   :  { %9664 = vst [vmem:[#allocation19_spill] sm:$0xff] %v7923_v11  ;;  %v1842_v37 = vpop.f32.mrf.mxu0  ;;  %v1381_v53 = vadd.f32 %v9669_v57, %v9668_v47  ;;  %v7938_v11 = vadd.f32 %v5393_v62, %v1389_v7  ;;  %v3104_v48 = vrot.slane %v5678_v10, 6  ;;  %v9672_v8 = vld [vmem:[#allocation43_spill] sm:$0xff]  ;;  %v9673_v15 = vld [vmem:[#allocation102_spill] sm:$0xff] }
 0x1c4   :  { %9665 = vst [vmem:[#allocation94_spill] sm:$0xff] %v7925_v49  ;;  %v7940_v22 = vadd.f32 %v1842_v37, %v1221_v2  ;;  %v3094_v49 = vsel %vm7624_vm12, %v3092_v21, %v3093_v54  ;;  %v1225_v47 = vadd.f32 %v9673_v15, %v9672_v8  ;;  %v9674_v7 = vld [vmem:[#allocation18_spill] sm:$0xff]  ;;  %v9675_v62 = vld [vmem:[#allocation107_spill] sm:$0xff]  ;;  %v5396_v52 = vpop.f32.mrf.mxu1  ;;  %5467 = vmatmul.mubr.msk.bf16.gmra.mxu1 %vm571_vm4, %v5115_v5  ;;  %v5679_v15 = vld [vmem:[%s9265_s0 + $0x7c] sm:$0xf] }
 0x1c5   :  { %9670 = vst [vmem:[#allocation23_spill] sm:$0xff] %v7938_v11  ;;  %v1844_v28 = vpop.f32.mrf.mxu0  ;;  %v1402_v37 = vadd.f32 %v9675_v62, %v9674_v7  ;;  %v7953_v2 = vadd.f32 %v2002_v50, %v1381_v53  ;;  %v3098_v21 = vsel %vm7624_vm12, %v5094_v55, %v3097_v12  ;;  %v3101_v54 = vsel %vm7624_vm12, %v3099_v27, %v3100_v36  ;;  %v9678_v8 = vld [vmem:[#allocation44_spill] sm:$0xff]  ;;  %v5680_v36 = vld [vmem:[%s9265_s0 + $0x6c] sm:$0xf] }
 0x1c6   :  { %9671 = vst [vmem:[#allocation99_spill] sm:$0xff] %v7940_v22  ;;  %v7955_v57 = vadd.f32 %v1844_v28, %v1223_v3  ;;  %v3111_v10 = vrot.slane %v5679_v15, 6  ;;  %v9679_v53 = vld [vmem:[#allocation104_spill] sm:$0xff]  ;;  %v9680_v28 = vld [vmem:[#allocation30_spill] sm:$0xff]  ;;  %v9681_v3 = vld [vmem:[#allocation109_spill] sm:$0xff]  ;;  %5470 = vmatprep.mubr.msk.bf16.mxu1 %vm571_vm4, %v5116_v14  ;;  %v2015_v12 = vpop.f32.mrf.mxu1  ;;  %v5117_v55 = vcombine.low %v3091_v63, %v3094_v49  ;;  %v5095_v15 = vrot.slane %v5680_v36, 10 }
 0x1c7   :  { %9676 = vst [vmem:[#allocation37_spill] sm:$0xff] %v7953_v2  ;;  %v1846_v58 = vpop.f32.mrf.mxu0  ;;  %v1229_v50 = vadd.f32 %v9679_v53, %v9678_v8  ;;  %v1394_v7 = vadd.f32 %v9681_v3, %v9680_v28  ;;  %v7969_v62 = vadd.f32 %v5396_v52, %v1402_v37  ;;  %v3106_v8 = vrot.slane %v3104_v48, 4  ;;  %v5681_v37 = vld [vmem:[%s9265_s0 + $0x74] sm:$0x3]  ;;  %v9684_v53 = vld [vmem:[#allocation45_spill] sm:$0xff]  ;;  %v9685_v28 = vld [vmem:[#allocation106_spill] sm:$0xff] }
 0x1c8   :  { %9677 = vst [vmem:[#allocation96_spill] sm:$0xff] %v7955_v57  ;;  %v7972_v5 = vadd.f32 %v1846_v58, %v1225_v47  ;;  %v3107_v52 = vrot.slane %v5681_v37, 6  ;;  %v1231_v47 = vadd.f32 %v9685_v28, %v9684_v53  ;;  %v9686_v58 = vld [vmem:[#allocation32_spill] sm:$0xff]  ;;  %v9687_v3 = vld [vmem:[#allocation111_spill] sm:$0xff]  ;;  %v7990_v36 = vcombine.low %v3098_v21, %v3101_v54  ;;  %v5682_v37 = vld [vmem:[%s9265_s0 + $0x78] sm:$0xf] }
 0x1c9   :  { %9682 = vst [vmem:[#allocation17_spill] sm:$0xff] %v7969_v62  ;;  %v1850_v27 = vpop.f32.mrf.mxu0  ;;  %5138 = vmatmul.mubr.msk.bf16.gmra.mxu0 %vm571_vm4, %v5116_v14  ;;  %v1405_v49 = vadd.f32 %v9687_v3, %v9686_v58  ;;  %v7985_v63 = vadd.f32 %v2015_v12, %v1394_v7  ;;  %v5397_v62 = vpop.f32.mrf.mxu1  ;;  %v5096_v11 = vrot.slane %v5682_v37, 10  ;;  %v5683_v53 = vld [vmem:[%s9265_s0 + $0x80] sm:$0x3]  ;;  %v9693_v58 = vld [vmem:[#allocation113_spill] sm:$0xff]  ;;  %v3105_v37 = vsel %vm7624_vm12, %v5095_v15, %v3104_v48  ;;  %v9694_v22 = vld [vmem:[#allocation47_spill] sm:$0xff] }
 0x1ca   :  { %9683 = vst [vmem:[#allocation101_spill] sm:$0xff] %v7972_v5  ;;  %v7987_v14 = vadd.f32 %v1850_v27, %v1229_v50  ;;  %3390 = vmatprep.mubr.bf16.mxu0 %v9384_v17  ;;  %v3113_v5 = vrot.slane %v3111_v10, 4  ;;  %v3114_v7 = vrot.slane %v5683_v53, 6  ;;  %v9690_v12 = vld [vmem:[#allocation46_spill] sm:$0xff]  ;;  %v9691_v50 = vld [vmem:[#allocation108_spill] sm:$0xff] }
 0x1cb   :  { %9688 = vst [vmem:[#allocation39_spill] sm:$0xff] %v7985_v63  ;;  %v1852_v2 = vpop.f32.mrf.mxu0  ;;  %v1233_v27 = vadd.f32 %v9691_v50, %v9690_v12  ;;  %v9692_v28 = vld [vmem:[#allocation34_spill] sm:$0xff]  ;;  %v8002_v21 = vadd.f32 %v5397_v62, %v1405_v49  ;;  %v2018_v63 = vpop.f32.mrf.mxu1  ;;  %v9697_v12 = vld [vmem:[#allocation115_spill] sm:$0xff]  ;;  %v3112_v48 = vsel %vm7624_vm12, %v5096_v11, %v3111_v10 }
 0x1cc   :  { %9689 = vst [vmem:[#allocation98_spill] sm:$0xff] %v7987_v14  ;;  %v1397_v3 = vadd.f32 %v9693_v58, %v9692_v28  ;;  %v8004_v54 = vadd.f32 %v1852_v2, %v1231_v47  ;;  %v3108_v14 = vsel %vm7624_vm12, %v3106_v8, %v3107_v52  ;;  %v9695_v53 = vld [vmem:[#allocation110_spill] sm:$0xff]  ;;  %v1418_v50 = vadd.f32 %v9697_v12, %v9696_v6  ;;  %v9698_v6 = vld [vmem:[#allocation48_spill] sm:$0xff] }
 0x1cd   :  { %v1854_v57 = vpop.f32.mrf.mxu0  ;;  %v1235_v43 = vadd.f32 %v9695_v53, %v9694_v22  ;;  %v5400_v2 = vpop.f32.mrf.mxu1  ;;  %5471 = vmatmul.mubr.msk.bf16.gmra.mxu1 %vm571_vm4, %v5117_v55  ;;  %v3115_v15 = vsel %vm7624_vm12, %v3113_v5, %v3114_v7  ;;  %v5684_v22 = vld [vmem:[%s9265_s0 + $0x88] sm:$0xf]  ;;  %v9699_v52 = vld [vmem:[#allocation112_spill] sm:$0xff]  ;;  %v8036_v5 = vcombine.low %v3105_v37, %v3108_v14 }
 0x1ce   :  { %v8014_v38 = vadd.f32 %v2018_v63, %v1397_v3  ;;  %v8016_v62 = vadd.f32 %v1854_v57, %v1233_v27  ;;  %v3118_v8 = vrot.slane %v5684_v22, 6  ;;  %v1239_v49 = vadd.f32 %v9699_v52, %v9698_v6  ;;  %v9700_v57 = vld [vmem:[#allocation38_spill] sm:$0xff]  ;;  %5474 = vmatprep.mubr.msk.bf16.mxu1 %vm571_vm4, %v7990_v36  ;;  %v5685_v28 = vld [vmem:[%s9265_s0 + $0x94] sm:$0xf]  ;;  %v5687_v6 = vld [vmem:[%s9265_s0 + $0x8c] sm:$0x3] }
 0x1cf   :  { %v1856_v47 = vpop.f32.mrf.mxu0  ;;  %v1410_v63 = vadd.f32 %v7511_v9, %v9700_v57  ;;  %v8030_v27 = vadd.f32 %v5400_v2, %v1418_v50  ;;  %v2031_v10 = vpop.f32.mrf.mxu1  ;;  %v3125_v58 = vrot.slane %v5685_v28, 6  ;;  %v9702_v3 = vld [vmem:[#allocation50_spill] sm:$0xff]  ;;  %v9704_v12 = vld [vmem:[#allocation40_spill] sm:$0xff]  ;;  %v8051_v37 = vcombine.low %v3112_v48, %v3115_v15  ;;  %v9706_v57 = vld [vmem:[#allocation51_spill] sm:$0xff] }
 0x1d0   :  { %v8034_v11 = vadd.f32 %v1856_v47, %v1235_v43  ;;  %v9703_v9 = vld [vmem:[#allocation114_spill] sm:$0xff]  ;;  %v1421_v50 = vadd.f32 %v7515_v59, %v9704_v12  ;;  %v3120_v22 = vrot.slane %v3118_v8, 4  ;;  %v3121_v59 = vrot.slane %v5687_v6, 6  ;;  %v5689_v6 = vld [vmem:[%s9265_s0 + $0x98] sm:$0x3] }
 0x1d1   :  { %9701 = vst [vmem:[#allocation24_spill] sm:$0xff] %v8030_v27  ;;  %v1860_v7 = vpop.f32.mrf.mxu0  ;;  %5139 = vmatmul.mubr.msk.bf16.gmra.mxu0 %vm571_vm4, %v5117_v55  ;;  %v1241_v53 = vadd.f32 %v9703_v9, %v9702_v3  ;;  %v8046_v2 = vadd.f32 %v2031_v10, %v1410_v63  ;;  %v5401_v14 = vpop.f32.mrf.mxu1  ;;  %v5686_v55 = vld [vmem:[%s9265_s0 + $0x84] sm:$0xf]  ;;  %v9708_v10 = vld [vmem:[#allocation117_spill] sm:$0xff]  ;;  %v5688_v9 = vld [vmem:[%s9265_s0 + $0x90] sm:$0xf] }
 0x1d2   :  { %v8048_v43 = vadd.f32 %v1860_v7, %v1239_v49  ;;  %3400 = vmatprep.mubr.bf16.mxu0 %v9384_v17  ;;  %v5097_v47 = vrot.slane %v5686_v55, 10  ;;  %v1243_v49 = vadd.f32 %v7509_v26, %v9706_v57  ;;  %v9707_v63 = vld [vmem:[#allocation42_spill] sm:$0xff]  ;;  %v8063_v48 = vadd.f32 %v5401_v14, %v1421_v50  ;;  %v9710_v57 = vld [vmem:[#allocation53_spill] sm:$0xff]  ;;  %v9712_v50 = vld [vmem:[#allocation8_spill] sm:$0xff] }
 0x1d3   :  { %9705 = vst [vmem:[#allocation103_spill] sm:$0xff] %v8046_v2  ;;  %v1862_v52 = vpop.f32.mrf.mxu0  ;;  %v1413_v7 = vadd.f32 %v9708_v10, %v9707_v63  ;;  %v2034_v28 = vpop.f32.mrf.mxu1  ;;  %v5098_v12 = vrot.slane %v5688_v9, 10  ;;  %v3127_v55 = vrot.slane %v3125_v58, 4  ;;  %v3128_v26 = vrot.slane %v5689_v6, 6  ;;  %v9711_v2 = vld [vmem:[#allocation20_spill] sm:$0xff]  ;;  %v9713_v14 = vld [vmem:[#allocation119_spill] sm:$0xff] }
 0x1d4   :  { %9709 = vst [vmem:[#allocation41_spill] sm:$0xff] %v8063_v48  ;;  %v8065_v15 = vadd.f32 %v1862_v52, %v1241_v53  ;;  %v1245_v63 = vadd.f32 %v9711_v2, %v9710_v57  ;;  %v1434_v53 = vadd.f32 %v9713_v14, %v9712_v50  ;;  %v3119_v9 = vsel %vm7624_vm12, %v5097_v47, %v3118_v8  ;;  %v5690_v2 = vld [vmem:[%s9265_s0 + $0xa0] sm:$0xf] }
 0x1d5   :  { %v1864_v3 = vpop.f32.mrf.mxu0  ;;  %v8077_v52 = vadd.f32 %v2034_v28, %v1413_v7  ;;  %v5404_v48 = vpop.f32.mrf.mxu1  ;;  %5475 = vmatmul.mubr.msk.bf16.gmra.mxu1 %vm571_vm4, %v8036_v5  ;;  %v3122_v6 = vsel %vm7624_vm12, %v3120_v22, %v3121_v59  ;;  %v3132_v57 = vrot.slane %v5690_v2, 6  ;;  %v9714_v7 = vld [vmem:[#allocation55_spill] sm:$0xff]  ;;  %v9715_v28 = vld [vmem:[#allocation116_spill] sm:$0xff]  ;;  %v3126_v22 = vsel %vm7624_vm12, %v5098_v12, %v3125_v58 }
 0x1d6   :  { %v8079_v10 = vadd.f32 %v1864_v3, %v1243_v49  ;;  %v1249_v49 = vadd.f32 %v9715_v28, %v9714_v7  ;;  %v9716_v3 = vld [vmem:[#allocation9_spill] sm:$0xff]  ;;  %v8094_v14 = vadd.f32 %v5404_v48, %v1434_v53  ;;  %5478 = vmatprep.mubr.msk.bf16.mxu1 %vm571_vm4, %v8051_v37  ;;  %v3129_v59 = vsel %vm7624_vm12, %v3127_v55, %v3128_v26  ;;  %v9719_v7 = vld [vmem:[#allocation118_spill] sm:$0xff] }
 0x1d7   :  { %v1866_v27 = vpop.f32.mrf.mxu0  ;;  %v1426_v50 = vadd.f32 %v7547_v51, %v9716_v3  ;;  %v2047_v47 = vpop.f32.mrf.mxu1  ;;  %v5691_v51 = vld [vmem:[%s9265_s0 + $0xac] sm:$0xf]  ;;  %v9718_v53 = vld [vmem:[#allocation57_spill] sm:$0xff]  ;;  %v8118_v55 = vcombine.low %v3119_v9, %v3122_v6 }
 0x1d8   :  { %9717 = vst [vmem:[#allocation100_spill] sm:$0xff] %v8094_v14  ;;  %v8098_v8 = vadd.f32 %v1866_v27, %v1245_v63  ;;  %v3139_v48 = vrot.slane %v5691_v51, 6  ;;  %v1251_v27 = vadd.f32 %v9719_v7, %v9718_v53  ;;  %v9720_v63 = vld [vmem:[#allocation10_spill] sm:$0xff]  ;;  %v3134_v51 = vrot.slane %v3132_v57, 4 }
 0x1d9   :  { %v1870_v2 = vpop.f32.mrf.mxu0  ;;  %5140 = vmatmul.mubr.msk.bf16.gmra.mxu0 %vm571_vm4, %v7990_v36  ;;  %v1437_v28 = vadd.f32 %v7553_v61, %v9720_v63  ;;  %v8113_v3 = vadd.f32 %v2047_v47, %v1426_v50  ;;  %v5405_v12 = vpop.f32.mrf.mxu1  ;;  %v5692_v36 = vld [vmem:[%s9265_s0 + $0x9c] sm:$0xf]  ;;  %v5693_v53 = vld [vmem:[%s9265_s0 + $0xa4] sm:$0x3]  ;;  %v9722_v47 = vld [vmem:[#allocation59_spill] sm:$0xff]  ;;  %v8130_v7 = vcombine.low %v3126_v22, %v3129_v59 }
 0x1da   :  { %v8115_v58 = vadd.f32 %v1870_v2, %v1249_v49  ;;  %3410 = vmatprep.mubr.bf16.mxu0 %v9384_v17  ;;  %v5099_v26 = vrot.slane %v5692_v36, 10  ;;  %v3135_v61 = vrot.slane %v5693_v53, 6  ;;  %v1253_v49 = vadd.f32 %v7545_v39, %v9722_v47  ;;  %v5694_v36 = vld [vmem:[%s9265_s0 + $0xa8] sm:$0xf]  ;;  %v5695_v53 = vld [vmem:[%s9265_s0 + $0xb0] sm:$0x3] }
 0x1db   :  { %9721 = vst [vmem:[#allocation26_spill] sm:$0xff] %v8113_v3  ;;  %v1872_v50 = vpop.f32.mrf.mxu0  ;;  %v8128_v2 = vadd.f32 %v5405_v12, %v1437_v28  ;;  %v8134_v6 = vpop.f32.mrf.mxu1  ;;  %v5100_v3 = vrot.slane %v5694_v36, 10  ;;  %v3141_v14 = vrot.slane %v3139_v48, 4  ;;  %v3142_v39 = vrot.slane %v5695_v53, 6  ;;  %v9724_v28 = vld [vmem:[#allocation61_spill] sm:$0xff]  ;;  %v9725_v59 = vld [vmem:[#allocation52_spill] sm:$0xff] }
 0x1dc   :  { %v8132_v9 = vadd.f32 %v1872_v50, %v1251_v27  ;;  %v1255_v22 = vadd.f32 %v7551_v42, %v9724_v28  ;;  %v1450_v27 = vadd.f32 %v7566_v23, %v9725_v59  ;;  %v3133_v47 = vsel %vm7624_vm12, %v5099_v26, %v3132_v57  ;;  %v5696_v42 = vld [vmem:[%s9265_s0 + $0xb8] sm:$0xf]  ;;  %v9726_v28 = vld [vmem:[#allocation63_spill] sm:$0xff] }
 0x1dd   :  { %9723 = vst [vmem:[#allocation105_spill] sm:$0xff] %v8128_v2  ;;  %v1874_v63 = vpop.f32.mrf.mxu0  ;;  %v5408_v50 = vpop.f32.mrf.mxu1  ;;  %5479 = vmatmul.mubr.msk.bf16.gmra.mxu1 %vm571_vm4, %v8118_v55  ;;  %v3136_v36 = vsel %vm7624_vm12, %v3134_v51, %v3135_v61  ;;  %v3146_v53 = vrot.slane %v5696_v42, 6  ;;  %v1259_v23 = vadd.f32 %v7557_v60, %v9726_v28  ;;  %v3140_v51 = vsel %vm7624_vm12, %v5100_v3, %v3139_v48  ;;  %v9730_v60 = vld [vmem:[#allocation65_spill] sm:$0xff] }
 0x1de   :  { %v8146_v12 = vadd.f32 %v1874_v63, %v1253_v49  ;;  %v9727_v49 = vld [vmem:[#allocation54_spill] sm:$0xff]  ;;  %v8161_v59 = vadd.f32 %v5408_v50, %v1450_v27  ;;  %5482 = vmatprep.mubr.msk.bf16.mxu1 %vm571_vm4, %v8130_v7  ;;  %v3143_v61 = vsel %vm7624_vm12, %v3141_v14, %v3142_v39  ;;  %v9731_v27 = vld [vmem:[#allocation56_spill] sm:$0xff]  ;;  %v8182_v3 = vcombine.low %v3133_v47, %v3136_v36 }
 0x1df   :  { %v1876_v2 = vpop.f32.mrf.mxu0  ;;  %v1442_v63 = vadd.f32 %v7574_v4, %v9727_v49  ;;  %v2063_v26 = vpop.f32.mrf.mxu1  ;;  %v1261_v4 = vadd.f32 %v7564_v46, %v9730_v60  ;;  %v1453_v50 = vadd.f32 %v7582_v33, %v9731_v27  ;;  %v5697_v14 = vld [vmem:[%s9265_s0 + $0xb4] sm:$0xf]  ;;  %v3148_v39 = vrot.slane %v3146_v53, 4  ;;  %v5698_v46 = vld [vmem:[%s9265_s0 + $0xbc] sm:$0x3]  ;;  %v9734_v49 = vld [vmem:[#allocation67_spill] sm:$0xff] }
 0x1e0   :  { %9728 = vst [vmem:[#allocation43_spill] sm:$0xff] %v8161_v59  ;;  %v8165_v57 = vadd.f32 %v1876_v2, %v1255_v22  ;;  %v3149_v33 = vrot.slane %v5698_v46, 6  ;;  %v9736_v60 = vld [vmem:[#allocation69_spill] sm:$0xff]  ;;  %s4818_s0 = sshll.u32 %s5755_s21, 4  ;;  %s4819_s0 = int_to_ptr.vmem [resolvable:$true] %s4818_s0 }
 0x1e1   :  { %v1880_v42 = vpop.f32.mrf.mxu0  ;;  %5141 = vmatmul.mubr.msk.bf16.gmra.mxu0 %vm571_vm4, %v8036_v5  ;;  %v8177_v28 = vadd.f32 %v2063_v26, %v1442_v63  ;;  %v5409_v48 = vpop.f32.mrf.mxu1  ;;  %v5101_v5 = vrot.slane %v5697_v14, 10  ;;  %v8194_v26 = vcombine.low %v3140_v51, %v3143_v61  ;;  %v9737_v27 = vld [vmem:[#allocation121_spill] sm:$0xff]  ;;  %s5725_s22 = scalar_lea.vmem %s4819_s0, 256  ;;  %p5730_p6 = scmp.lt.s32.totalorder %s4819_s0, %s4819_s0 }
 0x1e2   :  { %9729 = vst [vmem:[#allocation102_spill] sm:$0xff] %v8165_v57  ;;  %v8179_v2 = vadd.f32 %v1880_v42, %v1259_v23  ;;  %3420 = vmatprep.mubr.bf16.mxu0 %v9384_v17  ;;  %v1263_v23 = vadd.f32 %v7572_v44, %v9734_v49  ;;  %v8192_v63 = vadd.f32 %v5409_v48, %v1453_v50  ;;  %v9739_v59 = vld [vmem:[#allocation125_spill] sm:$0xff]  ;;  %v9741_v50 = vld [vmem:[#allocation122_spill] sm:$0xff]  ;;  %v9743_v49 = vld [vmem:[#allocation127_spill] sm:$0xff]  ;;  %p5726_p5 = scmp.ne.s32.totalorder %s4819_s0, %s5725_s22  ;;  %p5731_p7 = scmp.lt.s32.totalorder %s5725_s22, %s5725_s22 }
 0x1e3   :  { %9732 = vst [vmem:[#allocation18_spill] sm:$0xff] %v8177_v28  ;;  %v1882_v22 = vpop.f32.mrf.mxu0  ;;  %v8198_v36 = vpop.f32.mrf.mxu1  ;;  %v1265_v14 = vadd.f32 %v9737_v27, %v9736_v60  ;;  %v9738_v28 = vld [vmem:[#allocation60_spill] sm:$0xff]  ;;  %v3147_v44 = vsel %vm7624_vm12, %v5101_v5, %v3146_v53  ;;  %v3150_v51 = vsel %vm7624_vm12, %v3148_v39, %v3149_v33  ;;  %v9748_v33 = vld [vmem:[#allocation129_spill] sm:$0xff] }
 0x1e4   :  { %9733 = vst [vmem:[#allocation107_spill] sm:$0xff] %v8179_v2  ;;  %9735 = vst [vmem:[#allocation44_spill] sm:$0xff] %v8192_v63  ;;  %v8196_v47 = vadd.f32 %v1882_v22, %v1261_v4  ;;  %v1466_v2 = vadd.f32 %v9739_v59, %v9738_v28  ;;  %v9740_v4 = vld [vmem:[#allocation71_spill] sm:$0xff]  ;;  %v9742_v22 = vld [vmem:[#allocation62_spill] sm:$0xff]  ;;  %p5732_p8 = por %p5731_p7, %p5730_p6 }
 0x1e5   :  { %v1884_v42 = vpop.f32.mrf.mxu0  ;;  %v5412_v57 = vpop.f32.mrf.mxu1  ;;  %5483 = vmatmul.mubr.msk.bf16.gmra.mxu1 %vm571_vm4, %v8182_v3  ;;  %v1269_v48 = vadd.f32 %v9741_v50, %v9740_v4  ;;  %v1458_v60 = vadd.f32 %v9743_v49, %v9742_v22  ;;  %v9746_v53 = vld [vmem:[#allocation124_spill] sm:$0xff]  ;;  %v9751_v50 = vld [vmem:[#allocation75_spill] sm:$0xff]  ;;  %v9752_v22 = vld [vmem:[#allocation126_spill] sm:$0xff] }
 0x1e6   :  { %v8204_v46 = vadd.f32 %v1884_v42, %v1263_v23  ;;  %v8216_v59 = vadd.f32 %v5412_v57, %v1466_v2  ;;  %5486 = vmatprep.mubr.msk.bf16.mxu1 %vm571_vm4, %v8194_v26  ;;  %v1271_v5 = vadd.f32 %v9746_v53, %v9745_v20  ;;  %v9747_v39 = vld [vmem:[#allocation64_spill] sm:$0xff]  ;;  %v1273_v49 = vadd.f32 %v9752_v22, %v9751_v50  ;;  %p5733_p9 = pnand %p5732_p8, %p5726_p5 }
 0x1e7   :  { %v1886_v61 = vpop.f32.mrf.mxu0  ;;  %v2079_v23 = vpop.f32.mrf.mxu1  ;;  %v1469_v27 = vadd.f32 %v9748_v33, %v9747_v39  ;;  %v9758_v33 = vld [vmem:[#allocation68_spill] sm:$0xff] }
 0x1e8   :  { %9744 = vst [vmem:[#allocation104_spill] sm:$0xff] %v8216_v59  ;;  %v8220_v28 = vadd.f32 %v1886_v61, %v1265_v14  ;;  %v8228_v4 = vadd.f32 %v2079_v23, %v1458_v60  ;;  %v8233_v14 = vcombine.low %v3147_v44, %v3150_v51  ;;  %v9754_v59 = vld [vmem:[#allocation131_spill] sm:$0xff] }
 0x1e9   :  { %v1890_v42 = vpop.f32.mrf.mxu0  ;;  %5142 = vmatmul.mubr.msk.bf16.gmra.mxu0 %vm571_vm4, %v8051_v37  ;;  %v5413_v2 = vpop.f32.mrf.mxu1  ;;  %v9753_v37 = vld [vmem:[#allocation66_spill] sm:$0xff] }
 0x1ea   :  { %9749 = vst [vmem:[#allocation30_spill] sm:$0xff] %v8228_v4  ;;  %v8230_v57 = vadd.f32 %v1890_v42, %v1269_v48  ;;  %3430 = vmatprep.mubr.bf16.mxu0 %v9384_v17  ;;  %v1461_v63 = vadd.f32 %v9754_v59, %v9753_v37  ;;  %v8239_v20 = vadd.f32 %v5413_v2, %v1469_v27  ;;  %v9756_v48 = vld [vmem:[#allocation76_spill] sm:$0xff]  ;;  %v9759_v4 = vld [vmem:[#allocation133_spill] sm:$0xff] }
 0x1eb   :  { %v1892_v61 = vpop.f32.mrf.mxu0  ;;  %v2082_v60 = vpop.f32.mrf.mxu1  ;;  %v9757_v42 = vld [vmem:[#allocation128_spill] sm:$0xff]  ;;  %v1482_v44 = vadd.f32 %v9759_v4, %v9758_v33  ;;  %v9761_v27 = vld [vmem:[#allocation77_spill] sm:$0xff] }
 0x1ec   :  { %9750 = vst [vmem:[#allocation109_spill] sm:$0xff] %v8230_v57  ;;  %9755 = vst [vmem:[#allocation45_spill] sm:$0xff] %v8239_v20  ;;  %v8241_v53 = vadd.f32 %v1892_v61, %v1271_v5  ;;  %v1275_v39 = vadd.f32 %v9757_v42, %v9756_v48  ;;  %v8247_v51 = vadd.f32 %v2082_v60, %v1461_v63  ;;  %v9762_v5 = vld [vmem:[#allocation130_spill] sm:$0xff]  ;;  %v9767_v60 = vld [vmem:[#allocation132_spill] sm:$0xff] }
 0x1ed   :  { %v1894_v23 = vpop.f32.mrf.mxu0  ;;  %v5416_v50 = vpop.f32.mrf.mxu1  ;;  %5487 = vmatmul.mubr.msk.bf16.gmra.mxu1 %vm571_vm4, %v8233_v14  ;;  %v1279_v2 = vadd.f32 %v9762_v5, %v9761_v27  ;;  %v9763_v61 = vld [vmem:[#allocation70_spill] sm:$0xff]  ;;  %v9768_v42 = vld [vmem:[#allocation72_spill] sm:$0xff] }
 0x1ee   :  { %9760 = vst [vmem:[#allocation106_spill] sm:$0xff] %v8247_v51  ;;  %v8249_v57 = vadd.f32 %v1894_v23, %v1273_v49  ;;  %v1474_v22 = vadd.f32 %v7645_v16, %v9763_v61  ;;  %v8257_v37 = vadd.f32 %v5416_v50, %v1482_v44  ;;  %v9766_v49 = vld [vmem:[#allocation78_spill] sm:$0xff]  ;;  %v9769_v33 = vld [vmem:[#allocation136_spill] sm:$0xff]  ;;  %v9772_v44 = vld [vmem:[#allocation79_spill] sm:$0xff] }
 0x1ef   :  { %v1896_v59 = vpop.f32.mrf.mxu0  ;;  %v2095_v4 = vpop.f32.mrf.mxu1  ;;  %v1281_v23 = vadd.f32 %v9767_v60, %v9766_v49  ;;  %v1485_v51 = vadd.f32 %v9769_v33, %v9768_v42  ;;  %v9773_v50 = vld [vmem:[#allocation134_spill] sm:$0xff] }
 0x1f0   :  { %9764 = vst [vmem:[#allocation32_spill] sm:$0xff] %v8257_v37  ;;  %v8259_v48 = vadd.f32 %v1896_v59, %v1275_v39  ;;  %v8267_v20 = vadd.f32 %v2095_v4, %v1474_v22  ;;  %v1283_v59 = vadd.f32 %v9773_v50, %v9772_v44  ;;  %v9774_v5 = vld [vmem:[#allocation74_spill] sm:$0xff]  ;;  %v9776_v22 = vld [vmem:[#allocation80_spill] sm:$0xff]  ;;  %v9777_v4 = vld [vmem:[#allocation135_spill] sm:$0xff] }
 0x1f1   :  { %v1900_v63 = vpop.f32.mrf.mxu0  ;;  %5143 = vmatmul.mubr.msk.bf16.gmra.mxu0 %vm571_vm4, %v8118_v55  ;;  %v5417_v16 = vpop.f32.mrf.mxu1  ;;  %v9775_v61 = vld [vmem:[#allocation138_spill] sm:$0xff]  ;;  %v9779_v44 = vld [vmem:[#allocation137_spill] sm:$0xff] }
 0x1f2   :  { %9765 = vst [vmem:[#allocation111_spill] sm:$0xff] %v8259_v48  ;;  %9770 = vst [vmem:[#allocation46_spill] sm:$0xff] %v8267_v20  ;;  %v8269_v27 = vadd.f32 %v1900_v63, %v1279_v2  ;;  %3440 = vmatprep.mubr.bf16.mxu0 %v9384_v17  ;;  %v1477_v55 = vadd.f32 %v9775_v61, %v9774_v5  ;;  %v8276_v37 = vadd.f32 %v5417_v16, %v1485_v51  ;;  %v9778_v48 = vld [vmem:[#allocation81_spill] sm:$0xff]  ;;  %v9781_v61 = vld [vmem:[#allocation139_spill] sm:$0xff] }
 0x1f3   :  { %v1902_v39 = vpop.f32.mrf.mxu0  ;;  %v2098_v60 = vpop.f32.mrf.mxu1  ;;  %v1285_v2 = vadd.f32 %v9777_v4, %v9776_v22  ;;  %v1289_v50 = vadd.f32 %v9779_v44, %v9778_v48  ;;  %v9784_v44 = vld [vmem:[#allocation84_spill] sm:$0xff] }
 0x1f4   :  { %9771 = vst [vmem:[#allocation108_spill] sm:$0xff] %v8269_v27  ;;  %v8278_v49 = vadd.f32 %v1902_v39, %v1281_v23  ;;  %v8282_v63 = vadd.f32 %v2098_v60, %v1477_v55  ;;  %v9780_v39 = vld [vmem:[#allocation82_spill] sm:$0xff] }
 0x1f5   :  { %v1904_v42 = vpop.f32.mrf.mxu0  ;;  %v2620_v20 = vpop.f32.mrf.mxu1  ;;  %v1291_v55 = vadd.f32 %v9781_v61, %v9780_v39  ;;  %v9785_v61 = vld [vmem:[#allocation85_spill] sm:$0xff] }
 0x1f6   :  { %v8284_v33 = vadd.f32 %v1904_v42, %v1283_v59  ;;  %v8289_v5 = vadd.f32 %v2620_v20, %v7676_v24  ;;  %v9782_v20 = vld [vmem:[#allocation83_spill] sm:$0xff] }
 0x1f7   :  { %v1906_v27 = vpop.f32.mrf.mxu0  ;;  %v2622_v23 = vpop.f32.mrf.mxu1 }
 0x1f8   :  { %v8291_v51 = vadd.f32 %v1906_v27, %v1285_v2  ;;  %v8298_v59 = vadd.f32 %v2622_v23, %v7688_v1  ;;  %v9783_v27 = vld [vmem:[#allocation140_spill] sm:$0xff]  ;;  %v1295_v1 = vadd.f32 %v7690_v29, %v9784_v44  ;;  %v9786_v29 = vld [vmem:[#allocation86_spill] sm:$0xff] }
 0x1f9   :  { %v1910_v16 = vpop.f32.mrf.mxu0  ;;  %5144 = vmatmul.mubr.msk.bf16.gmra.mxu0 %vm571_vm4, %v8130_v7  ;;  %v2624_v48 = vpop.f32.mrf.mxu1  ;;  %v1293_v42 = vadd.f32 %v9783_v27, %v9782_v20  ;;  %v1299_v20 = vadd.f32 %v7704_v0, %v9785_v61 }
 0x1fa   :  { %v8300_v60 = vadd.f32 %v1910_v16, %v1289_v50  ;;  %3450 = vmatprep.mubr.bf16.mxu0 %v9384_v17  ;;  %v8306_v22 = vadd.f32 %v2624_v48, %v7699_v19 }
 0x1fb   :  { %v1912_v24 = vpop.f32.mrf.mxu0  ;;  %v2626_v7 = vpop.f32.mrf.mxu1 }
 0x1fc   :  { %v8308_v4 = vadd.f32 %v1912_v24, %v1291_v55  ;;  %v8313_v50 = vadd.f32 %v2626_v7, %v7711_v31  ;;  %v1301_v31 = vadd.f32 %v7713_v56, %v9786_v29  ;;  %v9787_v7 = vld [vmem:[#allocation87_spill] sm:$0xff]  ;;  %v9788_v56 = vld [vmem:[#allocation88_spill] sm:$0xff] }
 0x1fd   :  { %v1914_v2 = vpop.f32.mrf.mxu0  ;;  %v2630_v16 = vpop.f32.mrf.mxu1 }
 0x1fe   :  { %v8315_v23 = vadd.f32 %v1914_v2, %v1293_v42  ;;  %v8320_v19 = vadd.f32 %v2630_v16, %v7721_v32  ;;  %v1303_v2 = vadd.f32 %v7729_v18, %v9787_v7 }
 0x1ff   :  { %v1916_v39 = vpop.f32.mrf.mxu0  ;;  %v2632_v48 = vpop.f32.mrf.mxu1 }
 0x200   :  { %v8322_v55 = vadd.f32 %v1916_v39, %v1295_v1  ;;  %v8329_v27 = vadd.f32 %v2632_v48, %v7733_v34  ;;  %v1305_v34 = vadd.f32 %v7735_v30, %v9788_v56  ;;  %v9790_v30 = vld [vmem:[#allocation90_spill] sm:$0xff]  ;;  %v9795_v56 = vld [vmem:[#allocation143_spill] sm:$0xff] }
 0x201   :  { %v1920_v24 = vpop.f32.mrf.mxu0  ;;  %5145 = vmatmul.mubr.msk.bf16.gmra.mxu0 %vm571_vm4, %v8182_v3  ;;  %v2634_v0 = vpop.f32.mrf.mxu1 }
 0x202   :  { %v8331_v42 = vadd.f32 %v1920_v24, %v1299_v20  ;;  %3460 = vmatprep.mubr.bf16.mxu0 %v9384_v17  ;;  %v8337_v44 = vadd.f32 %v2634_v0, %v7744_v45  ;;  %v9789_v24 = vld [vmem:[#allocation89_spill] sm:$0xff] }
 0x203   :  { %v1922_v32 = vpop.f32.mrf.mxu0  ;;  %v2636_v3 = vpop.f32.mrf.mxu1  ;;  %v1309_v18 = vadd.f32 %v7749_v25, %v9789_v24  ;;  %v9798_v24 = vld [vmem:[#allocation142_spill] sm:$0xff] }
 0x204   :  { %v8339_v1 = vadd.f32 %v1922_v32, %v1301_v31  ;;  %v8344_v39 = vadd.f32 %v2636_v3, %v7756_v35  ;;  %v1311_v35 = vadd.f32 %v7758_v40, %v9790_v30  ;;  %v9794_v3 = vld [vmem:[#allocation141_spill] sm:$0xff]  ;;  %v9797_v40 = vld [vmem:[#allocation92_spill] sm:$0xff] }
 0x205   :  { %v1924_v16 = vpop.f32.mrf.mxu0  ;;  %v2640_v20 = vpop.f32.mrf.mxu1 }
 0x206   :  { %v8346_v61 = vadd.f32 %v1924_v16, %v1303_v2  ;;  %v8351_v45 = vadd.f32 %v2640_v20, %v7766_v41  ;;  %v9793_v2 = vld [vmem:[#allocation91_spill] sm:$0xff] }
 0x207   :  { %v1926_v48 = vpop.f32.mrf.mxu0  ;;  %v2642_v31 = vpop.f32.mrf.mxu1  ;;  %v1313_v16 = vadd.f32 %v9794_v3, %v9793_v2  ;;  %v9804_v3 = vld [vmem:[#allocation27_spill] sm:$0xff] }
 0x208   :  { %v8353_v29 = vadd.f32 %v1926_v48, %v1305_v34  ;;  %v8360_v32 = vadd.f32 %v2642_v31, %v7778_v13  ;;  %v1315_v13 = vadd.f32 %v9798_v24, %v9797_v40  ;;  %v9799_v31 = vld [vmem:[#allocation25_spill] sm:$0xff]  ;;  %v9807_v40 = vld [vmem:[#allocation12_spill] sm:$0xff] }
 0x209   :  { %v1930_v0 = vpop.f32.mrf.mxu0  ;;  %5146 = vmatmul.mubr.msk.bf16.gmra.mxu0 %vm571_vm4, %v8194_v26  ;;  %v2644_v25 = vpop.f32.mrf.mxu1 }
 0x20a   :  { %9791 = vst [vmem:[#allocation34_spill] sm:$0xff] %v8360_v32  ;;  %v8362_v7 = vadd.f32 %v1930_v0, %v1309_v18  ;;  %3470 = vmatprep.mubr.bf16.mxu0 %v9384_v17  ;;  %v8368_v34 = vadd.f32 %v2644_v25, %v9795_v56  ;;  %v9802_v32 = vld [vmem:[#allocation11_spill] sm:$0xff] }
 0x20b   :  { %v1932_v41 = vpop.f32.mrf.mxu0  ;;  %v2646_v26 = vpop.f32.mrf.mxu1 }
 0x20c   :  { %9792 = vst [vmem:[#allocation113_spill] sm:$0xff] %v8362_v7  ;;  %9796 = vst [vmem:[#allocation47_spill] sm:$0xff] %v8368_v34  ;;  %v8370_v20 = vadd.f32 %v1932_v41, %v1311_v35  ;;  %v8375_v18 = vadd.f32 %v2646_v26, %v9799_v31  ;;  %v9803_v7 = vld [vmem:[#allocation144_spill] sm:$0xff]  ;;  %v9808_v26 = vld [vmem:[#allocation145_spill] sm:$0xff] }
 0x20d   :  { %v1934_v48 = vpop.f32.mrf.mxu0  ;;  %v2650_v17 = vpop.f32.mrf.mxu1  ;;  %v1319_v2 = vadd.f32 %v9803_v7, %v9802_v32  ;;  %v1321_v24 = vadd.f32 %v9808_v26, %v9807_v40  ;;  %v9812_v7 = vld [vmem:[#allocation13_spill] sm:$0xff]  ;;  %v9816_v34 = vld [vmem:[#allocation14_spill] sm:$0xff]  ;;  %v9818_v26 = vld [vmem:[#allocation31_spill] sm:$0xff] }
 0x20e   :  { %9800 = vst [vmem:[#allocation110_spill] sm:$0xff] %v8375_v18  ;;  %v8377_v0 = vadd.f32 %v1934_v48, %v1313_v16  ;;  %v8382_v25 = vadd.f32 %v2650_v17, %v9804_v3  ;;  %v9809_v16 = vld [vmem:[#allocation28_spill] sm:$0xff]  ;;  %v9813_v17 = vld [vmem:[#allocation146_spill] sm:$0xff] }
 0x20f   :  { %v1936_v30 = vpop.f32.mrf.mxu0  ;;  %v2652_v41 = vpop.f32.mrf.mxu1  ;;  %v1323_v3 = vadd.f32 %v9813_v17, %v9812_v7 }
 0x210   :  { %9801 = vst [vmem:[#allocation36_spill] sm:$0xff] %v8377_v0  ;;  %9805 = vst [vmem:[#allocation115_spill] sm:$0xff] %v8382_v25  ;;  %v8384_v35 = vadd.f32 %v1936_v30, %v1315_v13  ;;  %v8391_v48 = vadd.f32 %v2652_v41, %v9809_v16  ;;  %v9814_v13 = vld [vmem:[#allocation29_spill] sm:$0xff]  ;;  %v9817_v0 = vld [vmem:[#allocation147_spill] sm:$0xff] }
 0x211   :  { %v1940_v56 = vpop.f32.mrf.mxu0  ;;  %5147 = vmatmul.mubr.msk.bf16.gmra.mxu0 %vm571_vm4, %v8233_v14  ;;  %v2654_v18 = vpop.f32.mrf.mxu1  ;;  %v1325_v40 = vadd.f32 %v9817_v0, %v9816_v34  ;;  %vm5754_vm4 = vmmov 0  }
 0x212   :  { %9806 = vst [vmem:[#allocation48_spill] sm:$0xff] %v8384_v35  ;;  %9810 = vst [vmem:[#allocation112_spill] sm:$0xff] %v8391_v48  ;;  %v8393_v31 = vadd.f32 %v1940_v56, %v1319_v2  ;;  %v8398_v30 = vadd.f32 %v2654_v18, %v9814_v13  ;;  %v9820_v48 = vld [vmem:[#allocation33_spill] sm:$0xff]  ;;  %v9824_v13 = vld [vmem:[#allocation15_spill] sm:$0xff] }
 0x213   :  { %v1942_v32 = vpop.f32.mrf.mxu0  ;;  %v2656_v35 = vpop.f32.mrf.mxu1 }
 0x214   :  { %9811 = vst [vmem:[#allocation38_spill] sm:$0xff] %v8393_v31  ;;  %9815 = vst [vmem:[#allocation50_spill] sm:$0xff] %v8398_v30  ;;  %v8400_v25 = vadd.f32 %v1942_v32, %v1321_v24  ;;  %v8405_v41 = vadd.f32 %v2656_v35, %v9818_v26  ;;  %v9822_v32 = vld [vmem:[#allocation95_spill] sm:$0xff]  ;;  %v9826_v35 = vld [vmem:[#allocation93_spill] sm:$0xff] }
 0x215   :  { %v1944_v14 = vpop.f32.mrf.mxu0  ;;  %v2660_v56 = vpop.f32.mrf.mxu1 }
 0x216   :  { %9819 = vst [vmem:[#allocation114_spill] sm:$0xff] %v8405_v41  ;;  %v8407_v2 = vadd.f32 %v1944_v14, %v1323_v3  ;;  %v8410_v31 = vadd.f32 %v2660_v56, %v9820_v48  ;;  %v9828_v14 = vld [vmem:[#allocation16_spill] sm:$0xff] }
 0x217   :  { %v1946_v16 = vpop.f32.mrf.mxu0  ;;  %v2662_v18 = vpop.f32.mrf.mxu1 }
 0x218   :  { %9821 = vst [vmem:[#allocation40_spill] sm:$0xff] %v8410_v31  ;;  %v8412_v7 = vadd.f32 %v1946_v16, %v1325_v40  ;;  %v8415_v17 = vadd.f32 %v2662_v18, %v9822_v32  ;;  %v9830_v40 = vld [vmem:[#allocation97_spill] sm:$0xff] }
 0x219   :  { %v5424_v24 = vpop.f32.mrf.mxu0  ;;  %v2664_v34 = vpop.f32.mrf.mxu1  ;;  %v9832_v31 = vld [vmem:[#allocation21_spill] sm:$0xff] }
 0x21a   :  { %9823 = vst [vmem:[#allocation51_spill] sm:$0xff] %v8415_v17  ;;  %v8418_v30 = vadd.f32 %v5424_v24, %v9824_v13  ;;  %v8421_v3 = vadd.f32 %v2664_v34, %v9826_v35  ;;  %v9834_v24 = vld [vmem:[#allocation94_spill] sm:$0xff]  ;;  %v9836_v17 = vld [vmem:[#allocation35_spill] sm:$0xff] }
 0x21b   :  { %v2813_v0 = vpop.f32.mrf.mxu0  ;;  %v2666_v48 = vpop.f32.mrf.mxu1 }
 0x21c   :  { %9825 = vst [vmem:[#allocation42_spill] sm:$0xff] %v8418_v30  ;;  %9827 = vst [vmem:[#allocation117_spill] sm:$0xff] %v8421_v3  ;;  %v8424_v26 = vadd.f32 %v2813_v0, %v9828_v14  ;;  %v8427_v16 = vadd.f32 %v2666_v48, %v9830_v40  ;;  %v9838_v0 = vld [vmem:[#allocation99_spill] sm:$0xff]  ;;  %v9840_v3 = vld [vmem:[#allocation22_spill] sm:$0xff] }
 0x21d   :  { %v5425_v56 = vpop.f32.mrf.mxu0  ;;  %v2670_v18 = vpop.f32.mrf.mxu1 }
 0x21e   :  { %9829 = vst [vmem:[#allocation53_spill] sm:$0xff] %v8424_v26  ;;  %9831 = vst [vmem:[#allocation20_spill] sm:$0xff] %v8427_v16  ;;  %v8430_v41 = vadd.f32 %v5425_v56, %v9832_v31  ;;  %v8433_v13 = vadd.f32 %v2670_v18, %v9834_v24  ;;  %v9842_v31 = vld [vmem:[#allocation96_spill] sm:$0xff]  ;;  %v9844_v16 = vld [vmem:[#allocation19_spill] sm:$0xff] }
 0x21f   :  { %v2816_v32 = vpop.f32.mrf.mxu0  ;;  %v2672_v34 = vpop.f32.mrf.mxu1 }
 0x220   :  { %9833 = vst [vmem:[#allocation8_spill] sm:$0xff] %v8430_v41  ;;  %9835 = vst [vmem:[#allocation119_spill] sm:$0xff] %v8433_v13  ;;  %v8436_v30 = vadd.f32 %v2816_v32, %v9836_v17  ;;  %v8439_v14 = vadd.f32 %v2672_v34, %v9838_v0  ;;  %v9845_v17 = vld [vmem:[#allocation101_spill] sm:$0xff]  ;;  %v9847_v13 = vld [vmem:[#allocation23_spill] sm:$0xff] }
 0x221   :  { %v5428_v35 = vpop.f32.mrf.mxu0  ;;  %v2674_v48 = vpop.f32.mrf.mxu1 }
 0x222   :  { %9837 = vst [vmem:[#allocation55_spill] sm:$0xff] %v8436_v30  ;;  %9839 = vst [vmem:[#allocation116_spill] sm:$0xff] %v8439_v14  ;;  %v8442_v26 = vadd.f32 %v5428_v35, %v9840_v3  ;;  %v8445_v56 = vadd.f32 %v2674_v48, %v9842_v31  ;;  %v9848_v3 = vld [vmem:[#allocation98_spill] sm:$0xff]  ;;  %v9850_v14 = vld [vmem:[#allocation37_spill] sm:$0xff] }
 0x223   :  { %v2829_v40 = vpop.f32.mrf.mxu0  ;;  %v2676_v18 = vpop.f32.mrf.mxu1 }
 0x224   :  { %9841 = vst [vmem:[#allocation9_spill] sm:$0xff] %v8442_v26  ;;  %9843 = vst [vmem:[#allocation57_spill] sm:$0xff] %v8445_v56  ;;  %v8448_v41 = vadd.f32 %v2829_v40, %v9844_v16  ;;  %v8451_v32 = vadd.f32 %v2676_v18, %v9845_v17  ;;  %v9852_v40 = vld [vmem:[#allocation17_spill] sm:$0xff] }
 0x225   :  { %v5429_v24 = vpop.f32.mrf.mxu0  ;;  %v2680_v34 = vpop.f32.mrf.mxu1 }
 0x226   :  { %9846 = vst [vmem:[#allocation118_spill] sm:$0xff] %v8451_v32  ;;  %v8454_v30 = vadd.f32 %v5429_v24, %v9847_v13  ;;  %v8457_v35 = vadd.f32 %v2680_v34, %v9848_v3  ;;  %v9854_v24 = vld [vmem:[#allocation39_spill] sm:$0xff] }
 0x227   :  { %v2832_v0 = vpop.f32.mrf.mxu0  ;;  %v2682_v48 = vpop.f32.mrf.mxu1 }
 0x228   :  { %9849 = vst [vmem:[#allocation10_spill] sm:$0xff] %v8457_v35  ;;  %v8460_v26 = vadd.f32 %v2832_v0, %v9850_v14  ;;  %v8463_v16 = vadd.f32 %v2682_v48, %v8004_v54 }
 0x229   :  { %v5432_v31 = vpop.f32.mrf.mxu0  ;;  %v2684_v18 = vpop.f32.mrf.mxu1 }
 0x22a   :  { %9851 = vst [vmem:[#allocation59_spill] sm:$0xff] %v8463_v16  ;;  %v8466_v56 = vadd.f32 %v5432_v31, %v9852_v40  ;;  %v8469_v13 = vadd.f32 %v2684_v18, %v8016_v62 }
 0x22b   :  { %v2845_v17 = vpop.f32.mrf.mxu0  ;;  %v2686_v34 = vpop.f32.mrf.mxu1 }
 0x22c   :  { %9853 = vst [vmem:[#allocation61_spill] sm:$0xff] %v8469_v13  ;;  %v8472_v32 = vadd.f32 %v2845_v17, %v9854_v24  ;;  %v8475_v14 = vadd.f32 %v2686_v34, %v8034_v11  ;;  %v9858_v24 = vld [vmem:[#allocation24_spill] sm:$0xff] }
 0x22d   :  { %v5433_v3 = vpop.f32.mrf.mxu0  ;;  %v2690_v54 = vpop.f32.mrf.mxu1 }
 0x22e   :  { %9855 = vst [vmem:[#allocation52_spill] sm:$0xff] %v8475_v14  ;;  %v8478_v0 = vadd.f32 %v5433_v3, %v8002_v21  ;;  %v8481_v31 = vadd.f32 %v2690_v54, %v8048_v43  ;;  %v9860_v3 = vld [vmem:[#allocation103_spill] sm:$0xff] }
 0x22f   :  { %v2848_v48 = vpop.f32.mrf.mxu0  ;;  %v2692_v62 = vpop.f32.mrf.mxu1 }
 0x230   :  { %9856 = vst [vmem:[#allocation63_spill] sm:$0xff] %v8481_v31  ;;  %v8484_v40 = vadd.f32 %v2848_v48, %v8014_v38  ;;  %v8487_v17 = vadd.f32 %v2692_v62, %v8065_v15  ;;  %v9863_v48 = vld [vmem:[#allocation41_spill] sm:$0xff] }
 0x231   :  { %v5436_v18 = vpop.f32.mrf.mxu0  ;;  %v2694_v11 = vpop.f32.mrf.mxu1 }
 0x232   :  { %9857 = vst [vmem:[#allocation54_spill] sm:$0xff] %v8487_v17  ;;  %v8490_v13 = vadd.f32 %v5436_v18, %v9858_v24  ;;  %v8493_v21 = vadd.f32 %v2694_v11, %v8079_v10 }
 0x233   :  { %v2861_v34 = vpop.f32.mrf.mxu0  ;;  %v2696_v43 = vpop.f32.mrf.mxu1 }
 0x234   :  { %9859 = vst [vmem:[#allocation65_spill] sm:$0xff] %v8493_v21  ;;  %v8496_v14 = vadd.f32 %v2861_v34, %v9860_v3  ;;  %v8499_v38 = vadd.f32 %v2696_v43, %v8098_v8  ;;  %v9868_v3 = vld [vmem:[#allocation100_spill] sm:$0xff] }
 0x235   :  { %v5437_v54 = vpop.f32.mrf.mxu0  ;;  %v2700_v15 = vpop.f32.mrf.mxu1 }
 0x236   :  { %9861 = vst [vmem:[#allocation56_spill] sm:$0xff] %v8496_v14  ;;  %9862 = vst [vmem:[#allocation67_spill] sm:$0xff] %v8499_v38  ;;  %v8502_v31 = vadd.f32 %v5437_v54, %v9863_v48  ;;  %v8505_v18 = vadd.f32 %v2700_v15, %v8115_v58  ;;  %v9870_v54 = vld [vmem:[#allocation49_spill] sm:$0xff]  ;;  %v9871_v48 = vld [vmem:[#allocation120_spill] sm:$0xff] }
 0x237   :  { %v2864_v62 = vpop.f32.mrf.mxu0  ;;  %v2702_v10 = vpop.f32.mrf.mxu1  ;;  %v1429_v38 = vadd.f32 %v9871_v48, %v9870_v54  ;;  %v9873_v58 = vld [vmem:[#allocation26_spill] sm:$0xff] }
 0x238   :  { %9864 = vst [vmem:[#allocation69_spill] sm:$0xff] %v8502_v31  ;;  %9865 = vst [vmem:[#allocation121_spill] sm:$0xff] %v8505_v18  ;;  %v8508_v24 = vadd.f32 %v2864_v62, %v8077_v52  ;;  %v8511_v34 = vadd.f32 %v2702_v10, %v8132_v9  ;;  %v9875_v9 = vld [vmem:[#allocation102_spill] sm:$0xff] }
 0x239   :  { %v5440_v11 = vpop.f32.mrf.mxu0  ;;  %v2704_v8 = vpop.f32.mrf.mxu1  ;;  %v2163_v18 = vadd.f32 %v8134_v6, %v1429_v38 }
 0x23a   :  { %9866 = vst [vmem:[#allocation60_spill] sm:$0xff] %v8508_v24  ;;  %9867 = vst [vmem:[#allocation125_spill] sm:$0xff] %v8511_v34  ;;  %v8514_v21 = vadd.f32 %v5440_v11, %v9868_v3  ;;  %v8519_v17 = vadd.f32 %v2704_v8, %v8146_v12  ;;  %v9877_v11 = vld [vmem:[#allocation105_spill] sm:$0xff] }
 0x23b   :  { %v2877_v43 = vpop.f32.mrf.mxu0  ;;  %v2706_v52 = vpop.f32.mrf.mxu1 }
 0x23c   :  { %9869 = vst [vmem:[#allocation71_spill] sm:$0xff] %v8514_v21  ;;  %9872 = vst [vmem:[#allocation122_spill] sm:$0xff] %v8519_v17  ;;  %v8522_v15 = vadd.f32 %v2877_v43, %v9873_v58  ;;  %v8526_v10 = vadd.f32 %v2706_v52, %v9875_v9  ;;  %v9879_v21 = vld [vmem:[#allocation107_spill] sm:$0xff]  ;;  %v9885_v9 = vld [vmem:[#allocation58_spill] sm:$0xff] }
 0x23d   :  { %v5441_v62 = vpop.f32.mrf.mxu0  ;;  %v2710_v34 = vpop.f32.mrf.mxu1  ;;  %v9883_v58 = vld [vmem:[#allocation43_spill] sm:$0xff]  ;;  %v9893_v17 = vld [vmem:[#allocation109_spill] sm:$0xff] }
 0x23e   :  { %9874 = vst [vmem:[#allocation62_spill] sm:$0xff] %v8522_v15  ;;  %9876 = vst [vmem:[#allocation127_spill] sm:$0xff] %v8526_v10  ;;  %v8529_v3 = vadd.f32 %v5441_v62, %v9877_v11  ;;  %v8532_v54 = vadd.f32 %v2710_v34, %v9879_v21  ;;  %v9886_v62 = vld [vmem:[#allocation123_spill] sm:$0xff]  ;;  %v9888_v21 = vld [vmem:[#allocation18_spill] sm:$0xff] }
 0x23f   :  { %v2880_v16 = vpop.f32.mrf.mxu0  ;;  %v2712_v8 = vpop.f32.mrf.mxu1  ;;  %v1445_v11 = vadd.f32 %v9886_v62, %v9885_v9 }
 0x240   :  { %9878 = vst [vmem:[#allocation73_spill] sm:$0xff] %v8529_v3  ;;  %9880 = vst [vmem:[#allocation124_spill] sm:$0xff] %v8532_v54  ;;  %v8534_v12 = vadd.f32 %v2880_v16, %v2163_v18  ;;  %v8537_v48 = vadd.f32 %v2712_v8, %v8196_v47  ;;  %v9891_v8 = vld [vmem:[#allocation44_spill] sm:$0xff] }
 0x241   :  { %v5444_v43 = vpop.f32.mrf.mxu0  ;;  %v2714_v38 = vpop.f32.mrf.mxu1  ;;  %v2175_v54 = vadd.f32 %v8198_v36, %v1445_v11 }
 0x242   :  { %9881 = vst [vmem:[#allocation64_spill] sm:$0xff] %v8534_v12  ;;  %9882 = vst [vmem:[#allocation129_spill] sm:$0xff] %v8537_v48  ;;  %v8540_v6 = vadd.f32 %v5444_v43, %v9883_v58  ;;  %v8545_v10 = vadd.f32 %v2714_v38, %v8204_v46 }
 0x243   :  { %v2893_v52 = vpop.f32.mrf.mxu0  ;;  %v2716_v16 = vpop.f32.mrf.mxu1 }
 0x244   :  { %9884 = vst [vmem:[#allocation75_spill] sm:$0xff] %v8540_v6  ;;  %9887 = vst [vmem:[#allocation126_spill] sm:$0xff] %v8545_v10  ;;  %v8548_v34 = vadd.f32 %v2893_v52, %v9888_v21  ;;  %v8552_v47 = vadd.f32 %v2716_v16, %v8220_v28  ;;  %v9897_v21 = vld [vmem:[#allocation104_spill] sm:$0xff]  ;;  %v4176_v6 = vld [vmem:[%s9267_s2] sm:$0x7] }
 0x245   :  { %v5445_v18 = vpop.f32.mrf.mxu0  ;;  %v2720_v58 = vpop.f32.mrf.mxu1 }
 0x246   :  { %9889 = vst [vmem:[#allocation66_spill] sm:$0xff] %v8548_v34  ;;  %9890 = vst [vmem:[#allocation131_spill] sm:$0xff] %v8552_v47  ;;  %v8555_v43 = vadd.f32 %v5445_v18, %v9891_v8  ;;  %v8558_v9 = vadd.f32 %v2720_v58, %v9893_v17  ;;  %v9900_v18 = vld [vmem:[#allocation30_spill] sm:$0xff] }
 0x247   :  { %v2896_v48 = vpop.f32.mrf.mxu0  ;;  %v2722_v38 = vpop.f32.mrf.mxu1 }
 0x248   :  { %9892 = vst [vmem:[#allocation76_spill] sm:$0xff] %v8555_v43  ;;  %9894 = vst [vmem:[#allocation128_spill] sm:$0xff] %v8558_v9  ;;  %v8560_v46 = vadd.f32 %v2896_v48, %v2175_v54  ;;  %v8563_v62 = vadd.f32 %v2722_v38, %v8241_v53  ;;  %v9902_v54 = vld [vmem:[#allocation111_spill] sm:$0xff]  ;;  %v9904_v9 = vld [vmem:[#allocation45_spill] sm:$0xff] }
 0x249   :  { %v5448_v52 = vpop.f32.mrf.mxu0  ;;  %v2724_v28 = vpop.f32.mrf.mxu1 }
 0x24a   :  { %9895 = vst [vmem:[#allocation68_spill] sm:$0xff] %v8560_v46  ;;  %9896 = vst [vmem:[#allocation133_spill] sm:$0xff] %v8563_v62  ;;  %v8566_v36 = vadd.f32 %v5448_v52, %v9897_v21  ;;  %v8569_v16 = vadd.f32 %v2724_v28, %v8249_v57  ;;  %v9906_v52 = vld [vmem:[#allocation108_spill] sm:$0xff]  ;;  %v9908_v62 = vld [vmem:[#allocation106_spill] sm:$0xff] }
 0x24b   :  { %v2909_v11 = vpop.f32.mrf.mxu0  ;;  %v2726_v17 = vpop.f32.mrf.mxu1 }
 0x24c   :  { %9898 = vst [vmem:[#allocation77_spill] sm:$0xff] %v8566_v36  ;;  %9899 = vst [vmem:[#allocation130_spill] sm:$0xff] %v8569_v16  ;;  %v8572_v8 = vadd.f32 %v2909_v11, %v9900_v18  ;;  %v8575_v48 = vadd.f32 %v2726_v17, %v9902_v54  ;;  %v9910_v11 = vld [vmem:[#allocation32_spill] sm:$0xff]  ;;  %v9912_v17 = vld [vmem:[#allocation46_spill] sm:$0xff] }
 0x24d   :  { %v5449_v58 = vpop.f32.mrf.mxu0  ;;  %v2730_v53 = vpop.f32.mrf.mxu1 }
 0x24e   :  { %9901 = vst [vmem:[#allocation70_spill] sm:$0xff] %v8572_v8  ;;  %9903 = vst [vmem:[#allocation78_spill] sm:$0xff] %v8575_v48  ;;  %v8578_v47 = vadd.f32 %v5449_v58, %v9904_v9  ;;  %v8581_v21 = vadd.f32 %v2730_v53, %v9906_v52 }
 0x24f   :  { %v2912_v38 = vpop.f32.mrf.mxu0  ;;  %v2732_v57 = vpop.f32.mrf.mxu1 }
 0x250   :  { %9905 = vst [vmem:[#allocation132_spill] sm:$0xff] %v8578_v47  ;;  %9907 = vst [vmem:[#allocation72_spill] sm:$0xff] %v8581_v21  ;;  %v8584_v10 = vadd.f32 %v2912_v38, %v9908_v62 }
 0x251   :  { %v5452_v28 = vpop.f32.mrf.mxu0  ;;  %v2734_v16 = vpop.f32.mrf.mxu1 }
 0x252   :  { %9909 = vst [vmem:[#allocation136_spill] sm:$0xff] %v8584_v10  ;;  %v8587_v18 = vadd.f32 %v5452_v28, %v9910_v11  ;;  %v4178_v10 = vlaneseq }
 0x253   :  { %v2925_v8 = vpop.f32.mrf.mxu0  ;;  %v2736_v9 = vpop.f32.mrf.mxu1 }
 0x254   :  { %9911 = vst [vmem:[#allocation79_spill] sm:$0xff] %v8587_v18  ;;  %v8590_v54 = vadd.f32 %v2925_v8, %v9912_v17 }
 0x255   :  { %v5453_v58 = vpop.f32.mrf.mxu0  ;;  %v2740_v53 = vpop.f32.mrf.mxu1 }
 0x256   :  { %9913 = vst [vmem:[#allocation134_spill] sm:$0xff] %v8590_v54  ;;  %v8593_v48 = vadd.f32 %v5453_v58, %v8276_v37  ;;  %v8603_v37 = vld [vmem:[%s9270_s5] sm:$0xff] }
 0x257   :  { %v2928_v52 = vpop.f32.mrf.mxu0  ;;  %v2742_v38 = vpop.f32.mrf.mxu1 }
 0x258   :  { %9914 = vst [vmem:[#allocation74_spill] sm:$0xff] %v8593_v48  ;;  %v8596_v62 = vadd.f32 %v2928_v52, %v8282_v63  ;;  %v8608_v63 = vld [vmem:[%s9270_s5 + $0x18] sm:$0xff]  ;;  %v4179_v52 = vshrl.u32 %v4178_v10, 7 }
 0x259   :  { %v3322_v21 = vpop.f32.mrf.mxu0  ;;  %v2744_v11 = vpop.f32.mrf.mxu1 }
 0x25a   :  { %9915 = vst [vmem:[#allocation138_spill] sm:$0xff] %v8596_v62  ;;  %v3642_v28 = vadd.f32 %v3322_v21, %v8289_v5  ;;  %v4188_v46 = vsub.s32 2, %v4179_v52 }
 0x25b   :  { %v3324_v18 = vpop.f32.mrf.mxu0  ;;  %v2746_v17 = vpop.f32.mrf.mxu1 }
 0x25c   :  { %v3643_v8 = vadd.f32 %v3324_v18, %v8298_v59  ;;  %v8614_v59 = vld [vmem:[%s9270_s5 + $0x8] sm:$0xff]  ;;  %v8619_v18 = vld [vmem:[%s9270_s5 + $0x20] sm:$0xff]  ;;  %v3744_v48 = vadd.f32 %v8603_v37, %v3642_v28  ;;  %v8636_v14 = vrot.slane %v4176_v6, %v4188_v46 }
 0x25d   :  { %v3326_v58 = vpop.f32.mrf.mxu0  ;;  %v2750_v5 = vpop.f32.mrf.mxu1 }
 0x25e   :  { %v3645_v62 = vadd.f32 %v3326_v58, %v8306_v22  ;;  %v4180_v22 = vsub.s32 0, %v4179_v52  ;;  %v4184_v58 = vsub.s32 1, %v4179_v52  ;;  %v3745_v43 = vadd.f32 %v8614_v59, %v3643_v8 }
 0x25f   :  { %v3328_v21 = vpop.f32.mrf.mxu0  ;;  %v2752_v47 = vpop.f32.mrf.mxu1 }
 0x260   :  { %v3747_v54 = vadd.f32 %v8608_v63, %v3645_v62  ;;  %v3646_v10 = vadd.f32 %v3328_v21, %v8313_v50  ;;  %v8630_v35 = vrot.slane %v4176_v6, %v4180_v22  ;;  %v8632_v24 = vrot.slane %v4176_v6, %v4184_v58 }
 0x261   :  { %v3332_v36 = vpop.f32.mrf.mxu0  ;;  %v2754_v3 = vpop.f32.mrf.mxu1 }
 0x262   :  { %v3840_v34 = vmax.f32 %v3744_v48, %v3747_v54  ;;  %v3748_v12 = vadd.f32 %v8619_v18, %v3646_v10  ;;  %v3648_v28 = vadd.f32 %v3332_v36, %v8320_v19  ;;  %v8639_v19 = vadd.f32 %v2732_v57, %v8278_v49 }
 0x263   :  { %v3334_v62 = vpop.f32.mrf.mxu0  ;;  %v2756_v21 = vpop.f32.mrf.mxu1  ;;  %v8642_v36 = vadd.f32 %v2734_v16, %v8284_v33  ;;  %v8653_v49 = vadd.f32 %v2742_v38, %v8308_v4  ;;  %v8656_v33 = vadd.f32 %v2744_v11, %v8315_v23  ;;  %v8663_v57 = vadd.f32 %v2750_v5, %v8331_v42 }
 0x264   :  { %v3841_v15 = vrot.slane %v3840_v34, 4  ;;  %v3847_v50 = vmax.f32 %v3745_v43, %v3748_v12  ;;  %v3649_v8 = vadd.f32 %v3334_v62, %v8329_v27  ;;  %v8645_v12 = vadd.f32 %v2736_v9, %v8291_v51 }
 0x265   :  { %v3336_v48 = vpop.f32.mrf.mxu0  ;;  %v8648_v43 = vadd.f32 %v2740_v53, %v8300_v60  ;;  %v2760_v27 = vpop.f32.mrf.mxu1  ;;  %v8659_v51 = vadd.f32 %v2746_v17, %v8322_v55  ;;  %v8675_v58 = vadd.f32 %v2756_v21, %v8353_v29 }
 0x266   :  { %v3842_v54 = vmax.f32 %v3840_v34, %v3841_v15  ;;  %v3848_v52 = vrot.slane %v3847_v50, 4  ;;  %v3651_v31 = vadd.f32 %v3336_v48, %v8337_v44  ;;  %v3750_v44 = vadd.f32 %v8603_v37, %v3648_v28  ;;  %v9919_v28 = vld [vmem:[#allocation113_spill] sm:$0xff] }
 0x267   :  { %v3338_v10 = vpop.f32.mrf.mxu0  ;;  %v2762_v46 = vpop.f32.mrf.mxu1  ;;  %v3751_v23 = vadd.f32 %v8614_v59, %v3649_v8  ;;  %9918 = vst [vmem:[#allocation81_spill] sm:$0xff] %v8675_v58 }
 0x268   :  { %v3843_v15 = vrot.slane %v3842_v54, 2  ;;  %v3849_v34 = vmax.f32 %v3847_v50, %v3848_v52  ;;  %v3753_v6 = vadd.f32 %v8608_v63, %v3651_v31  ;;  %v3652_v60 = vadd.f32 %v3338_v10, %v8344_v39  ;;  %v9921_v50 = vld [vmem:[#allocation34_spill] sm:$0xff]  ;;  %v9923_v52 = vld [vmem:[#allocation36_spill] sm:$0xff] }
 0x269   :  { %v3342_v16 = vpop.f32.mrf.mxu0  ;;  %v8666_v31 = vadd.f32 %v2752_v47, %v8339_v1  ;;  %v2764_v4 = vpop.f32.mrf.mxu1  ;;  %v8672_v39 = vadd.f32 %v2754_v3, %v8346_v61  ;;  %v8678_v1 = vadd.f32 %v2760_v27, %v9919_v28  ;;  %v9925_v27 = vld [vmem:[#allocation47_spill] sm:$0xff] }
 0x26a   :  { %v3844_v9 = vmax.f32 %v3842_v54, %v3843_v15  ;;  %v3850_v53 = vrot.slane %v3849_v34, 2  ;;  %v3861_v22 = vmax.f32 %v3750_v44, %v3753_v6  ;;  %v3754_v38 = vadd.f32 %v8619_v18, %v3652_v60  ;;  %v9926_v60 = vld [vmem:[#allocation48_spill] sm:$0xff] }
 0x26b   :  { %9916 = vst [vmem:[#allocation80_spill] sm:$0xff] %v8666_v31  ;;  %v3654_v55 = vadd.f32 %v3342_v16, %v8351_v45  ;;  %v3344_v11 = vpop.f32.mrf.mxu0  ;;  %9917 = vst [vmem:[#allocation135_spill] sm:$0xff] %v8672_v39  ;;  %v2766_v47 = vpop.f32.mrf.mxu1  ;;  %v8682_v45 = vadd.f32 %v2762_v46, %v8370_v20  ;;  %v8685_v10 = vadd.f32 %v2764_v4, %v9923_v52  ;;  %v9946_v39 = vld [vmem:[#allocation40_spill] sm:$0xff] }
 0x26c   :  { %v3845_v17 = vrot.slane %v3844_v9, 1  ;;  %v3851_v42 = vmax.f32 %v3849_v34, %v3850_v53  ;;  %v3862_v5 = vrot.slane %v3861_v22, 4  ;;  %9920 = vst [vmem:[#allocation137_spill] sm:$0xff] %v8678_v1  ;;  %v3868_v62 = vmax.f32 %v3751_v23, %v3754_v38  ;;  %v9928_v23 = vld [vmem:[#allocation110_spill] sm:$0xff] }
 0x26d   :  { %v3655_v8 = vadd.f32 %v3344_v11, %v9921_v50  ;;  %v3346_v48 = vpop.f32.mrf.mxu0  ;;  %9922 = vst [vmem:[#allocation82_spill] sm:$0xff] %v8682_v45  ;;  %9924 = vst [vmem:[#allocation139_spill] sm:$0xff] %v8685_v10  ;;  %v2770_v15 = vpop.f32.mrf.mxu1  ;;  %v3756_v21 = vadd.f32 %v8603_v37, %v3654_v55  ;;  %v8691_v16 = vadd.f32 %v2766_v47, %v9926_v60 }
 0x26e   :  { %v3846_v54 = vmax.f32 %v3844_v9, %v3845_v17  ;;  %v3852_v61 = vrot.slane %v3851_v42, 1  ;;  %v3863_v3 = vmax.f32 %v3861_v22, %v3862_v5  ;;  %v3869_v29 = vrot.slane %v3868_v62, 4  ;;  %v9929_v5 = vld [vmem:[#allocation38_spill] sm:$0xff] }
 0x26f   :  { %v3657_v34 = vadd.f32 %v3346_v48, %v9925_v27  ;;  %v3348_v44 = vpop.f32.mrf.mxu0  ;;  %9927 = vst [vmem:[#allocation83_spill] sm:$0xff] %v8691_v16  ;;  %v2772_v9 = vpop.f32.mrf.mxu1  ;;  %v3757_v22 = vadd.f32 %v8614_v59, %v3655_v8  ;;  %v8698_v28 = vadd.f32 %v2770_v15, %v9929_v5 }
 0x270   :  { %v4193_v6 = vadd.f32 %v8630_v35, %v3846_v54  ;;  %v3853_v20 = vmax.f32 %v3851_v42, %v3852_v61  ;;  %v3864_v46 = vrot.slane %v3863_v3, 2  ;;  %v3870_v53 = vmax.f32 %v3868_v62, %v3869_v29  ;;  %v9931_v62 = vld [vmem:[#allocation115_spill] sm:$0xff] }
 0x271   :  { %v3759_v4 = vadd.f32 %v8608_v63, %v3657_v34  ;;  %v3658_v38 = vadd.f32 %v3348_v44, %v9928_v23  ;;  %v3352_v11 = vpop.f32.mrf.mxu0  ;;  %9930 = vst [vmem:[#allocation140_spill] sm:$0xff] %v8698_v28  ;;  %v2774_v47 = vpop.f32.mrf.mxu1  ;;  %v8705_v27 = vadd.f32 %v2772_v9, %v8400_v25 }
 0x272   :  { %v4241_v55 = vmax.f32 %v4193_v6, 0.0  ;;  %v4194_v17 = vadd.f32 %v8632_v24, %v3853_v20  ;;  %v3865_v50 = vmax.f32 %v3863_v3, %v3864_v46  ;;  %v3871_v48 = vrot.slane %v3870_v53, 2 }
 0x273   :  { %v3882_v42 = vmax.f32 %v3756_v21, %v3759_v4  ;;  %v3760_v54 = vadd.f32 %v8619_v18, %v3658_v38  ;;  %v3660_v61 = vadd.f32 %v3352_v11, %v9931_v62  ;;  %v3354_v8 = vpop.f32.mrf.mxu0  ;;  %9932 = vst [vmem:[#allocation84_spill] sm:$0xff] %v8705_v27  ;;  %v8708_v44 = vadd.f32 %v2774_v47, %v8407_v2  ;;  %v2776_v15 = vpop.f32.mrf.mxu1  ;;  %v8717_v2 = vld [vmem:[%s9270_s5 + $0x10] sm:$0xff] }
 0x274   :  { %v8702_v52 = vpack.c.bf16 %v4241_v55, %v4241_v55  ;;  %v4242_v29 = vmax.f32 %v4194_v17, 0.0  ;;  %v3866_v34 = vrot.slane %v3865_v50, 1  ;;  %v3872_v3 = vmax.f32 %v3870_v53, %v3871_v48  ;;  %v9935_v11 = vld [vmem:[#allocation112_spill] sm:$0xff]  ;;  %v9938_v48 = vld [vmem:[#allocation50_spill] sm:$0xff] }
 0x275   :  { %9933 = vst [vmem:[#allocation85_spill] sm:$0xff] %v8708_v44  ;;  %v3883_v6 = vrot.slane %v3882_v42, 4  ;;  %v3889_v60 = vmax.f32 %v3757_v22, %v3760_v54  ;;  %v3356_v21 = vpop.f32.mrf.mxu0  ;;  %v3762_v23 = vadd.f32 %v8603_v37, %v3660_v61  ;;  %v5460_v25 = vpop.f32.mrf.mxu1  ;;  %v3661_v22 = vadd.f32 %v3354_v8, %v9935_v11  ;;  %v9939_v11 = vld [vmem:[#allocation53_spill] sm:$0xff] }
 0x276   :  { %v8711_v46 = vpack.c.bf16 %v4242_v29, %v4242_v29  ;;  %v3867_v4 = vmax.f32 %v3865_v50, %v3866_v34  ;;  %v3873_v38 = vrot.slane %v3872_v3, 1  ;;  %v8722_v5 = vadd.f32 %v2776_v15, %v8412_v7  ;;  %v9937_v50 = vld [vmem:[#allocation42_spill] sm:$0xff] }
 0x277   :  { %v3884_v9 = vmax.f32 %v3882_v42, %v3883_v6  ;;  %v3890_v53 = vrot.slane %v3889_v60, 4  ;;  %v3358_v55 = vpop.f32.mrf.mxu0  ;;  %v3650_v47 = vadd.f32 %v5460_v25, %v9937_v50  ;;  %v3663_v54 = vadd.f32 %v3356_v21, %v9938_v48  ;;  %v3515_v61 = vpop.f32.mrf.mxu1  ;;  %v9940_v21 = vld [vmem:[#allocation114_spill] sm:$0xff] }
 0x278   :  { %9934 = vst [vmem:[#allocation86_spill] sm:$0xff] %v8711_v46  ;;  %v4196_v17 = vadd.f32 %v8630_v35, %v3867_v4  ;;  %9936 = vst [vmem:[#allocation87_spill] sm:$0xff] %v8722_v5  ;;  %v3874_v62 = vmax.f32 %v3872_v3, %v3873_v38  ;;  %v3763_v20 = vadd.f32 %v8614_v59, %v3661_v22  ;;  %v8736_v3 = vld [vmem:[%s9270_s5 + $0x28] sm:$0xff] }
 0x279   :  { %v3885_v29 = vrot.slane %v3884_v9, 2  ;;  %v3891_v34 = vmax.f32 %v3889_v60, %v3890_v53  ;;  %v8727_v42 = vpop.f32.mrf.mxu0  ;;  %v3752_v8 = vadd.f32 %v8717_v2, %v3650_v47  ;;  %v3644_v4 = vadd.f32 %v3515_v61, %v9939_v11  ;;  %v5461_v50 = vpop.f32.mrf.mxu1  ;;  %v9941_v47 = vld [vmem:[#allocation8_spill] sm:$0xff] }
 0x27a   :  { %v4244_v6 = vmax.f32 %v4196_v17, 0.0  ;;  %v3765_v7 = vadd.f32 %v8608_v63, %v3663_v54  ;;  %v4197_v15 = vadd.f32 %v8632_v24, %v3874_v62  ;;  %v3664_v38 = vadd.f32 %v3358_v55, %v9940_v21  ;;  %v9942_v55 = vld [vmem:[#allocation55_spill] sm:$0xff] }
 0x27b   :  { %v3886_v25 = vmax.f32 %v3884_v9, %v3885_v29  ;;  %v3892_v60 = vrot.slane %v3891_v34, 2  ;;  %v8739_v53 = vpop.f32.mrf.mxu0  ;;  %v3746_v17 = vadd.f32 %v8717_v2, %v3644_v4  ;;  %v3653_v48 = vadd.f32 %v5461_v50, %v9941_v47  ;;  %v3518_v29 = vpop.f32.mrf.mxu1 }
 0x27c   :  { %v4292_v22 = vpack.c.bf16 %v4244_v6, %v4244_v6  ;;  %v3903_v54 = vmax.f32 %v3762_v23, %v3765_v7  ;;  %v4245_v61 = vmax.f32 %v4197_v15, 0.0  ;;  %v3766_v11 = vadd.f32 %v8619_v18, %v3664_v38 }
 0x27d   :  { %v3887_v62 = vrot.slane %v3886_v25, 1  ;;  %v3893_v9 = vmax.f32 %v3891_v34, %v3892_v60  ;;  %v8744_v5 = vpop.f32.mrf.mxu0  ;;  %v3755_v27 = vadd.f32 %v8736_v3, %v3653_v48  ;;  %v3647_v21 = vadd.f32 %v3518_v29, %v9942_v55  ;;  %v5464_v10 = vpop.f32.mrf.mxu1  ;;  %v9943_v60 = vld [vmem:[#allocation9_spill] sm:$0xff] }
 0x27e   :  { %v4443_v44 = vunpack.c.l.b16 %v4292_v22  ;;  %v3904_v28 = vrot.slane %v3903_v54, 4  ;;  %v4293_v6 = vpack.c.bf16 %v4245_v61, %v4245_v61  ;;  %v3910_v50 = vmax.f32 %v3763_v20, %v3766_v11 }
 0x27f   :  { %v3888_v16 = vmax.f32 %v3886_v25, %v3887_v62  ;;  %v3894_v4 = vrot.slane %v3893_v9, 1  ;;  %v8748_v23 = vpop.f32.mrf.mxu0  ;;  %v3875_v34 = vmax.f32 %v3752_v8, %v3755_v27  ;;  %v3749_v15 = vadd.f32 %v8736_v3, %v3647_v21  ;;  %v3531_v29 = vpop.f32.mrf.mxu1 }
 0x280   :  { %v4488_v7 = vrot.slane %v4443_v44, 7  ;;  %v3662_v38 = vadd.f32 %v5464_v10, %v9943_v60  ;;  %v4444_v22 = vunpack.c.l.b16 %v4293_v6  ;;  %v3905_v55 = vmax.f32 %v3903_v54, %v3904_v28 }
 0x281   :  { %v4199_v47 = vadd.f32 %v8630_v35, %v3888_v16  ;;  %v3895_v48 = vmax.f32 %v3893_v9, %v3894_v4  ;;  %v8753_v61 = vpop.f32.mrf.mxu0  ;;  %v9944_v20 = vunpack.c.l.b16 %v8702_v52  ;;  %v3876_v62 = vrot.slane %v3875_v34, 4  ;;  %v5465_v9 = vpop.f32.mrf.mxu1 }
 0x282   :  { %v3854_v27 = vmax.f32 %v3746_v17, %v3749_v15  ;;  %v8759_v8 = vrot.slane %v4444_v22, 7  ;;  %v3764_v16 = vadd.f32 %v8717_v2, %v3662_v38  ;;  %v3906_v6 = vrot.slane %v3905_v55, 2 }
 0x283   :  { %v4490_v44 = vsel %vm4489_vm13, %v4488_v7, %v9944_v20  ;;  %v4247_v11 = vmax.f32 %v4199_v47, 0.0  ;;  %v4200_v10 = vadd.f32 %v8632_v24, %v3895_v48  ;;  %v8763_v21 = vpop.f32.mrf.mxu0  ;;  %v3877_v28 = vmax.f32 %v3875_v34, %v3876_v62  ;;  %v3534_v15 = vpop.f32.mrf.mxu1 }
 0x284   :  { %9945 = vst [vmem:[#allocation88_spill] sm:$0xff] %v8759_v8  ;;  %v3855_v54 = vrot.slane %v3854_v27, 4  ;;  %v3665_v4 = vadd.f32 %v5465_v9, %v8454_v30  ;;  %v3656_v7 = vadd.f32 %v3531_v29, %v8448_v41  ;;  %v3911_v17 = vrot.slane %v3910_v50, 4 }
 0x285   :  { %v4295_v52 = vpack.c.bf16 %v4247_v11, %v4247_v11  ;;  %v4248_v60 = vmax.f32 %v4200_v10, 0.0  ;;  %v8767_v22 = vpop.f32.mrf.mxu0  ;;  %v3878_v47 = vrot.slane %v3877_v28, 2  ;;  %v3907_v20 = vmax.f32 %v3905_v55, %v3906_v6  ;;  %v5468_v46 = vpop.f32.mrf.mxu1 }
 0x286   :  { %v3856_v48 = vmax.f32 %v3854_v27, %v3855_v54  ;;  %v3767_v38 = vadd.f32 %v8736_v3, %v3665_v4  ;;  %v3912_v34 = vmax.f32 %v3910_v50, %v3911_v17  ;;  %v3659_v62 = vadd.f32 %v3534_v15, %v8460_v26 }
 0x287   :  { %v4446_v25 = vunpack.c.l.b16 %v4295_v52  ;;  %v4296_v8 = vpack.c.bf16 %v4248_v60, %v4248_v60  ;;  %v8771_v30 = vpop.f32.mrf.mxu0  ;;  %v3879_v11 = vmax.f32 %v3877_v28, %v3878_v47  ;;  %v3908_v41 = vrot.slane %v3907_v20, 1  ;;  %v3547_v27 = vpop.f32.mrf.mxu1 }
 0x288   :  { %v3857_v10 = vrot.slane %v3856_v48, 2  ;;  %v3917_v29 = vmax.f32 %v3764_v16, %v3767_v38  ;;  %v3758_v45 = vadd.f32 %v8717_v2, %v3656_v7  ;;  %v3913_v1 = vrot.slane %v3912_v34, 2 }
 0x289   :  { %v4491_v9 = vrot.slane %v4446_v25, 6  ;;  %v3761_v55 = vadd.f32 %v8736_v3, %v3659_v62  ;;  %v8775_v54 = vpop.f32.mrf.mxu0  ;;  %v3880_v6 = vrot.slane %v3879_v11, 1  ;;  %v3909_v4 = vmax.f32 %v3907_v20, %v3908_v41  ;;  %v5469_v38 = vpop.f32.mrf.mxu1 }
 0x28a   :  { %v3858_v50 = vmax.f32 %v3856_v48, %v3857_v10  ;;  %v3918_v26 = vrot.slane %v3917_v29, 4  ;;  %v4447_v60 = vunpack.c.l.b16 %v4296_v8  ;;  %v3914_v28 = vmax.f32 %v3912_v34, %v3913_v1 }
 0x28b   :  { %v4493_v52 = vsel %vm4492_vm14, %v4491_v9, %v4490_v44  ;;  %v3896_v17 = vmax.f32 %v3758_v45, %v3761_v55  ;;  %v8778_v16 = vpop.f32.mrf.mxu0  ;;  %v3881_v25 = vmax.f32 %v3879_v11, %v3880_v6  ;;  %v4202_v15 = vadd.f32 %v8630_v35, %v3909_v4 }
 0x28c   :  { %v3859_v7 = vrot.slane %v3858_v50, 1  ;;  %v3919_v47 = vmax.f32 %v3917_v29, %v3918_v26  ;;  %v3915_v62 = vrot.slane %v3914_v28, 1  ;;  %v3666_v48 = vadd.f32 %v8727_v42, %v9946_v39  ;;  %v9948_v26 = vld [vmem:[#allocation51_spill] sm:$0xff] }
 0x28d   :  { %v3897_v58 = vrot.slane %v3896_v17, 4  ;;  %v3674_v20 = vadd.f32 %v5468_v46, %v8466_v56  ;;  %v8784_v44 = vpop.f32.mrf.mxu0  ;;  %v4198_v1 = vadd.f32 %v8636_v14, %v3881_v25  ;;  %v4250_v8 = vmax.f32 %v4202_v15, 0.0  ;;  %v3550_v46 = vpop.f32.mrf.mxu1 }
 0x28e   :  { %v3860_v45 = vmax.f32 %v3858_v50, %v3859_v7  ;;  %v3920_v34 = vrot.slane %v3919_v47, 2  ;;  %v8787_v11 = vrot.slane %v4447_v60, 6  ;;  %v3916_v10 = vmax.f32 %v3914_v28, %v3915_v62 }
 0x28f   :  { %v3898_v41 = vmax.f32 %v3896_v17, %v3897_v58  ;;  %v3768_v29 = vadd.f32 %v8603_v37, %v3666_v48  ;;  %v8790_v9 = vpop.f32.mrf.mxu0  ;;  %v4246_v55 = vmax.f32 %v4198_v1, 0.0  ;;  %v4298_v42 = vpack.c.bf16 %v4250_v8, %v4250_v8 }
 0x290   :  { %9947 = vst [vmem:[#allocation89_spill] sm:$0xff] %v8787_v11  ;;  %v4195_v39 = vadd.f32 %v8636_v14, %v3860_v45  ;;  %v3921_v56 = vmax.f32 %v3919_v47, %v3920_v34  ;;  %v4203_v6 = vadd.f32 %v8632_v24, %v3916_v10  ;;  %v3776_v50 = vadd.f32 %v8717_v2, %v3674_v20  ;;  %v5472_v10 = vpop.f32.mrf.mxu1 }
 0x291   :  { %v3899_v4 = vrot.slane %v3898_v41, 2  ;;  %v3667_v60 = vadd.f32 %v8739_v53, %v9948_v26  ;;  %v8797_v28 = vpop.f32.mrf.mxu0  ;;  %v4294_v58 = vpack.c.bf16 %v4246_v55, %v4246_v55  ;;  %v4449_v25 = vunpack.c.l.b16 %v4298_v42  ;;  %v5579_v53 = vld [vmem:[#allocation2 + $0x78] sm:$0xff]  }
 0x292   :  { %v4243_v17 = vmax.f32 %v4195_v39, 0.0  ;;  %v3922_v7 = vrot.slane %v3921_v56, 1  ;;  %v4251_v15 = vmax.f32 %v4203_v6, 0.0  ;;  %v3668_v47 = vadd.f32 %v3547_v27, %v8472_v32  ;;  %v5580_v26 = vld [vmem:[#allocation2 + $0x38] sm:$0xff]   ;;  %5279 = vmatprep.subr.bf16.mxu1 %v5579_v53 }
 0x293   :  { %v3900_v62 = vmax.f32 %v3898_v41, %v3899_v4  ;;  %v3769_v48 = vadd.f32 %v8614_v59, %v3667_v60  ;;  %v8801_v1 = vpop.f32.mrf.mxu0  ;;  %v4445_v45 = vunpack.c.l.b16 %v4294_v58  ;;  %v4494_v20 = vrot.slane %v4449_v25, 5  ;;  %v9949_v39 = vld [vmem:[#allocation117_spill] sm:$0xff]  ;;  %5280 = vmatpush3.bf16.msra.mxu1 %v5580_v26 }
 0x294   :  { %v4291_v8 = vpack.c.bf16 %v4243_v17, %v4243_v17  ;;  %v3923_v34 = vmax.f32 %v3921_v56, %v3922_v7  ;;  %v8803_v11 = vpack.c.bf16 %v4251_v15, %v4251_v15  ;;  %v3669_v42 = vadd.f32 %v8744_v5, %v9949_v39  ;;  %v9950_v7 = vld [vmem:[#allocation20_spill] sm:$0xff] }
 0x295   :  { %v3901_v55 = vrot.slane %v3900_v62, 1  ;;  %v3677_v41 = vadd.f32 %v5469_v38, %v8478_v0  ;;  %v8808_v6 = vpop.f32.mrf.mxu0  ;;  %v4523_v32 = vrot.slane %v4445_v45, 7  ;;  %v8811_v4 = vsel %vm4495_vm15, %v4494_v20, %v4493_v52  ;;  %v3563_v45 = vpop.f32.mrf.mxu1 }
 0x296   :  { %v4442_v27 = vunpack.c.l.b16 %v4291_v8  ;;  %v4204_v56 = vadd.f32 %v8636_v14, %v3923_v34  ;;  %v3770_v58 = vadd.f32 %v8717_v2, %v3668_v47  ;;  %v3771_v17 = vadd.f32 %v8608_v63, %v3669_v42  ;;  %v5581_v42 = vld [vmem:[#allocation2 + $0x70] sm:$0xff]  }
 0x297   :  { %v3902_v60 = vmax.f32 %v3900_v62, %v3901_v55  ;;  %v3779_v25 = vadd.f32 %v8736_v3, %v3677_v41  ;;  %v8817_v5 = vpop.f32.mrf.mxu0  ;;  %v3670_v52 = vadd.f32 %v8748_v23, %v9950_v7  ;;  %v3671_v15 = vadd.f32 %v3550_v46, %v8484_v40  ;;  %v9951_v55 = vld [vmem:[#allocation119_spill] sm:$0xff]  ;;  %v5582_v41 = vld [vmem:[#allocation2 + $0x30] sm:$0xff]   ;;  %5281 = vmatprep.subr.bf16.mxu1 %v5581_v42  ;;  %v9955_v62 = vld [vmem:[#allocation69_spill] sm:$0xff] }
 0x298   :  { %v4524_v0 = vsel %vm4489_vm13, %v4523_v32, %v4442_v27  ;;  %v4252_v38 = vmax.f32 %v4204_v56, 0.0  ;;  %v3924_v8 = vmax.f32 %v3768_v29, %v3771_v17  ;;  %v3672_v39 = vadd.f32 %v8753_v61, %v9951_v55  ;;  %v5473_v17 = vpop.f32.mrf.mxu1  ;;  %5282 = vmatpush3.bf16.msra.mxu1 %v5582_v41  ;;  %v9952_v55 = vld [vmem:[#allocation116_spill] sm:$0xff]  ;;  %v5584_v42 = vld [vmem:[#allocation2 + $0x28] sm:$0xff]   ;;  %v9954_v41 = vld [vmem:[#allocation57_spill] sm:$0xff] }
 0x299   :  { %v4201_v47 = vadd.f32 %v8636_v14, %v3902_v60  ;;  %v3959_v20 = vmax.f32 %v3776_v50, %v3779_v25  ;;  %v3772_v53 = vadd.f32 %v8619_v18, %v3670_v52  ;;  %v3773_v26 = vadd.f32 %v8736_v3, %v3671_v15  ;;  %v8830_v27 = vpop.f32.mrf.mxu0 }
 0x29a   :  { %v4300_v34 = vpack.c.bf16 %v4252_v38, %v4252_v38  ;;  %v3925_v32 = vrot.slane %v3924_v8, 4  ;;  %v3686_v46 = vadd.f32 %v5472_v10, %v8490_v13  ;;  %v3774_v60 = vadd.f32 %v8603_v37, %v3672_v39  ;;  %v5583_v39 = vld [vmem:[#allocation2 + $0x68] sm:$0xff]  }
 0x29b   :  { %v4249_v23 = vmax.f32 %v4201_v47, 0.0  ;;  %v3960_v40 = vrot.slane %v3959_v20, 4  ;;  %v3931_v29 = vmax.f32 %v3769_v48, %v3772_v53  ;;  %v3938_v50 = vmax.f32 %v3770_v58, %v3773_v26  ;;  %v9953_v58 = vld [vmem:[#allocation56_spill] sm:$0xff]  ;;  %v8837_v26 = vpop.f32.mrf.mxu0  ;;  %5283 = vmatprep.subr.bf16.mxu1 %v5583_v39 }
 0x29c   :  { %v4451_v56 = vunpack.c.l.b16 %v4300_v34  ;;  %v3926_v38 = vmax.f32 %v3924_v8, %v3925_v32  ;;  %v3788_v61 = vadd.f32 %v8717_v2, %v3686_v46  ;;  %v3673_v13 = vadd.f32 %v8763_v21, %v9952_v55  ;;  %5284 = vmatpush3.bf16.msra.mxu1 %v5584_v42 }
 0x29d   :  { %v4297_v25 = vpack.c.bf16 %v4249_v23, %v4249_v23  ;;  %v3961_v7 = vmax.f32 %v3959_v20, %v3960_v40  ;;  %v3932_v15 = vrot.slane %v3931_v29, 4  ;;  %v3939_v47 = vrot.slane %v3938_v50, 4  ;;  %v3566_v40 = vpop.f32.mrf.mxu1 }
 0x29e   :  { %v4527_v52 = vrot.slane %v4451_v56, 5  ;;  %v3927_v34 = vrot.slane %v3926_v38, 2  ;;  %v3680_v53 = vadd.f32 %v3563_v45, %v9953_v58  ;;  %v3775_v23 = vadd.f32 %v8614_v59, %v3673_v13  ;;  %v8848_v13 = vpop.f32.mrf.mxu0 }
 0x29f   :  { %v4448_v10 = vunpack.c.l.b16 %v4297_v25  ;;  %v3962_v48 = vrot.slane %v3961_v7, 2  ;;  %v3933_v8 = vmax.f32 %v3931_v29, %v3932_v15  ;;  %v3940_v20 = vmax.f32 %v3938_v50, %v3939_v47  ;;  %v9956_v47 = vld [vmem:[#allocation118_spill] sm:$0xff] }
 0x2a0   :  { %v3675_v32 = vadd.f32 %v8767_v22, %v9954_v41  ;;  %v3928_v56 = vmax.f32 %v3926_v38, %v3927_v34  ;;  %v3782_v25 = vadd.f32 %v8717_v2, %v3680_v53  ;;  %v3689_v31 = vadd.f32 %v5473_v17, %v9955_v62  ;;  %v9957_v41 = vld [vmem:[#allocation60_spill] sm:$0xff] }
 0x2a1   :  { %v4525_v46 = vrot.slane %v4448_v10, 6  ;;  %v3963_v21 = vmax.f32 %v3961_v7, %v3962_v48  ;;  %v3934_v55 = vrot.slane %v3933_v8, 2  ;;  %v3941_v45 = vrot.slane %v3940_v20, 2  ;;  %v8853_v48 = vpop.f32.mrf.mxu1 }
 0x2a2   :  { %v3777_v58 = vadd.f32 %v8608_v63, %v3675_v32  ;;  %v3929_v50 = vrot.slane %v3928_v56, 1  ;;  %v3676_v22 = vadd.f32 %v8771_v30, %v9956_v47  ;;  %v3791_v17 = vadd.f32 %v8736_v3, %v3689_v31 }
 0x2a3   :  { %v4526_v29 = vsel %vm4492_vm14, %v4525_v46, %v4524_v0  ;;  %v3964_v15 = vrot.slane %v3963_v21, 1  ;;  %v3935_v38 = vmax.f32 %v3933_v8, %v3934_v55  ;;  %v3942_v7 = vmax.f32 %v3940_v20, %v3941_v45  ;;  %v5585_v8 = vld [vmem:[#allocation2 + $0x60] sm:$0xff]   ;;  %v8860_v55 = vpop.f32.mrf.mxu0 }
 0x2a4   :  { %v8851_v10 = vsel %vm4495_vm15, %v4527_v52, %v4526_v29  ;;  %v3945_v34 = vmax.f32 %v3774_v60, %v3777_v58  ;;  %v3930_v53 = vmax.f32 %v3928_v56, %v3929_v50  ;;  %v3778_v0 = vadd.f32 %v8619_v18, %v3676_v22  ;;  %v5586_v56 = vld [vmem:[#allocation2 + $0x20] sm:$0xff]   ;;  %v8863_v29 = vpop.f32.mrf.mxu1  ;;  %5285 = vmatprep.subr.bf16.mxu1 %v5585_v8 }
 0x2a5   :  { %v3965_v62 = vmax.f32 %v3963_v21, %v3964_v15  ;;  %v3936_v39 = vrot.slane %v3935_v38, 1  ;;  %v3943_v42 = vrot.slane %v3942_v7, 1  ;;  %v3683_v32 = vadd.f32 %v3566_v40, %v9957_v41  ;;  %5286 = vmatpush3.bf16.msra.mxu1 %v5586_v56 }
 0x2a6   :  { %v3946_v30 = vrot.slane %v3945_v34, 4  ;;  %v4205_v20 = vadd.f32 %v8630_v35, %v3930_v53  ;;  %v4001_v60 = vmax.f32 %v3788_v61, %v3791_v17  ;;  %v3952_v46 = vmax.f32 %v3775_v23, %v3778_v0  ;;  %v8867_v0 = vpop.f32.mrf.mxu0  ;;  %v5477_v8 = vpop.f32.mrf.mxu1 }
 0x2a7   :  { %v4210_v52 = vadd.f32 %v8636_v14, %v3965_v62  ;;  %v3937_v21 = vmax.f32 %v3935_v38, %v3936_v39  ;;  %v3944_v31 = vmax.f32 %v3942_v7, %v3943_v42  ;;  %v3785_v58 = vadd.f32 %v8736_v3, %v3683_v32  ;;  %v5587_v62 = vld [vmem:[#allocation2 + $0x58] sm:$0xff]  }
 0x2a8   :  { %v3947_v45 = vmax.f32 %v3945_v34, %v3946_v30  ;;  %v4253_v50 = vmax.f32 %v4205_v20, 0.0  ;;  %v4002_v15 = vrot.slane %v4001_v60, 4  ;;  %v3953_v47 = vrot.slane %v3952_v46, 4  ;;  %v5588_v39 = vld [vmem:[#allocation2 + $0x18] sm:$0xff]   ;;  %5287 = vmatprep.subr.bf16.mxu1 %v5587_v62 }
 0x2a9   :  { %v4258_v40 = vmax.f32 %v4210_v52, 0.0  ;;  %v4206_v22 = vadd.f32 %v8632_v24, %v3937_v21  ;;  %v4207_v61 = vadd.f32 %v8636_v14, %v3944_v31  ;;  %v3980_v53 = vmax.f32 %v3782_v25, %v3785_v58  ;;  %5288 = vmatpush3.bf16.msra.mxu1 %v5588_v39  ;;  %v3582_v39 = vpop.f32.mrf.mxu1 }
 0x2aa   :  { %v3948_v23 = vrot.slane %v3947_v45, 2  ;;  %v4301_v38 = vpack.c.bf16 %v4253_v50, %v4253_v50  ;;  %v4003_v34 = vmax.f32 %v4001_v60, %v4002_v15  ;;  %v3954_v17 = vmax.f32 %v3952_v46, %v3953_v47  ;;  %v5589_v60 = vld [vmem:[#allocation2 + $0x50] sm:$0xff]  }
 0x2ab   :  { %v4306_v7 = vpack.c.bf16 %v4258_v40, %v4258_v40  ;;  %v4254_v42 = vmax.f32 %v4206_v22, 0.0  ;;  %v4255_v30 = vmax.f32 %v4207_v61, 0.0  ;;  %v3981_v32 = vrot.slane %v3980_v53, 4  ;;  %v8873_v22 = vpop.f32.mrf.mxu0  ;;  %v5590_v61 = vld [vmem:[#allocation2 + $0x10] sm:$0xff]   ;;  %5289 = vmatprep.subr.bf16.mxu1 %v5589_v60  ;;  %v9963_v60 = vld [vmem:[#allocation71_spill] sm:$0xff] }
 0x2ac   :  { %v3949_v41 = vmax.f32 %v3947_v45, %v3948_v23  ;;  %v4452_v20 = vunpack.c.l.b16 %v4301_v38  ;;  %v4004_v56 = vrot.slane %v4003_v34, 2  ;;  %v3955_v21 = vrot.slane %v3954_v17, 2 }
 0x2ad   :  { %v4457_v52 = vunpack.c.l.b16 %v4306_v7  ;;  %v4302_v25 = vpack.c.bf16 %v4254_v42, %v4254_v42  ;;  %v4303_v31 = vpack.c.bf16 %v4255_v30, %v4255_v30  ;;  %v3982_v50 = vmax.f32 %v3980_v53, %v3981_v32  ;;  %v9960_v30 = vld [vmem:[#allocation10_spill] sm:$0xff]  ;;  %5290 = vmatpush3.bf16.msra.mxu1 %v5590_v61 }
 0x2ae   :  { %v3950_v58 = vrot.slane %v3949_v41, 1  ;;  %v9958_v46 = vunpack.c.l.b16 %v8803_v11  ;;  %v4497_v15 = vrot.slane %v4452_v20, 4  ;;  %v4005_v47 = vmax.f32 %v4003_v34, %v4004_v56 }
 0x2af   :  { %v3956_v45 = vmax.f32 %v3954_v17, %v3955_v21  ;;  %v4453_v23 = vunpack.c.l.b16 %v4302_v25  ;;  %v4454_v62 = vunpack.c.l.b16 %v4303_v31  ;;  %v3983_v7 = vrot.slane %v3982_v50, 2  ;;  %v5592_v21 = vld [vmem:[#allocation2 + $0x8] sm:$0xff]   ;;  %v5593_v25 = vld [vmem:[#allocation2 + $0x40] sm:$0xff]  }
 0x2b0   :  { %v8871_v40 = vrot.slane %v9958_v46, 5  ;;  %v3951_v38 = vmax.f32 %v3949_v41, %v3950_v58  ;;  %v8877_v53 = vsel %vm4498_vm0, %v4497_v15, %v8811_v4  ;;  %v4006_v42 = vrot.slane %v4005_v47, 1  ;;  %v5591_v41 = vld [vmem:[#allocation2 + $0x48] sm:$0xff]   ;;  %v8888_v15 = vpop.f32.mrf.mxu0 }
 0x2b1   :  { %9959 = vst [vmem:[#allocation90_spill] sm:$0xff] %v8877_v53  ;;  %v3957_v11 = vrot.slane %v3956_v45, 1  ;;  %v3678_v32 = vadd.f32 %v8775_v54, %v9960_v30  ;;  %v8881_v34 = vrot.slane %v4457_v52, 3  ;;  %v4529_v17 = vrot.slane %v4454_v62, 4  ;;  %v9965_v62 = vld [vmem:[#allocation59_spill] sm:$0xff]  ;;  %5291 = vmatprep.subr.bf16.mxu1 %v5591_v41 }
 0x2b2   :  { %v4208_v20 = vadd.f32 %v8630_v35, %v3951_v38  ;;  %v3984_v56 = vmax.f32 %v3982_v50, %v3983_v7  ;;  %v8884_v31 = vrot.slane %v4453_v23, 4  ;;  %v4007_v58 = vmax.f32 %v4005_v47, %v4006_v42  ;;  %v5480_v38 = vpop.f32.mrf.mxu1  ;;  %5292 = vmatpush3.bf16.msra.mxu1 %v5592_v21  ;;  %v5594_v7 = vld [vmem:[#allocation2] sm:$0xff]  }
 0x2b3   :  { %9961 = vst [vmem:[#allocation91_spill] sm:$0xff] %v8881_v34  ;;  %v3958_v4 = vmax.f32 %v3956_v45, %v3957_v11  ;;  %v3698_v46 = vadd.f32 %v8853_v48, %v9963_v60  ;;  %v8892_v54 = vsel %vm4498_vm0, %v4529_v17, %v8851_v10  ;;  %v3679_v50 = vadd.f32 %v8778_v16, %v9965_v62  ;;  %v9966_v11 = vld [vmem:[#allocation62_spill] sm:$0xff]  ;;  %v9967_v17 = vld [vmem:[#allocation61_spill] sm:$0xff] }
 0x2b4   :  { %9962 = vst [vmem:[#allocation141_spill] sm:$0xff] %v8884_v31  ;;  %9964 = vst [vmem:[#allocation143_spill] sm:$0xff] %v8892_v54  ;;  %v4256_v52 = vmax.f32 %v4208_v20, 0.0  ;;  %v3985_v61 = vrot.slane %v3984_v56, 1  ;;  %v4216_v23 = vadd.f32 %v8636_v14, %v4007_v58  ;;  %v3780_v45 = vadd.f32 %v8603_v37, %v3678_v32  ;;  %5293 = vmatprep.subr.bf16.mxu1 %v5593_v25  ;;  %v8906_v32 = vpop.f32.mrf.mxu0 }
 0x2b5   :  { %v4209_v47 = vadd.f32 %v8632_v24, %v3958_v4  ;;  %v3800_v48 = vadd.f32 %v8717_v2, %v3698_v46  ;;  %v3692_v30 = vadd.f32 %v8863_v29, %v9966_v11  ;;  %v3681_v16 = vadd.f32 %v8784_v44, %v9967_v17  ;;  %v9968_v4 = vld [vmem:[#allocation73_spill] sm:$0xff] }
 0x2b6   :  { %v4304_v42 = vpack.c.bf16 %v4256_v52, %v4256_v52  ;;  %v3986_v10 = vmax.f32 %v3984_v56, %v3985_v61  ;;  %v4264_v20 = vmax.f32 %v4216_v23, 0.0  ;;  %v3781_v58 = vadd.f32 %v8614_v59, %v3679_v50  ;;  %v9969_v52 = vld [vmem:[#allocation52_spill] sm:$0xff]  ;;  %v3595_v61 = vpop.f32.mrf.mxu1  ;;  %5294 = vmatpush3.bf16.msra.mxu1 %v5594_v7 }
 0x2b7   :  { %v4257_v41 = vmax.f32 %v4209_v47, 0.0  ;;  %v3701_v60 = vadd.f32 %v5477_v8, %v9968_v4  ;;  %v3783_v56 = vadd.f32 %v8608_v63, %v3681_v16  ;;  %v3682_v29 = vadd.f32 %v8790_v9, %v9969_v52  ;;  %v9970_v23 = vld [vmem:[#allocation64_spill] sm:$0xff] }
 0x2b8   :  { %v4455_v46 = vunpack.c.l.b16 %v4304_v42  ;;  %v4213_v21 = vadd.f32 %v8636_v14, %v3986_v10  ;;  %v4312_v62 = vpack.c.bf16 %v4264_v20, %v4264_v20  ;;  %v3695_v50 = vadd.f32 %v3582_v39, %v9970_v23  ;;  %v8921_v20 = vpop.f32.mrf.mxu0  ;;  %v9972_v39 = vld [vmem:[#allocation63_spill] sm:$0xff] }
 0x2b9   :  { %v8912_v44 = vpack.c.bf16 %v4257_v41, %v4257_v41  ;;  %v3803_v25 = vadd.f32 %v8736_v3, %v3701_v60  ;;  %v3794_v47 = vadd.f32 %v8717_v2, %v3692_v30  ;;  %v3966_v42 = vmax.f32 %v3780_v45, %v3783_v56 }
 0x2ba   :  { %v4261_v8 = vmax.f32 %v4213_v21, 0.0  ;;  %v3784_v10 = vadd.f32 %v8619_v18, %v3682_v29  ;;  %v8918_v11 = vrot.slane %v4455_v46, 3  ;;  %v4463_v17 = vunpack.c.l.b16 %v4312_v62  ;;  %v5481_v21 = vpop.f32.mrf.mxu1  ;;  %v9973_v46 = vld [vmem:[#allocation75_spill] sm:$0xff] }
 0x2bb   :  { %v4043_v16 = vmax.f32 %v3800_v48, %v3803_v25  ;;  %v3797_v9 = vadd.f32 %v8736_v3, %v3695_v50  ;;  %v3967_v4 = vrot.slane %v3966_v42, 4  ;;  %v3684_v7 = vadd.f32 %v8797_v28, %v9972_v39  ;;  %v9975_v50 = vld [vmem:[#allocation54_spill] sm:$0xff] }
 0x2bc   :  { %9971 = vst [vmem:[#allocation92_spill] sm:$0xff] %v8918_v11  ;;  %v8923_v41 = vpack.c.bf16 %v4261_v8, %v4261_v8  ;;  %v3973_v60 = vmax.f32 %v3781_v58, %v3784_v10  ;;  %v3710_v56 = vadd.f32 %v5480_v38, %v9973_v46  ;;  %v8929_v52 = vrot.slane %v4463_v17, 1  ;;  %v8935_v8 = vpop.f32.mrf.mxu0  ;;  %v9976_v38 = vld [vmem:[#allocation66_spill] sm:$0xff] }
 0x2bd   :  { %v4044_v30 = vrot.slane %v4043_v16, 4  ;;  %v4022_v18 = vmax.f32 %v3794_v47, %v3797_v9  ;;  %v3968_v29 = vmax.f32 %v3966_v42, %v3967_v4  ;;  %v3786_v58 = vadd.f32 %v8603_v37, %v3684_v7  ;;  %v3598_v9 = vpop.f32.mrf.mxu1 }
 0x2be   :  { %9974 = vst [vmem:[#allocation142_spill] sm:$0xff] %v8929_v52  ;;  %v4460_v48 = vunpack.c.l.b16 %v8923_v41  ;;  %v3974_v62 = vrot.slane %v3973_v60, 4  ;;  %v3685_v28 = vadd.f32 %v8801_v1, %v9975_v50  ;;  %v3812_v47 = vadd.f32 %v8717_v2, %v3710_v56 }
 0x2bf   :  { %v4045_v25 = vmax.f32 %v4043_v16, %v4044_v30  ;;  %v4023_v23 = vrot.slane %v4022_v18, 4  ;;  %v3969_v10 = vrot.slane %v3968_v29, 2  ;;  %v3704_v17 = vadd.f32 %v3595_v61, %v9976_v38  ;;  %v9977_v16 = vld [vmem:[#allocation65_spill] sm:$0xff]  ;;  %v9978_v30 = vld [vmem:[#allocation76_spill] sm:$0xff]  ;;  %v8947_v38 = vpop.f32.mrf.mxu0 }
 0x2c0   :  { %v3975_v39 = vmax.f32 %v3973_v60, %v3974_v62  ;;  %v3787_v42 = vadd.f32 %v8614_v59, %v3685_v28  ;;  %v3687_v4 = vadd.f32 %v8808_v6, %v9977_v16  ;;  %v3713_v50 = vadd.f32 %v5481_v21, %v9978_v30  ;;  %v9979_v62 = vld [vmem:[#allocation67_spill] sm:$0xff]  ;;  %v9980_v6 = vld [vmem:[#allocation68_spill] sm:$0xff]  ;;  %v8951_v28 = vpop.f32.mrf.mxu1 }
 0x2c1   :  { %v4046_v46 = vrot.slane %v4045_v25, 2  ;;  %v4024_v41 = vmax.f32 %v4022_v18, %v4023_v23  ;;  %v3970_v37 = vmax.f32 %v3968_v29, %v3969_v10  ;;  %v3806_v1 = vadd.f32 %v8717_v2, %v3704_v17 }
 0x2c2   :  { %v3976_v7 = vrot.slane %v3975_v39, 2  ;;  %v3789_v56 = vadd.f32 %v8608_v63, %v3687_v4  ;;  %v3688_v61 = vadd.f32 %v8817_v5, %v9979_v62  ;;  %v3815_v23 = vadd.f32 %v8736_v3, %v3713_v50  ;;  %v8956_v63 = vld [vmem:[%s9270_s5 + $0x20] sm:$0xff]  ;;  %v8960_v50 = vpop.f32.mrf.mxu0  ;;  %v3611_v62 = vpop.f32.mrf.mxu1 }
 0x2c3   :  { %v4047_v45 = vmax.f32 %v4045_v25, %v4046_v46  ;;  %v4025_v60 = vrot.slane %v4024_v41, 2  ;;  %v3971_v18 = vrot.slane %v3970_v37, 1  ;;  %v3707_v29 = vadd.f32 %v3598_v9, %v9980_v6 }
 0x2c4   :  { %v3977_v59 = vmax.f32 %v3975_v39, %v3976_v7  ;;  %v3987_v21 = vmax.f32 %v3786_v58, %v3789_v56  ;;  %v3790_v5 = vadd.f32 %v8956_v63, %v3688_v61  ;;  %v4085_v16 = vmax.f32 %v3812_v47, %v3815_v23 }
 0x2c5   :  { %v4048_v10 = vrot.slane %v4047_v45, 1  ;;  %v4026_v17 = vmax.f32 %v4024_v41, %v4025_v60  ;;  %v3972_v25 = vmax.f32 %v3970_v37, %v3971_v18  ;;  %v3809_v39 = vadd.f32 %v8736_v3, %v3707_v29 }
 0x2c6   :  { %v3978_v46 = vrot.slane %v3977_v59, 1  ;;  %v3988_v9 = vrot.slane %v3987_v21, 4  ;;  %v3994_v30 = vmax.f32 %v3787_v42, %v3790_v5  ;;  %v4086_v60 = vrot.slane %v4085_v16, 4 }
 0x2c7   :  { %v4049_v4 = vmax.f32 %v4047_v45, %v4048_v10  ;;  %v4027_v7 = vrot.slane %v4026_v17, 1  ;;  %v4211_v58 = vadd.f32 %v8630_v35, %v3972_v25  ;;  %v4064_v56 = vmax.f32 %v3806_v1, %v3809_v39  ;;  %v8967_v25 = vpop.f32.mrf.mxu0 }
 0x2c8   :  { %v3979_v41 = vmax.f32 %v3977_v59, %v3978_v46  ;;  %v3989_v37 = vmax.f32 %v3987_v21, %v3988_v9  ;;  %v3995_v18 = vrot.slane %v3994_v30, 4  ;;  %v8964_v47 = vrot.slane %v4460_v48, 2  ;;  %v5485_v21 = vpop.f32.mrf.mxu1 }
 0x2c9   :  { %v4222_v6 = vadd.f32 %v8636_v14, %v4049_v4  ;;  %v4028_v61 = vmax.f32 %v4026_v17, %v4027_v7  ;;  %v4259_v23 = vmax.f32 %v4211_v58, 0.0  ;;  %v4087_v45 = vmax.f32 %v4085_v16, %v4086_v60  ;;  %v9982_v60 = vld [vmem:[#allocation121_spill] sm:$0xff] }
 0x2ca   :  { %9981 = vst [vmem:[#allocation25_spill] sm:$0xff] %v8964_v47  ;;  %v4065_v29 = vrot.slane %v4064_v56, 4  ;;  %v3990_v5 = vrot.slane %v3989_v37, 2  ;;  %v3996_v52 = vmax.f32 %v3994_v30, %v3995_v18  ;;  %v8970_v1 = vadd.f32 %v8632_v24, %v3979_v41  ;;  %v8974_v47 = vpop.f32.mrf.mxu0 }
 0x2cb   :  { %v4270_v10 = vmax.f32 %v4222_v6, 0.0  ;;  %v4219_v42 = vadd.f32 %v8636_v14, %v4028_v61  ;;  %v4307_v59 = vpack.c.bf16 %v4259_v23, %v4259_v23  ;;  %v4088_v46 = vrot.slane %v4087_v45, 2 }
 0x2cc   :  { %v4066_v17 = vmax.f32 %v4064_v56, %v4065_v29  ;;  %v3991_v4 = vmax.f32 %v3989_v37, %v3990_v5  ;;  %v3997_v7 = vrot.slane %v3996_v52, 2  ;;  %v3690_v6 = vadd.f32 %v8830_v27, %v9982_v60  ;;  %v3614_v37 = vpop.f32.mrf.mxu1  ;;  %v8982_v27 = vld [vmem:[%s9270_s5] sm:$0xff] }
 0x2cd   :  { %v4318_v39 = vpack.c.bf16 %v4270_v10, %v4270_v10  ;;  %v4267_v48 = vmax.f32 %v4219_v42, 0.0  ;;  %v4458_v16 = vunpack.c.l.b16 %v4307_v59  ;;  %v4089_v9 = vmax.f32 %v4087_v45, %v4088_v46  ;;  %v9986_v60 = vld [vmem:[#allocation70_spill] sm:$0xff] }
 0x2ce   :  { %v4067_v58 = vrot.slane %v4066_v17, 2  ;;  %v3992_v18 = vrot.slane %v3991_v4, 1  ;;  %v3998_v23 = vmax.f32 %v3996_v52, %v3997_v7  ;;  %v3792_v59 = vadd.f32 %v8982_v27, %v3690_v6  ;;  %v9985_v7 = vld [vmem:[#allocation125_spill] sm:$0xff] }
 0x2cf   :  { %v4469_v30 = vunpack.c.l.b16 %v4318_v39  ;;  %v4315_v61 = vpack.c.bf16 %v4267_v48, %v4267_v48  ;;  %v8976_v41 = vrot.slane %v4458_v16, 2  ;;  %v4090_v29 = vrot.slane %v4089_v9, 1  ;;  %v9984_v39 = vld [vmem:[#allocation77_spill] sm:$0xff] }
 0x2d0   :  { %v4068_v10 = vmax.f32 %v4066_v17, %v4067_v58  ;;  %v3993_v45 = vmax.f32 %v3991_v4, %v3992_v18  ;;  %v3722_v48 = vadd.f32 %v8951_v28, %v9984_v39  ;;  %v3691_v16 = vadd.f32 %v8837_v26, %v9985_v7  ;;  %v8999_v28 = vld [vmem:[%s9270_s5 + $0x8] sm:$0xff]  ;;  %v9988_v39 = vld [vmem:[#allocation132_spill] sm:$0xff] }
 0x2d1   :  { %9983 = vst [vmem:[#allocation11_spill] sm:$0xff] %v8976_v41  ;;  %v4565_v42 = vrot.slane %v4469_v30, 7  ;;  %v4466_v5 = vunpack.c.l.b16 %v4315_v61  ;;  %v4091_v52 = vmax.f32 %v4089_v9, %v4090_v29  ;;  %v3999_v4 = vrot.slane %v3998_v23, 1  ;;  %v8992_v61 = vpop.f32.mrf.mxu0  ;;  %v5488_v29 = vpop.f32.mrf.mxu1 }
 0x2d2   :  { %v4069_v46 = vrot.slane %v4068_v10, 1  ;;  %v4214_v58 = vadd.f32 %v8630_v35, %v3993_v45  ;;  %v3716_v30 = vadd.f32 %v3611_v62, %v9986_v60  ;;  %v3824_v9 = vadd.f32 %v8717_v2, %v3722_v48  ;;  %v9987_v45 = vld [vmem:[#allocation122_spill] sm:$0xff]  ;;  %v9990_v60 = vld [vmem:[#allocation136_spill] sm:$0xff] }
 0x2d3   :  { %v4566_v17 = vsel %vm4489_vm13, %v4565_v42, %v4466_v5  ;;  %v4228_v18 = vadd.f32 %v8636_v14, %v4091_v52  ;;  %v3793_v26 = vadd.f32 %v8999_v28, %v3691_v16  ;;  %v3693_v62 = vadd.f32 %v8848_v13, %v9987_v45  ;;  %v9015_v16 = vld [vmem:[%s9270_s5 + $0x18] sm:$0xff]  ;;  %v3627_v45 = vpop.f32.mrf.mxu1 }
 0x2d4   :  { %v4070_v6 = vmax.f32 %v4068_v10, %v4069_v46  ;;  %v4262_v42 = vmax.f32 %v4214_v58, 0.0  ;;  %v3818_v5 = vadd.f32 %v8717_v2, %v3716_v30  ;;  %v3725_v7 = vadd.f32 %v5485_v21, %v9988_v39  ;;  %v9989_v46 = vld [vmem:[#allocation127_spill] sm:$0xff]  ;;  %v9991_v21 = vld [vmem:[#allocation124_spill] sm:$0xff] }
 0x2d5   :  { %v4276_v52 = vmax.f32 %v4228_v18, 0.0  ;;  %v3694_v48 = vadd.f32 %v8860_v55, %v9989_v46  ;;  %v3719_v56 = vadd.f32 %v3614_v37, %v9990_v60  ;;  %v3795_v58 = vadd.f32 %v9015_v16, %v3693_v62  ;;  %v9021_v18 = vpop.f32.mrf.mxu0 }
 0x2d6   :  { %v4225_v10 = vadd.f32 %v8636_v14, %v4070_v6  ;;  %v9010_v34 = vpack.c.bf16 %v4262_v42, %v4262_v42  ;;  %v3827_v13 = vadd.f32 %v8736_v3, %v3725_v7  ;;  %v3696_v30 = vadd.f32 %v8867_v0, %v9991_v21 }
 0x2d7   :  { %v4324_v6 = vpack.c.bf16 %v4276_v52, %v4276_v52  ;;  %v3796_v37 = vadd.f32 %v8956_v63, %v3694_v48  ;;  %v3821_v42 = vadd.f32 %v8736_v3, %v3719_v56  ;;  %v9026_v46 = vmax.f32 %v3998_v23, %v3999_v4  ;;  %v9030_v48 = vpop.f32.mrf.mxu0  ;;  %v5489_v23 = vpop.f32.mrf.mxu1 }
 0x2d8   :  { %v4273_v55 = vmax.f32 %v4225_v10, 0.0  ;;  %v4008_v60 = vmax.f32 %v3792_v59, %v3795_v58  ;;  %v4127_v62 = vmax.f32 %v3824_v9, %v3827_v13  ;;  %v3798_v52 = vadd.f32 %v8982_v27, %v3696_v30  ;;  %v9992_v10 = vld [vmem:[#allocation79_spill] sm:$0xff]  ;;  %v9993_v58 = vld [vmem:[#allocation129_spill] sm:$0xff]  ;;  %v9994_v30 = vld [vmem:[#allocation134_spill] sm:$0xff] }
 0x2d9   :  { %v4475_v54 = vunpack.c.l.b16 %v4324_v6  ;;  %v4015_v41 = vmax.f32 %v3793_v26, %v3796_v37  ;;  %v4106_v11 = vmax.f32 %v3818_v5, %v3821_v42  ;;  %v3734_v53 = vadd.f32 %v5488_v29, %v9992_v10  ;;  %v9995_v42 = vld [vmem:[#allocation126_spill] sm:$0xff]  ;;  %v9039_v10 = vpop.f32.mrf.mxu0 }
 0x2da   :  { %v4321_v7 = vpack.c.bf16 %v4273_v55, %v4273_v55  ;;  %v4009_v0 = vrot.slane %v4008_v60, 4  ;;  %v4128_v21 = vrot.slane %v4127_v62, 4  ;;  %v3697_v26 = vadd.f32 %v8873_v22, %v9993_v58  ;;  %v5703_v22 = vld [vmem:[%s9270_s5 + $0x10] sm:$0xff] }
 0x2db   :  { %v4569_v3 = vrot.slane %v4475_v54, 5  ;;  %v4016_v31 = vrot.slane %v4015_v41, 4  ;;  %v4107_v39 = vrot.slane %v4106_v11, 4  ;;  %v3836_v9 = vadd.f32 %v8717_v2, %v3734_v53 }
 0x2dc   :  { %v4472_v56 = vunpack.c.l.b16 %v4321_v7  ;;  %v4010_v4 = vmax.f32 %v4008_v60, %v4009_v0  ;;  %v4129_v59 = vmax.f32 %v4127_v62, %v4128_v21  ;;  %v3728_v55 = vadd.f32 %v3627_v45, %v9994_v30  ;;  %v9996_v21 = vld [vmem:[#allocation74_spill] sm:$0xff] }
 0x2dd   :  { %v4017_v13 = vmax.f32 %v4015_v41, %v4016_v31  ;;  %v4108_v6 = vmax.f32 %v4106_v11, %v4107_v39  ;;  %v3799_v54 = vadd.f32 %v8999_v28, %v3697_v26  ;;  %v3699_v7 = vadd.f32 %v8888_v15, %v9995_v42  ;;  %v3630_v11 = vpop.f32.mrf.mxu1  ;;  %v9998_v42 = vld [vmem:[#allocation138_spill] sm:$0xff] }
 0x2de   :  { %v4567_v5 = vrot.slane %v4472_v56, 6  ;;  %v4011_v29 = vrot.slane %v4010_v4, 2  ;;  %v4130_v37 = vrot.slane %v4129_v59, 2  ;;  %v3830_v31 = vadd.f32 %v5703_v22, %v3728_v55  ;;  %v9053_v22 = vpop.f32.mrf.mxu0 }
 0x2df   :  { %v4018_v2 = vrot.slane %v4017_v13, 2  ;;  %v4109_v53 = vrot.slane %v4108_v6, 2  ;;  %v3801_v62 = vadd.f32 %v9015_v16, %v3699_v7  ;;  %v3737_v56 = vadd.f32 %v5489_v23, %v9996_v21 }
 0x2e0   :  { %v4568_v60 = vsel %vm4492_vm14, %v4567_v5, %v4566_v17  ;;  %v4012_v41 = vmax.f32 %v4010_v4, %v4011_v29  ;;  %v4131_v45 = vmax.f32 %v4129_v59, %v4130_v37  ;;  %v9997_v17 = vld [vmem:[#allocation131_spill] sm:$0xff]  ;;  %v3731_v55 = vadd.f32 %v3630_v11, %v9998_v42 }
 0x2e1   :  { %v9046_v39 = vsel %vm4495_vm15, %v4569_v3, %v4568_v60  ;;  %v4019_v15 = vmax.f32 %v4017_v13, %v4018_v2  ;;  %v4110_v0 = vmax.f32 %v4108_v6, %v4109_v53  ;;  %v3700_v58 = vadd.f32 %v8906_v32, %v9997_v17  ;;  %v5704_v3 = vld [vmem:[%s9270_s5 + $0x28] sm:$0xff]  ;;  %v9061_v17 = vpop.f32.mrf.mxu0 }
 0x2e2   :  { %v4013_v26 = vrot.slane %v4012_v41, 1  ;;  %v4132_v5 = vrot.slane %v4131_v45, 1  ;;  %v4029_v30 = vmax.f32 %v3798_v52, %v3801_v62  ;;  %v3839_v13 = vadd.f32 %v5704_v3, %v3737_v56 }
 0x2e3   :  { %v4020_v4 = vrot.slane %v4019_v15, 1  ;;  %v4111_v59 = vrot.slane %v4110_v0, 1  ;;  %v3802_v6 = vadd.f32 %v8956_v63, %v3700_v58  ;;  %v3833_v32 = vadd.f32 %v5704_v3, %v3731_v55  ;;  %v9067_v3 = vpop.f32.mrf.mxu0 }
 0x2e4   :  { %v4014_v23 = vmax.f32 %v4012_v41, %v4013_v26  ;;  %v4133_v29 = vmax.f32 %v4131_v45, %v4132_v5  ;;  %v4030_v37 = vrot.slane %v4029_v30, 4  ;;  %v4169_v52 = vmax.f32 %v3836_v9, %v3839_v13 }
 0x2e5   :  { %v4021_v7 = vmax.f32 %v4019_v15, %v4020_v4  ;;  %v4112_v60 = vmax.f32 %v4110_v0, %v4111_v59  ;;  %v4036_v2 = vmax.f32 %v3799_v54, %v3802_v6  ;;  %v4148_v21 = vmax.f32 %v3830_v31, %v3833_v32 }
 0x2e6   :  { %v4217_v53 = vadd.f32 %v8630_v35, %v4014_v23  ;;  %v4234_v11 = vadd.f32 %v8636_v14, %v4133_v29  ;;  %v4031_v62 = vmax.f32 %v4029_v30, %v4030_v37  ;;  %v4170_v41 = vrot.slane %v4169_v52, 4 }
 0x2e7   :  { %v4218_v56 = vadd.f32 %v8632_v24, %v4021_v7  ;;  %v4231_v58 = vadd.f32 %v8636_v14, %v4112_v60  ;;  %v4037_v45 = vrot.slane %v4036_v2, 4  ;;  %v4149_v0 = vrot.slane %v4148_v21, 4 }
 0x2e8   :  { %v4265_v26 = vmax.f32 %v4217_v53, 0.0  ;;  %v4282_v5 = vmax.f32 %v4234_v11, 0.0  ;;  %v4032_v15 = vrot.slane %v4031_v62, 2  ;;  %v4171_v42 = vmax.f32 %v4169_v52, %v4170_v41  ;;  %v10000_v41 = vld [vmem:[#allocation128_spill] sm:$0xff] }
 0x2e9   :  { %v4266_v9 = vmax.f32 %v4218_v56, 0.0  ;;  %v4279_v54 = vmax.f32 %v4231_v58, 0.0  ;;  %v4038_v55 = vmax.f32 %v4036_v2, %v4037_v45  ;;  %v4150_v59 = vmax.f32 %v4148_v21, %v4149_v0  ;;  %v10001_v0 = vld [vmem:[#allocation133_spill] sm:$0xff] }
 0x2ea   :  { %v9065_v4 = vpack.c.bf16 %v4265_v26, %v4265_v26  ;;  %v4330_v30 = vpack.c.bf16 %v4282_v5, %v4282_v5  ;;  %v4033_v31 = vmax.f32 %v4031_v62, %v4032_v15  ;;  %v4172_v23 = vrot.slane %v4171_v42, 2  ;;  %v9079_v26 = vpop.f32.mrf.mxu0 }
 0x2eb   :  { %v9069_v13 = vpack.c.bf16 %v4266_v9, %v4266_v9  ;;  %v4327_v6 = vpack.c.bf16 %v4279_v54, %v4279_v54  ;;  %v4039_v29 = vrot.slane %v4038_v55, 2  ;;  %v9999_v37 = vunpack.c.l.b16 %v9010_v34 }
 0x2ec   :  { %v4481_v7 = vunpack.c.l.b16 %v4330_v30  ;;  %v4034_v60 = vrot.slane %v4033_v31, 1  ;;  %v4151_v52 = vrot.slane %v4150_v59, 2  ;;  %v4464_v2 = vunpack.c.l.b16 %v9065_v4  ;;  %v10002_v4 = vld [vmem:[#allocation130_spill] sm:$0xff] }
 0x2ed   :  { %v9073_v32 = vrot.slane %v9999_v37, 1  ;;  %v4478_v53 = vunpack.c.l.b16 %v4327_v6  ;;  %v4173_v11 = vmax.f32 %v4171_v42, %v4172_v23  ;;  %v4040_v62 = vmax.f32 %v4038_v55, %v4039_v29  ;;  %v10003_v37 = vld [vmem:[#allocation78_spill] sm:$0xff] }
 0x2ee   :  { %v4465_v21 = vunpack.c.l.b16 %v9069_v13  ;;  %v4035_v56 = vmax.f32 %v4033_v31, %v4034_v60  ;;  %v4152_v58 = vmax.f32 %v4150_v59, %v4151_v52  ;;  %v3702_v45 = vadd.f32 %v8921_v20, %v10000_v41  ;;  %v9096_v60 = vpop.f32.mrf.mxu0 }
 0x2ef   :  { %v4571_v34 = vrot.slane %v4478_v53, 4  ;;  %v4174_v5 = vrot.slane %v4173_v11, 1  ;;  %v4041_v15 = vrot.slane %v4040_v62, 1  ;;  %v3703_v9 = vadd.f32 %v8935_v8, %v10001_v0  ;;  %v10004_v53 = vld [vmem:[#allocation72_spill] sm:$0xff] }
 0x2f0   :  { %v9083_v54 = vrot.slane %v4481_v7, 3  ;;  %v4220_v42 = vadd.f32 %v8630_v35, %v4035_v56  ;;  %v4153_v55 = vrot.slane %v4152_v58, 1  ;;  %v3705_v30 = vadd.f32 %v8947_v38, %v10002_v4 }
 0x2f1   :  { %v9090_v31 = vsel %vm4498_vm0, %v4571_v34, %v9046_v39  ;;  %v4175_v20 = vmax.f32 %v4173_v11, %v4174_v5  ;;  %v4042_v59 = vmax.f32 %v4040_v62, %v4041_v15  ;;  %v3804_v6 = vadd.f32 %v8982_v27, %v3702_v45 }
 0x2f2   :  { %v4268_v23 = vmax.f32 %v4220_v42, 0.0  ;;  %v4154_v29 = vmax.f32 %v4152_v58, %v4153_v55  ;;  %v3807_v8 = vadd.f32 %v9015_v16, %v3705_v30  ;;  %v3706_v7 = vadd.f32 %v8960_v50, %v10003_v37  ;;  %v9108_v55 = vpop.f32.mrf.mxu0 }
 0x2f3   :  { %v4240_v52 = vadd.f32 %v8636_v14, %v4175_v20  ;;  %v4221_v38 = vadd.f32 %v8632_v24, %v4042_v59  ;;  %v3805_v39 = vadd.f32 %v8999_v28, %v3703_v9  ;;  %v3708_v11 = vadd.f32 %v8967_v25, %v10004_v53 }
 0x2f4   :  { %v4316_v62 = vpack.c.bf16 %v4268_v23, %v4268_v23  ;;  %v4237_v56 = vadd.f32 %v8636_v14, %v4154_v29  ;;  %v4050_v58 = vmax.f32 %v3804_v6, %v3807_v8  ;;  %v3808_v41 = vadd.f32 %v8956_v63, %v3706_v7 }
 0x2f5   :  { %v4288_v45 = vmax.f32 %v4240_v52, 0.0  ;;  %v4269_v34 = vmax.f32 %v4221_v38, 0.0  ;;  %v3810_v50 = vadd.f32 %v8982_v27, %v3708_v11  ;;  %v3709_v5 = vadd.f32 %v8974_v47, %v8639_v19 }
 0x2f6   :  { %v4467_v15 = vunpack.c.l.b16 %v4316_v62  ;;  %v4285_v0 = vmax.f32 %v4237_v56, 0.0  ;;  %v4051_v42 = vrot.slane %v4050_v58, 4  ;;  %v4057_v9 = vmax.f32 %v3805_v39, %v3808_v41 }
 0x2f7   :  { %v9110_v25 = vpack.c.bf16 %v4288_v45, %v4288_v45  ;;  %v4317_v4 = vpack.c.bf16 %v4269_v34, %v4269_v34  ;;  %v3711_v14 = vadd.f32 %v8992_v61, %v8642_v36  ;;  %v3712_v30 = vadd.f32 %v9021_v18, %v8645_v12  ;;  %v9122_v61 = vpop.f32.mrf.mxu0 }
 0x2f8   :  { %v4537_v20 = vrot.slane %v4467_v15, 7  ;;  %v4333_v59 = vpack.c.bf16 %v4285_v0, %v4285_v0  ;;  %v4052_v6 = vmax.f32 %v4050_v58, %v4051_v42  ;;  %v4058_v23 = vrot.slane %v4057_v9, 4 }
 0x2f9   :  { %v4468_v19 = vunpack.c.l.b16 %v4317_v4  ;;  %v3811_v47 = vadd.f32 %v8999_v28, %v3709_v5  ;;  %v3813_v29 = vadd.f32 %v9015_v16, %v3711_v14  ;;  %v3814_v8 = vadd.f32 %v8956_v63, %v3712_v30  ;;  %v9138_v0 = vpop.f32.mrf.mxu0 }
 0x2fa   :  { %v9120_v37 = vsel %vm4489_vm13, %v4537_v20, %v4464_v2  ;;  %v4484_v7 = vunpack.c.l.b16 %v4333_v59  ;;  %v4053_v52 = vrot.slane %v4052_v6, 2  ;;  %v4059_v36 = vmax.f32 %v4057_v9, %v4058_v23  ;;  %v10005_v20 = vld [vmem:[#allocation80_spill] sm:$0xff] }
 0x2fb   :  { %v4487_v12 = vunpack.c.l.b16 %v9110_v25  ;;  %v9125_v18 = vrot.slane %v4468_v19, 7  ;;  %v4071_v38 = vmax.f32 %v3810_v50, %v3813_v29  ;;  %v4078_v39 = vmax.f32 %v3811_v47, %v3814_v8  ;;  %v9149_v19 = vpop.f32.mrf.mxu0  ;;  %v10028_v25 = vld [vmem:[#allocation25_spill] sm:$0xff] }
 0x2fc   :  { %v9127_v53 = vrot.slane %v4484_v7, 2  ;;  %v4054_v11 = vmax.f32 %v4052_v6, %v4053_v52  ;;  %v4060_v62 = vrot.slane %v4059_v36, 2  ;;  %v3714_v56 = vadd.f32 %v9030_v48, %v8648_v43 }
 0x2fd   :  { %v4072_v2 = vrot.slane %v4071_v38, 4  ;;  %v4079_v58 = vrot.slane %v4078_v39, 4  ;;  %v3715_v41 = vadd.f32 %v9039_v10, %v8653_v49  ;;  %v3717_v45 = vadd.f32 %v9053_v22, %v8656_v33 }
 0x2fe   :  { %v4055_v34 = vrot.slane %v4054_v11, 1  ;;  %v4061_v5 = vmax.f32 %v4059_v36, %v4060_v62  ;;  %v3816_v50 = vadd.f32 %v8982_v27, %v3714_v56  ;;  %v3718_v15 = vadd.f32 %v9061_v17, %v8659_v51  ;;  %v10006_v36 = vld [vmem:[#allocation135_spill] sm:$0xff]  ;;  %v10007_v62 = vld [vmem:[#allocation81_spill] sm:$0xff] }
 0x2ff   :  { %v4073_v42 = vmax.f32 %v4071_v38, %v4072_v2  ;;  %v4080_v9 = vmax.f32 %v4078_v39, %v4079_v58  ;;  %v3817_v43 = vadd.f32 %v8999_v28, %v3715_v41  ;;  %v3819_v48 = vadd.f32 %v9015_v16, %v3717_v45 }
 0x300   :  { %v4056_v4 = vmax.f32 %v4054_v11, %v4055_v34  ;;  %v4062_v49 = vrot.slane %v4061_v5, 1  ;;  %v3820_v10 = vadd.f32 %v8956_v63, %v3718_v15  ;;  %v3720_v33 = vadd.f32 %v9067_v3, %v8663_v57  ;;  %v3468_v34 = vpop.f32.mrf.mxu0 }
 0x301   :  { %v4074_v22 = vrot.slane %v4073_v42, 2  ;;  %v4081_v14 = vrot.slane %v4080_v9, 2  ;;  %v4092_v30 = vmax.f32 %v3816_v50, %v3819_v48  ;;  %v3721_v51 = vadd.f32 %v9079_v26, %v10005_v20 }
 0x302   :  { %v4223_v17 = vadd.f32 %v8630_v35, %v4056_v4  ;;  %v4063_v59 = vmax.f32 %v4061_v5, %v4062_v49  ;;  %v4099_v6 = vmax.f32 %v3817_v43, %v3820_v10  ;;  %v3822_v23 = vadd.f32 %v8982_v27, %v3720_v33  ;;  %v3472_v20 = vpop.f32.mrf.mxu0 }
 0x303   :  { %v4075_v47 = vmax.f32 %v4073_v42, %v4074_v22  ;;  %v4082_v29 = vmax.f32 %v4080_v9, %v4081_v14  ;;  %v4093_v8 = vrot.slane %v4092_v30, 4  ;;  %v3823_v7 = vadd.f32 %v8999_v28, %v3721_v51 }
 0x304   :  { %v4271_v57 = vmax.f32 %v4223_v17, 0.0  ;;  %v4224_v3 = vadd.f32 %v8632_v24, %v4063_v59  ;;  %v4100_v52 = vrot.slane %v4099_v6, 4  ;;  %v3723_v26 = vadd.f32 %v9096_v60, %v10006_v36 }
 0x305   :  { %v4076_v38 = vrot.slane %v4075_v47, 1  ;;  %v4083_v39 = vrot.slane %v4082_v29, 1  ;;  %v4094_v11 = vmax.f32 %v4092_v30, %v4093_v8  ;;  %v3724_v56 = vadd.f32 %v9108_v55, %v10007_v62 }
 0x306   :  { %v4319_v2 = vpack.c.bf16 %v4271_v57, %v4271_v57  ;;  %v4272_v58 = vmax.f32 %v4224_v3, 0.0  ;;  %v4101_v41 = vmax.f32 %v4099_v6, %v4100_v52  ;;  %v3825_v45 = vadd.f32 %v9015_v16, %v3723_v26 }
 0x307   :  { %v4077_v5 = vmax.f32 %v4075_v47, %v4076_v38  ;;  %v4084_v50 = vmax.f32 %v4082_v29, %v4083_v39  ;;  %v4095_v15 = vrot.slane %v4094_v11, 2  ;;  %v3826_v42 = vadd.f32 %v8956_v63, %v3724_v56  ;;  %v10008_v38 = vld [vmem:[#allocation137_spill] sm:$0xff]  ;;  %v3474_v56 = vpop.f32.mrf.mxu0 }
 0x308   :  { %v4470_v9 = vunpack.c.l.b16 %v4319_v2  ;;  %v4320_v43 = vpack.c.bf16 %v4272_v58, %v4272_v58  ;;  %v4102_v60 = vrot.slane %v4101_v41, 2  ;;  %v4113_v48 = vmax.f32 %v3822_v23, %v3825_v45 }
 0x309   :  { %v4226_v4 = vadd.f32 %v8630_v35, %v4077_v5  ;;  %v4227_v49 = vadd.f32 %v8632_v24, %v4084_v50  ;;  %v4096_v55 = vmax.f32 %v4094_v11, %v4095_v15  ;;  %v4120_v10 = vmax.f32 %v3823_v7, %v3826_v42  ;;  %v10009_v11 = vld [vmem:[#allocation82_spill] sm:$0xff] }
 0x30a   :  { %v4539_v33 = vrot.slane %v4470_v9, 6  ;;  %v4471_v22 = vunpack.c.l.b16 %v4320_v43  ;;  %v4103_v14 = vmax.f32 %v4101_v41, %v4102_v60  ;;  %v4114_v30 = vrot.slane %v4113_v48, 4 }
 0x30b   :  { %v4274_v51 = vmax.f32 %v4226_v4, 0.0  ;;  %v4275_v17 = vmax.f32 %v4227_v49, 0.0  ;;  %v4097_v59 = vrot.slane %v4096_v55, 1  ;;  %v4121_v6 = vrot.slane %v4120_v10, 4  ;;  %v10011_v49 = vld [vmem:[#allocation83_spill] sm:$0xff] }
 0x30c   :  { %v4540_v47 = vsel %vm4492_vm14, %v4539_v33, %v9120_v37  ;;  %v9163_v29 = vrot.slane %v4471_v22, 6  ;;  %v4104_v23 = vrot.slane %v4103_v14, 1  ;;  %v4115_v8 = vmax.f32 %v4113_v48, %v4114_v30  ;;  %v10010_v48 = vld [vmem:[#allocation139_spill] sm:$0xff]  ;;  %v10012_v30 = vld [vmem:[#allocation140_spill] sm:$0xff] }
 0x30d   :  { %v4322_v57 = vpack.c.bf16 %v4274_v51, %v4274_v51  ;;  %v4323_v3 = vpack.c.bf16 %v4275_v17, %v4275_v17  ;;  %v4098_v52 = vmax.f32 %v4096_v55, %v4097_v59  ;;  %v4122_v7 = vmax.f32 %v4120_v10, %v4121_v6  ;;  %v3476_v10 = vpop.f32.mrf.mxu0 }
 0x30e   :  { %v4105_v36 = vmax.f32 %v4103_v14, %v4104_v23  ;;  %v4116_v26 = vrot.slane %v4115_v8, 2  ;;  %v3726_v39 = vadd.f32 %v9122_v61, %v10008_v38  ;;  %v3727_v62 = vadd.f32 %v9138_v0, %v10009_v11  ;;  %v10014_v11 = vld [vmem:[#allocation85_spill] sm:$0xff] }
 0x30f   :  { %v4473_v2 = vunpack.c.l.b16 %v4322_v57  ;;  %v4474_v58 = vunpack.c.l.b16 %v4323_v3  ;;  %v4229_v37 = vadd.f32 %v8630_v35, %v4098_v52  ;;  %v4123_v41 = vrot.slane %v4122_v7, 2 }
 0x310   :  { %v4230_v45 = vadd.f32 %v8632_v24, %v4105_v36  ;;  %v4117_v5 = vmax.f32 %v4115_v8, %v4116_v26  ;;  %v3828_v50 = vadd.f32 %v8982_v27, %v3726_v39  ;;  %v3829_v15 = vadd.f32 %v8999_v28, %v3727_v62  ;;  %v3478_v26 = vpop.f32.mrf.mxu0 }
 0x311   :  { %v4541_v42 = vrot.slane %v4473_v2, 5  ;;  %v9173_v9 = vrot.slane %v4474_v58, 5  ;;  %v4277_v61 = vmax.f32 %v4229_v37, 0.0  ;;  %v4124_v43 = vmax.f32 %v4122_v7, %v4123_v41 }
 0x312   :  { %v4278_v60 = vmax.f32 %v4230_v45, 0.0  ;;  %v4118_v0 = vrot.slane %v4117_v5, 1  ;;  %v3729_v4 = vadd.f32 %v9149_v19, %v10010_v48  ;;  %v3730_v55 = vadd.f32 %v3468_v34, %v10011_v49  ;;  %v10013_v19 = vld [vmem:[#allocation84_spill] sm:$0xff] }
 0x313   :  { %v4542_v33 = vsel %vm4495_vm15, %v4541_v42, %v4540_v47  ;;  %v4325_v22 = vpack.c.bf16 %v4277_v61, %v4277_v61  ;;  %v4125_v14 = vrot.slane %v4124_v43, 1  ;;  %v3732_v51 = vadd.f32 %v3472_v20, %v10012_v30 }
 0x314   :  { %v4326_v17 = vpack.c.bf16 %v4278_v60, %v4278_v60  ;;  %v4119_v59 = vmax.f32 %v4117_v5, %v4118_v0  ;;  %v3831_v6 = vadd.f32 %v9015_v16, %v3729_v4  ;;  %v3832_v23 = vadd.f32 %v8956_v63, %v3730_v55  ;;  %v10015_v5 = vld [vmem:[#allocation87_spill] sm:$0xff] }
 0x315   :  { %v4476_v8 = vunpack.c.l.b16 %v4325_v22  ;;  %v4126_v57 = vmax.f32 %v4124_v43, %v4125_v14  ;;  %v3834_v3 = vadd.f32 %v8982_v27, %v3732_v51  ;;  %v3733_v52 = vadd.f32 %v3474_v56, %v10013_v19  ;;  %v10017_v19 = vld [vmem:[#allocation86_spill] sm:$0xff] }
 0x316   :  { %v4477_v34 = vunpack.c.l.b16 %v4326_v17  ;;  %v4232_v7 = vadd.f32 %v8630_v35, %v4119_v59  ;;  %v4134_v47 = vmax.f32 %v3828_v50, %v3831_v6  ;;  %v4141_v36 = vmax.f32 %v3829_v15, %v3832_v23 }
 0x317   :  { %v4543_v38 = vrot.slane %v4476_v8, 4  ;;  %v4233_v20 = vadd.f32 %v8632_v24, %v4126_v57  ;;  %v3835_v39 = vadd.f32 %v8999_v28, %v3733_v52  ;;  %v3735_v62 = vadd.f32 %v3476_v10, %v10014_v11 }
 0x318   :  { %v9188_v2 = vrot.slane %v4477_v34, 4  ;;  %v4280_v58 = vmax.f32 %v4232_v7, 0.0  ;;  %v4135_v37 = vrot.slane %v4134_v47, 4  ;;  %v4142_v27 = vrot.slane %v4141_v36, 4  ;;  %v10019_v34 = vld [vmem:[#allocation88_spill] sm:$0xff] }
 0x319   :  { %v9191_v56 = vsel %vm4498_vm0, %v4543_v38, %v4542_v33  ;;  %v4281_v41 = vmax.f32 %v4233_v20, 0.0  ;;  %v3837_v45 = vadd.f32 %v9015_v16, %v3735_v62  ;;  %v3736_v50 = vadd.f32 %v3478_v26, %v10015_v5  ;;  %v10021_v20 = vld [vmem:[#allocation89_spill] sm:$0xff] }
 0x31a   :  { %v4328_v15 = vpack.c.bf16 %v4280_v58, %v4280_v58  ;;  %v4136_v42 = vmax.f32 %v4134_v47, %v4135_v37  ;;  %v4143_v61 = vmax.f32 %v4141_v36, %v4142_v27  ;;  %v4215_v28 = vadd.f32 %v8632_v24, %v9026_v46  ;;  %v10022_v5 = vld [vmem:[#allocation141_spill] sm:$0xff] }
 0x31b   :  { %v4329_v43 = vpack.c.bf16 %v4281_v41, %v4281_v41  ;;  %v4155_v60 = vmax.f32 %v3834_v3, %v3837_v45  ;;  %v3838_v0 = vadd.f32 %v8956_v63, %v3736_v50  ;;  %v10016_v48 = vmax.f32 %v8970_v1, 0.0 }
 0x31c   :  { %v4479_v49 = vunpack.c.l.b16 %v4328_v15  ;;  %v4137_v55 = vrot.slane %v4136_v42, 2  ;;  %v4144_v10 = vrot.slane %v4143_v61, 2  ;;  %v4263_v16 = vmax.f32 %v4215_v28, 0.0 }
 0x31d   :  { %v4308_v4 = vpack.c.bf16 %v10016_v48, %v10016_v48  ;;  %v4480_v33 = vunpack.c.l.b16 %v4329_v43  ;;  %v4156_v22 = vrot.slane %v4155_v60, 4  ;;  %v4162_v14 = vmax.f32 %v3835_v39, %v3838_v0 }
 0x31e   :  { %v4545_v51 = vrot.slane %v4479_v49, 3  ;;  %v4138_v17 = vmax.f32 %v4136_v42, %v4137_v55  ;;  %v4145_v59 = vmax.f32 %v4143_v61, %v4144_v10  ;;  %v4311_v46 = vpack.c.bf16 %v4263_v16, %v4263_v16 }
 0x31f   :  { %v4459_v30 = vunpack.c.l.b16 %v4308_v4  ;;  %v4157_v6 = vmax.f32 %v4155_v60, %v4156_v22  ;;  %v4163_v23 = vrot.slane %v4162_v14, 4  ;;  %v10018_v52 = vunpack.c.l.b16 %v10017_v19  ;;  %v10023_v22 = vld [vmem:[#allocation90_spill] sm:$0xff] }
 0x320   :  { %v4139_v63 = vrot.slane %v4138_v17, 1  ;;  %v4146_v1 = vrot.slane %v4145_v59, 1  ;;  %v4462_v8 = vunpack.c.l.b16 %v4311_v46  ;;  %v10020_v47 = vunpack.c.l.b16 %v8912_v44 }
 0x321   :  { %v4158_v57 = vrot.slane %v4157_v6, 2  ;;  %v4164_v3 = vmax.f32 %v4162_v14, %v4163_v23  ;;  %v4510_v7 = vsel %vm4489_vm13, %v10019_v34, %v10018_v52  ;;  %v4519_v11 = vrot.slane %v4459_v30, 2  ;;  %v10024_v14 = vld [vmem:[#allocation92_spill] sm:$0xff] }
 0x322   :  { %v4517_v36 = vrot.slane %v10020_v47, 3  ;;  %v4140_v26 = vmax.f32 %v4138_v17, %v4139_v63  ;;  %v4147_v38 = vmax.f32 %v4145_v59, %v4146_v1  ;;  %v4512_v39 = vsel %vm4492_vm14, %v10021_v20, %v4510_v7  ;;  %v10029_v7 = vld [vmem:[#allocation142_spill] sm:$0xff] }
 0x323   :  { %v4159_v62 = vmax.f32 %v4157_v6, %v4158_v57  ;;  %v4165_v58 = vrot.slane %v4164_v3, 2  ;;  %v4514_v37 = vsel %vm4495_vm15, %v8871_v40, %v4512_v39  ;;  %v4521_v27 = vrot.slane %v4462_v8, 1  ;;  %v10026_v57 = vld [vmem:[#allocation143_spill] sm:$0xff] }
 0x324   :  { %v4235_v41 = vadd.f32 %v8630_v35, %v4140_v26  ;;  %v4236_v45 = vadd.f32 %v8632_v24, %v4147_v38  ;;  %v4516_v44 = vsel %vm4498_vm0, %v10022_v5, %v4514_v37  ;;  %v4552_v50 = vsel %vm4489_vm13, %v9125_v18, %v4465_v21  ;;  %v5595_v37 = vld [vmem:[#allocation2 + $0xb8] sm:$0xff]  }
 0x325   :  { %v4160_v15 = vrot.slane %v4159_v62, 1  ;;  %v4166_v42 = vmax.f32 %v4164_v3, %v4165_v58  ;;  %v4518_v61 = vsel %vm4501_vm1, %v4517_v36, %v4516_v44  ;;  %v4554_v40 = vsel %vm4492_vm14, %v9163_v29, %v4552_v50  ;;  %v5599_v5 = vld [vmem:[#allocation2 + $0x98] sm:$0xff]   ;;  %v5600_v44 = vld [vmem:[#allocation2 + $0x90] sm:$0xff]   ;;  %v5601_v50 = vld [vmem:[#allocation2 + $0x88] sm:$0xff]  }
 0x326   :  { %v4283_v28 = vmax.f32 %v4235_v41, 0.0  ;;  %v4284_v43 = vmax.f32 %v4236_v45, 0.0  ;;  %v4520_v60 = vsel %vm4504_vm2, %v4519_v11, %v4518_v61  ;;  %v4556_v0 = vsel %vm4495_vm15, %v9173_v9, %v4554_v40  ;;  %v5597_v41 = vld [vmem:[#allocation2 + $0xa8] sm:$0xff]   ;;  %v5598_v45 = vld [vmem:[#allocation2 + $0xa0] sm:$0xff]  }
 0x327   :  { %v4161_v48 = vmax.f32 %v4159_v62, %v4160_v15  ;;  %v4167_v4 = vrot.slane %v4166_v42, 1  ;;  %v4522_v13 = vsel %vm4507_vm3, %v4521_v27, %v4520_v60  ;;  %v4558_v21 = vsel %vm4498_vm0, %v9188_v2, %v4556_v0  ;;  %v10025_v2 = vld [vmem:[#allocation11_spill] sm:$0xff]  ;;  %v5596_v27 = vld [vmem:[#allocation2 + $0xb0] sm:$0xff]   ;;  %v5602_v15 = vld [vmem:[#allocation2 + $0x80] sm:$0xff]  }
 0x328   :  { %v4331_v18 = vpack.c.bf16 %v4283_v28, %v4283_v28  ;;  %v4332_v49 = vpack.c.bf16 %v4284_v43, %v4284_v43  ;;  %v4559_v55 = vrot.slane %v4480_v33, 3  ;;  %v5753_v16 = vmov 0.0   ;;  %v5164_v60 = vld [vmem:[%s9269_s4] ss:$0 sm:$0xff] }
 0x329   :  { %v4238_v10 = vadd.f32 %v8630_v35, %v4161_v48  ;;  %v4168_v29 = vmax.f32 %v4166_v42, %v4167_v4  ;;  %5490 = vmatprep.subr.bf16.mxu1 %v5753_v16  ;;  %v4502_v30 = vsel %vm4501_vm1, %v10024_v14, %v10023_v22  ;;  %v4546_v9 = vsel %vm4501_vm1, %v4545_v51, %v9191_v56  ;;  %v10027_v56 = vld [vmem:[#allocation91_spill] sm:$0xff] }
 0x32a   :  { %v4482_v17 = vunpack.c.l.b16 %v4331_v18  ;;  %v4483_v59 = vunpack.c.l.b16 %v4332_v49  ;;  %v4560_v46 = vsel %vm4501_vm1, %v4559_v55, %v4558_v21  ;;  %v4505_v6 = vsel %vm4504_vm2, %v10025_v2, %v4502_v30 }
 0x32b   :  { %v4577_v35 = vrot.slane %v4487_v12, 1  ;;  %v4286_v33 = vmax.f32 %v4238_v10, 0.0  ;;  %v4239_v23 = vadd.f32 %v8632_v24, %v4168_v29  ;;  %v4508_v63 = vsel %vm4507_vm3, %v9073_v32, %v4505_v6 }
 0x32c   :  { %v4547_v1 = vrot.slane %v4482_v17, 2  ;;  %v4561_v8 = vrot.slane %v4483_v59, 2  ;;  %v4532_v51 = vsel %vm4501_vm1, %v10027_v56, %v10026_v57  ;;  %v4574_v3 = vsel %vm4501_vm1, %v9083_v54, %v9090_v31 }
 0x32d   :  { %v4334_v19 = vpack.c.bf16 %v4286_v33, %v4286_v33  ;;  %v4287_v52 = vmax.f32 %v4239_v23, 0.0  ;;  %v4534_v12 = vsel %vm4504_vm2, %v10028_v25, %v4532_v51  ;;  %v4576_v24 = vsel %vm4504_vm2, %v9127_v53, %v4574_v3 }
 0x32e   :  { %v4562_v32 = vsel %vm4504_vm2, %v4561_v8, %v4560_v46  ;;  %v4548_v34 = vsel %vm4504_vm2, %v4547_v1, %v4546_v9  ;;  %v4536_v47 = vsel %vm4507_vm3, %v10029_v7, %v4534_v12  ;;  %v4578_v36 = vsel %vm4507_vm3, %v4577_v35, %v4576_v24 }
 0x32f   :  { %v4485_v26 = vunpack.c.l.b16 %v4334_v19  ;;  %v4335_v38 = vpack.c.bf16 %v4287_v52, %v4287_v52  ;;  %v4581_v54 = vpack.c.b16 %v4578_v36, %v4536_v47 }
 0x331   :  { %v4549_v31 = vrot.slane %v4485_v26, 1  ;;  %v4486_v20 = vunpack.c.l.b16 %v4335_v38 }
 0x333   :  { %v4563_v39 = vrot.slane %v4486_v20, 1  ;;  %v4550_v11 = vsel %vm4507_vm3, %v4549_v31, %v4548_v34 }
 0x334   :  { %v4579_v62 = vpack.c.b16 %v4550_v11, %v4508_v63 }
 0x335   :  { %v4564_v53 = vsel %vm4507_vm3, %v4563_v39, %v4562_v32 }
 0x336   :  { %v4580_v58 = vpack.c.b16 %v4564_v53, %v4522_v13 }
 0x338   :  { %4761 = vmatprep.mubr.bf16.mxu1 %v4580_v58 }
 0x339   :  { %4762 = vmatmul.mubr.bf16.vlgmr.msra.gmra.mxu1 %v4579_v62 }
 0x33a   :  { %5491 = vmatpush3.bf16.msra.mxu1 %v5595_v37  ;;  %5506 = vmatprep.mubr.msk.bf16.mxu1 %vm5754_vm4, %v5753_v16 }
 0x33b   :  { %5492 = vmatprep.subr.bf16.mxu1 %v5753_v16 }
 0x33e   :  { %5493 = vmatpush3.bf16.msra.mxu1 %v5596_v27 }
 0x33f   :  { %5494 = vmatprep.subr.bf16.mxu1 %v5753_v16 }
 0x342   :  { %5495 = vmatpush3.bf16.msra.mxu1 %v5597_v41 }
 0x343   :  { %5496 = vmatprep.subr.bf16.mxu1 %v5753_v16 }
 0x346   :  { %5497 = vmatpush3.bf16.msra.mxu1 %v5598_v45 }
 0x347   :  { %5498 = vmatprep.subr.bf16.mxu1 %v5753_v16 }
 0x34a   :  { %5499 = vmatpush3.bf16.msra.mxu1 %v5599_v5 }
 0x34b   :  { %5500 = vmatprep.subr.bf16.mxu1 %v5753_v16 }
 0x34e   :  { %5501 = vmatpush3.bf16.msra.mxu1 %v5600_v44 }
 0x34f   :  { %5502 = vmatprep.subr.bf16.mxu1 %v5753_v16 }
 0x352   :  { %5503 = vmatpush3.bf16.msra.mxu1 %v5601_v50 }
 0x353   :  { %5504 = vmatprep.subr.bf16.mxu1 %v5753_v16 }
 0x356   :  { %5505 = vmatpush3.bf16.msra.mxu1 %v5602_v15 }
 0x359   :  { %5507 = vmatmul.mubr.bf16.vlgmr.msra.gmra.mxu1 %v4581_v54 }
 0x3f9   :  { %v5295_v42 = vpop.f32.mrf.mxu1 }
 0x3fb   :  { %v5296_v61 = vpop.f32.mrf.mxu1 }
 0x3fc   :  { %v5297_v28 = vadd.f32 %v5296_v61, %v5295_v42 }
 0x3fd   :  { %v5298_v40 = vpop.f32.mrf.mxu1 }
 0x3fe   :  { %v4764_v48 = vadd.f32 %v5297_v28, %v5164_v60 }
 0x3ff   :  { %v5299_v43 = vpop.f32.mrf.mxu1 }
 0x400   :  { %v5300_v0 = vadd.f32 %v5299_v43, %v5298_v40 }
 0x402   :  { %v4767_v18 = vadd.f32 %v5300_v0, %v5164_v60 }
 0x419   :  { %v4804_v4 = vpop.f32.mrf.mxu1 }
 0x41a   :  { %v4805_v13 = vadd.f32 %v4804_v4, %v4764_v48 }
 0x41b   :  { %v5508_v21 = vpop.f32.mrf.mxu1 }
 0x41c   :  { %4811 = vst [vmem:[#allocation5] sm:$0xff] %v4805_v13 }
 0x41d   :  { %v4807_v49 = vpop.f32.mrf.mxu1 }
 0x41e   :  { %v4808_v55 = vadd.f32 %v4807_v49, %v4767_v18 }
 0x41f   :  { %v5509_v10 = vpop.f32.mrf.mxu1 }
 0x420   :  { %4812 = vst [vmem:[#allocation5 + $0x8] sm:$0xff] %v4808_v55 }
 0x421   :  { %5736 = shalt.err (!%p5733_p9)
}
 0x422   :  { %s5756_s4 = smov 128   ;;  %s5757_s23 = smov 8  }
 0x423   :  { %4824 = dma.vmem_to_hbm [thread:$0]  %s4819_s0, 256, %s9271_s6, [#allocation4], %s5756_s4, %s5756_s4, %s5757_s23  }
 0x424   :  { %5747 = dma.done.wait [#allocation4], 256  }
 0x425   :  { %5748 = vsyncadd [#allocation4], 4294967040 }
 0x426   :  { %4828 = vsyncpa [#allocation3], 1 }
 0x427   :  { %4829 = vsyncpa [#allocation4], 1 }

</bundles_post_ra>
